<compile_context>
chip_gen: v6e
topology: v6e:2x2x1
jax: 0.10.0
libtpu: 0.0.40
codegen_flags: <defaults>
</compile_context>

<pallas_src>
import jax
import jax.numpy as jnp
from jax.experimental import pallas as pl
from jax.experimental.pallas import tpu as pltpu


# ---------------------------------------------------------------------------
# Pallas kernel: one batch tile (BT samples) per grid step.
# ---------------------------------------------------------------------------
def disc_kernel(p_ref, cw_ref, cb_ref, lw_ref, lb_ref, out_ref):
    # p_ref  : (9, 196, BT) VMEM  im2col patches; k=ki*3+kj major, q=oh*14+ow sublane,
    #                             batch in lanes (lane-dense).
    # cw_ref : (8, 9)       SMEM  conv weight scalars (out_ch, k)
    # cb_ref : (8,)         SMEM  conv bias scalars
    # lw_ref : (8, 196)     VMEM  linear weight in (channel, spatial) = PyTorch flatten order
    # lb_ref : (1,)         SMEM  linear bias
    # out_ref: (1, BT)      VMEM  lane-dense sigmoid output slab
    lw = lw_ref[...]                                    # (8, 196): tiny, stays in vregs
    bt = p_ref.shape[-1]
    logit = jnp.zeros((1, bt), dtype=jnp.float32)

    for c in range(8):                                  # 8 output channels
        # Direct conv for channel c: bias + sum_k w[c,k] * patch_k, lane-dense VPU MACs.
        conv_c = cb_ref[c] + cw_ref[c, 0] * p_ref[0]    # (196, BT)
        for k in range(1, 9):
            conv_c = conv_c + cw_ref[c, k] * p_ref[k]
        # LeakyReLU(0.2): max(x, 0.2*x)
        act_c = jnp.maximum(conv_c, 0.2 * conv_c)       # (196, BT)
        # Channel-c contribution to the Linear(1568->1): (1,196)@(196,BT) on the MXU.
        logit = logit + jnp.dot(lw[c:c + 1, :], act_c,
                                preferred_element_type=jnp.float32)

    logit = logit + lb_ref[0]
    out_ref[...] = 1.0 / (1.0 + jnp.exp(-logit))        # sigmoid (exp -> EUP)


# ---------------------------------------------------------------------------
# Wrapper: im2col glue (lane-dense layout), batch tiling, pallas_call.
# ---------------------------------------------------------------------------
def discriminator_forward(x, conv_w, conv_b, lin_w, lin_b, *, block_b=256):
    """x: (B,1,29,29) f32. conv_w: (8,1,3,3), conv_b: (8,), lin_w: (1,1568), lin_b: (1,).
    Returns (B, 1) float32."""
    assert block_b % 128 == 0, "batch tile must be a multiple of 128 (lane tiling)"
    B = x.shape[0]
    OH = OW = 14                       # (29 - 3) // 2 + 1
    Q = OH * OW                        # 196 conv output positions

    # --- glue: im2col into lane-dense (k, q, batch) layout ---
    # TODO(synk): fold this im2col/transpose into the kernel (strided slices from a
    # (29, 29, B) VMEM block) to remove the extra HBM round trip of the patch tensor.
    x2 = x[:, 0].astype(jnp.float32)                                 # (B, 29, 29)
    taps = []
    for ki in range(3):
        for kj in range(3):
            taps.append(x2[:, ki:ki + 27:2, kj:kj + 27:2].reshape(B, Q))
    patches = jnp.transpose(jnp.stack(taps, axis=0), (0, 2, 1))      # (9, 196, B)

    # --- batch tiling: one grid step per `bt` samples ---
    if B <= block_b:
        bt, b_pad, n_tiles = B, B, 1          # single tile: block == full dims (any B legal)
    else:
        bt = block_b
        n_tiles = pl.cdiv(B, bt)
        b_pad = n_tiles * bt
        patches = jnp.pad(patches, ((0, 0), (0, 0), (0, b_pad - B)))

    # --- glue: parameter reshapes ---
    cw = conv_w.reshape(8, 9).astype(jnp.float32)                    # (8, 9)   -> SMEM scalars
    cb = conv_b.reshape(8).astype(jnp.float32)                       # (8,)     -> SMEM scalars
    # PyTorch Flatten order is (C, H, W): lin_w[0, c*196 + q] -> lw[c, q]; no transpose needed.
    lw = lin_w.reshape(8, Q).astype(jnp.float32)                     # (8, 196) -> VMEM resident
    lb = lin_b.reshape(1).astype(jnp.float32)                        # (1,)     -> SMEM scalar

    out = pl.pallas_call(
        disc_kernel,
        out_shape=jax.ShapeDtypeStruct((1, b_pad), jnp.float32),     # lane-dense output slab
        grid_spec=pltpu.PrefetchScalarGridSpec(
            num_scalar_prefetch=0,
            grid=(n_tiles,),
            in_specs=[
                pl.BlockSpec((9, Q, bt), lambda i: (0, 0, i)),
                pl.BlockSpec(memory_space=pltpu.MemorySpace.SMEM),
                pl.BlockSpec(memory_space=pltpu.MemorySpace.SMEM),
                pl.BlockSpec((8, Q), lambda i: (0, 0)),              # constant block: no re-DMA
                pl.BlockSpec(memory_space=pltpu.MemorySpace.SMEM),
            ],
            out_specs=pl.BlockSpec((1, bt), lambda i: (0, i)),
        ),
        compiler_params=pltpu.CompilerParams(
            dimension_semantics=("parallel",),        # independent batch tiles (v7x megacore)
            vmem_limit_bytes=32 * 1024 * 1024),
    )(patches, cw, cb, lw, lb)

    return out[0, :B].reshape(B, 1)


# ---------------------------------------------------------------------------
# Pure-JAX reference (for correctness check).
# ---------------------------------------------------------------------------
def reference_forward(x, conv_w, conv_b, lin_w, lin_b):
    conv = jax.lax.conv_general_dilated(
        x, conv_w, window_strides=(2, 2), padding="VALID",
        dimension_numbers=("NCHW", "OIHW", "NCHW"))
    conv = conv + conv_b[None, :, None, None]
    act = jnp.where(conv >= 0, conv, 0.2 * conv)
    flat = act.reshape(x.shape[0], -1)                               # (B, 1568), (C,H,W) order
    logit = flat @ lin_w.T + lin_b
    return jax.nn.sigmoid(logit)


if __name__ == "__main__":
    key = jax.random.PRNGKey(0)
    k_x, k_cw, k_cb, k_lw, k_lb, k_x2 = jax.random.split(key, 6)

    # Deterministic synthetic parameters (shapes from the module's __init__).
    conv_w = 0.1 * jax.random.normal(k_cw, (8, 1, 3, 3), dtype=jnp.float32)
    conv_b = 0.1 * jax.random.normal(k_cb, (8,), dtype=jnp.float32)
    lin_w = 0.05 * jax.random.normal(k_lw, (1, 8 * 14 * 14), dtype=jnp.float32)
    lin_b = 0.05 * jax.random.normal(k_lb, (1,), dtype=jnp.float32)

    # Input spatial size 29 so the conv output is 8 x 14 x 14 = 1568, matching the Linear.
    # Small batch: exercises the single-tile path.
    x_small = jax.random.normal(k_x, (2, 1, 29, 29), dtype=jnp.float32)
    out_small = jax.block_until_ready(
        discriminator_forward(x_small, conv_w, conv_b, lin_w, lin_b))
    ref_small = reference_forward(x_small, conv_w, conv_b, lin_w, lin_b)
    assert out_small.shape == (2, 1)
    assert jnp.allclose(out_small, ref_small, atol=2e-5, rtol=2e-5), (out_small, ref_small)

    # Larger batch: exercises the batch-tiled path (2 grid steps + lane padding).
    x_big = jax.random.normal(k_x2, (160, 1, 29, 29), dtype=jnp.float32)
    out_big = jax.block_until_ready(
        discriminator_forward(x_big, conv_w, conv_b, lin_w, lin_b, block_b=128))
    ref_big = reference_forward(x_big, conv_w, conv_b, lin_w, lin_b)
    assert out_big.shape == (160, 1)
    assert jnp.allclose(out_big, ref_big, atol=2e-5, rtol=2e-5), (
        float(jnp.max(jnp.abs(out_big - ref_big))))

    print("KERNEL_OK")
</pallas_src>

<mosaic_0001>
module attributes {stable_mosaic.version = 11 : i64} {
  func.func @disc_kernel(%arg0: i32, %arg1: memref<9x196x2xf32, #tpu.memory_space<vmem>>, %arg2: memref<8x9xf32, #tpu.memory_space<smem>>, %arg3: memref<8xf32, #tpu.memory_space<smem>>, %arg4: memref<8x196xf32, #tpu.memory_space<vmem>>, %arg5: memref<1xf32, #tpu.memory_space<smem>>, %arg6: memref<1x2xf32, #tpu.memory_space<vmem>>) attributes {dimension_semantics = [#tpu.dimension_semantics<parallel>], iteration_bounds = array<i64: 1>, scalar_prefetch = 0 : i64, scratch_operands = 0 : i64, tpu.core_type = #tpu.core_type<tc>, window_params = [{transform_indices = @transform_0, window_bounds = array<i64: 9, 196, 2>}, {transform_indices = @transform_1, window_bounds = array<i64: 8, 9>}, {transform_indices = @transform_2, window_bounds = array<i64: 8>}, {pipeline_mode = #tpu.pipeline_mode<synchronous>, transform_indices = @transform_3, window_bounds = array<i64: 8, 196>}, {transform_indices = @transform_4, window_bounds = array<i64: 1>}, {transform_indices = @transform_5, window_bounds = array<i64: 1, 2>}]} {
    %c0 = arith.constant 0 : index
    %c0_0 = arith.constant 0 : index
    %0 = vector.load %arg4[%c0, %c0_0] : memref<8x196xf32, #tpu.memory_space<vmem>>, vector<8x196xf32>
    %cst = arith.constant 0.000000e+00 : f32
    %1 = vector.broadcast %cst : f32 to vector<1x2xf32>
    %c0_1 = arith.constant 0 : index
    %2 = memref.load %arg3[%c0_1] : memref<8xf32, #tpu.memory_space<smem>>
    %c0_2 = arith.constant 0 : index
    %c0_3 = arith.constant 0 : index
    %3 = memref.load %arg2[%c0_2, %c0_3] : memref<8x9xf32, #tpu.memory_space<smem>>
    %c0_4 = arith.constant 0 : index
    %c0_5 = arith.constant 0 : index
    %c0_6 = arith.constant 0 : index
    %4 = vector.load %arg1[%c0_4, %c0_5, %c0_6] : memref<9x196x2xf32, #tpu.memory_space<vmem>>, vector<1x196x2xf32>
    %5 = vector.shape_cast %4 : vector<1x196x2xf32> to vector<196x2xf32>
    %6 = vector.broadcast %3 : f32 to vector<196x2xf32>
    %7 = arith.mulf %6, %5 : vector<196x2xf32>
    %8 = vector.broadcast %2 : f32 to vector<196x2xf32>
    %9 = arith.addf %8, %7 : vector<196x2xf32>
    %c0_7 = arith.constant 0 : index
    %c1 = arith.constant 1 : index
    %10 = memref.load %arg2[%c0_7, %c1] : memref<8x9xf32, #tpu.memory_space<smem>>
    %c1_8 = arith.constant 1 : index
    %c0_9 = arith.constant 0 : index
    %c0_10 = arith.constant 0 : index
    %11 = vector.load %arg1[%c1_8, %c0_9, %c0_10] : memref<9x196x2xf32, #tpu.memory_space<vmem>>, vector<1x196x2xf32>
    %12 = vector.shape_cast %11 : vector<1x196x2xf32> to vector<196x2xf32>
    %13 = vector.broadcast %10 : f32 to vector<196x2xf32>
    %14 = arith.mulf %13, %12 : vector<196x2xf32>
    %15 = arith.addf %9, %14 : vector<196x2xf32>
    %c0_11 = arith.constant 0 : index
    %c2 = arith.constant 2 : index
    %16 = memref.load %arg2[%c0_11, %c2] : memref<8x9xf32, #tpu.memory_space<smem>>
    %c2_12 = arith.constant 2 : index
    %c0_13 = arith.constant 0 : index
    %c0_14 = arith.constant 0 : index
    %17 = vector.load %arg1[%c2_12, %c0_13, %c0_14] : memref<9x196x2xf32, #tpu.memory_space<vmem>>, vector<1x196x2xf32>
    %18 = vector.shape_cast %17 : vector<1x196x2xf32> to vector<196x2xf32>
    %19 = vector.broadcast %16 : f32 to vector<196x2xf32>
    %20 = arith.mulf %19, %18 : vector<196x2xf32>
    %21 = arith.addf %15, %20 : vector<196x2xf32>
    %c0_15 = arith.constant 0 : index
    %c3 = arith.constant 3 : index
    %22 = memref.load %arg2[%c0_15, %c3] : memref<8x9xf32, #tpu.memory_space<smem>>
    %c3_16 = arith.constant 3 : index
    %c0_17 = arith.constant 0 : index
    %c0_18 = arith.constant 0 : index
    %23 = vector.load %arg1[%c3_16, %c0_17, %c0_18] : memref<9x196x2xf32, #tpu.memory_space<vmem>>, vector<1x196x2xf32>
    %24 = vector.shape_cast %23 : vector<1x196x2xf32> to vector<196x2xf32>
    %25 = vector.broadcast %22 : f32 to vector<196x2xf32>
    %26 = arith.mulf %25, %24 : vector<196x2xf32>
    %27 = arith.addf %21, %26 : vector<196x2xf32>
    %c0_19 = arith.constant 0 : index
    %c4 = arith.constant 4 : index
    %28 = memref.load %arg2[%c0_19, %c4] : memref<8x9xf32, #tpu.memory_space<smem>>
    %c4_20 = arith.constant 4 : index
    %c0_21 = arith.constant 0 : index
    %c0_22 = arith.constant 0 : index
    %29 = vector.load %arg1[%c4_20, %c0_21, %c0_22] : memref<9x196x2xf32, #tpu.memory_space<vmem>>, vector<1x196x2xf32>
    %30 = vector.shape_cast %29 : vector<1x196x2xf32> to vector<196x2xf32>
    %31 = vector.broadcast %28 : f32 to vector<196x2xf32>
    %32 = arith.mulf %31, %30 : vector<196x2xf32>
    %33 = arith.addf %27, %32 : vector<196x2xf32>
    %c0_23 = arith.constant 0 : index
    %c5 = arith.constant 5 : index
    %34 = memref.load %arg2[%c0_23, %c5] : memref<8x9xf32, #tpu.memory_space<smem>>
    %c5_24 = arith.constant 5 : index
    %c0_25 = arith.constant 0 : index
    %c0_26 = arith.constant 0 : index
    %35 = vector.load %arg1[%c5_24, %c0_25, %c0_26] : memref<9x196x2xf32, #tpu.memory_space<vmem>>, vector<1x196x2xf32>
    %36 = vector.shape_cast %35 : vector<1x196x2xf32> to vector<196x2xf32>
    %37 = vector.broadcast %34 : f32 to vector<196x2xf32>
    %38 = arith.mulf %37, %36 : vector<196x2xf32>
    %39 = arith.addf %33, %38 : vector<196x2xf32>
    %c0_27 = arith.constant 0 : index
    %c6 = arith.constant 6 : index
    %40 = memref.load %arg2[%c0_27, %c6] : memref<8x9xf32, #tpu.memory_space<smem>>
    %c6_28 = arith.constant 6 : index
    %c0_29 = arith.constant 0 : index
    %c0_30 = arith.constant 0 : index
    %41 = vector.load %arg1[%c6_28, %c0_29, %c0_30] : memref<9x196x2xf32, #tpu.memory_space<vmem>>, vector<1x196x2xf32>
    %42 = vector.shape_cast %41 : vector<1x196x2xf32> to vector<196x2xf32>
    %43 = vector.broadcast %40 : f32 to vector<196x2xf32>
    %44 = arith.mulf %43, %42 : vector<196x2xf32>
    %45 = arith.addf %39, %44 : vector<196x2xf32>
    %c0_31 = arith.constant 0 : index
    %c7 = arith.constant 7 : index
    %46 = memref.load %arg2[%c0_31, %c7] : memref<8x9xf32, #tpu.memory_space<smem>>
    %c7_32 = arith.constant 7 : index
    %c0_33 = arith.constant 0 : index
    %c0_34 = arith.constant 0 : index
    %47 = vector.load %arg1[%c7_32, %c0_33, %c0_34] : memref<9x196x2xf32, #tpu.memory_space<vmem>>, vector<1x196x2xf32>
    %48 = vector.shape_cast %47 : vector<1x196x2xf32> to vector<196x2xf32>
    %49 = vector.broadcast %46 : f32 to vector<196x2xf32>
    %50 = arith.mulf %49, %48 : vector<196x2xf32>
    %51 = arith.addf %45, %50 : vector<196x2xf32>
    %c0_35 = arith.constant 0 : index
    %c8 = arith.constant 8 : index
    %52 = memref.load %arg2[%c0_35, %c8] : memref<8x9xf32, #tpu.memory_space<smem>>
    %c8_36 = arith.constant 8 : index
    %c0_37 = arith.constant 0 : index
    %c0_38 = arith.constant 0 : index
    %53 = vector.load %arg1[%c8_36, %c0_37, %c0_38] : memref<9x196x2xf32, #tpu.memory_space<vmem>>, vector<1x196x2xf32>
    %54 = vector.shape_cast %53 : vector<1x196x2xf32> to vector<196x2xf32>
    %55 = vector.broadcast %52 : f32 to vector<196x2xf32>
    %56 = arith.mulf %55, %54 : vector<196x2xf32>
    %57 = arith.addf %51, %56 : vector<196x2xf32>
    %cst_39 = arith.constant 2.000000e-01 : f32
    %58 = vector.broadcast %cst_39 : f32 to vector<196x2xf32>
    %59 = arith.mulf %58, %57 : vector<196x2xf32>
    %60 = arith.maximumf %57, %59 : vector<196x2xf32>
    %61 = vector.extract_strided_slice %0 {offsets = [0, 0], sizes = [1, 196], strides = [1, 1]} : vector<8x196xf32> to vector<1x196xf32>
    %cst_40 = arith.constant dense<0.000000e+00> : vector<1x2xf32>
    %62 = tpu.matmul %61, %60, %cst_40 {dimension_numbers = #tpu.dot_dimension_numbers<[1], [0], [0], [1], [0, 0, 1, 1], [], []>} : vector<1x196xf32>, vector<196x2xf32>, vector<1x2xf32> -> vector<1x2xf32>
    %63 = arith.addf %1, %62 : vector<1x2xf32>
    %c1_41 = arith.constant 1 : index
    %64 = memref.load %arg3[%c1_41] : memref<8xf32, #tpu.memory_space<smem>>
    %c1_42 = arith.constant 1 : index
    %c0_43 = arith.constant 0 : index
    %65 = memref.load %arg2[%c1_42, %c0_43] : memref<8x9xf32, #tpu.memory_space<smem>>
    %c0_44 = arith.constant 0 : index
    %c0_45 = arith.constant 0 : index
    %c0_46 = arith.constant 0 : index
    %66 = vector.load %arg1[%c0_44, %c0_45, %c0_46] : memref<9x196x2xf32, #tpu.memory_space<vmem>>, vector<1x196x2xf32>
    %67 = vector.shape_cast %66 : vector<1x196x2xf32> to vector<196x2xf32>
    %68 = vector.broadcast %65 : f32 to vector<196x2xf32>
    %69 = arith.mulf %68, %67 : vector<196x2xf32>
    %70 = vector.broadcast %64 : f32 to vector<196x2xf32>
    %71 = arith.addf %70, %69 : vector<196x2xf32>
    %c1_47 = arith.constant 1 : index
    %c1_48 = arith.constant 1 : index
    %72 = memref.load %arg2[%c1_47, %c1_48] : memref<8x9xf32, #tpu.memory_space<smem>>
    %c1_49 = arith.constant 1 : index
    %c0_50 = arith.constant 0 : index
    %c0_51 = arith.constant 0 : index
    %73 = vector.load %arg1[%c1_49, %c0_50, %c0_51] : memref<9x196x2xf32, #tpu.memory_space<vmem>>, vector<1x196x2xf32>
    %74 = vector.shape_cast %73 : vector<1x196x2xf32> to vector<196x2xf32>
    %75 = vector.broadcast %72 : f32 to vector<196x2xf32>
    %76 = arith.mulf %75, %74 : vector<196x2xf32>
    %77 = arith.addf %71, %76 : vector<196x2xf32>
    %c1_52 = arith.constant 1 : index
    %c2_53 = arith.constant 2 : index
    %78 = memref.load %arg2[%c1_52, %c2_53] : memref<8x9xf32, #tpu.memory_space<smem>>
    %c2_54 = arith.constant 2 : index
    %c0_55 = arith.constant 0 : index
    %c0_56 = arith.constant 0 : index
    %79 = vector.load %arg1[%c2_54, %c0_55, %c0_56] : memref<9x196x2xf32, #tpu.memory_space<vmem>>, vector<1x196x2xf32>
    %80 = vector.shape_cast %79 : vector<1x196x2xf32> to vector<196x2xf32>
    %81 = vector.broadcast %78 : f32 to vector<196x2xf32>
    %82 = arith.mulf %81, %80 : vector<196x2xf32>
    %83 = arith.addf %77, %82 : vector<196x2xf32>
    %c1_57 = arith.constant 1 : index
    %c3_58 = arith.constant 3 : index
    %84 = memref.load %arg2[%c1_57, %c3_58] : memref<8x9xf32, #tpu.memory_space<smem>>
    %c3_59 = arith.constant 3 : index
    %c0_60 = arith.constant 0 : index
    %c0_61 = arith.constant 0 : index
    %85 = vector.load %arg1[%c3_59, %c0_60, %c0_61] : memref<9x196x2xf32, #tpu.memory_space<vmem>>, vector<1x196x2xf32>
    %86 = vector.shape_cast %85 : vector<1x196x2xf32> to vector<196x2xf32>
    %87 = vector.broadcast %84 : f32 to vector<196x2xf32>
    %88 = arith.mulf %87, %86 : vector<196x2xf32>
    %89 = arith.addf %83, %88 : vector<196x2xf32>
    %c1_62 = arith.constant 1 : index
    %c4_63 = arith.constant 4 : index
    %90 = memref.load %arg2[%c1_62, %c4_63] : memref<8x9xf32, #tpu.memory_space<smem>>
    %c4_64 = arith.constant 4 : index
    %c0_65 = arith.constant 0 : index
    %c0_66 = arith.constant 0 : index
    %91 = vector.load %arg1[%c4_64, %c0_65, %c0_66] : memref<9x196x2xf32, #tpu.memory_space<vmem>>, vector<1x196x2xf32>
    %92 = vector.shape_cast %91 : vector<1x196x2xf32> to vector<196x2xf32>
    %93 = vector.broadcast %90 : f32 to vector<196x2xf32>
    %94 = arith.mulf %93, %92 : vector<196x2xf32>
    %95 = arith.addf %89, %94 : vector<196x2xf32>
    %c1_67 = arith.constant 1 : index
    %c5_68 = arith.constant 5 : index
    %96 = memref.load %arg2[%c1_67, %c5_68] : memref<8x9xf32, #tpu.memory_space<smem>>
    %c5_69 = arith.constant 5 : index
    %c0_70 = arith.constant 0 : index
    %c0_71 = arith.constant 0 : index
    %97 = vector.load %arg1[%c5_69, %c0_70, %c0_71] : memref<9x196x2xf32, #tpu.memory_space<vmem>>, vector<1x196x2xf32>
    %98 = vector.shape_cast %97 : vector<1x196x2xf32> to vector<196x2xf32>
    %99 = vector.broadcast %96 : f32 to vector<196x2xf32>
    %100 = arith.mulf %99, %98 : vector<196x2xf32>
    %101 = arith.addf %95, %100 : vector<196x2xf32>
    %c1_72 = arith.constant 1 : index
    %c6_73 = arith.constant 6 : index
    %102 = memref.load %arg2[%c1_72, %c6_73] : memref<8x9xf32, #tpu.memory_space<smem>>
    %c6_74 = arith.constant 6 : index
    %c0_75 = arith.constant 0 : index
    %c0_76 = arith.constant 0 : index
    %103 = vector.load %arg1[%c6_74, %c0_75, %c0_76] : memref<9x196x2xf32, #tpu.memory_space<vmem>>, vector<1x196x2xf32>
    %104 = vector.shape_cast %103 : vector<1x196x2xf32> to vector<196x2xf32>
    %105 = vector.broadcast %102 : f32 to vector<196x2xf32>
    %106 = arith.mulf %105, %104 : vector<196x2xf32>
    %107 = arith.addf %101, %106 : vector<196x2xf32>
    %c1_77 = arith.constant 1 : index
    %c7_78 = arith.constant 7 : index
    %108 = memref.load %arg2[%c1_77, %c7_78] : memref<8x9xf32, #tpu.memory_space<smem>>
    %c7_79 = arith.constant 7 : index
    %c0_80 = arith.constant 0 : index
    %c0_81 = arith.constant 0 : index
    %109 = vector.load %arg1[%c7_79, %c0_80, %c0_81] : memref<9x196x2xf32, #tpu.memory_space<vmem>>, vector<1x196x2xf32>
    %110 = vector.shape_cast %109 : vector<1x196x2xf32> to vector<196x2xf32>
    %111 = vector.broadcast %108 : f32 to vector<196x2xf32>
    %112 = arith.mulf %111, %110 : vector<196x2xf32>
    %113 = arith.addf %107, %112 : vector<196x2xf32>
    %c1_82 = arith.constant 1 : index
    %c8_83 = arith.constant 8 : index
    %114 = memref.load %arg2[%c1_82, %c8_83] : memref<8x9xf32, #tpu.memory_space<smem>>
    %c8_84 = arith.constant 8 : index
    %c0_85 = arith.constant 0 : index
    %c0_86 = arith.constant 0 : index
    %115 = vector.load %arg1[%c8_84, %c0_85, %c0_86] : memref<9x196x2xf32, #tpu.memory_space<vmem>>, vector<1x196x2xf32>
    %116 = vector.shape_cast %115 : vector<1x196x2xf32> to vector<196x2xf32>
    %117 = vector.broadcast %114 : f32 to vector<196x2xf32>
    %118 = arith.mulf %117, %116 : vector<196x2xf32>
    %119 = arith.addf %113, %118 : vector<196x2xf32>
    %cst_87 = arith.constant 2.000000e-01 : f32
    %120 = vector.broadcast %cst_87 : f32 to vector<196x2xf32>
    %121 = arith.mulf %120, %119 : vector<196x2xf32>
    %122 = arith.maximumf %119, %121 : vector<196x2xf32>
    %123 = vector.extract_strided_slice %0 {offsets = [1, 0], sizes = [1, 196], strides = [1, 1]} : vector<8x196xf32> to vector<1x196xf32>
    %cst_88 = arith.constant dense<0.000000e+00> : vector<1x2xf32>
    %124 = tpu.matmul %123, %122, %cst_88 {dimension_numbers = #tpu.dot_dimension_numbers<[1], [0], [0], [1], [0, 0, 1, 1], [], []>} : vector<1x196xf32>, vector<196x2xf32>, vector<1x2xf32> -> vector<1x2xf32>
    %125 = arith.addf %63, %124 : vector<1x2xf32>
    %c2_89 = arith.constant 2 : index
    %126 = memref.load %arg3[%c2_89] : memref<8xf32, #tpu.memory_space<smem>>
    %c2_90 = arith.constant 2 : index
    %c0_91 = arith.constant 0 : index
    %127 = memref.load %arg2[%c2_90, %c0_91] : memref<8x9xf32, #tpu.memory_space<smem>>
    %c0_92 = arith.constant 0 : index
    %c0_93 = arith.constant 0 : index
    %c0_94 = arith.constant 0 : index
    %128 = vector.load %arg1[%c0_92, %c0_93, %c0_94] : memref<9x196x2xf32, #tpu.memory_space<vmem>>, vector<1x196x2xf32>
    %129 = vector.shape_cast %128 : vector<1x196x2xf32> to vector<196x2xf32>
    %130 = vector.broadcast %127 : f32 to vector<196x2xf32>
    %131 = arith.mulf %130, %129 : vector<196x2xf32>
    %132 = vector.broadcast %126 : f32 to vector<196x2xf32>
    %133 = arith.addf %132, %131 : vector<196x2xf32>
    %c2_95 = arith.constant 2 : index
    %c1_96 = arith.constant 1 : index
    %134 = memref.load %arg2[%c2_95, %c1_96] : memref<8x9xf32, #tpu.memory_space<smem>>
    %c1_97 = arith.constant 1 : index
    %c0_98 = arith.constant 0 : index
    %c0_99 = arith.constant 0 : index
    %135 = vector.load %arg1[%c1_97, %c0_98, %c0_99] : memref<9x196x2xf32, #tpu.memory_space<vmem>>, vector<1x196x2xf32>
    %136 = vector.shape_cast %135 : vector<1x196x2xf32> to vector<196x2xf32>
    %137 = vector.broadcast %134 : f32 to vector<196x2xf32>
    %138 = arith.mulf %137, %136 : vector<196x2xf32>
    %139 = arith.addf %133, %138 : vector<196x2xf32>
    %c2_100 = arith.constant 2 : index
    %c2_101 = arith.constant 2 : index
    %140 = memref.load %arg2[%c2_100, %c2_101] : memref<8x9xf32, #tpu.memory_space<smem>>
    %c2_102 = arith.constant 2 : index
    %c0_103 = arith.constant 0 : index
    %c0_104 = arith.constant 0 : index
    %141 = vector.load %arg1[%c2_102, %c0_103, %c0_104] : memref<9x196x2xf32, #tpu.memory_space<vmem>>, vector<1x196x2xf32>
    %142 = vector.shape_cast %141 : vector<1x196x2xf32> to vector<196x2xf32>
    %143 = vector.broadcast %140 : f32 to vector<196x2xf32>
    %144 = arith.mulf %143, %142 : vector<196x2xf32>
    %145 = arith.addf %139, %144 : vector<196x2xf32>
    %c2_105 = arith.constant 2 : index
    %c3_106 = arith.constant 3 : index
    %146 = memref.load %arg2[%c2_105, %c3_106] : memref<8x9xf32, #tpu.memory_space<smem>>
    %c3_107 = arith.constant 3 : index
    %c0_108 = arith.constant 0 : index
    %c0_109 = arith.constant 0 : index
    %147 = vector.load %arg1[%c3_107, %c0_108, %c0_109] : memref<9x196x2xf32, #tpu.memory_space<vmem>>, vector<1x196x2xf32>
    %148 = vector.shape_cast %147 : vector<1x196x2xf32> to vector<196x2xf32>
    %149 = vector.broadcast %146 : f32 to vector<196x2xf32>
    %150 = arith.mulf %149, %148 : vector<196x2xf32>
    %151 = arith.addf %145, %150 : vector<196x2xf32>
    %c2_110 = arith.constant 2 : index
    %c4_111 = arith.constant 4 : index
    %152 = memref.load %arg2[%c2_110, %c4_111] : memref<8x9xf32, #tpu.memory_space<smem>>
    %c4_112 = arith.constant 4 : index
    %c0_113 = arith.constant 0 : index
    %c0_114 = arith.constant 0 : index
    %153 = vector.load %arg1[%c4_112, %c0_113, %c0_114] : memref<9x196x2xf32, #tpu.memory_space<vmem>>, vector<1x196x2xf32>
    %154 = vector.shape_cast %153 : vector<1x196x2xf32> to vector<196x2xf32>
    %155 = vector.broadcast %152 : f32 to vector<196x2xf32>
    %156 = arith.mulf %155, %154 : vector<196x2xf32>
    %157 = arith.addf %151, %156 : vector<196x2xf32>
    %c2_115 = arith.constant 2 : index
    %c5_116 = arith.constant 5 : index
    %158 = memref.load %arg2[%c2_115, %c5_116] : memref<8x9xf32, #tpu.memory_space<smem>>
    %c5_117 = arith.constant 5 : index
    %c0_118 = arith.constant 0 : index
    %c0_119 = arith.constant 0 : index
    %159 = vector.load %arg1[%c5_117, %c0_118, %c0_119] : memref<9x196x2xf32, #tpu.memory_space<vmem>>, vector<1x196x2xf32>
    %160 = vector.shape_cast %159 : vector<1x196x2xf32> to vector<196x2xf32>
    %161 = vector.broadcast %158 : f32 to vector<196x2xf32>
    %162 = arith.mulf %161, %160 : vector<196x2xf32>
    %163 = arith.addf %157, %162 : vector<196x2xf32>
    %c2_120 = arith.constant 2 : index
    %c6_121 = arith.constant 6 : index
    %164 = memref.load %arg2[%c2_120, %c6_121] : memref<8x9xf32, #tpu.memory_space<smem>>
    %c6_122 = arith.constant 6 : index
    %c0_123 = arith.constant 0 : index
    %c0_124 = arith.constant 0 : index
    %165 = vector.load %arg1[%c6_122, %c0_123, %c0_124] : memref<9x196x2xf32, #tpu.memory_space<vmem>>, vector<1x196x2xf32>
    %166 = vector.shape_cast %165 : vector<1x196x2xf32> to vector<196x2xf32>
    %167 = vector.broadcast %164 : f32 to vector<196x2xf32>
    %168 = arith.mulf %167, %166 : vector<196x2xf32>
    %169 = arith.addf %163, %168 : vector<196x2xf32>
    %c2_125 = arith.constant 2 : index
    %c7_126 = arith.constant 7 : index
    %170 = memref.load %arg2[%c2_125, %c7_126] : memref<8x9xf32, #tpu.memory_space<smem>>
    %c7_127 = arith.constant 7 : index
    %c0_128 = arith.constant 0 : index
    %c0_129 = arith.constant 0 : index
    %171 = vector.load %arg1[%c7_127, %c0_128, %c0_129] : memref<9x196x2xf32, #tpu.memory_space<vmem>>, vector<1x196x2xf32>
    %172 = vector.shape_cast %171 : vector<1x196x2xf32> to vector<196x2xf32>
    %173 = vector.broadcast %170 : f32 to vector<196x2xf32>
    %174 = arith.mulf %173, %172 : vector<196x2xf32>
    %175 = arith.addf %169, %174 : vector<196x2xf32>
    %c2_130 = arith.constant 2 : index
    %c8_131 = arith.constant 8 : index
    %176 = memref.load %arg2[%c2_130, %c8_131] : memref<8x9xf32, #tpu.memory_space<smem>>
    %c8_132 = arith.constant 8 : index
    %c0_133 = arith.constant 0 : index
    %c0_134 = arith.constant 0 : index
    %177 = vector.load %arg1[%c8_132, %c0_133, %c0_134] : memref<9x196x2xf32, #tpu.memory_space<vmem>>, vector<1x196x2xf32>
    %178 = vector.shape_cast %177 : vector<1x196x2xf32> to vector<196x2xf32>
    %179 = vector.broadcast %176 : f32 to vector<196x2xf32>
    %180 = arith.mulf %179, %178 : vector<196x2xf32>
    %181 = arith.addf %175, %180 : vector<196x2xf32>
    %cst_135 = arith.constant 2.000000e-01 : f32
    %182 = vector.broadcast %cst_135 : f32 to vector<196x2xf32>
    %183 = arith.mulf %182, %181 : vector<196x2xf32>
    %184 = arith.maximumf %181, %183 : vector<196x2xf32>
    %185 = vector.extract_strided_slice %0 {offsets = [2, 0], sizes = [1, 196], strides = [1, 1]} : vector<8x196xf32> to vector<1x196xf32>
    %cst_136 = arith.constant dense<0.000000e+00> : vector<1x2xf32>
    %186 = tpu.matmul %185, %184, %cst_136 {dimension_numbers = #tpu.dot_dimension_numbers<[1], [0], [0], [1], [0, 0, 1, 1], [], []>} : vector<1x196xf32>, vector<196x2xf32>, vector<1x2xf32> -> vector<1x2xf32>
    %187 = arith.addf %125, %186 : vector<1x2xf32>
    %c3_137 = arith.constant 3 : index
    %188 = memref.load %arg3[%c3_137] : memref<8xf32, #tpu.memory_space<smem>>
    %c3_138 = arith.constant 3 : index
    %c0_139 = arith.constant 0 : index
    %189 = memref.load %arg2[%c3_138, %c0_139] : memref<8x9xf32, #tpu.memory_space<smem>>
    %c0_140 = arith.constant 0 : index
    %c0_141 = arith.constant 0 : index
    %c0_142 = arith.constant 0 : index
    %190 = vector.load %arg1[%c0_140, %c0_141, %c0_142] : memref<9x196x2xf32, #tpu.memory_space<vmem>>, vector<1x196x2xf32>
    %191 = vector.shape_cast %190 : vector<1x196x2xf32> to vector<196x2xf32>
    %192 = vector.broadcast %189 : f32 to vector<196x2xf32>
    %193 = arith.mulf %192, %191 : vector<196x2xf32>
    %194 = vector.broadcast %188 : f32 to vector<196x2xf32>
    %195 = arith.addf %194, %193 : vector<196x2xf32>
    %c3_143 = arith.constant 3 : index
    %c1_144 = arith.constant 1 : index
    %196 = memref.load %arg2[%c3_143, %c1_144] : memref<8x9xf32, #tpu.memory_space<smem>>
    %c1_145 = arith.constant 1 : index
    %c0_146 = arith.constant 0 : index
    %c0_147 = arith.constant 0 : index
    %197 = vector.load %arg1[%c1_145, %c0_146, %c0_147] : memref<9x196x2xf32, #tpu.memory_space<vmem>>, vector<1x196x2xf32>
    %198 = vector.shape_cast %197 : vector<1x196x2xf32> to vector<196x2xf32>
    %199 = vector.broadcast %196 : f32 to vector<196x2xf32>
    %200 = arith.mulf %199, %198 : vector<196x2xf32>
    %201 = arith.addf %195, %200 : vector<196x2xf32>
    %c3_148 = arith.constant 3 : index
    %c2_149 = arith.constant 2 : index
    %202 = memref.load %arg2[%c3_148, %c2_149] : memref<8x9xf32, #tpu.memory_space<smem>>
    %c2_150 = arith.constant 2 : index
    %c0_151 = arith.constant 0 : index
    %c0_152 = arith.constant 0 : index
    %203 = vector.load %arg1[%c2_150, %c0_151, %c0_152] : memref<9x196x2xf32, #tpu.memory_space<vmem>>, vector<1x196x2xf32>
    %204 = vector.shape_cast %203 : vector<1x196x2xf32> to vector<196x2xf32>
    %205 = vector.broadcast %202 : f32 to vector<196x2xf32>
    %206 = arith.mulf %205, %204 : vector<196x2xf32>
    %207 = arith.addf %201, %206 : vector<196x2xf32>
    %c3_153 = arith.constant 3 : index
    %c3_154 = arith.constant 3 : index
    %208 = memref.load %arg2[%c3_153, %c3_154] : memref<8x9xf32, #tpu.memory_space<smem>>
    %c3_155 = arith.constant 3 : index
    %c0_156 = arith.constant 0 : index
    %c0_157 = arith.constant 0 : index
    %209 = vector.load %arg1[%c3_155, %c0_156, %c0_157] : memref<9x196x2xf32, #tpu.memory_space<vmem>>, vector<1x196x2xf32>
    %210 = vector.shape_cast %209 : vector<1x196x2xf32> to vector<196x2xf32>
    %211 = vector.broadcast %208 : f32 to vector<196x2xf32>
    %212 = arith.mulf %211, %210 : vector<196x2xf32>
    %213 = arith.addf %207, %212 : vector<196x2xf32>
    %c3_158 = arith.constant 3 : index
    %c4_159 = arith.constant 4 : index
    %214 = memref.load %arg2[%c3_158, %c4_159] : memref<8x9xf32, #tpu.memory_space<smem>>
    %c4_160 = arith.constant 4 : index
    %c0_161 = arith.constant 0 : index
    %c0_162 = arith.constant 0 : index
    %215 = vector.load %arg1[%c4_160, %c0_161, %c0_162] : memref<9x196x2xf32, #tpu.memory_space<vmem>>, vector<1x196x2xf32>
    %216 = vector.shape_cast %215 : vector<1x196x2xf32> to vector<196x2xf32>
    %217 = vector.broadcast %214 : f32 to vector<196x2xf32>
    %218 = arith.mulf %217, %216 : vector<196x2xf32>
    %219 = arith.addf %213, %218 : vector<196x2xf32>
    %c3_163 = arith.constant 3 : index
    %c5_164 = arith.constant 5 : index
    %220 = memref.load %arg2[%c3_163, %c5_164] : memref<8x9xf32, #tpu.memory_space<smem>>
    %c5_165 = arith.constant 5 : index
    %c0_166 = arith.constant 0 : index
    %c0_167 = arith.constant 0 : index
    %221 = vector.load %arg1[%c5_165, %c0_166, %c0_167] : memref<9x196x2xf32, #tpu.memory_space<vmem>>, vector<1x196x2xf32>
    %222 = vector.shape_cast %221 : vector<1x196x2xf32> to vector<196x2xf32>
    %223 = vector.broadcast %220 : f32 to vector<196x2xf32>
    %224 = arith.mulf %223, %222 : vector<196x2xf32>
    %225 = arith.addf %219, %224 : vector<196x2xf32>
    %c3_168 = arith.constant 3 : index
    %c6_169 = arith.constant 6 : index
    %226 = memref.load %arg2[%c3_168, %c6_169] : memref<8x9xf32, #tpu.memory_space<smem>>
    %c6_170 = arith.constant 6 : index
    %c0_171 = arith.constant 0 : index
    %c0_172 = arith.constant 0 : index
    %227 = vector.load %arg1[%c6_170, %c0_171, %c0_172] : memref<9x196x2xf32, #tpu.memory_space<vmem>>, vector<1x196x2xf32>
    %228 = vector.shape_cast %227 : vector<1x196x2xf32> to vector<196x2xf32>
    %229 = vector.broadcast %226 : f32 to vector<196x2xf32>
    %230 = arith.mulf %229, %228 : vector<196x2xf32>
    %231 = arith.addf %225, %230 : vector<196x2xf32>
    %c3_173 = arith.constant 3 : index
    %c7_174 = arith.constant 7 : index
    %232 = memref.load %arg2[%c3_173, %c7_174] : memref<8x9xf32, #tpu.memory_space<smem>>
    %c7_175 = arith.constant 7 : index
    %c0_176 = arith.constant 0 : index
    %c0_177 = arith.constant 0 : index
    %233 = vector.load %arg1[%c7_175, %c0_176, %c0_177] : memref<9x196x2xf32, #tpu.memory_space<vmem>>, vector<1x196x2xf32>
    %234 = vector.shape_cast %233 : vector<1x196x2xf32> to vector<196x2xf32>
    %235 = vector.broadcast %232 : f32 to vector<196x2xf32>
    %236 = arith.mulf %235, %234 : vector<196x2xf32>
    %237 = arith.addf %231, %236 : vector<196x2xf32>
    %c3_178 = arith.constant 3 : index
    %c8_179 = arith.constant 8 : index
    %238 = memref.load %arg2[%c3_178, %c8_179] : memref<8x9xf32, #tpu.memory_space<smem>>
    %c8_180 = arith.constant 8 : index
    %c0_181 = arith.constant 0 : index
    %c0_182 = arith.constant 0 : index
    %239 = vector.load %arg1[%c8_180, %c0_181, %c0_182] : memref<9x196x2xf32, #tpu.memory_space<vmem>>, vector<1x196x2xf32>
    %240 = vector.shape_cast %239 : vector<1x196x2xf32> to vector<196x2xf32>
    %241 = vector.broadcast %238 : f32 to vector<196x2xf32>
    %242 = arith.mulf %241, %240 : vector<196x2xf32>
    %243 = arith.addf %237, %242 : vector<196x2xf32>
    %cst_183 = arith.constant 2.000000e-01 : f32
    %244 = vector.broadcast %cst_183 : f32 to vector<196x2xf32>
    %245 = arith.mulf %244, %243 : vector<196x2xf32>
    %246 = arith.maximumf %243, %245 : vector<196x2xf32>
    %247 = vector.extract_strided_slice %0 {offsets = [3, 0], sizes = [1, 196], strides = [1, 1]} : vector<8x196xf32> to vector<1x196xf32>
    %cst_184 = arith.constant dense<0.000000e+00> : vector<1x2xf32>
    %248 = tpu.matmul %247, %246, %cst_184 {dimension_numbers = #tpu.dot_dimension_numbers<[1], [0], [0], [1], [0, 0, 1, 1], [], []>} : vector<1x196xf32>, vector<196x2xf32>, vector<1x2xf32> -> vector<1x2xf32>
    %249 = arith.addf %187, %248 : vector<1x2xf32>
    %c4_185 = arith.constant 4 : index
    %250 = memref.load %arg3[%c4_185] : memref<8xf32, #tpu.memory_space<smem>>
    %c4_186 = arith.constant 4 : index
    %c0_187 = arith.constant 0 : index
    %251 = memref.load %arg2[%c4_186, %c0_187] : memref<8x9xf32, #tpu.memory_space<smem>>
    %c0_188 = arith.constant 0 : index
    %c0_189 = arith.constant 0 : index
    %c0_190 = arith.constant 0 : index
    %252 = vector.load %arg1[%c0_188, %c0_189, %c0_190] : memref<9x196x2xf32, #tpu.memory_space<vmem>>, vector<1x196x2xf32>
    %253 = vector.shape_cast %252 : vector<1x196x2xf32> to vector<196x2xf32>
    %254 = vector.broadcast %251 : f32 to vector<196x2xf32>
    %255 = arith.mulf %254, %253 : vector<196x2xf32>
    %256 = vector.broadcast %250 : f32 to vector<196x2xf32>
    %257 = arith.addf %256, %255 : vector<196x2xf32>
    %c4_191 = arith.constant 4 : index
    %c1_192 = arith.constant 1 : index
    %258 = memref.load %arg2[%c4_191, %c1_192] : memref<8x9xf32, #tpu.memory_space<smem>>
    %c1_193 = arith.constant 1 : index
    %c0_194 = arith.constant 0 : index
    %c0_195 = arith.constant 0 : index
    %259 = vector.load %arg1[%c1_193, %c0_194, %c0_195] : memref<9x196x2xf32, #tpu.memory_space<vmem>>, vector<1x196x2xf32>
    %260 = vector.shape_cast %259 : vector<1x196x2xf32> to vector<196x2xf32>
    %261 = vector.broadcast %258 : f32 to vector<196x2xf32>
    %262 = arith.mulf %261, %260 : vector<196x2xf32>
    %263 = arith.addf %257, %262 : vector<196x2xf32>
    %c4_196 = arith.constant 4 : index
    %c2_197 = arith.constant 2 : index
    %264 = memref.load %arg2[%c4_196, %c2_197] : memref<8x9xf32, #tpu.memory_space<smem>>
    %c2_198 = arith.constant 2 : index
    %c0_199 = arith.constant 0 : index
    %c0_200 = arith.constant 0 : index
    %265 = vector.load %arg1[%c2_198, %c0_199, %c0_200] : memref<9x196x2xf32, #tpu.memory_space<vmem>>, vector<1x196x2xf32>
    %266 = vector.shape_cast %265 : vector<1x196x2xf32> to vector<196x2xf32>
    %267 = vector.broadcast %264 : f32 to vector<196x2xf32>
    %268 = arith.mulf %267, %266 : vector<196x2xf32>
    %269 = arith.addf %263, %268 : vector<196x2xf32>
    %c4_201 = arith.constant 4 : index
    %c3_202 = arith.constant 3 : index
    %270 = memref.load %arg2[%c4_201, %c3_202] : memref<8x9xf32, #tpu.memory_space<smem>>
    %c3_203 = arith.constant 3 : index
    %c0_204 = arith.constant 0 : index
    %c0_205 = arith.constant 0 : index
    %271 = vector.load %arg1[%c3_203, %c0_204, %c0_205] : memref<9x196x2xf32, #tpu.memory_space<vmem>>, vector<1x196x2xf32>
    %272 = vector.shape_cast %271 : vector<1x196x2xf32> to vector<196x2xf32>
    %273 = vector.broadcast %270 : f32 to vector<196x2xf32>
    %274 = arith.mulf %273, %272 : vector<196x2xf32>
    %275 = arith.addf %269, %274 : vector<196x2xf32>
    %c4_206 = arith.constant 4 : index
    %c4_207 = arith.constant 4 : index
    %276 = memref.load %arg2[%c4_206, %c4_207] : memref<8x9xf32, #tpu.memory_space<smem>>
    %c4_208 = arith.constant 4 : index
    %c0_209 = arith.constant 0 : index
    %c0_210 = arith.constant 0 : index
    %277 = vector.load %arg1[%c4_208, %c0_209, %c0_210] : memref<9x196x2xf32, #tpu.memory_space<vmem>>, vector<1x196x2xf32>
    %278 = vector.shape_cast %277 : vector<1x196x2xf32> to vector<196x2xf32>
    %279 = vector.broadcast %276 : f32 to vector<196x2xf32>
    %280 = arith.mulf %279, %278 : vector<196x2xf32>
    %281 = arith.addf %275, %280 : vector<196x2xf32>
    %c4_211 = arith.constant 4 : index
    %c5_212 = arith.constant 5 : index
    %282 = memref.load %arg2[%c4_211, %c5_212] : memref<8x9xf32, #tpu.memory_space<smem>>
    %c5_213 = arith.constant 5 : index
    %c0_214 = arith.constant 0 : index
    %c0_215 = arith.constant 0 : index
    %283 = vector.load %arg1[%c5_213, %c0_214, %c0_215] : memref<9x196x2xf32, #tpu.memory_space<vmem>>, vector<1x196x2xf32>
    %284 = vector.shape_cast %283 : vector<1x196x2xf32> to vector<196x2xf32>
    %285 = vector.broadcast %282 : f32 to vector<196x2xf32>
    %286 = arith.mulf %285, %284 : vector<196x2xf32>
    %287 = arith.addf %281, %286 : vector<196x2xf32>
    %c4_216 = arith.constant 4 : index
    %c6_217 = arith.constant 6 : index
    %288 = memref.load %arg2[%c4_216, %c6_217] : memref<8x9xf32, #tpu.memory_space<smem>>
    %c6_218 = arith.constant 6 : index
    %c0_219 = arith.constant 0 : index
    %c0_220 = arith.constant 0 : index
    %289 = vector.load %arg1[%c6_218, %c0_219, %c0_220] : memref<9x196x2xf32, #tpu.memory_space<vmem>>, vector<1x196x2xf32>
    %290 = vector.shape_cast %289 : vector<1x196x2xf32> to vector<196x2xf32>
    %291 = vector.broadcast %288 : f32 to vector<196x2xf32>
    %292 = arith.mulf %291, %290 : vector<196x2xf32>
    %293 = arith.addf %287, %292 : vector<196x2xf32>
    %c4_221 = arith.constant 4 : index
    %c7_222 = arith.constant 7 : index
    %294 = memref.load %arg2[%c4_221, %c7_222] : memref<8x9xf32, #tpu.memory_space<smem>>
    %c7_223 = arith.constant 7 : index
    %c0_224 = arith.constant 0 : index
    %c0_225 = arith.constant 0 : index
    %295 = vector.load %arg1[%c7_223, %c0_224, %c0_225] : memref<9x196x2xf32, #tpu.memory_space<vmem>>, vector<1x196x2xf32>
    %296 = vector.shape_cast %295 : vector<1x196x2xf32> to vector<196x2xf32>
    %297 = vector.broadcast %294 : f32 to vector<196x2xf32>
    %298 = arith.mulf %297, %296 : vector<196x2xf32>
    %299 = arith.addf %293, %298 : vector<196x2xf32>
    %c4_226 = arith.constant 4 : index
    %c8_227 = arith.constant 8 : index
    %300 = memref.load %arg2[%c4_226, %c8_227] : memref<8x9xf32, #tpu.memory_space<smem>>
    %c8_228 = arith.constant 8 : index
    %c0_229 = arith.constant 0 : index
    %c0_230 = arith.constant 0 : index
    %301 = vector.load %arg1[%c8_228, %c0_229, %c0_230] : memref<9x196x2xf32, #tpu.memory_space<vmem>>, vector<1x196x2xf32>
    %302 = vector.shape_cast %301 : vector<1x196x2xf32> to vector<196x2xf32>
    %303 = vector.broadcast %300 : f32 to vector<196x2xf32>
    %304 = arith.mulf %303, %302 : vector<196x2xf32>
    %305 = arith.addf %299, %304 : vector<196x2xf32>
    %cst_231 = arith.constant 2.000000e-01 : f32
    %306 = vector.broadcast %cst_231 : f32 to vector<196x2xf32>
    %307 = arith.mulf %306, %305 : vector<196x2xf32>
    %308 = arith.maximumf %305, %307 : vector<196x2xf32>
    %309 = vector.extract_strided_slice %0 {offsets = [4, 0], sizes = [1, 196], strides = [1, 1]} : vector<8x196xf32> to vector<1x196xf32>
    %cst_232 = arith.constant dense<0.000000e+00> : vector<1x2xf32>
    %310 = tpu.matmul %309, %308, %cst_232 {dimension_numbers = #tpu.dot_dimension_numbers<[1], [0], [0], [1], [0, 0, 1, 1], [], []>} : vector<1x196xf32>, vector<196x2xf32>, vector<1x2xf32> -> vector<1x2xf32>
    %311 = arith.addf %249, %310 : vector<1x2xf32>
    %c5_233 = arith.constant 5 : index
    %312 = memref.load %arg3[%c5_233] : memref<8xf32, #tpu.memory_space<smem>>
    %c5_234 = arith.constant 5 : index
    %c0_235 = arith.constant 0 : index
    %313 = memref.load %arg2[%c5_234, %c0_235] : memref<8x9xf32, #tpu.memory_space<smem>>
    %c0_236 = arith.constant 0 : index
    %c0_237 = arith.constant 0 : index
    %c0_238 = arith.constant 0 : index
    %314 = vector.load %arg1[%c0_236, %c0_237, %c0_238] : memref<9x196x2xf32, #tpu.memory_space<vmem>>, vector<1x196x2xf32>
    %315 = vector.shape_cast %314 : vector<1x196x2xf32> to vector<196x2xf32>
    %316 = vector.broadcast %313 : f32 to vector<196x2xf32>
    %317 = arith.mulf %316, %315 : vector<196x2xf32>
    %318 = vector.broadcast %312 : f32 to vector<196x2xf32>
    %319 = arith.addf %318, %317 : vector<196x2xf32>
    %c5_239 = arith.constant 5 : index
    %c1_240 = arith.constant 1 : index
    %320 = memref.load %arg2[%c5_239, %c1_240] : memref<8x9xf32, #tpu.memory_space<smem>>
    %c1_241 = arith.constant 1 : index
    %c0_242 = arith.constant 0 : index
    %c0_243 = arith.constant 0 : index
    %321 = vector.load %arg1[%c1_241, %c0_242, %c0_243] : memref<9x196x2xf32, #tpu.memory_space<vmem>>, vector<1x196x2xf32>
    %322 = vector.shape_cast %321 : vector<1x196x2xf32> to vector<196x2xf32>
    %323 = vector.broadcast %320 : f32 to vector<196x2xf32>
    %324 = arith.mulf %323, %322 : vector<196x2xf32>
    %325 = arith.addf %319, %324 : vector<196x2xf32>
    %c5_244 = arith.constant 5 : index
    %c2_245 = arith.constant 2 : index
    %326 = memref.load %arg2[%c5_244, %c2_245] : memref<8x9xf32, #tpu.memory_space<smem>>
    %c2_246 = arith.constant 2 : index
    %c0_247 = arith.constant 0 : index
    %c0_248 = arith.constant 0 : index
    %327 = vector.load %arg1[%c2_246, %c0_247, %c0_248] : memref<9x196x2xf32, #tpu.memory_space<vmem>>, vector<1x196x2xf32>
    %328 = vector.shape_cast %327 : vector<1x196x2xf32> to vector<196x2xf32>
    %329 = vector.broadcast %326 : f32 to vector<196x2xf32>
    %330 = arith.mulf %329, %328 : vector<196x2xf32>
    %331 = arith.addf %325, %330 : vector<196x2xf32>
    %c5_249 = arith.constant 5 : index
    %c3_250 = arith.constant 3 : index
    %332 = memref.load %arg2[%c5_249, %c3_250] : memref<8x9xf32, #tpu.memory_space<smem>>
    %c3_251 = arith.constant 3 : index
    %c0_252 = arith.constant 0 : index
    %c0_253 = arith.constant 0 : index
    %333 = vector.load %arg1[%c3_251, %c0_252, %c0_253] : memref<9x196x2xf32, #tpu.memory_space<vmem>>, vector<1x196x2xf32>
    %334 = vector.shape_cast %333 : vector<1x196x2xf32> to vector<196x2xf32>
    %335 = vector.broadcast %332 : f32 to vector<196x2xf32>
    %336 = arith.mulf %335, %334 : vector<196x2xf32>
    %337 = arith.addf %331, %336 : vector<196x2xf32>
    %c5_254 = arith.constant 5 : index
    %c4_255 = arith.constant 4 : index
    %338 = memref.load %arg2[%c5_254, %c4_255] : memref<8x9xf32, #tpu.memory_space<smem>>
    %c4_256 = arith.constant 4 : index
    %c0_257 = arith.constant 0 : index
    %c0_258 = arith.constant 0 : index
    %339 = vector.load %arg1[%c4_256, %c0_257, %c0_258] : memref<9x196x2xf32, #tpu.memory_space<vmem>>, vector<1x196x2xf32>
    %340 = vector.shape_cast %339 : vector<1x196x2xf32> to vector<196x2xf32>
    %341 = vector.broadcast %338 : f32 to vector<196x2xf32>
    %342 = arith.mulf %341, %340 : vector<196x2xf32>
    %343 = arith.addf %337, %342 : vector<196x2xf32>
    %c5_259 = arith.constant 5 : index
    %c5_260 = arith.constant 5 : index
    %344 = memref.load %arg2[%c5_259, %c5_260] : memref<8x9xf32, #tpu.memory_space<smem>>
    %c5_261 = arith.constant 5 : index
    %c0_262 = arith.constant 0 : index
    %c0_263 = arith.constant 0 : index
    %345 = vector.load %arg1[%c5_261, %c0_262, %c0_263] : memref<9x196x2xf32, #tpu.memory_space<vmem>>, vector<1x196x2xf32>
    %346 = vector.shape_cast %345 : vector<1x196x2xf32> to vector<196x2xf32>
    %347 = vector.broadcast %344 : f32 to vector<196x2xf32>
    %348 = arith.mulf %347, %346 : vector<196x2xf32>
    %349 = arith.addf %343, %348 : vector<196x2xf32>
    %c5_264 = arith.constant 5 : index
    %c6_265 = arith.constant 6 : index
    %350 = memref.load %arg2[%c5_264, %c6_265] : memref<8x9xf32, #tpu.memory_space<smem>>
    %c6_266 = arith.constant 6 : index
    %c0_267 = arith.constant 0 : index
    %c0_268 = arith.constant 0 : index
    %351 = vector.load %arg1[%c6_266, %c0_267, %c0_268] : memref<9x196x2xf32, #tpu.memory_space<vmem>>, vector<1x196x2xf32>
    %352 = vector.shape_cast %351 : vector<1x196x2xf32> to vector<196x2xf32>
    %353 = vector.broadcast %350 : f32 to vector<196x2xf32>
    %354 = arith.mulf %353, %352 : vector<196x2xf32>
    %355 = arith.addf %349, %354 : vector<196x2xf32>
    %c5_269 = arith.constant 5 : index
    %c7_270 = arith.constant 7 : index
    %356 = memref.load %arg2[%c5_269, %c7_270] : memref<8x9xf32, #tpu.memory_space<smem>>
    %c7_271 = arith.constant 7 : index
    %c0_272 = arith.constant 0 : index
    %c0_273 = arith.constant 0 : index
    %357 = vector.load %arg1[%c7_271, %c0_272, %c0_273] : memref<9x196x2xf32, #tpu.memory_space<vmem>>, vector<1x196x2xf32>
    %358 = vector.shape_cast %357 : vector<1x196x2xf32> to vector<196x2xf32>
    %359 = vector.broadcast %356 : f32 to vector<196x2xf32>
    %360 = arith.mulf %359, %358 : vector<196x2xf32>
    %361 = arith.addf %355, %360 : vector<196x2xf32>
    %c5_274 = arith.constant 5 : index
    %c8_275 = arith.constant 8 : index
    %362 = memref.load %arg2[%c5_274, %c8_275] : memref<8x9xf32, #tpu.memory_space<smem>>
    %c8_276 = arith.constant 8 : index
    %c0_277 = arith.constant 0 : index
    %c0_278 = arith.constant 0 : index
    %363 = vector.load %arg1[%c8_276, %c0_277, %c0_278] : memref<9x196x2xf32, #tpu.memory_space<vmem>>, vector<1x196x2xf32>
    %364 = vector.shape_cast %363 : vector<1x196x2xf32> to vector<196x2xf32>
    %365 = vector.broadcast %362 : f32 to vector<196x2xf32>
    %366 = arith.mulf %365, %364 : vector<196x2xf32>
    %367 = arith.addf %361, %366 : vector<196x2xf32>
    %cst_279 = arith.constant 2.000000e-01 : f32
    %368 = vector.broadcast %cst_279 : f32 to vector<196x2xf32>
    %369 = arith.mulf %368, %367 : vector<196x2xf32>
    %370 = arith.maximumf %367, %369 : vector<196x2xf32>
    %371 = vector.extract_strided_slice %0 {offsets = [5, 0], sizes = [1, 196], strides = [1, 1]} : vector<8x196xf32> to vector<1x196xf32>
    %cst_280 = arith.constant dense<0.000000e+00> : vector<1x2xf32>
    %372 = tpu.matmul %371, %370, %cst_280 {dimension_numbers = #tpu.dot_dimension_numbers<[1], [0], [0], [1], [0, 0, 1, 1], [], []>} : vector<1x196xf32>, vector<196x2xf32>, vector<1x2xf32> -> vector<1x2xf32>
    %373 = arith.addf %311, %372 : vector<1x2xf32>
    %c6_281 = arith.constant 6 : index
    %374 = memref.load %arg3[%c6_281] : memref<8xf32, #tpu.memory_space<smem>>
    %c6_282 = arith.constant 6 : index
    %c0_283 = arith.constant 0 : index
    %375 = memref.load %arg2[%c6_282, %c0_283] : memref<8x9xf32, #tpu.memory_space<smem>>
    %c0_284 = arith.constant 0 : index
    %c0_285 = arith.constant 0 : index
    %c0_286 = arith.constant 0 : index
    %376 = vector.load %arg1[%c0_284, %c0_285, %c0_286] : memref<9x196x2xf32, #tpu.memory_space<vmem>>, vector<1x196x2xf32>
    %377 = vector.shape_cast %376 : vector<1x196x2xf32> to vector<196x2xf32>
    %378 = vector.broadcast %375 : f32 to vector<196x2xf32>
    %379 = arith.mulf %378, %377 : vector<196x2xf32>
    %380 = vector.broadcast %374 : f32 to vector<196x2xf32>
    %381 = arith.addf %380, %379 : vector<196x2xf32>
    %c6_287 = arith.constant 6 : index
    %c1_288 = arith.constant 1 : index
    %382 = memref.load %arg2[%c6_287, %c1_288] : memref<8x9xf32, #tpu.memory_space<smem>>
    %c1_289 = arith.constant 1 : index
    %c0_290 = arith.constant 0 : index
    %c0_291 = arith.constant 0 : index
    %383 = vector.load %arg1[%c1_289, %c0_290, %c0_291] : memref<9x196x2xf32, #tpu.memory_space<vmem>>, vector<1x196x2xf32>
    %384 = vector.shape_cast %383 : vector<1x196x2xf32> to vector<196x2xf32>
    %385 = vector.broadcast %382 : f32 to vector<196x2xf32>
    %386 = arith.mulf %385, %384 : vector<196x2xf32>
    %387 = arith.addf %381, %386 : vector<196x2xf32>
    %c6_292 = arith.constant 6 : index
    %c2_293 = arith.constant 2 : index
    %388 = memref.load %arg2[%c6_292, %c2_293] : memref<8x9xf32, #tpu.memory_space<smem>>
    %c2_294 = arith.constant 2 : index
    %c0_295 = arith.constant 0 : index
    %c0_296 = arith.constant 0 : index
    %389 = vector.load %arg1[%c2_294, %c0_295, %c0_296] : memref<9x196x2xf32, #tpu.memory_space<vmem>>, vector<1x196x2xf32>
    %390 = vector.shape_cast %389 : vector<1x196x2xf32> to vector<196x2xf32>
    %391 = vector.broadcast %388 : f32 to vector<196x2xf32>
    %392 = arith.mulf %391, %390 : vector<196x2xf32>
    %393 = arith.addf %387, %392 : vector<196x2xf32>
    %c6_297 = arith.constant 6 : index
    %c3_298 = arith.constant 3 : index
    %394 = memref.load %arg2[%c6_297, %c3_298] : memref<8x9xf32, #tpu.memory_space<smem>>
    %c3_299 = arith.constant 3 : index
    %c0_300 = arith.constant 0 : index
    %c0_301 = arith.constant 0 : index
    %395 = vector.load %arg1[%c3_299, %c0_300, %c0_301] : memref<9x196x2xf32, #tpu.memory_space<vmem>>, vector<1x196x2xf32>
    %396 = vector.shape_cast %395 : vector<1x196x2xf32> to vector<196x2xf32>
    %397 = vector.broadcast %394 : f32 to vector<196x2xf32>
    %398 = arith.mulf %397, %396 : vector<196x2xf32>
    %399 = arith.addf %393, %398 : vector<196x2xf32>
    %c6_302 = arith.constant 6 : index
    %c4_303 = arith.constant 4 : index
    %400 = memref.load %arg2[%c6_302, %c4_303] : memref<8x9xf32, #tpu.memory_space<smem>>
    %c4_304 = arith.constant 4 : index
    %c0_305 = arith.constant 0 : index
    %c0_306 = arith.constant 0 : index
    %401 = vector.load %arg1[%c4_304, %c0_305, %c0_306] : memref<9x196x2xf32, #tpu.memory_space<vmem>>, vector<1x196x2xf32>
    %402 = vector.shape_cast %401 : vector<1x196x2xf32> to vector<196x2xf32>
    %403 = vector.broadcast %400 : f32 to vector<196x2xf32>
    %404 = arith.mulf %403, %402 : vector<196x2xf32>
    %405 = arith.addf %399, %404 : vector<196x2xf32>
    %c6_307 = arith.constant 6 : index
    %c5_308 = arith.constant 5 : index
    %406 = memref.load %arg2[%c6_307, %c5_308] : memref<8x9xf32, #tpu.memory_space<smem>>
    %c5_309 = arith.constant 5 : index
    %c0_310 = arith.constant 0 : index
    %c0_311 = arith.constant 0 : index
    %407 = vector.load %arg1[%c5_309, %c0_310, %c0_311] : memref<9x196x2xf32, #tpu.memory_space<vmem>>, vector<1x196x2xf32>
    %408 = vector.shape_cast %407 : vector<1x196x2xf32> to vector<196x2xf32>
    %409 = vector.broadcast %406 : f32 to vector<196x2xf32>
    %410 = arith.mulf %409, %408 : vector<196x2xf32>
    %411 = arith.addf %405, %410 : vector<196x2xf32>
    %c6_312 = arith.constant 6 : index
    %c6_313 = arith.constant 6 : index
    %412 = memref.load %arg2[%c6_312, %c6_313] : memref<8x9xf32, #tpu.memory_space<smem>>
    %c6_314 = arith.constant 6 : index
    %c0_315 = arith.constant 0 : index
    %c0_316 = arith.constant 0 : index
    %413 = vector.load %arg1[%c6_314, %c0_315, %c0_316] : memref<9x196x2xf32, #tpu.memory_space<vmem>>, vector<1x196x2xf32>
    %414 = vector.shape_cast %413 : vector<1x196x2xf32> to vector<196x2xf32>
    %415 = vector.broadcast %412 : f32 to vector<196x2xf32>
    %416 = arith.mulf %415, %414 : vector<196x2xf32>
    %417 = arith.addf %411, %416 : vector<196x2xf32>
    %c6_317 = arith.constant 6 : index
    %c7_318 = arith.constant 7 : index
    %418 = memref.load %arg2[%c6_317, %c7_318] : memref<8x9xf32, #tpu.memory_space<smem>>
    %c7_319 = arith.constant 7 : index
    %c0_320 = arith.constant 0 : index
    %c0_321 = arith.constant 0 : index
    %419 = vector.load %arg1[%c7_319, %c0_320, %c0_321] : memref<9x196x2xf32, #tpu.memory_space<vmem>>, vector<1x196x2xf32>
    %420 = vector.shape_cast %419 : vector<1x196x2xf32> to vector<196x2xf32>
    %421 = vector.broadcast %418 : f32 to vector<196x2xf32>
    %422 = arith.mulf %421, %420 : vector<196x2xf32>
    %423 = arith.addf %417, %422 : vector<196x2xf32>
    %c6_322 = arith.constant 6 : index
    %c8_323 = arith.constant 8 : index
    %424 = memref.load %arg2[%c6_322, %c8_323] : memref<8x9xf32, #tpu.memory_space<smem>>
    %c8_324 = arith.constant 8 : index
    %c0_325 = arith.constant 0 : index
    %c0_326 = arith.constant 0 : index
    %425 = vector.load %arg1[%c8_324, %c0_325, %c0_326] : memref<9x196x2xf32, #tpu.memory_space<vmem>>, vector<1x196x2xf32>
    %426 = vector.shape_cast %425 : vector<1x196x2xf32> to vector<196x2xf32>
    %427 = vector.broadcast %424 : f32 to vector<196x2xf32>
    %428 = arith.mulf %427, %426 : vector<196x2xf32>
    %429 = arith.addf %423, %428 : vector<196x2xf32>
    %cst_327 = arith.constant 2.000000e-01 : f32
    %430 = vector.broadcast %cst_327 : f32 to vector<196x2xf32>
    %431 = arith.mulf %430, %429 : vector<196x2xf32>
    %432 = arith.maximumf %429, %431 : vector<196x2xf32>
    %433 = vector.extract_strided_slice %0 {offsets = [6, 0], sizes = [1, 196], strides = [1, 1]} : vector<8x196xf32> to vector<1x196xf32>
    %cst_328 = arith.constant dense<0.000000e+00> : vector<1x2xf32>
    %434 = tpu.matmul %433, %432, %cst_328 {dimension_numbers = #tpu.dot_dimension_numbers<[1], [0], [0], [1], [0, 0, 1, 1], [], []>} : vector<1x196xf32>, vector<196x2xf32>, vector<1x2xf32> -> vector<1x2xf32>
    %435 = arith.addf %373, %434 : vector<1x2xf32>
    %c7_329 = arith.constant 7 : index
    %436 = memref.load %arg3[%c7_329] : memref<8xf32, #tpu.memory_space<smem>>
    %c7_330 = arith.constant 7 : index
    %c0_331 = arith.constant 0 : index
    %437 = memref.load %arg2[%c7_330, %c0_331] : memref<8x9xf32, #tpu.memory_space<smem>>
    %c0_332 = arith.constant 0 : index
    %c0_333 = arith.constant 0 : index
    %c0_334 = arith.constant 0 : index
    %438 = vector.load %arg1[%c0_332, %c0_333, %c0_334] : memref<9x196x2xf32, #tpu.memory_space<vmem>>, vector<1x196x2xf32>
    %439 = vector.shape_cast %438 : vector<1x196x2xf32> to vector<196x2xf32>
    %440 = vector.broadcast %437 : f32 to vector<196x2xf32>
    %441 = arith.mulf %440, %439 : vector<196x2xf32>
    %442 = vector.broadcast %436 : f32 to vector<196x2xf32>
    %443 = arith.addf %442, %441 : vector<196x2xf32>
    %c7_335 = arith.constant 7 : index
    %c1_336 = arith.constant 1 : index
    %444 = memref.load %arg2[%c7_335, %c1_336] : memref<8x9xf32, #tpu.memory_space<smem>>
    %c1_337 = arith.constant 1 : index
    %c0_338 = arith.constant 0 : index
    %c0_339 = arith.constant 0 : index
    %445 = vector.load %arg1[%c1_337, %c0_338, %c0_339] : memref<9x196x2xf32, #tpu.memory_space<vmem>>, vector<1x196x2xf32>
    %446 = vector.shape_cast %445 : vector<1x196x2xf32> to vector<196x2xf32>
    %447 = vector.broadcast %444 : f32 to vector<196x2xf32>
    %448 = arith.mulf %447, %446 : vector<196x2xf32>
    %449 = arith.addf %443, %448 : vector<196x2xf32>
    %c7_340 = arith.constant 7 : index
    %c2_341 = arith.constant 2 : index
    %450 = memref.load %arg2[%c7_340, %c2_341] : memref<8x9xf32, #tpu.memory_space<smem>>
    %c2_342 = arith.constant 2 : index
    %c0_343 = arith.constant 0 : index
    %c0_344 = arith.constant 0 : index
    %451 = vector.load %arg1[%c2_342, %c0_343, %c0_344] : memref<9x196x2xf32, #tpu.memory_space<vmem>>, vector<1x196x2xf32>
    %452 = vector.shape_cast %451 : vector<1x196x2xf32> to vector<196x2xf32>
    %453 = vector.broadcast %450 : f32 to vector<196x2xf32>
    %454 = arith.mulf %453, %452 : vector<196x2xf32>
    %455 = arith.addf %449, %454 : vector<196x2xf32>
    %c7_345 = arith.constant 7 : index
    %c3_346 = arith.constant 3 : index
    %456 = memref.load %arg2[%c7_345, %c3_346] : memref<8x9xf32, #tpu.memory_space<smem>>
    %c3_347 = arith.constant 3 : index
    %c0_348 = arith.constant 0 : index
    %c0_349 = arith.constant 0 : index
    %457 = vector.load %arg1[%c3_347, %c0_348, %c0_349] : memref<9x196x2xf32, #tpu.memory_space<vmem>>, vector<1x196x2xf32>
    %458 = vector.shape_cast %457 : vector<1x196x2xf32> to vector<196x2xf32>
    %459 = vector.broadcast %456 : f32 to vector<196x2xf32>
    %460 = arith.mulf %459, %458 : vector<196x2xf32>
    %461 = arith.addf %455, %460 : vector<196x2xf32>
    %c7_350 = arith.constant 7 : index
    %c4_351 = arith.constant 4 : index
    %462 = memref.load %arg2[%c7_350, %c4_351] : memref<8x9xf32, #tpu.memory_space<smem>>
    %c4_352 = arith.constant 4 : index
    %c0_353 = arith.constant 0 : index
    %c0_354 = arith.constant 0 : index
    %463 = vector.load %arg1[%c4_352, %c0_353, %c0_354] : memref<9x196x2xf32, #tpu.memory_space<vmem>>, vector<1x196x2xf32>
    %464 = vector.shape_cast %463 : vector<1x196x2xf32> to vector<196x2xf32>
    %465 = vector.broadcast %462 : f32 to vector<196x2xf32>
    %466 = arith.mulf %465, %464 : vector<196x2xf32>
    %467 = arith.addf %461, %466 : vector<196x2xf32>
    %c7_355 = arith.constant 7 : index
    %c5_356 = arith.constant 5 : index
    %468 = memref.load %arg2[%c7_355, %c5_356] : memref<8x9xf32, #tpu.memory_space<smem>>
    %c5_357 = arith.constant 5 : index
    %c0_358 = arith.constant 0 : index
    %c0_359 = arith.constant 0 : index
    %469 = vector.load %arg1[%c5_357, %c0_358, %c0_359] : memref<9x196x2xf32, #tpu.memory_space<vmem>>, vector<1x196x2xf32>
    %470 = vector.shape_cast %469 : vector<1x196x2xf32> to vector<196x2xf32>
    %471 = vector.broadcast %468 : f32 to vector<196x2xf32>
    %472 = arith.mulf %471, %470 : vector<196x2xf32>
    %473 = arith.addf %467, %472 : vector<196x2xf32>
    %c7_360 = arith.constant 7 : index
    %c6_361 = arith.constant 6 : index
    %474 = memref.load %arg2[%c7_360, %c6_361] : memref<8x9xf32, #tpu.memory_space<smem>>
    %c6_362 = arith.constant 6 : index
    %c0_363 = arith.constant 0 : index
    %c0_364 = arith.constant 0 : index
    %475 = vector.load %arg1[%c6_362, %c0_363, %c0_364] : memref<9x196x2xf32, #tpu.memory_space<vmem>>, vector<1x196x2xf32>
    %476 = vector.shape_cast %475 : vector<1x196x2xf32> to vector<196x2xf32>
    %477 = vector.broadcast %474 : f32 to vector<196x2xf32>
    %478 = arith.mulf %477, %476 : vector<196x2xf32>
    %479 = arith.addf %473, %478 : vector<196x2xf32>
    %c7_365 = arith.constant 7 : index
    %c7_366 = arith.constant 7 : index
    %480 = memref.load %arg2[%c7_365, %c7_366] : memref<8x9xf32, #tpu.memory_space<smem>>
    %c7_367 = arith.constant 7 : index
    %c0_368 = arith.constant 0 : index
    %c0_369 = arith.constant 0 : index
    %481 = vector.load %arg1[%c7_367, %c0_368, %c0_369] : memref<9x196x2xf32, #tpu.memory_space<vmem>>, vector<1x196x2xf32>
    %482 = vector.shape_cast %481 : vector<1x196x2xf32> to vector<196x2xf32>
    %483 = vector.broadcast %480 : f32 to vector<196x2xf32>
    %484 = arith.mulf %483, %482 : vector<196x2xf32>
    %485 = arith.addf %479, %484 : vector<196x2xf32>
    %c7_370 = arith.constant 7 : index
    %c8_371 = arith.constant 8 : index
    %486 = memref.load %arg2[%c7_370, %c8_371] : memref<8x9xf32, #tpu.memory_space<smem>>
    %c8_372 = arith.constant 8 : index
    %c0_373 = arith.constant 0 : index
    %c0_374 = arith.constant 0 : index
    %487 = vector.load %arg1[%c8_372, %c0_373, %c0_374] : memref<9x196x2xf32, #tpu.memory_space<vmem>>, vector<1x196x2xf32>
    %488 = vector.shape_cast %487 : vector<1x196x2xf32> to vector<196x2xf32>
    %489 = vector.broadcast %486 : f32 to vector<196x2xf32>
    %490 = arith.mulf %489, %488 : vector<196x2xf32>
    %491 = arith.addf %485, %490 : vector<196x2xf32>
    %cst_375 = arith.constant 2.000000e-01 : f32
    %492 = vector.broadcast %cst_375 : f32 to vector<196x2xf32>
    %493 = arith.mulf %492, %491 : vector<196x2xf32>
    %494 = arith.maximumf %491, %493 : vector<196x2xf32>
    %495 = vector.extract_strided_slice %0 {offsets = [7, 0], sizes = [1, 196], strides = [1, 1]} : vector<8x196xf32> to vector<1x196xf32>
    %cst_376 = arith.constant dense<0.000000e+00> : vector<1x2xf32>
    %496 = tpu.matmul %495, %494, %cst_376 {dimension_numbers = #tpu.dot_dimension_numbers<[1], [0], [0], [1], [0, 0, 1, 1], [], []>} : vector<1x196xf32>, vector<196x2xf32>, vector<1x2xf32> -> vector<1x2xf32>
    %497 = arith.addf %435, %496 : vector<1x2xf32>
    %c0_377 = arith.constant 0 : index
    %498 = memref.load %arg5[%c0_377] : memref<1xf32, #tpu.memory_space<smem>>
    %499 = vector.broadcast %498 : f32 to vector<1x2xf32>
    %500 = arith.addf %497, %499 : vector<1x2xf32>
    %cst_378 = arith.constant 0.000000e+00 : f32
    %501 = vector.broadcast %cst_378 : f32 to vector<1x2xf32>
    %502 = arith.subf %501, %500 : vector<1x2xf32>
    %503 = math.exp %502 : vector<1x2xf32>
    %cst_379 = arith.constant 1.000000e+00 : f32
    %504 = vector.broadcast %cst_379 : f32 to vector<1x2xf32>
    %505 = arith.addf %504, %503 : vector<1x2xf32>
    %cst_380 = arith.constant 1.000000e+00 : f32
    %506 = vector.broadcast %cst_380 : f32 to vector<1x2xf32>
    %507 = arith.divf %506, %505 : vector<1x2xf32>
    %c0_381 = arith.constant 0 : index
    %c0_382 = arith.constant 0 : index
    %508 = vector.load %arg6[%c0_381, %c0_382] : memref<1x2xf32, #tpu.memory_space<vmem>>, vector<1x2xf32>
    tpu.vector_store %arg6[%c0_381, %c0_382], %507 {strides = array<i32>} : memref<1x2xf32, #tpu.memory_space<vmem>>, vector<1x2xf32>,
    return
  }
  func.func @transform_0(%arg0: i32) -> (i32, i32, i32) {
    %c0_i32 = arith.constant 0 : i32
    %c0_i32_0 = arith.constant 0 : i32
    %c0_i32_1 = arith.constant 0 : i32
    return %c0_i32, %c0_i32_0, %arg0 : i32, i32, i32
  }
  func.func @transform_1(%arg0: i32) -> (i32, i32) {
    %c0_i32 = arith.constant 0 : i32
    %c0_i32_0 = arith.constant 0 : i32
    %c0_i32_1 = arith.constant 0 : i32
    return %c0_i32, %c0_i32_0 : i32, i32
  }
  func.func @transform_2(%arg0: i32) -> i32 {
    %c0_i32 = arith.constant 0 : i32
    %c0_i32_0 = arith.constant 0 : i32
    return %c0_i32 : i32
  }
  func.func @transform_3(%arg0: i32) -> (i32, i32) {
    %c0_i32 = arith.constant 0 : i32
    %c0_i32_0 = arith.constant 0 : i32
    %c0_i32_1 = arith.constant 0 : i32
    return %c0_i32, %c0_i32_0 : i32, i32
  }
  func.func @transform_4(%arg0: i32) -> i32 {
    %c0_i32 = arith.constant 0 : i32
    %c0_i32_0 = arith.constant 0 : i32
    return %c0_i32 : i32
  }
  func.func @transform_5(%arg0: i32) -> (i32, i32) {
    %c0_i32 = arith.constant 0 : i32
    %c0_i32_0 = arith.constant 0 : i32
    return %c0_i32, %arg0 : i32, i32
  }
}

</mosaic_0001>

<bundles_post_ra>
// kernel: tpu_custom_call.1
= control target key start
LH: loop header
LB: loop body
LE: loop exit
PB: predicated region body
PF: predicated region fallthrough
CT: control target
= control target key end

     0   :  { %11 = vsyncpa [#allocation5], 0  ;;  %s11620_s0 = inlined_call_operand.vmem [shape: f32[9,196,2], index: 0, kind: input, shape index: {}]   ;;  %s11621_s1 = inlined_call_operand.vmem [shape: f32[8,9], index: 1, kind: input, shape index: {}]   ;;  %s11622_s2 = inlined_call_operand.vmem [shape: f32[8], index: 2, kind: input, shape index: {}]   ;;  %s11623_s3 = inlined_call_operand.vmem [shape: f32[8,196], index: 3, kind: input, shape index: {}]   ;;  %s11624_s4 = inlined_call_operand.<no memory space> [shape: f32[1], index: 4, kind: input, shape index: {}]   ;;  %s11625_s5 = inlined_call_operand.hbm [shape: f32[1,2], index: 5, kind: output, shape index: {}]  }
   0x1   :  { %12 = vsyncpa [#allocation7], 0 }
   0x2   :  { %13 = vsyncpa [#allocation4], 0  ;;  %s22_s20 = sshll.u32 %s11621_s1, 4  ;;  %s32_s23 = sshll.u32 %s11622_s2, 4  ;;  %s23_s20 = int_to_ptr.vmem [resolvable:$true] %s22_s20  ;;  %s33_s23 = int_to_ptr.vmem [resolvable:$true] %s32_s23 }
   0x3   :  { %s6083_s24 = scalar_lea.vmem %s23_s20, 128  ;;  %p6088_p1 = scmp.lt.s32.totalorder %s23_s20, %s23_s20 }
   0x4   :  { %p6084_p0 = scmp.ne.s32.totalorder %s23_s20, %s6083_s24  ;;  %p6089_p2 = scmp.lt.s32.totalorder %s6083_s24, %s6083_s24 }
   0x6   :  { %p6090_p3 = por %p6089_p2, %p6088_p1 }
   0x8   :  { %p6091_p4 = pnand %p6090_p3, %p6084_p0 }
   0xa   :  { %6094 = shalt.err (!%p6091_p4)
}
   0xb   :  { %s6133_s25 = smov [#allocation3]   ;;  %s6095_s26 = scalar_lea.vmem %s33_s23, 16 }
   0xc   :  { %25 = dma.vmem_to_smem %s23_s20, 128, %s6133_s25, [#allocation5]  }
   0xd   :  { %p6096_p5 = scmp.ne.s32.totalorder %s33_s23, %s6095_s26  ;;  %p6100_p6 = scmp.lt.s32.totalorder %s33_s23, %s33_s23 }
   0xe   :  { %p6101_p7 = scmp.lt.s32.totalorder %s6095_s26, %s6095_s26 }
  0x10   :  { %p6102_p8 = por %p6101_p7, %p6100_p6 }
  0x12   :  { %p6103_p9 = pnand %p6102_p8, %p6096_p5 }
  0x14   :  { %6106 = shalt.err (!%p6103_p9)
}
  0x15   :  { %s6134_s1 = smov [#allocation6]  }
  0x16   :  { %35 = dma.vmem_to_smem %s33_s23, 16, %s6134_s1, [#allocation7]  }
  0x17   :  { %6127 = dma.done.wait [#allocation5], 128  }
  0x18   :  { %6128 = vsyncadd [#allocation5], 4294967168 }
  0x19   :  { %6129 = dma.done.wait [#allocation7], 16  }
  0x1a   :  { %6130 = vsyncadd [#allocation7], 4294967280 }
  0x1b   :  { %46 = sfence }
  0x1c   :  { %s5308_s2 = sld [smem:[#allocation6 + $0x1]]  ;;  %v6135_v0 = vmov 0.0   ;;  %v6178_v1 = vld [vmem:[%s11620_s0 + $0x78] sm:$0xff]  ;;  %v6183_v2 = vld [vmem:[%s11620_s0 + $0x70] sm:$0xff]  ;;  %v6188_v3 = vld [vmem:[%s11620_s0 + $0x140] sm:$0xff]  ;;  %vm1330_vm0 = vcmask 1043456  }
  0x1d   :  { %1334 = vmatprep.subr.mxu0 %v6135_v0  ;;  %1409 = vmatprep.subr.mxu1 %v6135_v0  ;;  %s5309_s27 = sld [smem:[#allocation3 + $0x80]]  ;;  %v6195_v4 = vld [vmem:[%s11620_s0 + $0x138] sm:$0xff]  ;;  %v6200_v5 = vld [vmem:[%s11620_s0 + $0x208] sm:$0xff]  ;;  %v6211_v8 = vld [vmem:[%s11620_s0 + $0x2d0] sm:$0xff]  ;;  %vm1327_vm1 = vcmask 556032   ;;  %vm5082_vm2 = vcmask 8192  }
  0x1e   :  { %s5310_s28 = sld [smem:[#allocation3 + $0x81]]  ;;  %v6222_v11 = vld [vmem:[%s11620_s0 + $0x200] sm:$0xff]  ;;  %v6235_v15 = vld [vmem:[%s11620_s0 + $0x2c8] sm:$0xff]  ;;  %v6242_v17 = vld [vmem:[%s11620_s0 + $0x398] sm:$0xff] }
  0x1f   :  { %s5311_s29 = sld [smem:[#allocation3 + $0x82]]  ;;  %v6255_v22 = vld [vmem:[%s11620_s0 + $0x68] sm:$0xff]  ;;  %v6260_v23 = vld [vmem:[%s11620_s0 + $0x130] sm:$0xff]  ;;  %v6278_v28 = vld [vmem:[%s11620_s0 + $0x460] sm:$0xff] }
  0x20   :  { %s5312_s30 = sld [smem:[#allocation3 + $0x83]]  ;;  %v6271_v26 = vld [vmem:[%s11620_s0 + $0x390] sm:$0xff]  ;;  %v6283_v29 = vld [vmem:[%s11620_s0 + $0x528] sm:$0xff]  ;;  %v6293_v32 = vld [vmem:[%s11620_s0 + $0x458] sm:$0xff] }
  0x21   :  { %s5313_s8 = sld [smem:[#allocation3 + $0x84]]  ;;  %v6300_v35 = vld [vmem:[%s11620_s0 + $0x5f0] sm:$0xff]  ;;  %v6312_v38 = vld [vmem:[%s11620_s0 + $0x520] sm:$0xff]  ;;  %v6323_v41 = vld [vmem:[%s11620_s0 + $0x6b8] sm:$0xff] }
  0x22   :  { %s6190_s13 = sld [smem:[#allocation3 + $0x85]]  ;;  %v6204_v7 = vstv %s5308_s2  ;;  %v6333_v44 = vld [vmem:[%s11620_s0 + $0x5e8] sm:$0xff]  ;;  %v6372_v62 = vld [vmem:[%s11620_s0 + $0x6b0] sm:$0xff] }
  0x23   :  { %v6202_v6 = vstv %s5309_s27  ;;  %s6206_s18 = sld [smem:[#allocation3 + $0x86]] }
  0x24   :  { %v820_v9 = vmul.f32 %v6202_v6, %v6178_v1  ;;  %v6215_v10 = vstv %s5310_s28  ;;  %s6217_s21 = sld [smem:[#allocation3 + $0x87]]  ;;  %v819_v12 = vmul.f32 %v6202_v6, %v6183_v2  ;;  %v818_v39 = vmul.f32 %v6202_v6, %v6255_v22 }
  0x25   :  { %v873_v13 = vmul.f32 %v6188_v3, %v6215_v10  ;;  %v6228_v14 = vstv %s5311_s29  ;;  %s6230_s24 = sld [smem:[#allocation3 + $0x88]]  ;;  %v872_v16 = vmul.f32 %v6195_v4, %v6215_v10  ;;  %v6318_v40 = vmul.f32 %v6260_v23, %v6215_v10 }
  0x26   :  { %v846_v18 = vadd.f32 %v6204_v7, %v820_v9  ;;  %v925_v19 = vmul.f32 %v6200_v5, %v6228_v14  ;;  %v6247_v20 = vstv %s5312_s30  ;;  %s6249_s27 = sld [smem:[#allocation6]]  ;;  %v845_v21 = vadd.f32 %v6204_v7, %v819_v12 }
  0x27   :  { %v977_v24 = vmul.f32 %v6211_v8, %v6247_v20  ;;  %v6264_v25 = vstv %s5313_s8  ;;  %s6266_s30 = sld [smem:[#allocation3]]  ;;  %v924_v27 = vmul.f32 %v6222_v11, %v6228_v14  ;;  %v976_v34 = vmul.f32 %v6235_v15, %v6247_v20 }
  0x28   :  { %v898_v30 = vadd.f32 %v873_v13, %v846_v18  ;;  %v6286_v31 = vstv %s6190_s13  ;;  %s6288_s8 = sld [smem:[#allocation3 + $0x1]]  ;;  %v897_v33 = vadd.f32 %v872_v16, %v845_v21  ;;  %v1029_v36 = vmul.f32 %v6242_v17, %v6264_v25 }
  0x29   :  { %v6305_v37 = vstv %s6206_s18  ;;  %s6307_s13 = sld [smem:[#allocation3 + $0x2]]  ;;  %v1028_v46 = vmul.f32 %v6271_v26, %v6264_v25  ;;  %v1081_v47 = vmul.f32 %v6278_v28, %v6286_v31  ;;  %v1080_v50 = vmul.f32 %v6293_v32, %v6286_v31 }
  0x2a   :  { %v950_v42 = vadd.f32 %v925_v19, %v898_v30  ;;  %v6326_v43 = vstv %s6217_s21  ;;  %s6328_s18 = sld [smem:[#allocation3 + $0x3]]  ;;  %v949_v45 = vadd.f32 %v924_v27, %v897_v33  ;;  %v1133_v48 = vmul.f32 %v6283_v29, %v6305_v37 }
  0x2b   :  { %v6342_v49 = vstv %s6230_s24  ;;  %s5178_s21 = sld [smem:[#allocation3 + $0x4]]  ;;  %v1185_v52 = vmul.f32 %v6300_v35, %v6326_v43  ;;  %v1132_v54 = vmul.f32 %v6312_v38, %v6305_v37  ;;  %v1184_v58 = vmul.f32 %v6333_v44, %v6326_v43 }
  0x2c   :  { %v1002_v51 = vadd.f32 %v977_v24, %v950_v42  ;;  %s6348_s28 = sld [smem:[#allocation3 + $0x5]]  ;;  %v1001_v53 = vadd.f32 %v976_v34, %v949_v45  ;;  %v1237_v55 = vmul.f32 %v6323_v41, %v6342_v49  ;;  %v6358_v57 = vstv %s6249_s27 }
  0x2d   :  { %v6355_v56 = vstv %s6266_s30  ;;  %s6360_s24 = sld [smem:[#allocation3 + $0x6]]  ;;  %v844_v34 = vadd.f32 %v6204_v7, %v818_v39 }
  0x2e   :  { %v1054_v59 = vadd.f32 %v1029_v36, %v1002_v51  ;;  %v92_v60 = vmul.f32 %v6355_v56, %v6178_v1  ;;  %v6367_v61 = vstv %s6288_s8  ;;  %s5256_s29 = sld [smem:[#allocation3 + $0x7]]  ;;  %v1053_v63 = vadd.f32 %v1028_v46, %v1001_v53 }
  0x2f   :  { %v171_v9 = vmul.f32 %v6188_v3, %v6367_v61  ;;  %v6377_v12 = vstv %s6307_s13  ;;  %s5282_s27 = sld [smem:[#allocation3 + $0x8]]  ;;  %v91_v13 = vmul.f32 %v6355_v56, %v6183_v2  ;;  %v170_v1 = vmul.f32 %v6195_v4, %v6367_v61  ;;  %v6392_v3 = vld [vmem:[%s11620_s0 + $0x1f8] sm:$0xff] }
  0x30   :  { %v1106_v16 = vadd.f32 %v1081_v47, %v1054_v59  ;;  %v118_v18 = vadd.f32 %v6358_v57, %v92_v60  ;;  %v249_v19 = vmul.f32 %v6200_v5, %v6377_v12  ;;  %v6387_v21 = vstv %s6328_s18  ;;  %s7530_s30 = sld [smem:[#allocation6 + $0x2]] }
  0x31   :  { %v6394_v24 = vstv %s5178_s21  ;;  %v1105_v2 = vadd.f32 %v1080_v50, %v1053_v63  ;;  %v1236_v4 = vmul.f32 %v6372_v62, %v6342_v49  ;;  %v117_v27 = vadd.f32 %v6358_v57, %v91_v13  ;;  %s7540_s14 = sld [smem:[#allocation3 + $0x180]] }
  0x32   :  { %v1158_v30 = vadd.f32 %v1133_v48, %v1106_v16  ;;  %v196_v33 = vadd.f32 %v171_v9, %v118_v18  ;;  %v327_v5 = vmul.f32 %v6211_v8, %v6387_v21  ;;  %v6403_v36 = vstv %s6348_s28  ;;  %s7544_s15 = sld [smem:[#allocation3 + $0x101]] }
  0x33   :  { %v1157_v42 = vadd.f32 %v1132_v54, %v1105_v2  ;;  %v195_v45 = vadd.f32 %v170_v1, %v117_v27  ;;  %v923_v46 = vmul.f32 %v6392_v3, %v6228_v14  ;;  %v405_v51 = vmul.f32 %v6242_v17, %v6394_v24  ;;  %s7551_s17 = sld [smem:[#allocation6 + $0x3]] }
  0x34   :  { %v1210_v47 = vadd.f32 %v1185_v52, %v1158_v30  ;;  %v274_v50 = vadd.f32 %v249_v19, %v196_v33  ;;  %v6410_v53 = vstv %s6360_s24  ;;  %v6412_v48 = vstv %s5256_s29  ;;  %v5218_v19 = vld [vmem:[%s11620_s0 + $0x450] sm:$0xff]  ;;  %s7520_s24 = sld [smem:[#allocation3 + $0x100]] }
  0x35   :  { %v6414_v59 = vstv %s5282_s27  ;;  %v1209_v8 = vadd.f32 %v1184_v58, %v1157_v42  ;;  %v248_v39 = vmul.f32 %v6222_v11, %v6377_v12  ;;  %v483_v63 = vmul.f32 %v6278_v28, %v6403_v36  ;;  %v5166_v11 = vld [vmem:[%s11620_s0 + $0x2c0] sm:$0xff]  ;;  %s7555_s19 = sld [smem:[#allocation3 + $0x102]] }
  0x36   :  { %v1262_v54 = vadd.f32 %v1237_v55, %v1210_v47  ;;  %v352_v60 = vadd.f32 %v327_v5, %v274_v50  ;;  %v326_v52 = vmul.f32 %v6235_v15, %v6387_v21  ;;  %v561_v17 = vmul.f32 %v6283_v29, %v6410_v53  ;;  %v5192_v29 = vld [vmem:[%s11620_s0 + $0x388] sm:$0xff]  ;;  %v5244_v5 = vld [vmem:[%s11620_s0 + $0x518] sm:$0xff]  ;;  %s7563_s22 = sld [smem:[#allocation3 + $0x103]] }
  0x37   :  { %v1261_v9 = vadd.f32 %v1236_v4, %v1209_v8  ;;  %v273_v13 = vadd.f32 %v248_v39, %v195_v45  ;;  %v404_v1 = vmul.f32 %v6271_v26, %v6394_v24  ;;  %v639_v28 = vmul.f32 %v6300_v35, %v6412_v48  ;;  %s7568_s23 = sld [smem:[#allocation3 + $0x104]] }
  0x38   :  { %v1287_v55 = vmul.f32 0.2, %v1262_v54  ;;  %v430_v58 = vadd.f32 %v405_v51, %v352_v60  ;;  %v717_v15 = vmul.f32 %v6323_v41, %v6414_v59  ;;  %v482_v26 = vmul.f32 %v6293_v32, %v6403_v36  ;;  %v5270_v32 = vld [vmem:[%s11620_s0 + $0x5e0] sm:$0xff]  ;;  %s7573_s25 = sld [smem:[#allocation3 + $0x105]] }
  0x39   :  { %v1286_v16 = vmul.f32 0.2, %v1261_v9  ;;  %v351_v18 = vadd.f32 %v326_v52, %v273_v13  ;;  %v896_v2 = vadd.f32 %v6318_v40, %v844_v34  ;;  %v560_v41 = vmul.f32 %v6312_v38, %v6410_v53  ;;  %v5296_v40 = vld [vmem:[%s11620_s0 + $0x6a8] sm:$0xff]  ;;  %v5139_v13 = vld [vmem:[%s11620_s0 + $0x1f0] sm:$0xff]  ;;  %s7579_s26 = sld [smem:[#allocation3 + $0x106]] }
  0x3a   :  { %v1312_v4 = vmax.f32 %v1262_v54, %v1287_v55  ;;  %v508_v35 = vadd.f32 %v483_v63, %v430_v58  ;;  %v975_v27 = vmul.f32 %v5166_v11, %v6247_v20  ;;  %v1027_v42 = vmul.f32 %v5192_v29, %v6264_v25  ;;  %v63_v63 = vld [vmem:[%s11620_s0 + $0x60] sm:$0xff]  ;;  %s7583_s18 = sld [smem:[#allocation3 + $0x181]] }
  0x3b   :  { %v1311_v30 = vmax.f32 %v1261_v9, %v1286_v16  ;;  %v429_v33 = vadd.f32 %v404_v1, %v351_v18  ;;  %v948_v34 = vadd.f32 %v923_v46, %v896_v2  ;;  %v638_v45 = vmul.f32 %v6333_v44, %v6412_v48  ;;  %v5113_v9 = vld [vmem:[%s11620_s0 + $0x128] sm:$0xff]  ;;  %s7592_s1 = sld [smem:[#allocation3 + $0x182]] }
  0x3c   :  { %1335 = vmatpush1.msra.mxu0 %v1312_v4  ;;  %v586_v38 = vadd.f32 %v561_v17, %v508_v35  ;;  %v716_v47 = vmul.f32 %v6372_v62, %v6414_v59  ;;  %v1079_v50 = vmul.f32 %v5218_v19, %v6286_v31  ;;  %v90_v39 = vmul.f32 %v6355_v56, %v6255_v22  ;;  %s7598_s28 = sld [smem:[#allocation3 + $0x107]] }
  0x3d   :  { %1336 = vmatprep.subr.mxu0 %v6135_v0  ;;  %v507_v51 = vadd.f32 %v482_v26, %v429_v33  ;;  %v1000_v8 = vadd.f32 %v975_v27, %v948_v34  ;;  %v169_v46 = vmul.f32 %v6260_v23, %v6367_v61  ;;  %v1131_v60 = vmul.f32 %v5244_v5, %v6305_v37  ;;  %s7616_s7 = sld [smem:[#allocation3 + $0x183]] }
  0x3e   :  { %v664_v54 = vadd.f32 %v639_v28, %v586_v38  ;;  %1337 = vmatpush1.msra.mxu0 %v1311_v30  ;;  %v1183_v44 = vmul.f32 %v5270_v32, %v6326_v43  ;;  %v1235_v62 = vmul.f32 %v5296_v40, %v6342_v49  ;;  %v116_v22 = vadd.f32 %v6358_v57, %v90_v39  ;;  %v5217_v30 = vld [vmem:[%s11620_s0 + $0x448] sm:$0xff]  ;;  %s7629_s9 = sld [smem:[#allocation3 + $0x184]] }
  0x3f   :  { %v585_v52 = vadd.f32 %v560_v41, %v507_v51  ;;  %1338 = vmatprep.subr.mxu0 %v6135_v0  ;;  %v1052_v17 = vadd.f32 %v1027_v42, %v1000_v8  ;;  %v247_v23 = vmul.f32 %v6392_v3, %v6377_v12  ;;  %v325_v55 = vmul.f32 %v5166_v11, %v6387_v21  ;;  %v5165_v3 = vld [vmem:[%s11620_s0 + $0x2b8] sm:$0xff]  ;;  %v5243_v51 = vld [vmem:[%s11620_s0 + $0x510] sm:$0xff]  ;;  %s7640_s8 = sld [smem:[#allocation3 + $0x185]] }
  0x40   :  { %v742_v1 = vadd.f32 %v717_v15, %v664_v54  ;;  %v403_v58 = vmul.f32 %v5192_v29, %v6394_v24  ;;  %v481_v28 = vmul.f32 %v5218_v19, %v6403_v36  ;;  %v194_v26 = vadd.f32 %v169_v46, %v116_v22  ;;  %v5191_v19 = vld [vmem:[%s11620_s0 + $0x380] sm:$0xff]  ;;  %v5269_v8 = vld [vmem:[%s11620_s0 + $0x5d8] sm:$0xff]  ;;  %s7650_s16 = sld [smem:[#allocation3 + $0x186]] }
  0x41   :  { %v663_v16 = vadd.f32 %v638_v45, %v585_v52  ;;  %v1104_v18 = vadd.f32 %v1079_v50, %v1052_v17  ;;  %v817_v2 = vmul.f32 %v6202_v6, %v63_v63  ;;  %v559_v35 = vmul.f32 %v5244_v5, %v6410_v53  ;;  %s7656_s13 = sld [smem:[#allocation3 + $0x187]] }
  0x42   :  { %v767_v4 = vmul.f32 0.2, %v742_v1  ;;  %v870_v15 = vmul.f32 %v5113_v9, %v6215_v10  ;;  %v922_v11 = vmul.f32 %v5139_v13, %v6228_v14  ;;  %v272_v27 = vadd.f32 %v247_v23, %v194_v26  ;;  %s7670_s2 = sld [smem:[#allocation3 + $0x188]] }
  0x43   :  { %v741_v41 = vadd.f32 %v716_v47, %v663_v16  ;;  %v1156_v29 = vadd.f32 %v1131_v60, %v1104_v18  ;;  %v843_v33 = vadd.f32 %v6204_v7, %v817_v2  ;;  %v637_v5 = vmul.f32 %v5270_v32, %v6412_v48  ;;  %v5295_v32 = vld [vmem:[%s11620_s0 + $0x6a0] sm:$0xff]  ;;  %s8856_s12 = sld [smem:[#allocation3 + $0x200]] }
  0x44   :  { %v792_v34 = vmax.f32 %v742_v1, %v767_v4  ;;  %v715_v42 = vmul.f32 %v5296_v40, %v6414_v59  ;;  %v974_v38 = vmul.f32 %v5165_v3, %v6247_v20  ;;  %v350_v50 = vadd.f32 %v325_v55, %v272_v27  ;;  %v5164_v27 = vld [vmem:[%s11620_s0 + $0x2b0] sm:$0xff]  ;;  %s8936_s20 = sld [smem:[#allocation3 + $0x208]] }
  0x45   :  { %v766_v45 = vmul.f32 0.2, %v741_v41  ;;  %v1208_v47 = vadd.f32 %v1183_v44, %v1156_v29  ;;  %v895_v39 = vadd.f32 %v870_v15, %v843_v33  ;;  %v1026_v40 = vmul.f32 %v5191_v19, %v6264_v25  ;;  %v5190_v33 = vld [vmem:[%s11620_s0 + $0x378] sm:$0xff]  ;;  %s9006_s11 = sld [smem:[#allocation3 + $0x288]] }
  0x46   :  { %1410 = vmatpush1.msra.mxu1 %v792_v34  ;;  %v1078_v46 = vmul.f32 %v5217_v30, %v6286_v31  ;;  %v89_v54 = vmul.f32 %v6355_v56, %v63_v63  ;;  %v168_v60 = vmul.f32 %v5113_v9, %v6367_v61  ;;  %v428_v17 = vadd.f32 %v403_v58, %v350_v50  ;;  %v62_v63 = vld [vmem:[%s11620_s0 + $0x58] sm:$0xff]  ;;  %v5112_v58 = vld [vmem:[%s11620_s0 + $0x120] sm:$0xff]  ;;  %v5242_v50 = vld [vmem:[%s11620_s0 + $0x508] sm:$0xff]  ;;  %s10207_s29 = sld [smem:[#allocation3 + $0x300]] }
  0x47   :  { %1411 = vmatprep.subr.mxu1 %v6135_v0  ;;  %v791_v44 = vmax.f32 %v741_v41, %v766_v45  ;;  %v1260_v52 = vadd.f32 %v1235_v62, %v1208_v47  ;;  %v947_v22 = vadd.f32 %v922_v11, %v895_v39  ;;  %v1130_v23 = vmul.f32 %v5243_v51, %v6305_v37  ;;  %s10214_s27 = sld [smem:[#allocation6 + $0x6]] }
  0x48   :  { %v1182_v1 = vmul.f32 %v5269_v8, %v6326_v43  ;;  %v115_v55 = vadd.f32 %v6358_v57, %v89_v54  ;;  %v246_v16 = vmul.f32 %v5139_v13, %v6377_v12  ;;  %v506_v18 = vadd.f32 %v481_v28, %v428_v17  ;;  %v5138_v28 = vld [vmem:[%s11620_s0 + $0x1e8] sm:$0xff]  ;;  %v5268_v54 = vld [vmem:[%s11620_s0 + $0x5d0] sm:$0xff]  ;;  %s10265_s21 = sld [smem:[#allocation3 + $0x305]] }
  0x49   :  { %1412 = vmatpush1.msra.mxu1 %v791_v44  ;;  %v1285_v9 = vmul.f32 0.2, %v1260_v52  ;;  %v999_v26 = vadd.f32 %v974_v38, %v947_v22  ;;  %v1234_v62 = vmul.f32 %v5295_v32, %v6342_v49  ;;  %v324_v4 = vmul.f32 %v5165_v3, %v6387_v21  ;;  %s10279_s6 = sld [smem:[#allocation3 + $0x307]] }
  0x4a   :  { %1413 = vmatprep.subr.mxu1 %v6135_v0  ;;  %v193_v2 = vadd.f32 %v168_v60, %v115_v55  ;;  %v402_v13 = vmul.f32 %v5191_v19, %v6394_v24  ;;  %v480_v15 = vmul.f32 %v5217_v30, %v6403_v36  ;;  %v584_v41 = vadd.f32 %v559_v35, %v506_v18  ;;  %v5216_v35 = vld [vmem:[%s11620_s0 + $0x440] sm:$0xff]  ;;  %s10289_s10 = sld [smem:[#allocation3 + $0x308]] }
  0x4b   :  { %v1310_v11 = vmax.f32 %v1260_v52, %v1285_v9  ;;  %v1051_v29 = vadd.f32 %v1026_v40, %v999_v26  ;;  %v816_v3 = vmul.f32 %v6202_v6, %v62_v63  ;;  %v558_v30 = vmul.f32 %v5243_v51, %v6410_v53  ;;  %v5294_v52 = vld [vmem:[%s11620_s0 + $0x698] sm:$0xff] }
  0x4c   :  { %v271_v19 = vadd.f32 %v246_v16, %v193_v2  ;;  %v636_v34 = vmul.f32 %v5269_v8, %v6412_v48  ;;  %v869_v38 = vmul.f32 %v5112_v58, %v6215_v10  ;;  %v662_v45 = vadd.f32 %v637_v5, %v584_v41 }
  0x4d   :  { %1339 = vmatpush1.msra.mxu0 %v1310_v11  ;;  %v1103_v47 = vadd.f32 %v1078_v46, %v1051_v29  ;;  %v842_v39 = vadd.f32 %v6204_v7, %v816_v3  ;;  %v921_v40 = vmul.f32 %v5138_v28, %v6228_v14  ;;  %v714_v8 = vmul.f32 %v5295_v32, %v6414_v59 }
  0x4e   :  { %1340 = vmatprep.subr.mxu0 %v6135_v0  ;;  %v349_v51 = vadd.f32 %v324_v4, %v271_v19  ;;  %v973_v5 = vmul.f32 %v5164_v27, %v6247_v20  ;;  %v1025_v46 = vmul.f32 %v5190_v33, %v6264_v25  ;;  %v740_v60 = vadd.f32 %v715_v42, %v662_v45 }
  0x4f   :  { %v1155_v44 = vadd.f32 %v1130_v23, %v1103_v47  ;;  %v894_v17 = vadd.f32 %v869_v38, %v842_v39  ;;  %v1077_v22 = vmul.f32 %v5216_v35, %v6286_v31  ;;  %v1129_v32 = vmul.f32 %v5242_v50, %v6305_v37 }
  0x50   :  { %v427_v55 = vadd.f32 %v402_v13, %v349_v51  ;;  %v88_v16 = vmul.f32 %v6355_v56, %v62_v63  ;;  %v167_v9 = vmul.f32 %v5112_v58, %v6367_v61  ;;  %v765_v18 = vmul.f32 0.2, %v740_v60  ;;  %v61_v13 = vld [vmem:[%s11620_s0 + $0x50] sm:$0xff]  ;;  %v5111_v63 = vld [vmem:[%s11620_s0 + $0x118] sm:$0xff] }
  0x51   :  { %v1207_v26 = vadd.f32 %v1182_v1, %v1155_v44  ;;  %v946_v2 = vadd.f32 %v921_v40, %v894_v17  ;;  %v1181_v42 = vmul.f32 %v5268_v54, %v6326_v43  ;;  %v1233_v4 = vmul.f32 %v5294_v52, %v6342_v49 }
  0x52   :  { %v505_v23 = vadd.f32 %v480_v15, %v427_v55  ;;  %v114_v11 = vadd.f32 %v6358_v57, %v88_v16  ;;  %v245_v41 = vmul.f32 %v5138_v28, %v6377_v12  ;;  %v790_v58 = vmax.f32 %v740_v60, %v765_v18  ;;  %v5137_v28 = vld [vmem:[%s11620_s0 + $0x1e0] sm:$0xff] }
  0x53   :  { %v1259_v1 = vadd.f32 %v1234_v62, %v1207_v26  ;;  %v998_v29 = vadd.f32 %v973_v5, %v946_v2  ;;  %v323_v3 = vmul.f32 %v5164_v27, %v6387_v21  ;;  %v401_v38 = vmul.f32 %v5190_v33, %v6394_v24  ;;  %v5163_v62 = vld [vmem:[%s11620_s0 + $0x2a8] sm:$0xff]  ;;  %v5189_v5 = vld [vmem:[%s11620_s0 + $0x370] sm:$0xff] }
  0x54   :  { %v583_v15 = vadd.f32 %v558_v30, %v505_v23  ;;  %v192_v19 = vadd.f32 %v167_v9, %v114_v11  ;;  %v479_v45 = vmul.f32 %v5216_v35, %v6403_v36  ;;  %1414 = vmatpush1.msra.mxu1 %v790_v58  ;;  %v815_v40 = vmul.f32 %v6202_v6, %v61_v13  ;;  %v5267_v9 = vld [vmem:[%s11620_s0 + $0x5c8] sm:$0xff]  ;;  %v5293_v11 = vld [vmem:[%s11620_s0 + $0x690] sm:$0xff] }
  0x55   :  { %v1284_v47 = vmul.f32 0.2, %v1259_v1  ;;  %v1050_v39 = vadd.f32 %v1025_v46, %v998_v29  ;;  %v868_v27 = vmul.f32 %v5111_v63, %v6215_v10  ;;  %1415 = vmatprep.subr.mxu1 %v6135_v0  ;;  %v557_v35 = vmul.f32 %v5242_v50, %v6410_v53  ;;  %v5215_v46 = vld [vmem:[%s11620_s0 + $0x438] sm:$0xff] }
  0x56   :  { %v661_v33 = vadd.f32 %v636_v34, %v583_v15  ;;  %v270_v30 = vadd.f32 %v245_v41, %v192_v19  ;;  %v635_v51 = vmul.f32 %v5268_v54, %v6412_v48  ;;  %v841_v17 = vadd.f32 %v6204_v7, %v815_v40  ;;  %v5241_v54 = vld [vmem:[%s11620_s0 + $0x500] sm:$0xff] }
  0x57   :  { %v1309_v60 = vmax.f32 %v1259_v1, %v1284_v47  ;;  %v1102_v44 = vadd.f32 %v1077_v22, %v1050_v39  ;;  %v920_v55 = vmul.f32 %v5137_v28, %v6228_v14  ;;  %v713_v50 = vmul.f32 %v5294_v52, %v6414_v59  ;;  %v60_v39 = vld [vmem:[%s11620_s0 + $0x48] sm:$0xff] }
  0x58   :  { %v739_v34 = vadd.f32 %v714_v8, %v661_v33  ;;  %v348_v16 = vadd.f32 %v323_v3, %v270_v30  ;;  %v972_v18 = vmul.f32 %v5163_v62, %v6247_v20  ;;  %v893_v26 = vadd.f32 %v868_v27, %v841_v17  ;;  %v5162_v17 = vld [vmem:[%s11620_s0 + $0x2a0] sm:$0xff] }
  0x59   :  { %1341 = vmatpush1.msra.mxu0 %v1309_v60  ;;  %v1154_v22 = vadd.f32 %v1129_v32, %v1102_v44  ;;  %v1024_v2 = vmul.f32 %v5189_v5, %v6264_v25  ;;  %v1076_v8 = vmul.f32 %v5215_v46, %v6286_v31  ;;  %v87_v41 = vmul.f32 %v6355_v56, %v61_v13  ;;  %v5110_v13 = vld [vmem:[%s11620_s0 + $0x110] sm:$0xff]  ;;  %v5136_v60 = vld [vmem:[%s11620_s0 + $0x1d8] sm:$0xff] }
  0x5a   :  { %v764_v23 = vmul.f32 0.2, %v739_v34  ;;  %1342 = vmatprep.subr.mxu0 %v6135_v0  ;;  %v426_v52 = vadd.f32 %v401_v38, %v348_v16  ;;  %v166_v58 = vmul.f32 %v5111_v63, %v6367_v61  ;;  %v945_v29 = vadd.f32 %v920_v55, %v893_v26  ;;  %v5188_v16 = vld [vmem:[%s11620_s0 + $0x368] sm:$0xff] }
  0x5b   :  { %v1206_v1 = vadd.f32 %v1181_v42, %v1154_v22  ;;  %v1128_v32 = vmul.f32 %v5241_v54, %v6305_v37  ;;  %v1180_v3 = vmul.f32 %v5267_v9, %v6326_v43  ;;  %v113_v47 = vadd.f32 %v6358_v57, %v87_v41  ;;  %v5266_v41 = vld [vmem:[%s11620_s0 + $0x5c0] sm:$0xff] }
  0x5c   :  { %v789_v15 = vmax.f32 %v739_v34, %v764_v23  ;;  %v504_v19 = vadd.f32 %v479_v45, %v426_v52  ;;  %v244_v38 = vmul.f32 %v5137_v28, %v6377_v12  ;;  %v997_v63 = vadd.f32 %v972_v18, %v945_v29  ;;  %v5214_v18 = vld [vmem:[%s11620_s0 + $0x430] sm:$0xff] }
  0x5d   :  { %v1258_v42 = vadd.f32 %v1233_v4, %v1206_v1  ;;  %v1232_v40 = vmul.f32 %v5293_v11, %v6342_v49  ;;  %v322_v27 = vmul.f32 %v5163_v62, %v6387_v21  ;;  %v191_v33 = vadd.f32 %v166_v58, %v113_v47 }
  0x5e   :  { %1416 = vmatpush1.msra.mxu1 %v789_v15  ;;  %v582_v45 = vadd.f32 %v557_v35, %v504_v19  ;;  %v400_v30 = vmul.f32 %v5189_v5, %v6394_v24  ;;  %v478_v28 = vmul.f32 %v5215_v46, %v6403_v36  ;;  %v1049_v4 = vadd.f32 %v1024_v2, %v997_v63  ;;  %v5292_v19 = vld [vmem:[%s11620_s0 + $0x688] sm:$0xff] }
  0x5f   :  { %1417 = vmatprep.subr.mxu1 %v6135_v0  ;;  %v1283_v44 = vmul.f32 0.2, %v1258_v42  ;;  %v814_v62 = vmul.f32 %v6202_v6, %v60_v39  ;;  %v867_v35 = vmul.f32 %v5110_v13, %v6215_v10  ;;  %v269_v5 = vadd.f32 %v244_v38, %v191_v33 }
  0x60   :  { %v660_v55 = vadd.f32 %v635_v51, %v582_v45  ;;  %v556_v46 = vmul.f32 %v5241_v54, %v6410_v53  ;;  %v634_v34 = vmul.f32 %v5267_v9, %v6412_v48  ;;  %v1101_v26 = vadd.f32 %v1076_v8, %v1049_v4  ;;  %v5240_v9 = vld [vmem:[%s11620_s0 + $0x4f8] sm:$0xff]  ;;  %v59_v4 = vld [vmem:[%s11620_s0 + $0x40] sm:$0xff] }
  0x61   :  { %v1308_v22 = vmax.f32 %v1258_v42, %v1283_v44  ;;  %v840_v2 = vadd.f32 %v6204_v7, %v814_v62  ;;  %v919_v23 = vmul.f32 %v5136_v60, %v6228_v14  ;;  %v347_v52 = vadd.f32 %v322_v27, %v269_v5 }
  0x62   :  { %v738_v51 = vadd.f32 %v713_v50, %v660_v55  ;;  %v712_v54 = vmul.f32 %v5293_v11, %v6414_v59  ;;  %v971_v58 = vmul.f32 %v5162_v17, %v6247_v20  ;;  %v1153_v8 = vadd.f32 %v1128_v32, %v1101_v26 }
  0x63   :  { %1343 = vmatpush1.msra.mxu0 %v1308_v22  ;;  %v892_v1 = vadd.f32 %v867_v35, %v840_v2  ;;  %v1023_v29 = vmul.f32 %v5188_v16, %v6264_v25  ;;  %v1075_v50 = vmul.f32 %v5214_v18, %v6286_v31  ;;  %v425_v11 = vadd.f32 %v400_v30, %v347_v52  ;;  %v5135_v22 = vld [vmem:[%s11620_s0 + $0x1d0] sm:$0xff]  ;;  %v5161_v2 = vld [vmem:[%s11620_s0 + $0x298] sm:$0xff]  ;;  %v5187_v52 = vld [vmem:[%s11620_s0 + $0x360] sm:$0xff] }
  0x64   :  { %v763_v15 = vmul.f32 0.2, %v738_v51  ;;  %1344 = vmatprep.subr.mxu0 %v6135_v0  ;;  %v86_v47 = vmul.f32 %v6355_v56, %v60_v39  ;;  %v165_v38 = vmul.f32 %v5110_v13, %v6367_v61  ;;  %v1205_v42 = vadd.f32 %v1180_v3, %v1153_v8  ;;  %v5109_v39 = vld [vmem:[%s11620_s0 + $0x108] sm:$0xff] }
  0x65   :  { %v944_v63 = vadd.f32 %v919_v23, %v892_v1  ;;  %v1127_v32 = vmul.f32 %v5240_v9, %v6305_v37  ;;  %v1179_v27 = vmul.f32 %v5266_v41, %v6326_v43  ;;  %v503_v33 = vadd.f32 %v478_v28, %v425_v11 }
  0x66   :  { %v788_v45 = vmax.f32 %v738_v51, %v763_v15  ;;  %v112_v44 = vadd.f32 %v6358_v57, %v86_v47  ;;  %v243_v30 = vmul.f32 %v5136_v60, %v6377_v12  ;;  %v1257_v3 = vadd.f32 %v1232_v40, %v1205_v42  ;;  %v5265_v47 = vld [vmem:[%s11620_s0 + $0x5b8] sm:$0xff] }
  0x67   :  { %v996_v13 = vadd.f32 %v971_v58, %v944_v63  ;;  %v1231_v62 = vmul.f32 %v5292_v19, %v6342_v49  ;;  %v321_v35 = vmul.f32 %v5162_v17, %v6387_v21  ;;  %v581_v28 = vadd.f32 %v556_v46, %v503_v33  ;;  %v5213_v58 = vld [vmem:[%s11620_s0 + $0x428] sm:$0xff]  ;;  %v5291_v33 = vld [vmem:[%s11620_s0 + $0x680] sm:$0xff] }
  0x68   :  { %1418 = vmatpush1.msra.mxu1 %v788_v45  ;;  %v190_v55 = vadd.f32 %v165_v38, %v112_v44  ;;  %v399_v5 = vmul.f32 %v5188_v16, %v6394_v24  ;;  %v477_v60 = vmul.f32 %v5214_v18, %v6403_v36  ;;  %v1282_v26 = vmul.f32 0.2, %v1257_v3 }
  0x69   :  { %1419 = vmatprep.subr.mxu1 %v6135_v0  ;;  %v1048_v40 = vadd.f32 %v1023_v29, %v996_v13  ;;  %v813_v17 = vmul.f32 %v6202_v6, %v59_v4  ;;  %v866_v46 = vmul.f32 %v5109_v39, %v6215_v10  ;;  %v659_v23 = vadd.f32 %v634_v34, %v581_v28 }
  0x6a   :  { %v268_v16 = vadd.f32 %v243_v30, %v190_v55  ;;  %v555_v18 = vmul.f32 %v5240_v9, %v6410_v53  ;;  %v633_v51 = vmul.f32 %v5266_v41, %v6412_v48  ;;  %v1307_v8 = vmax.f32 %v1257_v3, %v1282_v26  ;;  %v5239_v41 = vld [vmem:[%s11620_s0 + $0x4f0] sm:$0xff] }
  0x6b   :  { %v1100_v1 = vadd.f32 %v1075_v50, %v1048_v40  ;;  %v839_v29 = vadd.f32 %v6204_v7, %v813_v17  ;;  %v918_v15 = vmul.f32 %v5135_v22, %v6228_v14  ;;  %v737_v34 = vadd.f32 %v712_v54, %v659_v23  ;;  %v58_v40 = vld [vmem:[%s11620_s0 + $0x38] sm:$0xff] }
  0x6c   :  { %v346_v11 = vadd.f32 %v321_v35, %v268_v16  ;;  %v711_v9 = vmul.f32 %v5292_v19, %v6414_v59  ;;  %v970_v38 = vmul.f32 %v5161_v2, %v6247_v20  ;;  %1345 = vmatpush1.msra.mxu0 %v1307_v8  ;;  %v1022_v63 = vmul.f32 %v5187_v52, %v6264_v25  ;;  %v5134_v8 = vld [vmem:[%s11620_s0 + $0x1c8] sm:$0xff] }
  0x6d   :  { %v1152_v50 = vadd.f32 %v1127_v32, %v1100_v1  ;;  %v891_v42 = vadd.f32 %v866_v46, %v839_v29  ;;  %v1074_v54 = vmul.f32 %v5213_v58, %v6286_v31  ;;  %v762_v45 = vmul.f32 0.2, %v737_v34  ;;  %1346 = vmatprep.subr.mxu0 %v6135_v0  ;;  %v5160_v29 = vld [vmem:[%s11620_s0 + $0x290] sm:$0xff] }
  0x6e   :  { %v424_v19 = vadd.f32 %v399_v5, %v346_v11  ;;  %v85_v44 = vmul.f32 %v6355_v56, %v59_v4  ;;  %v164_v30 = vmul.f32 %v5109_v39, %v6367_v61  ;;  %v1126_v32 = vmul.f32 %v5239_v41, %v6305_v37  ;;  %v5108_v4 = vld [vmem:[%s11620_s0 + $0x100] sm:$0xff]  ;;  %v5186_v11 = vld [vmem:[%s11620_s0 + $0x358] sm:$0xff] }
  0x6f   :  { %v1204_v3 = vadd.f32 %v1179_v27, %v1152_v50  ;;  %v943_v13 = vadd.f32 %v918_v15, %v891_v42  ;;  %v1178_v35 = vmul.f32 %v5265_v47, %v6326_v43  ;;  %v787_v28 = vmax.f32 %v737_v34, %v762_v45 }
  0x70   :  { %v502_v55 = vadd.f32 %v477_v60, %v424_v19  ;;  %v111_v26 = vadd.f32 %v6358_v57, %v85_v44  ;;  %v242_v5 = vmul.f32 %v5135_v22, %v6377_v12  ;;  %v1230_v17 = vmul.f32 %v5291_v33, %v6342_v49  ;;  %v5264_v44 = vld [vmem:[%s11620_s0 + $0x5b0] sm:$0xff] }
  0x71   :  { %v1256_v27 = vadd.f32 %v1231_v62, %v1204_v3  ;;  %v995_v39 = vadd.f32 %v970_v38, %v943_v13  ;;  %v320_v46 = vmul.f32 %v5161_v2, %v6387_v21  ;;  %1420 = vmatpush1.msra.mxu1 %v787_v28  ;;  %v398_v16 = vmul.f32 %v5187_v52, %v6394_v24  ;;  %v5212_v38 = vld [vmem:[%s11620_s0 + $0x420] sm:$0xff] }
  0x72   :  { %v580_v60 = vadd.f32 %v555_v18, %v502_v55  ;;  %v189_v23 = vadd.f32 %v164_v30, %v111_v26  ;;  %v476_v22 = vmul.f32 %v5213_v58, %v6403_v36  ;;  %1421 = vmatprep.subr.mxu1 %v6135_v0  ;;  %v812_v2 = vmul.f32 %v6202_v6, %v58_v40  ;;  %v5290_v55 = vld [vmem:[%s11620_s0 + $0x678] sm:$0xff] }
  0x73   :  { %v1281_v1 = vmul.f32 0.2, %v1256_v27  ;;  %v1047_v62 = vadd.f32 %v1022_v63, %v995_v39  ;;  %v865_v18 = vmul.f32 %v5108_v4, %v6215_v10  ;;  %v554_v58 = vmul.f32 %v5239_v41, %v6410_v53 }
  0x74   :  { %v658_v15 = vadd.f32 %v633_v51, %v580_v60  ;;  %v267_v52 = vadd.f32 %v242_v5, %v189_v23  ;;  %v632_v34 = vmul.f32 %v5265_v47, %v6412_v48  ;;  %v838_v63 = vadd.f32 %v6204_v7, %v812_v2  ;;  %v5238_v47 = vld [vmem:[%s11620_s0 + $0x4e8] sm:$0xff] }
  0x75   :  { %v1306_v50 = vmax.f32 %v1256_v27, %v1281_v1  ;;  %v1099_v42 = vadd.f32 %v1074_v54, %v1047_v62  ;;  %v917_v45 = vmul.f32 %v5134_v8, %v6228_v14  ;;  %v710_v41 = vmul.f32 %v5291_v33, %v6414_v59  ;;  %v57_v62 = vld [vmem:[%s11620_s0 + $0x30] sm:$0xff] }
  0x76   :  { %v736_v51 = vadd.f32 %v711_v9, %v658_v15  ;;  %v345_v19 = vadd.f32 %v320_v46, %v267_v52  ;;  %v969_v30 = vmul.f32 %v5160_v29, %v6247_v20  ;;  %v890_v3 = vadd.f32 %v865_v18, %v838_v63  ;;  %v5159_v63 = vld [vmem:[%s11620_s0 + $0x288] sm:$0xff] }
  0x77   :  { %1347 = vmatpush1.msra.mxu0 %v1306_v50  ;;  %v1151_v54 = vadd.f32 %v1126_v32, %v1099_v42  ;;  %v1021_v13 = vmul.f32 %v5186_v11, %v6264_v25  ;;  %v1073_v9 = vmul.f32 %v5212_v38, %v6286_v31  ;;  %v84_v26 = vmul.f32 %v6355_v56, %v58_v40  ;;  %v5107_v40 = vld [vmem:[%s11620_s0 + $0xf8] sm:$0xff]  ;;  %v5133_v50 = vld [vmem:[%s11620_s0 + $0x1c0] sm:$0xff] }
  0x78   :  { %v761_v28 = vmul.f32 0.2, %v736_v51  ;;  %1348 = vmatprep.subr.mxu0 %v6135_v0  ;;  %v423_v33 = vadd.f32 %v398_v16, %v345_v19  ;;  %v163_v5 = vmul.f32 %v5108_v4, %v6367_v61  ;;  %v942_v39 = vadd.f32 %v917_v45, %v890_v3  ;;  %v5185_v19 = vld [vmem:[%s11620_s0 + $0x350] sm:$0xff] }
  0x79   :  { %v1203_v27 = vadd.f32 %v1178_v35, %v1151_v54  ;;  %v1125_v32 = vmul.f32 %v5238_v47, %v6305_v37  ;;  %v1177_v46 = vmul.f32 %v5264_v44, %v6326_v43  ;;  %v110_v1 = vadd.f32 %v6358_v57, %v84_v26  ;;  %v5263_v26 = vld [vmem:[%s11620_s0 + $0x5a8] sm:$0xff] }
  0x7a   :  { %v786_v60 = vmax.f32 %v736_v51, %v761_v28  ;;  %v501_v23 = vadd.f32 %v476_v22, %v423_v33  ;;  %v241_v16 = vmul.f32 %v5134_v8, %v6377_v12  ;;  %v994_v4 = vadd.f32 %v969_v30, %v942_v39  ;;  %v5211_v30 = vld [vmem:[%s11620_s0 + $0x418] sm:$0xff] }
  0x7b   :  { %v1255_v35 = vadd.f32 %v1230_v17, %v1203_v27  ;;  %v1229_v2 = vmul.f32 %v5290_v55, %v6342_v49  ;;  %v319_v18 = vmul.f32 %v5160_v29, %v6387_v21  ;;  %v188_v15 = vadd.f32 %v163_v5, %v110_v1 }
  0x7c   :  { %1422 = vmatpush1.msra.mxu1 %v786_v60  ;;  %v579_v22 = vadd.f32 %v554_v58, %v501_v23  ;;  %v397_v52 = vmul.f32 %v5186_v11, %v6394_v24  ;;  %v475_v8 = vmul.f32 %v5212_v38, %v6403_v36  ;;  %v1046_v17 = vadd.f32 %v1021_v13, %v994_v4  ;;  %v5289_v23 = vld [vmem:[%s11620_s0 + $0x670] sm:$0xff] }
  0x7d   :  { %1423 = vmatprep.subr.mxu1 %v6135_v0  ;;  %v1280_v42 = vmul.f32 0.2, %v1255_v35  ;;  %v811_v29 = vmul.f32 %v6202_v6, %v57_v62  ;;  %v864_v58 = vmul.f32 %v5107_v40, %v6215_v10  ;;  %v266_v11 = vadd.f32 %v241_v16, %v188_v15 }
  0x7e   :  { %v657_v45 = vadd.f32 %v632_v34, %v579_v22  ;;  %v553_v38 = vmul.f32 %v5238_v47, %v6410_v53  ;;  %v631_v51 = vmul.f32 %v5264_v44, %v6412_v48  ;;  %v1098_v3 = vadd.f32 %v1073_v9, %v1046_v17  ;;  %v5237_v44 = vld [vmem:[%s11620_s0 + $0x4e0] sm:$0xff]  ;;  %v56_v17 = vld [vmem:[%s11620_s0 + $0x28] sm:$0xff] }
  0x7f   :  { %v1305_v54 = vmax.f32 %v1255_v35, %v1280_v42  ;;  %v837_v13 = vadd.f32 %v6204_v7, %v811_v29  ;;  %v916_v28 = vmul.f32 %v5133_v50, %v6228_v14  ;;  %v344_v33 = vadd.f32 %v319_v18, %v266_v11 }
  0x80   :  { %v735_v34 = vadd.f32 %v710_v41, %v657_v45  ;;  %v709_v47 = vmul.f32 %v5290_v55, %v6414_v59  ;;  %v968_v5 = vmul.f32 %v5159_v63, %v6247_v20  ;;  %v1150_v9 = vadd.f32 %v1125_v32, %v1098_v3 }
  0x81   :  { %1349 = vmatpush1.msra.mxu0 %v1305_v54  ;;  %v889_v27 = vadd.f32 %v864_v58, %v837_v13  ;;  %v1020_v39 = vmul.f32 %v5185_v19, %v6264_v25  ;;  %v1072_v41 = vmul.f32 %v5211_v30, %v6286_v31  ;;  %v422_v55 = vadd.f32 %v397_v52, %v344_v33  ;;  %v5132_v54 = vld [vmem:[%s11620_s0 + $0x1b8] sm:$0xff]  ;;  %v5158_v13 = vld [vmem:[%s11620_s0 + $0x280] sm:$0xff]  ;;  %v5184_v33 = vld [vmem:[%s11620_s0 + $0x348] sm:$0xff] }
  0x82   :  { %v760_v60 = vmul.f32 0.2, %v735_v34  ;;  %1350 = vmatprep.subr.mxu0 %v6135_v0  ;;  %v83_v1 = vmul.f32 %v6355_v56, %v57_v62  ;;  %v162_v16 = vmul.f32 %v5107_v40, %v6367_v61  ;;  %v1202_v35 = vadd.f32 %v1177_v46, %v1150_v9  ;;  %v5106_v62 = vld [vmem:[%s11620_s0 + $0xf0] sm:$0xff] }
  0x83   :  { %v941_v4 = vadd.f32 %v916_v28, %v889_v27  ;;  %v1124_v32 = vmul.f32 %v5237_v44, %v6305_v37  ;;  %v1176_v18 = vmul.f32 %v5263_v26, %v6326_v43  ;;  %v500_v15 = vadd.f32 %v475_v8, %v422_v55 }
  0x84   :  { %v785_v22 = vmax.f32 %v735_v34, %v760_v60  ;;  %v109_v42 = vadd.f32 %v6358_v57, %v83_v1  ;;  %v240_v52 = vmul.f32 %v5133_v50, %v6377_v12  ;;  %v1254_v46 = vadd.f32 %v1229_v2, %v1202_v35  ;;  %v5262_v1 = vld [vmem:[%s11620_s0 + $0x5a0] sm:$0xff] }
  0x85   :  { %v993_v40 = vadd.f32 %v968_v5, %v941_v4  ;;  %v1228_v29 = vmul.f32 %v5289_v23, %v6342_v49  ;;  %v318_v58 = vmul.f32 %v5159_v63, %v6387_v21  ;;  %v578_v8 = vadd.f32 %v553_v38, %v500_v15  ;;  %v5210_v5 = vld [vmem:[%s11620_s0 + $0x410] sm:$0xff]  ;;  %v5288_v15 = vld [vmem:[%s11620_s0 + $0x668] sm:$0xff] }
  0x86   :  { %1424 = vmatpush1.msra.mxu1 %v785_v22  ;;  %v187_v45 = vadd.f32 %v162_v16, %v109_v42  ;;  %v396_v11 = vmul.f32 %v5185_v19, %v6394_v24  ;;  %v474_v50 = vmul.f32 %v5211_v30, %v6403_v36  ;;  %v1279_v3 = vmul.f32 0.2, %v1254_v46 }
  0x87   :  { %1425 = vmatprep.subr.mxu1 %v6135_v0  ;;  %v1045_v2 = vadd.f32 %v1020_v39, %v993_v40  ;;  %v810_v63 = vmul.f32 %v6202_v6, %v56_v17  ;;  %v863_v38 = vmul.f32 %v5106_v62, %v6215_v10  ;;  %v656_v28 = vadd.f32 %v631_v51, %v578_v8 }
  0x88   :  { %v265_v19 = vadd.f32 %v240_v52, %v187_v45  ;;  %v552_v30 = vmul.f32 %v5237_v44, %v6410_v53  ;;  %v630_v34 = vmul.f32 %v5263_v26, %v6412_v48  ;;  %v1304_v9 = vmax.f32 %v1254_v46, %v1279_v3  ;;  %v5236_v26 = vld [vmem:[%s11620_s0 + $0x4d8] sm:$0xff] }
  0x89   :  { %v1097_v27 = vadd.f32 %v1072_v41, %v1045_v2  ;;  %v836_v39 = vadd.f32 %v6204_v7, %v810_v63  ;;  %v915_v60 = vmul.f32 %v5132_v54, %v6228_v14  ;;  %v734_v51 = vadd.f32 %v709_v47, %v656_v28  ;;  %v55_v2 = vld [vmem:[%s11620_s0 + $0x20] sm:$0xff] }
  0x8a   :  { %v343_v55 = vadd.f32 %v318_v58, %v265_v19  ;;  %v708_v44 = vmul.f32 %v5289_v23, %v6414_v59  ;;  %v967_v16 = vmul.f32 %v5158_v13, %v6247_v20  ;;  %1351 = vmatpush1.msra.mxu0 %v1304_v9  ;;  %v1019_v4 = vmul.f32 %v5184_v33, %v6264_v25  ;;  %v5131_v9 = vld [vmem:[%s11620_s0 + $0x1b0] sm:$0xff] }
  0x8b   :  { %v1149_v41 = vadd.f32 %v1124_v32, %v1097_v27  ;;  %v888_v35 = vadd.f32 %v863_v38, %v836_v39  ;;  %v1071_v47 = vmul.f32 %v5210_v5, %v6286_v31  ;;  %v759_v22 = vmul.f32 0.2, %v734_v51  ;;  %1352 = vmatprep.subr.mxu0 %v6135_v0  ;;  %v5157_v39 = vld [vmem:[%s11620_s0 + $0x278] sm:$0xff] }
  0x8c   :  { %v421_v23 = vadd.f32 %v396_v11, %v343_v55  ;;  %v82_v42 = vmul.f32 %v6355_v56, %v56_v17  ;;  %v161_v52 = vmul.f32 %v5106_v62, %v6367_v61  ;;  %v1123_v32 = vmul.f32 %v5236_v26, %v6305_v37  ;;  %v5105_v17 = vld [vmem:[%s11620_s0 + $0xe8] sm:$0xff]  ;;  %v5183_v55 = vld [vmem:[%s11620_s0 + $0x340] sm:$0xff] }
  0x8d   :  { %v1201_v46 = vadd.f32 %v1176_v18, %v1149_v41  ;;  %v940_v40 = vadd.f32 %v915_v60, %v888_v35  ;;  %v1175_v58 = vmul.f32 %v5262_v1, %v6326_v43  ;;  %v784_v8 = vmax.f32 %v734_v51, %v759_v22 }
  0x8e   :  { %v499_v45 = vadd.f32 %v474_v50, %v421_v23  ;;  %v108_v3 = vadd.f32 %v6358_v57, %v82_v42  ;;  %v239_v11 = vmul.f32 %v5132_v54, %v6377_v12  ;;  %v1227_v63 = vmul.f32 %v5288_v15, %v6342_v49  ;;  %v5261_v42 = vld [vmem:[%s11620_s0 + $0x598] sm:$0xff] }
  0x8f   :  { %v1253_v18 = vadd.f32 %v1228_v29, %v1201_v46  ;;  %v992_v62 = vadd.f32 %v967_v16, %v940_v40  ;;  %v317_v38 = vmul.f32 %v5158_v13, %v6387_v21  ;;  %1426 = vmatpush1.msra.mxu1 %v784_v8  ;;  %v395_v19 = vmul.f32 %v5184_v33, %v6394_v24  ;;  %v5209_v16 = vld [vmem:[%s11620_s0 + $0x408] sm:$0xff] }
  0x90   :  { %v577_v50 = vadd.f32 %v552_v30, %v499_v45  ;;  %v186_v28 = vadd.f32 %v161_v52, %v108_v3  ;;  %v473_v54 = vmul.f32 %v5210_v5, %v6403_v36  ;;  %1427 = vmatprep.subr.mxu1 %v6135_v0  ;;  %v809_v13 = vmul.f32 %v6202_v6, %v55_v2  ;;  %v5287_v45 = vld [vmem:[%s11620_s0 + $0x660] sm:$0xff] }
  0x91   :  { %v1278_v27 = vmul.f32 0.2, %v1253_v18  ;;  %v1044_v29 = vadd.f32 %v1019_v4, %v992_v62  ;;  %v862_v30 = vmul.f32 %v5105_v17, %v6215_v10  ;;  %v551_v5 = vmul.f32 %v5236_v26, %v6410_v53 }
  0x92   :  { %v655_v60 = vadd.f32 %v630_v34, %v577_v50  ;;  %v264_v33 = vadd.f32 %v239_v11, %v186_v28  ;;  %v629_v51 = vmul.f32 %v5262_v1, %v6412_v48  ;;  %v835_v4 = vadd.f32 %v6204_v7, %v809_v13  ;;  %v5235_v1 = vld [vmem:[%s11620_s0 + $0x4d0] sm:$0xff] }
  0x93   :  { %v1303_v41 = vmax.f32 %v1253_v18, %v1278_v27  ;;  %v1096_v35 = vadd.f32 %v1071_v47, %v1044_v29  ;;  %v914_v22 = vmul.f32 %v5131_v9, %v6228_v14  ;;  %v707_v26 = vmul.f32 %v5288_v15, %v6414_v59  ;;  %v54_v29 = vld [vmem:[%s11620_s0 + $0x18] sm:$0xff] }
  0x94   :  { %v733_v34 = vadd.f32 %v708_v44, %v655_v60  ;;  %v342_v23 = vadd.f32 %v317_v38, %v264_v33  ;;  %v966_v52 = vmul.f32 %v5157_v39, %v6247_v20  ;;  %v887_v46 = vadd.f32 %v862_v30, %v835_v4  ;;  %v5156_v4 = vld [vmem:[%s11620_s0 + $0x270] sm:$0xff] }
  0x95   :  { %1353 = vmatpush1.msra.mxu0 %v1303_v41  ;;  %v1148_v47 = vadd.f32 %v1123_v32, %v1096_v35  ;;  %v1018_v40 = vmul.f32 %v5183_v55, %v6264_v25  ;;  %v1070_v44 = vmul.f32 %v5209_v16, %v6286_v31  ;;  %v81_v3 = vmul.f32 %v6355_v56, %v55_v2  ;;  %v5104_v2 = vld [vmem:[%s11620_s0 + $0xe0] sm:$0xff]  ;;  %v5130_v41 = vld [vmem:[%s11620_s0 + $0x1a8] sm:$0xff] }
  0x96   :  { %v758_v8 = vmul.f32 0.2, %v733_v34  ;;  %1354 = vmatprep.subr.mxu0 %v6135_v0  ;;  %v420_v15 = vadd.f32 %v395_v19, %v342_v23  ;;  %v160_v11 = vmul.f32 %v5105_v17, %v6367_v61  ;;  %v939_v62 = vadd.f32 %v914_v22, %v887_v46  ;;  %v5182_v23 = vld [vmem:[%s11620_s0 + $0x338] sm:$0xff] }
  0x97   :  { %v1200_v18 = vadd.f32 %v1175_v58, %v1148_v47  ;;  %v1122_v32 = vmul.f32 %v5235_v1, %v6305_v37  ;;  %v1174_v38 = vmul.f32 %v5261_v42, %v6326_v43  ;;  %v107_v27 = vadd.f32 %v6358_v57, %v81_v3  ;;  %v5260_v3 = vld [vmem:[%s11620_s0 + $0x590] sm:$0xff] }
  0x98   :  { %v783_v50 = vmax.f32 %v733_v34, %v758_v8  ;;  %v498_v28 = vadd.f32 %v473_v54, %v420_v15  ;;  %v238_v19 = vmul.f32 %v5131_v9, %v6377_v12  ;;  %v991_v17 = vadd.f32 %v966_v52, %v939_v62  ;;  %v5208_v52 = vld [vmem:[%s11620_s0 + $0x400] sm:$0xff] }
  0x99   :  { %v1252_v58 = vadd.f32 %v1227_v63, %v1200_v18  ;;  %v1226_v13 = vmul.f32 %v5287_v45, %v6342_v49  ;;  %v316_v30 = vmul.f32 %v5157_v39, %v6387_v21  ;;  %v185_v60 = vadd.f32 %v160_v11, %v107_v27 }
  0x9a   :  { %1428 = vmatpush1.msra.mxu1 %v783_v50  ;;  %v576_v54 = vadd.f32 %v551_v5, %v498_v28  ;;  %v394_v33 = vmul.f32 %v5183_v55, %v6394_v24  ;;  %v472_v9 = vmul.f32 %v5209_v16, %v6403_v36  ;;  %v1043_v63 = vadd.f32 %v1018_v40, %v991_v17  ;;  %v5286_v28 = vld [vmem:[%s11620_s0 + $0x658] sm:$0xff] }
  0x9b   :  { %1429 = vmatprep.subr.mxu1 %v6135_v0  ;;  %v1277_v35 = vmul.f32 0.2, %v1252_v58  ;;  %v808_v39 = vmul.f32 %v6202_v6, %v54_v29  ;;  %v861_v5 = vmul.f32 %v5104_v2, %v6215_v10  ;;  %v263_v55 = vadd.f32 %v238_v19, %v185_v60 }
  0x9c   :  { %v654_v22 = vadd.f32 %v629_v51, %v576_v54  ;;  %v550_v16 = vmul.f32 %v5235_v1, %v6410_v53  ;;  %v628_v34 = vmul.f32 %v5261_v42, %v6412_v48  ;;  %v1095_v46 = vadd.f32 %v1070_v44, %v1043_v63  ;;  %v5234_v42 = vld [vmem:[%s11620_s0 + $0x4c8] sm:$0xff]  ;;  %v53_v63 = vld [vmem:[%s11620_s0 + $0x10] sm:$0xff] }
  0x9d   :  { %v1302_v47 = vmax.f32 %v1252_v58, %v1277_v35  ;;  %v834_v40 = vadd.f32 %v6204_v7, %v808_v39  ;;  %v913_v8 = vmul.f32 %v5130_v41, %v6228_v14  ;;  %v341_v15 = vadd.f32 %v316_v30, %v263_v55 }
  0x9e   :  { %v732_v51 = vadd.f32 %v707_v26, %v654_v22  ;;  %v706_v1 = vmul.f32 %v5287_v45, %v6414_v59  ;;  %v965_v11 = vmul.f32 %v5156_v4, %v6247_v20  ;;  %v1147_v44 = vadd.f32 %v1122_v32, %v1095_v46 }
  0x9f   :  { %1355 = vmatpush1.msra.mxu0 %v1302_v47  ;;  %v886_v18 = vadd.f32 %v861_v5, %v834_v40  ;;  %v1017_v62 = vmul.f32 %v5182_v23, %v6264_v25  ;;  %v1069_v26 = vmul.f32 %v5208_v52, %v6286_v31  ;;  %v419_v45 = vadd.f32 %v394_v33, %v341_v15  ;;  %v5129_v47 = vld [vmem:[%s11620_s0 + $0x1a0] sm:$0xff]  ;;  %v5155_v40 = vld [vmem:[%s11620_s0 + $0x268] sm:$0xff]  ;;  %v5181_v15 = vld [vmem:[%s11620_s0 + $0x330] sm:$0xff] }
  0xa0   :  { %v757_v50 = vmul.f32 0.2, %v732_v51  ;;  %1356 = vmatprep.subr.mxu0 %v6135_v0  ;;  %v80_v27 = vmul.f32 %v6355_v56, %v54_v29  ;;  %v159_v19 = vmul.f32 %v5104_v2, %v6367_v61  ;;  %v1199_v58 = vadd.f32 %v1174_v38, %v1147_v44  ;;  %v5103_v29 = vld [vmem:[%s11620_s0 + $0xd8] sm:$0xff] }
  0xa1   :  { %v938_v17 = vadd.f32 %v913_v8, %v886_v18  ;;  %v1121_v32 = vmul.f32 %v5234_v42, %v6305_v37  ;;  %v1173_v30 = vmul.f32 %v5260_v3, %v6326_v43  ;;  %v497_v60 = vadd.f32 %v472_v9, %v419_v45 }
  0xa2   :  { %v782_v54 = vmax.f32 %v732_v51, %v757_v50  ;;  %v106_v35 = vadd.f32 %v6358_v57, %v80_v27  ;;  %v237_v33 = vmul.f32 %v5130_v41, %v6377_v12  ;;  %v1251_v38 = vadd.f32 %v1226_v13, %v1199_v58  ;;  %v5259_v27 = vld [vmem:[%s11620_s0 + $0x588] sm:$0xff] }
  0xa3   :  { %v990_v2 = vadd.f32 %v965_v11, %v938_v17  ;;  %v1225_v39 = vmul.f32 %v5286_v28, %v6342_v49  ;;  %v315_v5 = vmul.f32 %v5156_v4, %v6387_v21  ;;  %v575_v9 = vadd.f32 %v550_v16, %v497_v60  ;;  %v5207_v11 = vld [vmem:[%s11620_s0 + $0x3f8] sm:$0xff]  ;;  %v5285_v60 = vld [vmem:[%s11620_s0 + $0x650] sm:$0xff] }
  0xa4   :  { %1430 = vmatpush1.msra.mxu1 %v782_v54  ;;  %v184_v22 = vadd.f32 %v159_v19, %v106_v35  ;;  %v393_v55 = vmul.f32 %v5182_v23, %v6394_v24  ;;  %v471_v41 = vmul.f32 %v5208_v52, %v6403_v36  ;;  %v1276_v46 = vmul.f32 0.2, %v1251_v38 }
  0xa5   :  { %1431 = vmatprep.subr.mxu1 %v6135_v0  ;;  %v1042_v13 = vadd.f32 %v1017_v62, %v990_v2  ;;  %v807_v4 = vmul.f32 %v6202_v6, %v53_v63  ;;  %v860_v16 = vmul.f32 %v5103_v29, %v6215_v10  ;;  %v653_v8 = vadd.f32 %v628_v34, %v575_v9 }
  0xa6   :  { %v262_v23 = vadd.f32 %v237_v33, %v184_v22  ;;  %v549_v52 = vmul.f32 %v5234_v42, %v6410_v53  ;;  %v627_v51 = vmul.f32 %v5260_v3, %v6412_v48  ;;  %v1301_v44 = vmax.f32 %v1251_v38, %v1276_v46  ;;  %v5233_v3 = vld [vmem:[%s11620_s0 + $0x4c0] sm:$0xff] }
  0xa7   :  { %v1094_v18 = vadd.f32 %v1069_v26, %v1042_v13  ;;  %v833_v62 = vadd.f32 %v6204_v7, %v807_v4  ;;  %v912_v50 = vmul.f32 %v5129_v47, %v6228_v14  ;;  %v731_v34 = vadd.f32 %v706_v1, %v653_v8  ;;  %v52_v13 = vld [vmem:[%s11620_s0 + $0x8] sm:$0xff] }
  0xa8   :  { %v340_v45 = vadd.f32 %v315_v5, %v262_v23  ;;  %v705_v42 = vmul.f32 %v5286_v28, %v6414_v59  ;;  %v964_v19 = vmul.f32 %v5155_v40, %v6247_v20  ;;  %1357 = vmatpush1.msra.mxu0 %v1301_v44  ;;  %v1016_v17 = vmul.f32 %v5181_v15, %v6264_v25  ;;  %v5128_v44 = vld [vmem:[%s11620_s0 + $0x198] sm:$0xff] }
  0xa9   :  { %v1146_v26 = vadd.f32 %v1121_v32, %v1094_v18  ;;  %v885_v58 = vadd.f32 %v860_v16, %v833_v62  ;;  %v1068_v1 = vmul.f32 %v5207_v11, %v6286_v31  ;;  %v756_v54 = vmul.f32 0.2, %v731_v34  ;;  %1358 = vmatprep.subr.mxu0 %v6135_v0  ;;  %v5154_v62 = vld [vmem:[%s11620_s0 + $0x260] sm:$0xff] }
  0xaa   :  { %v418_v28 = vadd.f32 %v393_v55, %v340_v45  ;;  %v79_v35 = vmul.f32 %v6355_v56, %v53_v63  ;;  %v158_v33 = vmul.f32 %v5103_v29, %v6367_v61  ;;  %v1120_v32 = vmul.f32 %v5233_v3, %v6305_v37  ;;  %v5102_v63 = vld [vmem:[%s11620_s0 + $0xd0] sm:$0xff]  ;;  %v5180_v45 = vld [vmem:[%s11620_s0 + $0x328] sm:$0xff] }
  0xab   :  { %v1198_v38 = vadd.f32 %v1173_v30, %v1146_v26  ;;  %v937_v2 = vadd.f32 %v912_v50, %v885_v58  ;;  %v1172_v5 = vmul.f32 %v5259_v27, %v6326_v43  ;;  %v781_v9 = vmax.f32 %v731_v34, %v756_v54 }
  0xac   :  { %v496_v22 = vadd.f32 %v471_v41, %v418_v28  ;;  %v105_v46 = vadd.f32 %v6358_v57, %v79_v35  ;;  %v236_v55 = vmul.f32 %v5129_v47, %v6377_v12  ;;  %v1224_v4 = vmul.f32 %v5285_v60, %v6342_v49  ;;  %v5258_v35 = vld [vmem:[%s11620_s0 + $0x580] sm:$0xff] }
  0xad   :  { %v1250_v30 = vadd.f32 %v1225_v39, %v1198_v38  ;;  %v989_v29 = vadd.f32 %v964_v19, %v937_v2  ;;  %v314_v16 = vmul.f32 %v5155_v40, %v6387_v21  ;;  %1432 = vmatpush1.msra.mxu1 %v781_v9  ;;  %v392_v23 = vmul.f32 %v5181_v15, %v6394_v24  ;;  %v5206_v19 = vld [vmem:[%s11620_s0 + $0x3f0] sm:$0xff] }
  0xae   :  { %v574_v41 = vadd.f32 %v549_v52, %v496_v22  ;;  %v183_v8 = vadd.f32 %v158_v33, %v105_v46  ;;  %v470_v47 = vmul.f32 %v5207_v11, %v6403_v36  ;;  %1433 = vmatprep.subr.mxu1 %v6135_v0  ;;  %v806_v40 = vmul.f32 %v6202_v6, %v52_v13  ;;  %v5284_v22 = vld [vmem:[%s11620_s0 + $0x648] sm:$0xff] }
  0xaf   :  { %v1275_v18 = vmul.f32 0.2, %v1250_v30  ;;  %v1041_v39 = vadd.f32 %v1016_v17, %v989_v29  ;;  %v859_v52 = vmul.f32 %v5102_v63, %v6215_v10  ;;  %v548_v11 = vmul.f32 %v5233_v3, %v6410_v53 }
  0xb0   :  { %v652_v50 = vadd.f32 %v627_v51, %v574_v41  ;;  %v261_v15 = vadd.f32 %v236_v55, %v183_v8  ;;  %v626_v34 = vmul.f32 %v5259_v27, %v6412_v48  ;;  %v832_v17 = vadd.f32 %v6204_v7, %v806_v40  ;;  %v5232_v27 = vld [vmem:[%s11620_s0 + $0x4b8] sm:$0xff] }
  0xb1   :  { %v1300_v26 = vmax.f32 %v1250_v30, %v1275_v18  ;;  %v1093_v58 = vadd.f32 %v1068_v1, %v1041_v39  ;;  %v911_v54 = vmul.f32 %v5128_v44, %v6228_v14  ;;  %v704_v3 = vmul.f32 %v5285_v60, %v6414_v59  ;;  %v51_v39 = vld [vmem:[%s11620_s0] sm:$0xff] }
  0xb2   :  { %v730_v51 = vadd.f32 %v705_v42, %v652_v50  ;;  %v339_v28 = vadd.f32 %v314_v16, %v261_v15  ;;  %v963_v33 = vmul.f32 %v5154_v62, %v6247_v20  ;;  %v884_v38 = vadd.f32 %v859_v52, %v832_v17  ;;  %v5153_v17 = vld [vmem:[%s11620_s0 + $0x258] sm:$0xff] }
  0xb3   :  { %1359 = vmatpush1.msra.mxu0 %v1300_v26  ;;  %v1145_v1 = vadd.f32 %v1120_v32, %v1093_v58  ;;  %v1015_v2 = vmul.f32 %v5180_v45, %v6264_v25  ;;  %v1067_v42 = vmul.f32 %v5206_v19, %v6286_v31  ;;  %v78_v46 = vmul.f32 %v6355_v56, %v52_v13  ;;  %v5101_v13 = vld [vmem:[%s11620_s0 + $0xc8] sm:$0xff]  ;;  %v5127_v26 = vld [vmem:[%s11620_s0 + $0x190] sm:$0xff] }
  0xb4   :  { %v755_v9 = vmul.f32 0.2, %v730_v51  ;;  %1360 = vmatprep.subr.mxu0 %v6135_v0  ;;  %v417_v60 = vadd.f32 %v392_v23, %v339_v28  ;;  %v157_v55 = vmul.f32 %v5102_v63, %v6367_v61  ;;  %v936_v29 = vadd.f32 %v911_v54, %v884_v38  ;;  %v5179_v28 = vld [vmem:[%s11620_s0 + $0x320] sm:$0xff] }
  0xb5   :  { %v1197_v30 = vadd.f32 %v1172_v5, %v1145_v1  ;;  %v1119_v32 = vmul.f32 %v5232_v27, %v6305_v37  ;;  %v1171_v16 = vmul.f32 %v5258_v35, %v6326_v43  ;;  %v104_v18 = vadd.f32 %v6358_v57, %v78_v46  ;;  %v5257_v46 = vld [vmem:[%s11620_s0 + $0x578] sm:$0xff] }
  0xb6   :  { %v780_v41 = vmax.f32 %v730_v51, %v755_v9  ;;  %v495_v8 = vadd.f32 %v470_v47, %v417_v60  ;;  %v235_v23 = vmul.f32 %v5128_v44, %v6377_v12  ;;  %v988_v63 = vadd.f32 %v963_v33, %v936_v29  ;;  %v5205_v33 = vld [vmem:[%s11620_s0 + $0x3e8] sm:$0xff] }
  0xb7   :  { %v1249_v5 = vadd.f32 %v1224_v4, %v1197_v30  ;;  %v1223_v40 = vmul.f32 %v5284_v22, %v6342_v49  ;;  %v313_v52 = vmul.f32 %v5154_v62, %v6387_v21  ;;  %v182_v50 = vadd.f32 %v157_v55, %v104_v18 }
  0xb8   :  { %1434 = vmatpush1.msra.mxu1 %v780_v41  ;;  %v573_v47 = vadd.f32 %v548_v11, %v495_v8  ;;  %v391_v15 = vmul.f32 %v5180_v45, %v6394_v24  ;;  %v469_v44 = vmul.f32 %v5206_v19, %v6403_v36  ;;  %v1040_v4 = vadd.f32 %v1015_v2, %v988_v63  ;;  %v5283_v8 = vld [vmem:[%s11620_s0 + $0x640] sm:$0xff] }
  0xb9   :  { %1435 = vmatprep.subr.mxu1 %v6135_v0  ;;  %v1274_v58 = vmul.f32 0.2, %v1249_v5  ;;  %v805_v62 = vmul.f32 %v6202_v6, %v51_v39  ;;  %v858_v11 = vmul.f32 %v5101_v13, %v6215_v10  ;;  %v260_v45 = vadd.f32 %v235_v23, %v182_v50 }
  0xba   :  { %v651_v54 = vadd.f32 %v626_v34, %v573_v47  ;;  %v547_v19 = vmul.f32 %v5232_v27, %v6410_v53  ;;  %v625_v51 = vmul.f32 %v5258_v35, %v6412_v48  ;;  %v1092_v38 = vadd.f32 %v1067_v42, %v1040_v4  ;;  %v5231_v35 = vld [vmem:[%s11620_s0 + $0x4b0] sm:$0xff]  ;;  %v75_v4 = vld [vmem:[%s11620_s0 + $0xc0] sm:$0xf] }
  0xbb   :  { %v1299_v1 = vmax.f32 %v1249_v5, %v1274_v58  ;;  %v831_v2 = vadd.f32 %v6204_v7, %v805_v62  ;;  %v910_v9 = vmul.f32 %v5127_v26, %v6228_v14  ;;  %v338_v60 = vadd.f32 %v313_v52, %v260_v45 }
  0xbc   :  { %v729_v34 = vadd.f32 %v704_v3, %v651_v54  ;;  %v703_v27 = vmul.f32 %v5284_v22, %v6414_v59  ;;  %v962_v55 = vmul.f32 %v5153_v17, %v6247_v20  ;;  %v1144_v42 = vadd.f32 %v1119_v32, %v1092_v38 }
  0xbd   :  { %1361 = vmatpush1.msra.mxu0 %v1299_v1  ;;  %v883_v30 = vadd.f32 %v858_v11, %v831_v2  ;;  %v1014_v29 = vmul.f32 %v5179_v28, %v6264_v25  ;;  %v1066_v3 = vmul.f32 %v5205_v33, %v6286_v31  ;;  %v416_v22 = vadd.f32 %v391_v15, %v338_v60  ;;  %v5151_v1 = vld [vmem:[%s11620_s0 + $0x250] sm:$0xf]  ;;  %v5177_v2 = vld [vmem:[%s11620_s0 + $0x318] sm:$0xf]  ;;  %v5203_v60 = vld [vmem:[%s11620_s0 + $0x3e0] sm:$0xf] }
  0xbe   :  { %v754_v41 = vmul.f32 0.2, %v729_v34  ;;  %1362 = vmatprep.subr.mxu0 %v6135_v0  ;;  %v77_v18 = vmul.f32 %v6355_v56, %v51_v39  ;;  %v156_v23 = vmul.f32 %v5101_v13, %v6367_v61  ;;  %v1196_v5 = vadd.f32 %v1171_v16, %v1144_v42  ;;  %v5125_v39 = vld [vmem:[%s11620_s0 + $0x188] sm:$0xf] }
  0xbf   :  { %v935_v63 = vadd.f32 %v910_v9, %v883_v30  ;;  %v1118_v32 = vmul.f32 %v5231_v35, %v6305_v37  ;;  %v1170_v52 = vmul.f32 %v5257_v46, %v6326_v43  ;;  %v494_v50 = vadd.f32 %v469_v44, %v416_v22 }
  0xc0   :  { %v779_v47 = vmax.f32 %v729_v34, %v754_v41  ;;  %v103_v58 = vadd.f32 %v6358_v57, %v77_v18  ;;  %v234_v15 = vmul.f32 %v5127_v26, %v6377_v12  ;;  %v1248_v16 = vadd.f32 %v1223_v40, %v1196_v5  ;;  %v5281_v18 = vld [vmem:[%s11620_s0 + $0x638] sm:$0xf] }
  0xc1   :  { %v987_v13 = vadd.f32 %v962_v55, %v935_v63  ;;  %v1222_v62 = vmul.f32 %v5283_v8, %v6342_v49  ;;  %v312_v11 = vmul.f32 %v5153_v17, %v6387_v21  ;;  %v572_v44 = vadd.f32 %v547_v19, %v494_v50  ;;  %v5229_v55 = vld [vmem:[%s11620_s0 + $0x4a8] sm:$0xf] }
  0xc2   :  { %1436 = vmatpush1.msra.mxu1 %v779_v47  ;;  %v181_v54 = vadd.f32 %v156_v23, %v103_v58  ;;  %v390_v45 = vmul.f32 %v5179_v28, %v6394_v24  ;;  %v468_v26 = vmul.f32 %v5205_v33, %v6403_v36  ;;  %v1273_v38 = vmul.f32 0.2, %v1248_v16 }
  0xc3   :  { %1437 = vmatprep.subr.mxu1 %v6135_v0  ;;  %v1039_v40 = vadd.f32 %v1014_v29, %v987_v13  ;;  %v829_v17 = vmul.f32 %v6202_v6, %v75_v4  ;;  %v882_v19 = vmul.f32 %v5125_v39, %v6215_v10  ;;  %v650_v9 = vadd.f32 %v625_v51, %v572_v44  ;;  %v5255_v29 = vld [vmem:[%s11620_s0 + $0x570] sm:$0xf] }
  0xc4   :  { %v259_v28 = vadd.f32 %v234_v15, %v181_v54  ;;  %v546_v33 = vmul.f32 %v5231_v35, %v6410_v53  ;;  %v624_v34 = vmul.f32 %v5257_v46, %v6412_v48  ;;  %v1298_v42 = vmax.f32 %v1248_v16, %v1273_v38 }
  0xc5   :  { %v1091_v30 = vadd.f32 %v1066_v3, %v1039_v40  ;;  %v855_v51 = vadd.f32 %v6204_v7, %v829_v17  ;;  %v934_v35 = vmul.f32 %v5151_v1, %v6228_v14  ;;  %v728_v41 = vadd.f32 %v703_v27, %v650_v9  ;;  %v74_v40 = vld [vmem:[%s11620_s0 + $0xb8] sm:$0xff] }
  0xc6   :  { %v337_v46 = vadd.f32 %v312_v11, %v259_v28  ;;  %v702_v22 = vmul.f32 %v5283_v8, %v6414_v59  ;;  %v986_v23 = vmul.f32 %v5177_v2, %v6247_v20  ;;  %1363 = vmatpush1.msra.mxu0 %v1298_v42  ;;  %v1038_v63 = vmul.f32 %v5203_v60, %v6264_v25  ;;  %v5307_v8 = vld [vmem:[%s11620_s0 + $0x700] sm:$0xf] }
  0xc7   :  { %v1143_v3 = vadd.f32 %v1118_v32, %v1091_v30  ;;  %v907_v5 = vadd.f32 %v882_v19, %v855_v51  ;;  %v1090_v47 = vmul.f32 %v5229_v55, %v6286_v31  ;;  %v753_v50 = vmul.f32 0.2, %v728_v41  ;;  %1364 = vmatprep.subr.mxu0 %v6135_v0  ;;  %v5176_v51 = vld [vmem:[%s11620_s0 + $0x310] sm:$0xff] }
  0xc8   :  { %v415_v27 = vadd.f32 %v390_v45, %v337_v46  ;;  %v1142_v58 = vmul.f32 %v5255_v29, %v6305_v37  ;;  %v101_v15 = vmul.f32 %v6355_v56, %v75_v4  ;;  %v1194_v32 = vmul.f32 %v5281_v18, %v6326_v43  ;;  %v5228_v46 = vld [vmem:[%s11620_s0 + $0x4a0] sm:$0xff] }
  0xc9   :  { %v1195_v16 = vadd.f32 %v1170_v52, %v1143_v3  ;;  %v959_v13 = vadd.f32 %v934_v35, %v907_v5  ;;  %v180_v11 = vmul.f32 %v5125_v39, %v6367_v61  ;;  %v778_v44 = vmax.f32 %v728_v41, %v753_v50  ;;  %v5124_v39 = vld [vmem:[%s11620_s0 + $0x180] sm:$0xff]  ;;  %v5202_v41 = vld [vmem:[%s11620_s0 + $0x3d8] sm:$0xff]  ;;  %v5254_v5 = vld [vmem:[%s11620_s0 + $0x568] sm:$0xff] }
  0xca   :  { %v493_v54 = vadd.f32 %v468_v26, %v415_v27  ;;  %v127_v38 = vadd.f32 %v6358_v57, %v101_v15  ;;  %v258_v45 = vmul.f32 %v5151_v1, %v6377_v12  ;;  %v1246_v4 = vmul.f32 %v5307_v8, %v6342_v49  ;;  %v5280_v15 = vld [vmem:[%s11620_s0 + $0x630] sm:$0xff] }
  0xcb   :  { %v1247_v17 = vadd.f32 %v1222_v62, %v1195_v16  ;;  %v1011_v19 = vadd.f32 %v986_v23, %v959_v13  ;;  %v336_v52 = vmul.f32 %v5177_v2, %v6387_v21  ;;  %1438 = vmatpush1.msra.mxu1 %v778_v44  ;;  %v414_v28 = vmul.f32 %v5203_v60, %v6394_v24  ;;  %v5150_v62 = vld [vmem:[%s11620_s0 + $0x248] sm:$0xff] }
  0xcc   :  { %v571_v26 = vadd.f32 %v546_v33, %v493_v54  ;;  %v205_v9 = vadd.f32 %v180_v11, %v127_v38  ;;  %v492_v1 = vmul.f32 %v5229_v55, %v6403_v36  ;;  %1439 = vmatprep.subr.mxu1 %v6135_v0  ;;  %v570_v2 = vmul.f32 %v5255_v29, %v6410_v53 }
  0xcd   :  { %v1272_v42 = vmul.f32 0.2, %v1247_v17  ;;  %v1063_v30 = vadd.f32 %v1038_v63, %v1011_v19  ;;  %v828_v33 = vmul.f32 %v6202_v6, %v74_v40  ;;  %v648_v55 = vmul.f32 %v5281_v18, %v6412_v48 }
  0xce   :  { %v649_v35 = vadd.f32 %v624_v34, %v571_v26  ;;  %v283_v60 = vadd.f32 %v258_v45, %v205_v9  ;;  %v881_v29 = vmul.f32 %v5124_v39, %v6215_v10  ;;  %v933_v18 = vmul.f32 %v5150_v62, %v6228_v14 }
  0xcf   :  { %v1297_v23 = vmax.f32 %v1247_v17, %v1272_v42  ;;  %v1115_v3 = vadd.f32 %v1090_v47, %v1063_v30  ;;  %v854_v34 = vadd.f32 %v6204_v7, %v828_v33  ;;  %v726_v27 = vmul.f32 %v5307_v8, %v6414_v59  ;;  %v5306_v8 = vld [vmem:[%s11620_s0 + $0x6f8] sm:$0xff]  ;;  %v73_v30 = vld [vmem:[%s11620_s0 + $0xb0] sm:$0xff] }
  0xd0   :  { %v727_v63 = vadd.f32 %v702_v22, %v649_v35  ;;  %v361_v50 = vadd.f32 %v336_v52, %v283_v60  ;;  %v985_v16 = vmul.f32 %v5176_v51, %v6247_v20  ;;  %v1037_v11 = vmul.f32 %v5202_v41, %v6264_v25 }
  0xd1   :  { %1365 = vmatpush1.msra.mxu0 %v1297_v23  ;;  %v1167_v47 = vadd.f32 %v1142_v58, %v1115_v3  ;;  %v906_v13 = vadd.f32 %v881_v29, %v854_v34  ;;  %v1089_v44 = vmul.f32 %v5228_v46, %v6286_v31  ;;  %v1141_v38 = vmul.f32 %v5254_v5, %v6305_v37  ;;  %v5175_v34 = vld [vmem:[%s11620_s0 + $0x308] sm:$0xff] }
  0xd2   :  { %v752_v54 = vmul.f32 0.2, %v727_v63  ;;  %1380 = vmatprep.subr.mxu0 %v6135_v0  ;;  %v439_v22 = vadd.f32 %v414_v28, %v361_v50  ;;  %v100_v45 = vmul.f32 %v6355_v56, %v74_v40  ;;  %v1193_v58 = vmul.f32 %v5280_v15, %v6326_v43  ;;  %v5227_v50 = vld [vmem:[%s11620_s0 + $0x498] sm:$0xff] }
  0xd3   :  { %v1219_v17 = vadd.f32 %v1194_v32, %v1167_v47  ;;  %v958_v19 = vadd.f32 %v933_v18, %v906_v13  ;;  %v179_v52 = vmul.f32 %v5124_v39, %v6367_v61  ;;  %v257_v28 = vmul.f32 %v5150_v62, %v6377_v12  ;;  %v5123_v39 = vld [vmem:[%s11620_s0 + $0x178] sm:$0xff]  ;;  %v5253_v13 = vld [vmem:[%s11620_s0 + $0x560] sm:$0xff] }
  0xd4   :  { %v777_v26 = vmax.f32 %v727_v63, %v752_v54  ;;  %v517_v9 = vadd.f32 %v492_v1, %v439_v22  ;;  %v126_v42 = vadd.f32 %v6358_v57, %v100_v45  ;;  %v1245_v40 = vmul.f32 %v5306_v8, %v6342_v49  ;;  %v5201_v63 = vld [vmem:[%s11620_s0 + $0x3d0] sm:$0xff]  ;;  %v5279_v45 = vld [vmem:[%s11620_s0 + $0x628] sm:$0xff] }
  0xd5   :  { %v1271_v33 = vadd.f32 %v1246_v4, %v1219_v17  ;;  %v1010_v35 = vadd.f32 %v985_v16, %v958_v19  ;;  %v335_v32 = vmul.f32 %v5176_v51, %v6387_v21  ;;  %v413_v29 = vmul.f32 %v5202_v41, %v6394_v24  ;;  %v5149_v4 = vld [vmem:[%s11620_s0 + $0x240] sm:$0xff] }
  0xd6   :  { %1440 = vmatpush1.msra.mxu1 %v777_v26  ;;  %v595_v1 = vadd.f32 %v570_v2, %v517_v9  ;;  %v204_v60 = vadd.f32 %v179_v52, %v126_v42  ;;  %v491_v62 = vmul.f32 %v5228_v46, %v6403_v36  ;;  %v569_v51 = vmul.f32 %v5254_v5, %v6410_v53 }
  0xd7   :  { %1455 = vmatprep.subr.mxu1 %v6135_v0  ;;  %v1296_v23 = vmul.f32 0.2, %v1271_v33  ;;  %v1062_v3 = vadd.f32 %v1037_v11, %v1010_v35  ;;  %v827_v2 = vmul.f32 %v6202_v6, %v73_v30  ;;  %v647_v46 = vmul.f32 %v5280_v15, %v6412_v48 }
  0xd8   :  { %v673_v18 = vadd.f32 %v648_v55, %v595_v1  ;;  %v282_v41 = vadd.f32 %v257_v28, %v204_v60  ;;  %v880_v5 = vmul.f32 %v5123_v39, %v6215_v10  ;;  %v932_v15 = vmul.f32 %v5149_v4, %v6228_v14 }
  0xd9   :  { %v1321_v16 = vmax.f32 %v1271_v33, %v1296_v23  ;;  %v1114_v47 = vadd.f32 %v1089_v44, %v1062_v3  ;;  %v853_v55 = vadd.f32 %v6204_v7, %v827_v2  ;;  %v725_v22 = vmul.f32 %v5306_v8, %v6414_v59  ;;  %v5305_v8 = vld [vmem:[%s11620_s0 + $0x6f0] sm:$0xff]  ;;  %v72_v3 = vld [vmem:[%s11620_s0 + $0xa8] sm:$0xff] }
  0xda   :  { %v751_v11 = vadd.f32 %v726_v27, %v673_v18  ;;  %v360_v54 = vadd.f32 %v335_v32, %v282_v41  ;;  %v984_v17 = vmul.f32 %v5175_v34, %v6247_v20  ;;  %v1036_v52 = vmul.f32 %v5201_v63, %v6264_v25 }
  0xdb   :  { %5318 = vmatpush2.msk.msra.mxu0 %vm1330_vm0, %v1321_v16  ;;  %v1166_v44 = vadd.f32 %v1141_v38, %v1114_v47  ;;  %v905_v19 = vadd.f32 %v880_v5, %v853_v55  ;;  %v1088_v26 = vmul.f32 %v5227_v50, %v6286_v31  ;;  %v1140_v42 = vmul.f32 %v5253_v13, %v6305_v37  ;;  %v5174_v55 = vld [vmem:[%s11620_s0 + $0x300] sm:$0xff] }
  0xdc   :  { %v776_v9 = vmul.f32 0.2, %v751_v11  ;;  %1382 = vmatprep.subr.mxu0 %v6135_v0  ;;  %v438_v27 = vadd.f32 %v413_v29, %v360_v54  ;;  %v99_v28 = vmul.f32 %v6355_v56, %v73_v30  ;;  %v1192_v38 = vmul.f32 %v5279_v45, %v6326_v43  ;;  %v5226_v54 = vld [vmem:[%s11620_s0 + $0x490] sm:$0xff] }
  0xdd   :  { %v1218_v33 = vadd.f32 %v1193_v58, %v1166_v44  ;;  %v957_v35 = vadd.f32 %v932_v15, %v905_v19  ;;  %v178_v32 = vmul.f32 %v5123_v39, %v6367_v61  ;;  %v256_v29 = vmul.f32 %v5149_v4, %v6377_v12  ;;  %v5122_v39 = vld [vmem:[%s11620_s0 + $0x170] sm:$0xff]  ;;  %v5252_v19 = vld [vmem:[%s11620_s0 + $0x558] sm:$0xff] }
  0xde   :  { %v801_v1 = vmax.f32 %v751_v11, %v776_v9  ;;  %v516_v60 = vadd.f32 %v491_v62, %v438_v27  ;;  %v125_v23 = vadd.f32 %v6358_v57, %v99_v28  ;;  %v1244_v30 = vmul.f32 %v5305_v8, %v6342_v49  ;;  %v5200_v11 = vld [vmem:[%s11620_s0 + $0x3c8] sm:$0xff]  ;;  %v5278_v28 = vld [vmem:[%s11620_s0 + $0x620] sm:$0xff] }
  0xdf   :  { %v1270_v2 = vadd.f32 %v1245_v40, %v1218_v33  ;;  %v1009_v18 = vadd.f32 %v984_v17, %v957_v35  ;;  %v334_v58 = vmul.f32 %v5175_v34, %v6387_v21  ;;  %v412_v4 = vmul.f32 %v5201_v63, %v6394_v24  ;;  %v5148_v40 = vld [vmem:[%s11620_s0 + $0x238] sm:$0xff] }
  0xe0   :  { %5320 = vmatpush2.msk.msra.mxu1 %vm1330_vm0, %v801_v1  ;;  %v594_v62 = vadd.f32 %v569_v51, %v516_v60  ;;  %v203_v41 = vadd.f32 %v178_v32, %v125_v23  ;;  %v490_v5 = vmul.f32 %v5227_v50, %v6403_v36  ;;  %v568_v47 = vmul.f32 %v5253_v13, %v6410_v53 }
  0xe1   :  { %1457 = vmatprep.subr.mxu1 %v6135_v0  ;;  %v1295_v16 = vmul.f32 0.2, %v1270_v2  ;;  %v1061_v34 = vadd.f32 %v1036_v52, %v1009_v18  ;;  %v826_v51 = vmul.f32 %v6202_v6, %v72_v3  ;;  %v646_v50 = vmul.f32 %v5279_v45, %v6412_v48 }
  0xe2   :  { %v672_v15 = vadd.f32 %v647_v46, %v594_v62  ;;  %v281_v63 = vadd.f32 %v256_v29, %v203_v41  ;;  %v879_v13 = vmul.f32 %v5122_v39, %v6215_v10  ;;  %v931_v45 = vmul.f32 %v5148_v40, %v6228_v14 }
  0xe3   :  { %v1320_v17 = vmax.f32 %v1270_v2, %v1295_v16  ;;  %v1113_v44 = vadd.f32 %v1088_v26, %v1061_v34  ;;  %v852_v46 = vadd.f32 %v6204_v7, %v826_v51  ;;  %v724_v27 = vmul.f32 %v5305_v8, %v6414_v59  ;;  %v5304_v8 = vld [vmem:[%s11620_s0 + $0x6e8] sm:$0xff]  ;;  %v71_v34 = vld [vmem:[%s11620_s0 + $0xa0] sm:$0xff] }
  0xe4   :  { %v750_v52 = vadd.f32 %v725_v22, %v672_v15  ;;  %v359_v9 = vadd.f32 %v334_v58, %v281_v63  ;;  %v983_v33 = vmul.f32 %v5174_v55, %v6247_v20  ;;  %v1035_v32 = vmul.f32 %v5200_v11, %v6264_v25 }
  0xe5   :  { %1383 = vmatpush2.msra.mxu0 %v1320_v17  ;;  %v1165_v26 = vadd.f32 %v1140_v42, %v1113_v44  ;;  %v904_v35 = vadd.f32 %v879_v13, %v852_v46  ;;  %v1087_v1 = vmul.f32 %v5226_v54, %v6286_v31  ;;  %v1139_v23 = vmul.f32 %v5252_v19, %v6305_v37  ;;  %v5173_v46 = vld [vmem:[%s11620_s0 + $0x2f8] sm:$0xff] }
  0xe6   :  { %v775_v60 = vmul.f32 0.2, %v750_v52  ;;  %1384 = vmatprep.subr.mxu0 %v6135_v0  ;;  %v437_v22 = vadd.f32 %v412_v4, %v359_v9  ;;  %v98_v29 = vmul.f32 %v6355_v56, %v72_v3  ;;  %v1191_v42 = vmul.f32 %v5278_v28, %v6326_v43  ;;  %v5225_v9 = vld [vmem:[%s11620_s0 + $0x488] sm:$0xff] }
  0xe7   :  { %v1217_v2 = vadd.f32 %v1192_v38, %v1165_v26  ;;  %v956_v18 = vadd.f32 %v931_v45, %v904_v35  ;;  %v177_v58 = vmul.f32 %v5122_v39, %v6367_v61  ;;  %v255_v4 = vmul.f32 %v5148_v40, %v6377_v12  ;;  %v5121_v39 = vld [vmem:[%s11620_s0 + $0x168] sm:$0xff]  ;;  %v5251_v35 = vld [vmem:[%s11620_s0 + $0x550] sm:$0xff] }
  0xe8   :  { %v800_v62 = vmax.f32 %v750_v52, %v775_v60  ;;  %v515_v41 = vadd.f32 %v490_v5, %v437_v22  ;;  %v124_v16 = vadd.f32 %v6358_v57, %v98_v29  ;;  %v1243_v3 = vmul.f32 %v5304_v8, %v6342_v49  ;;  %v5199_v52 = vld [vmem:[%s11620_s0 + $0x3c0] sm:$0xff]  ;;  %v5277_v29 = vld [vmem:[%s11620_s0 + $0x618] sm:$0xff] }
  0xe9   :  { %v1269_v51 = vadd.f32 %v1244_v30, %v1217_v2  ;;  %v1008_v15 = vadd.f32 %v983_v33, %v956_v18  ;;  %v333_v38 = vmul.f32 %v5174_v55, %v6387_v21  ;;  %v411_v13 = vmul.f32 %v5200_v11, %v6394_v24  ;;  %v5147_v30 = vld [vmem:[%s11620_s0 + $0x230] sm:$0xff] }
  0xea   :  { %1458 = vmatpush2.msra.mxu1 %v800_v62  ;;  %v593_v5 = vadd.f32 %v568_v47, %v515_v41  ;;  %v202_v63 = vadd.f32 %v177_v58, %v124_v16  ;;  %v489_v40 = vmul.f32 %v5226_v54, %v6403_v36  ;;  %v567_v55 = vmul.f32 %v5252_v19, %v6410_v53 }
  0xeb   :  { %1459 = vmatprep.subr.mxu1 %v6135_v0  ;;  %v1294_v17 = vmul.f32 0.2, %v1269_v51  ;;  %v1060_v44 = vadd.f32 %v1035_v32, %v1008_v15  ;;  %v825_v47 = vmul.f32 %v6202_v6, %v71_v34  ;;  %v645_v54 = vmul.f32 %v5278_v28, %v6412_v48 }
  0xec   :  { %v671_v45 = vadd.f32 %v646_v50, %v593_v5  ;;  %v280_v11 = vadd.f32 %v255_v4, %v202_v63  ;;  %v878_v19 = vmul.f32 %v5121_v39, %v6215_v10  ;;  %v930_v28 = vmul.f32 %v5147_v30, %v6228_v14 }
  0xed   :  { %v1319_v33 = vmax.f32 %v1269_v51, %v1294_v17  ;;  %v1112_v26 = vadd.f32 %v1087_v1, %v1060_v44  ;;  %v851_v50 = vadd.f32 %v6204_v7, %v825_v47  ;;  %v723_v22 = vmul.f32 %v5304_v8, %v6414_v59  ;;  %v5303_v8 = vld [vmem:[%s11620_s0 + $0x6e0] sm:$0xff]  ;;  %v70_v44 = vld [vmem:[%s11620_s0 + $0x98] sm:$0xff] }
  0xee   :  { %v749_v32 = vadd.f32 %v724_v27, %v671_v45  ;;  %v358_v60 = vadd.f32 %v333_v38, %v280_v11  ;;  %v982_v2 = vmul.f32 %v5173_v46, %v6247_v20  ;;  %v1034_v58 = vmul.f32 %v5199_v52, %v6264_v25 }
  0xef   :  { %1385 = vmatpush2.msra.mxu0 %v1319_v33  ;;  %v1164_v1 = vadd.f32 %v1139_v23, %v1112_v26  ;;  %v903_v18 = vadd.f32 %v878_v19, %v851_v50  ;;  %v1086_v62 = vmul.f32 %v5225_v9, %v6286_v31  ;;  %v1138_v16 = vmul.f32 %v5251_v35, %v6305_v37  ;;  %v5172_v50 = vld [vmem:[%s11620_s0 + $0x2f0] sm:$0xff] }
  0xf0   :  { %v774_v41 = vmul.f32 0.2, %v749_v32  ;;  %1386 = vmatprep.subr.mxu0 %v6135_v0  ;;  %v436_v27 = vadd.f32 %v411_v13, %v358_v60  ;;  %v97_v4 = vmul.f32 %v6355_v56, %v71_v34  ;;  %v1190_v23 = vmul.f32 %v5277_v29, %v6326_v43  ;;  %v5224_v60 = vld [vmem:[%s11620_s0 + $0x480] sm:$0xff] }
  0xf1   :  { %v1216_v51 = vadd.f32 %v1191_v42, %v1164_v1  ;;  %v955_v15 = vadd.f32 %v930_v28, %v903_v18  ;;  %v176_v38 = vmul.f32 %v5121_v39, %v6367_v61  ;;  %v254_v13 = vmul.f32 %v5147_v30, %v6377_v12  ;;  %v5120_v39 = vld [vmem:[%s11620_s0 + $0x160] sm:$0xff]  ;;  %v5250_v18 = vld [vmem:[%s11620_s0 + $0x548] sm:$0xff] }
  0xf2   :  { %v799_v5 = vmax.f32 %v749_v32, %v774_v41  ;;  %v514_v63 = vadd.f32 %v489_v40, %v436_v27  ;;  %v123_v17 = vadd.f32 %v6358_v57, %v97_v4  ;;  %v1242_v34 = vmul.f32 %v5303_v8, %v6342_v49  ;;  %v5198_v32 = vld [vmem:[%s11620_s0 + $0x3b8] sm:$0xff]  ;;  %v5276_v4 = vld [vmem:[%s11620_s0 + $0x610] sm:$0xff] }
  0xf3   :  { %v1268_v47 = vadd.f32 %v1243_v3, %v1216_v51  ;;  %v1007_v45 = vadd.f32 %v982_v2, %v955_v15  ;;  %v332_v42 = vmul.f32 %v5173_v46, %v6387_v21  ;;  %v410_v19 = vmul.f32 %v5199_v52, %v6394_v24  ;;  %v5146_v3 = vld [vmem:[%s11620_s0 + $0x228] sm:$0xff] }
  0xf4   :  { %1460 = vmatpush2.msra.mxu1 %v799_v5  ;;  %v592_v40 = vadd.f32 %v567_v55, %v514_v63  ;;  %v201_v11 = vadd.f32 %v176_v38, %v123_v17  ;;  %v488_v30 = vmul.f32 %v5225_v9, %v6403_v36  ;;  %v566_v46 = vmul.f32 %v5251_v35, %v6410_v53 }
  0xf5   :  { %1461 = vmatprep.subr.mxu1 %v6135_v0  ;;  %v1293_v33 = vmul.f32 0.2, %v1268_v47  ;;  %v1059_v26 = vadd.f32 %v1034_v58, %v1007_v45  ;;  %v824_v55 = vmul.f32 %v6202_v6, %v70_v44  ;;  %v644_v9 = vmul.f32 %v5277_v29, %v6412_v48 }
  0xf6   :  { %v670_v28 = vadd.f32 %v645_v54, %v592_v40  ;;  %v279_v52 = vadd.f32 %v254_v13, %v201_v11  ;;  %v877_v35 = vmul.f32 %v5120_v39, %v6215_v10  ;;  %v929_v29 = vmul.f32 %v5146_v3, %v6228_v14 }
  0xf7   :  { %v1318_v2 = vmax.f32 %v1268_v47, %v1293_v33  ;;  %v1111_v1 = vadd.f32 %v1086_v62, %v1059_v26  ;;  %v850_v54 = vadd.f32 %v6204_v7, %v824_v55  ;;  %v722_v27 = vmul.f32 %v5303_v8, %v6414_v59  ;;  %v5302_v8 = vld [vmem:[%s11620_s0 + $0x6d8] sm:$0xff]  ;;  %v69_v26 = vld [vmem:[%s11620_s0 + $0x90] sm:$0xff] }
  0xf8   :  { %v748_v58 = vadd.f32 %v723_v22, %v670_v28  ;;  %v357_v41 = vadd.f32 %v332_v42, %v279_v52  ;;  %v981_v51 = vmul.f32 %v5172_v50, %v6247_v20  ;;  %v1033_v38 = vmul.f32 %v5198_v32, %v6264_v25 }
  0xf9   :  { %1387 = vmatpush2.msra.mxu0 %v1318_v2  ;;  %v1163_v62 = vadd.f32 %v1138_v16, %v1111_v1  ;;  %v902_v15 = vadd.f32 %v877_v35, %v850_v54  ;;  %v1085_v5 = vmul.f32 %v5224_v60, %v6286_v31  ;;  %v1137_v17 = vmul.f32 %v5250_v18, %v6305_v37  ;;  %v5171_v54 = vld [vmem:[%s11620_s0 + $0x2e8] sm:$0xff] }
  0xfa   :  { %v773_v63 = vmul.f32 0.2, %v748_v58  ;;  %1388 = vmatprep.subr.mxu0 %v6135_v0  ;;  %v435_v22 = vadd.f32 %v410_v19, %v357_v41  ;;  %v96_v13 = vmul.f32 %v6355_v56, %v70_v44  ;;  %v1189_v16 = vmul.f32 %v5276_v4, %v6326_v43  ;;  %v5223_v41 = vld [vmem:[%s11620_s0 + $0x478] sm:$0xff] }
  0xfb   :  { %v1215_v47 = vadd.f32 %v1190_v23, %v1163_v62  ;;  %v954_v45 = vadd.f32 %v929_v29, %v902_v15  ;;  %v175_v42 = vmul.f32 %v5120_v39, %v6367_v61  ;;  %v253_v19 = vmul.f32 %v5146_v3, %v6377_v12  ;;  %v5119_v39 = vld [vmem:[%s11620_s0 + $0x158] sm:$0xff]  ;;  %v5249_v15 = vld [vmem:[%s11620_s0 + $0x540] sm:$0xff] }
  0xfc   :  { %v798_v40 = vmax.f32 %v748_v58, %v773_v63  ;;  %v513_v11 = vadd.f32 %v488_v30, %v435_v22  ;;  %v122_v33 = vadd.f32 %v6358_v57, %v96_v13  ;;  %v1241_v44 = vmul.f32 %v5302_v8, %v6342_v49  ;;  %v5197_v58 = vld [vmem:[%s11620_s0 + $0x3b0] sm:$0xff]  ;;  %v5275_v13 = vld [vmem:[%s11620_s0 + $0x608] sm:$0xff] }
  0xfd   :  { %v1267_v55 = vadd.f32 %v1242_v34, %v1215_v47  ;;  %v1006_v28 = vadd.f32 %v981_v51, %v954_v45  ;;  %v331_v23 = vmul.f32 %v5172_v50, %v6387_v21  ;;  %v409_v35 = vmul.f32 %v5198_v32, %v6394_v24  ;;  %v5145_v34 = vld [vmem:[%s11620_s0 + $0x220] sm:$0xff] }
  0xfe   :  { %1462 = vmatpush2.msra.mxu1 %v798_v40  ;;  %v591_v30 = vadd.f32 %v566_v46, %v513_v11  ;;  %v200_v52 = vadd.f32 %v175_v42, %v122_v33  ;;  %v487_v3 = vmul.f32 %v5224_v60, %v6403_v36  ;;  %v565_v50 = vmul.f32 %v5250_v18, %v6410_v53 }
  0xff   :  { %1463 = vmatprep.subr.mxu1 %v6135_v0  ;;  %v1292_v2 = vmul.f32 0.2, %v1267_v55  ;;  %v1058_v1 = vadd.f32 %v1033_v38, %v1006_v28  ;;  %v823_v46 = vmul.f32 %v6202_v6, %v69_v26  ;;  %v643_v60 = vmul.f32 %v5276_v4, %v6412_v48 }
 0x100   :  { %v669_v29 = vadd.f32 %v644_v9, %v591_v30  ;;  %v278_v32 = vadd.f32 %v253_v19, %v200_v52  ;;  %v876_v18 = vmul.f32 %v5119_v39, %v6215_v10  ;;  %v928_v4 = vmul.f32 %v5145_v34, %v6228_v14 }
 0x101   :  { %v1317_v51 = vmax.f32 %v1267_v55, %v1292_v2  ;;  %v1110_v62 = vadd.f32 %v1085_v5, %v1058_v1  ;;  %v849_v9 = vadd.f32 %v6204_v7, %v823_v46  ;;  %v721_v22 = vmul.f32 %v5302_v8, %v6414_v59  ;;  %v5301_v8 = vld [vmem:[%s11620_s0 + $0x6d0] sm:$0xff]  ;;  %v68_v1 = vld [vmem:[%s11620_s0 + $0x88] sm:$0xff] }
 0x102   :  { %v747_v38 = vadd.f32 %v722_v27, %v669_v29  ;;  %v356_v63 = vadd.f32 %v331_v23, %v278_v32  ;;  %v980_v47 = vmul.f32 %v5171_v54, %v6247_v20  ;;  %v1032_v42 = vmul.f32 %v5197_v58, %v6264_v25 }
 0x103   :  { %1389 = vmatpush2.msra.mxu0 %v1317_v51  ;;  %v1162_v5 = vadd.f32 %v1137_v17, %v1110_v62  ;;  %v901_v45 = vadd.f32 %v876_v18, %v849_v9  ;;  %v1084_v40 = vmul.f32 %v5223_v41, %v6286_v31  ;;  %v1136_v33 = vmul.f32 %v5249_v15, %v6305_v37  ;;  %v5170_v9 = vld [vmem:[%s11620_s0 + $0x2e0] sm:$0xff] }
 0x104   :  { %v772_v11 = vmul.f32 0.2, %v747_v38  ;;  %1390 = vmatprep.subr.mxu0 %v6135_v0  ;;  %v434_v27 = vadd.f32 %v409_v35, %v356_v63  ;;  %v95_v19 = vmul.f32 %v6355_v56, %v69_v26  ;;  %v1188_v17 = vmul.f32 %v5275_v13, %v6326_v43  ;;  %v5222_v63 = vld [vmem:[%s11620_s0 + $0x470] sm:$0xff] }
 0x105   :  { %v1214_v55 = vadd.f32 %v1189_v16, %v1162_v5  ;;  %v953_v28 = vadd.f32 %v928_v4, %v901_v45  ;;  %v174_v23 = vmul.f32 %v5119_v39, %v6367_v61  ;;  %v252_v35 = vmul.f32 %v5145_v34, %v6377_v12  ;;  %v5118_v39 = vld [vmem:[%s11620_s0 + $0x150] sm:$0xff]  ;;  %v5248_v45 = vld [vmem:[%s11620_s0 + $0x538] sm:$0xff] }
 0x106   :  { %v797_v30 = vmax.f32 %v747_v38, %v772_v11  ;;  %v512_v52 = vadd.f32 %v487_v3, %v434_v27  ;;  %v121_v2 = vadd.f32 %v6358_v57, %v95_v19  ;;  %v1240_v26 = vmul.f32 %v5301_v8, %v6342_v49  ;;  %v5196_v38 = vld [vmem:[%s11620_s0 + $0x3a8] sm:$0xff]  ;;  %v5274_v19 = vld [vmem:[%s11620_s0 + $0x600] sm:$0xff] }
 0x107   :  { %v1266_v46 = vadd.f32 %v1241_v44, %v1214_v55  ;;  %v1005_v29 = vadd.f32 %v980_v47, %v953_v28  ;;  %v330_v16 = vmul.f32 %v5171_v54, %v6387_v21  ;;  %v408_v18 = vmul.f32 %v5197_v58, %v6394_v24  ;;  %v5144_v44 = vld [vmem:[%s11620_s0 + $0x218] sm:$0xff] }
 0x108   :  { %1464 = vmatpush2.msra.mxu1 %v797_v30  ;;  %v590_v3 = vadd.f32 %v565_v50, %v512_v52  ;;  %v199_v32 = vadd.f32 %v174_v23, %v121_v2  ;;  %v486_v34 = vmul.f32 %v5223_v41, %v6403_v36  ;;  %v564_v54 = vmul.f32 %v5249_v15, %v6410_v53 }
 0x109   :  { %1465 = vmatprep.subr.mxu1 %v6135_v0  ;;  %v1291_v51 = vmul.f32 0.2, %v1266_v46  ;;  %v1057_v62 = vadd.f32 %v1032_v42, %v1005_v29  ;;  %v822_v50 = vmul.f32 %v6202_v6, %v68_v1  ;;  %v642_v41 = vmul.f32 %v5275_v13, %v6412_v48 }
 0x10a   :  { %v668_v4 = vadd.f32 %v643_v60, %v590_v3  ;;  %v277_v58 = vadd.f32 %v252_v35, %v199_v32  ;;  %v875_v15 = vmul.f32 %v5118_v39, %v6215_v10  ;;  %v927_v13 = vmul.f32 %v5144_v44, %v6228_v14 }
 0x10b   :  { %v1316_v47 = vmax.f32 %v1266_v46, %v1291_v51  ;;  %v1109_v5 = vadd.f32 %v1084_v40, %v1057_v62  ;;  %v848_v60 = vadd.f32 %v6204_v7, %v822_v50  ;;  %v720_v27 = vmul.f32 %v5301_v8, %v6414_v59  ;;  %v5300_v8 = vld [vmem:[%s11620_s0 + $0x6c8] sm:$0xff]  ;;  %v67_v62 = vld [vmem:[%s11620_s0 + $0x80] sm:$0xff] }
 0x10c   :  { %v746_v42 = vadd.f32 %v721_v22, %v668_v4  ;;  %v355_v11 = vadd.f32 %v330_v16, %v277_v58  ;;  %v979_v55 = vmul.f32 %v5170_v9, %v6247_v20  ;;  %v1031_v23 = vmul.f32 %v5196_v38, %v6264_v25 }
 0x10d   :  { %1391 = vmatpush2.msra.mxu0 %v1316_v47  ;;  %v1161_v40 = vadd.f32 %v1136_v33, %v1109_v5  ;;  %v900_v28 = vadd.f32 %v875_v15, %v848_v60  ;;  %v1083_v30 = vmul.f32 %v5222_v63, %v6286_v31  ;;  %v1135_v2 = vmul.f32 %v5248_v45, %v6305_v37  ;;  %v5169_v60 = vld [vmem:[%s11620_s0 + $0x2d8] sm:$0xff] }
 0x10e   :  { %v771_v52 = vmul.f32 0.2, %v746_v42  ;;  %1392 = vmatprep.subr.mxu0 %v6135_v0  ;;  %v433_v22 = vadd.f32 %v408_v18, %v355_v11  ;;  %v94_v35 = vmul.f32 %v6355_v56, %v68_v1  ;;  %v1187_v33 = vmul.f32 %v5274_v19, %v6326_v43 }
 0x10f   :  { %v1213_v46 = vadd.f32 %v1188_v17, %v1161_v40  ;;  %v952_v29 = vadd.f32 %v927_v13, %v900_v28  ;;  %v173_v16 = vmul.f32 %v5118_v39, %v6367_v61  ;;  %v251_v18 = vmul.f32 %v5144_v44, %v6377_v12  ;;  %v5117_v39 = vld [vmem:[%s11620_s0 + $0x148] sm:$0xff] }
 0x110   :  { %v796_v3 = vmax.f32 %v746_v42, %v771_v52  ;;  %v511_v32 = vadd.f32 %v486_v34, %v433_v22  ;;  %v120_v51 = vadd.f32 %v6358_v57, %v94_v35  ;;  %v1239_v1 = vmul.f32 %v5300_v8, %v6342_v49  ;;  %v5195_v42 = vld [vmem:[%s11620_s0 + $0x3a0] sm:$0xff]  ;;  %v48_v28 = vld [vmem:[%s11623_s3 + $0x8] sm:$0xff] }
 0x111   :  { %v1265_v50 = vadd.f32 %v1240_v26, %v1213_v46  ;;  %v1004_v4 = vadd.f32 %v979_v55, %v952_v29  ;;  %v329_v17 = vmul.f32 %v5170_v9, %v6387_v21  ;;  %v407_v15 = vmul.f32 %v5196_v38, %v6394_v24  ;;  %v5143_v26 = vld [vmem:[%s11620_s0 + $0x210] sm:$0xff]  ;;  %5321 = vmatprep.mubr.msk.f32.mxu1 %vm1327_vm1, %v48_v28 }
 0x112   :  { %1466 = vmatpush2.msra.mxu1 %v796_v3  ;;  %v589_v34 = vadd.f32 %v564_v54, %v511_v32  ;;  %v198_v58 = vadd.f32 %v173_v16, %v120_v51  ;;  %v485_v44 = vmul.f32 %v5222_v63, %v6403_v36  ;;  %v563_v9 = vmul.f32 %v5248_v45, %v6410_v53  ;;  %v5221_v45 = vld [vmem:[%s11620_s0 + $0x468] sm:$0xff]  ;;  %v7560_v16 = vld [vmem:[%s11620_s0 + $0x6c0] sm:$0xff] }
 0x113   :  { %1467 = vmatprep.subr.mxu1 %v6135_v0  ;;  %v1290_v47 = vmul.f32 0.2, %v1265_v50  ;;  %v1056_v5 = vadd.f32 %v1031_v23, %v1004_v4  ;;  %v821_v54 = vmul.f32 %v6202_v6, %v67_v62  ;;  %v641_v13 = vmul.f32 %v5274_v19, %v6412_v48 }
 0x114   :  { %v667_v38 = vadd.f32 %v642_v41, %v589_v34  ;;  %v276_v63 = vadd.f32 %v251_v18, %v198_v58  ;;  %v874_v11 = vmul.f32 %v5117_v39, %v6215_v10  ;;  %v5247_v41 = vld [vmem:[%s11620_s0 + $0x530] sm:$0xff]  ;;  %v926_v40 = vmul.f32 %v5143_v26, %v6228_v14 }
 0x115   :  { %v1315_v55 = vmax.f32 %v1265_v50, %v1290_v47  ;;  %v1108_v6 = vadd.f32 %v1083_v30, %v1056_v5  ;;  %v847_v19 = vadd.f32 %v6204_v7, %v821_v54  ;;  %v719_v52 = vmul.f32 %v5300_v8, %v6414_v59  ;;  %v5273_v7 = vld [vmem:[%s11620_s0 + $0x5f8] sm:$0xff]  ;;  %v5403_v54 = vld [vmem:[%s11620_s0 + $0x140] sm:$0xff] }
 0x116   :  { %v745_v23 = vadd.f32 %v720_v27, %v667_v38  ;;  %v354_v10 = vadd.f32 %v329_v17, %v276_v63  ;;  %v978_v30 = vmul.f32 %v5169_v60, %v6247_v20  ;;  %v1030_v35 = vmul.f32 %v5195_v42, %v6264_v25 }
 0x117   :  { %1393 = vmatpush2.msra.mxu0 %v1315_v55  ;;  %v1160_v22 = vadd.f32 %v1135_v2, %v1108_v6  ;;  %v899_v14 = vadd.f32 %v874_v11, %v847_v19  ;;  %v1082_v46 = vmul.f32 %v5221_v45, %v6286_v31  ;;  %v1134_v20 = vmul.f32 %v5247_v41, %v6305_v37 }
 0x118   :  { %v770_v27 = vmul.f32 0.2, %v745_v23  ;;  %1394 = vmatprep.subr.mxu0 %v6135_v0  ;;  %v432_v8 = vadd.f32 %v407_v15, %v354_v10  ;;  %v1325_v29 = vrot.slane %v48_v28, 1  ;;  %v93_v31 = vmul.f32 %v6355_v56, %v67_v62 }
 0x119   :  { %v1212_v2 = vadd.f32 %v1187_v33, %v1160_v22  ;;  %v951_v25 = vadd.f32 %v926_v40, %v899_v14  ;;  %v1186_v51 = vmul.f32 %v5273_v7, %v6326_v43  ;;  %v172_v37 = vmul.f32 %v5117_v39, %v6367_v61  ;;  %v5405_v40 = vld [vmem:[%s11620_s0 + $0x2d0] sm:$0xff] }
 0x11a   :  { %v795_v3 = vmax.f32 %v745_v23, %v770_v27  ;;  %v510_v32 = vadd.f32 %v485_v44, %v432_v8  ;;  %5319 = vmatprep.mubr.msk.f32.mxu0 %vm1327_vm1, %v1325_v29  ;;  %v119_v50 = vadd.f32 %v6358_v57, %v93_v31  ;;  %v250_v4 = vmul.f32 %v5143_v26, %v6377_v12  ;;  %v5407_v27 = vld [vmem:[%s11620_s0 + $0x460] sm:$0xff] }
 0x11b   :  { %v1264_v33 = vadd.f32 %v1239_v1, %v1212_v2  ;;  %v1003_v18 = vadd.f32 %v978_v30, %v951_v25  ;;  %v1238_v43 = vmul.f32 %v7560_v16, %v6342_v49  ;;  %v328_v61 = vmul.f32 %v5169_v60, %v6387_v21 }
 0x11c   :  { %1468 = vmatpush2.msra.mxu1 %v795_v3  ;;  %v588_v56 = vadd.f32 %v563_v9, %v510_v32  ;;  %v406_v62 = vmul.f32 %v5195_v42, %v6394_v24  ;;  %v197_v1 = vadd.f32 %v172_v37, %v119_v50  ;;  %v484_v17 = vmul.f32 %v5221_v45, %v6403_v36  ;;  %v5402_v36 = vld [vmem:[%s11620_s0 + $0x78] sm:$0xff] }
 0x11d   :  { %1469 = vmatprep.subr.mxu1 %v6135_v0  ;;  %v1289_v57 = vmul.f32 0.2, %v1264_v33  ;;  %v1055_v12 = vadd.f32 %v1030_v35, %v1003_v18  ;;  %v562_v49 = vmul.f32 %v5247_v41, %v6410_v53  ;;  %v7587_v21 = vmul.f32 %v5273_v7, %v6412_v48  ;;  %v7634_v41 = vld [vmem:[%s11623_s3] sm:$0xff]  ;;  %v5406_v35 = vld [vmem:[%s11620_s0 + $0x398] sm:$0xff] }
 0x11e   :  { %v666_v39 = vadd.f32 %v641_v13, %v588_v56  ;;  %v7590_v24 = vstv %s7520_s24  ;;  %v275_v15 = vadd.f32 %v250_v4, %v197_v1  ;;  %v7601_v53 = vstv %s7530_s30  ;;  %s7609_s24 = sld [smem:[#allocation3 + $0x108]]  ;;  %v5404_v13 = vld [vmem:[%s11620_s0 + $0x208] sm:$0xff] }
 0x11f   :  { %v1314_v34 = vmax.f32 %v1264_v33, %v1289_v57  ;;  %v1107_v58 = vadd.f32 %v1082_v46, %v1055_v12  ;;  %v1497_v44 = vmul.f32 %v5402_v36, %v7590_v24  ;;  %v7604_v48 = vstv %s7544_s15  ;;  %s8909_s30 = sld [smem:[#allocation3 + $0x204]] }
 0x120   :  { %v744_v26 = vadd.f32 %v719_v52, %v666_v39  ;;  %v7607_v47 = vstv %s7555_s19  ;;  %v353_v9 = vadd.f32 %v328_v61, %v275_v15  ;;  %v1550_v38 = vmul.f32 %v5403_v54, %v7604_v48  ;;  %s8921_s15 = sld [smem:[#allocation3 + $0x281]] }
 0x121   :  { %1395 = vmatpush2.msra.mxu0 %v1314_v34  ;;  %v1159_v5 = vadd.f32 %v1134_v20, %v1107_v58  ;;  %v1523_v60 = vadd.f32 %v7601_v53, %v1497_v44  ;;  %v1602_v42 = vmul.f32 %v5404_v13, %v7607_v47  ;;  %v7624_v45 = vstv %s7563_s22  ;;  %v5408_v20 = vld [vmem:[%s11620_s0 + $0x528] sm:$0xff]  ;;  %s8874_s22 = sld [smem:[#allocation3 + $0x201]] }
 0x122   :  { %v769_v63 = vmul.f32 0.2, %v744_v26  ;;  %1396 = vmatprep.subr.mxu0 %v6135_v0  ;;  %v7627_v11 = vstv %s7568_s23  ;;  %v431_v6 = vadd.f32 %v406_v62, %v353_v9  ;;  %v1654_v28 = vmul.f32 %v5405_v40, %v7624_v45  ;;  %s8931_s19 = sld [smem:[#allocation3 + $0x207]] }
 0x123   :  { %v1211_v55 = vadd.f32 %v1186_v51, %v1159_v5  ;;  %v1575_v19 = vadd.f32 %v1550_v38, %v1523_v60  ;;  %v718_v10 = vmul.f32 %v7560_v16, %v6414_v59  ;;  %v7645_v52 = vstv %s7573_s25  ;;  %s10238_s23 = sld [smem:[#allocation6 + $0x7]] }
 0x124   :  { %v794_v23 = vmax.f32 %v744_v26, %v769_v63  ;;  %v7648_v30 = vstv %s7579_s26  ;;  %v509_v7 = vadd.f32 %v484_v17, %v431_v6  ;;  %v1706_v46 = vmul.f32 %v5406_v35, %v7627_v11  ;;  %v5409_v17 = vld [vmem:[%s11620_s0 + $0x5f0] sm:$0xff]  ;;  %s8949_s26 = sld [smem:[#allocation3 + $0x282]] }
 0x125   :  { %v1263_v22 = vadd.f32 %v1238_v43, %v1211_v55  ;;  %v1627_v14 = vadd.f32 %v1602_v42, %v1575_v19  ;;  %v1324_v59 = vrot.slane %v7634_v41, 1  ;;  %v1758_v8 = vmul.f32 %v5407_v27, %v7645_v52  ;;  %v5411_v63 = vld [vmem:[%s11620_s0 + $0x70] sm:$0xff]  ;;  %s10242_s25 = sld [smem:[#allocation3 + $0x302]] }
 0x126   :  { %1470 = vmatpush2.msra.mxu1 %v794_v23  ;;  %v1810_v29 = vmul.f32 %v5408_v20, %v7648_v30  ;;  %v7668_v2 = vstv %s7540_s14  ;;  %v587_v25 = vadd.f32 %v562_v49, %v509_v7  ;;  %v7674_v3 = vstv %s7598_s28  ;;  %s8884_s14 = sld [smem:[#allocation6 + $0x5]] }
 0x127   :  { %1471 = vmatprep.subr.mxu1 %v6135_v0  ;;  %v1288_v16 = vmul.f32 0.2, %v1263_v22  ;;  %v1679_v31 = vadd.f32 %v1654_v28, %v1627_v14  ;;  %v7677_v32 = vstv %s7609_s24  ;;  %v2096_v51 = vmul.f32 %v5402_v36, %v7668_v2  ;;  %v5412_v28 = vld [vmem:[%s11620_s0 + $0x138] sm:$0xff]  ;;  %s8894_s28 = sld [smem:[#allocation3 + $0x202]] }
 0x128   :  { %v7681_v37 = vstv %s7551_s17  ;;  %v7684_v33 = vstv %s7583_s18  ;;  %v665_v50 = vadd.f32 %v7587_v21, %v587_v25  ;;  %v7690_v61 = vstv %s7592_s1  ;;  %v5410_v21 = vld [vmem:[%s11620_s0 + $0x6b8] sm:$0xff]  ;;  %s8898_s24 = sld [smem:[#allocation3 + $0x203]] }
 0x129   :  { %v1313_v18 = vmax.f32 %v1263_v22, %v1288_v16  ;;  %v1731_v4 = vadd.f32 %v1706_v46, %v1679_v31  ;;  %v2149_v56 = vmul.f32 %v5403_v54, %v7684_v33  ;;  %v2122_v43 = vadd.f32 %v7681_v37, %v2096_v51  ;;  %v5416_v31 = vld [vmem:[%s11620_s0 + $0x458] sm:$0xff]  ;;  %s8958_s17 = sld [smem:[#allocation3 + $0x283]] }
 0x12a   :  { %v7693_v62 = vstv %s7616_s7  ;;  %v7696_v57 = vstv %s7629_s9  ;;  %v743_v12 = vadd.f32 %v718_v10, %v665_v50  ;;  %v1862_v39 = vmul.f32 %v5409_v17, %v7674_v3  ;;  %v5413_v10 = vld [vmem:[%s11620_s0 + $0x200] sm:$0xff]  ;;  %s8913_s9 = sld [smem:[#allocation3 + $0x205]] }
 0x12b   :  { %1397 = vmatpush2.msra.mxu0 %v1313_v18  ;;  %v1783_v1 = vadd.f32 %v1758_v8, %v1731_v4  ;;  %v2201_v49 = vmul.f32 %v5404_v13, %v7690_v61  ;;  %v1914_v34 = vmul.f32 %v5410_v21, %v7677_v32  ;;  %v2174_v58 = vadd.f32 %v2149_v56, %v2122_v43  ;;  %v5414_v8 = vld [vmem:[%s11620_s0 + $0x2c8] sm:$0xff]  ;;  %v5417_v4 = vld [vmem:[%s11620_s0 + $0x520] sm:$0xff]  ;;  %s8969_s18 = sld [smem:[#allocation3 + $0x284]] }
 0x12c   :  { %1399 = vmatmul.mubr.f32.vlgmr.msra.gmra.mxu0 %v1324_v59  ;;  %2007 = vmatprep.subr.mxu0 %v6135_v0  ;;  %v2253_v15 = vmul.f32 %v5405_v40, %v7693_v62  ;;  %v7710_v36 = vstv %s7640_s8  ;;  %v768_v44 = vmul.f32 0.2, %v743_v12  ;;  %v2305_v5 = vmul.f32 %v5406_v35, %v7696_v57  ;;  %s8925_s8 = sld [smem:[#allocation3 + $0x206]] }
 0x12d   :  { %v1835_v26 = vadd.f32 %v1810_v29, %v1783_v1  ;;  %v7714_v9 = vstv %s7650_s16  ;;  %v2226_v60 = vadd.f32 %v2201_v49, %v2174_v58  ;;  %v7717_v54 = vstv %s7656_s13  ;;  %v5418_v1 = vld [vmem:[%s11620_s0 + $0x5e8] sm:$0xff]  ;;  %v5419_v58 = vld [vmem:[%s11620_s0 + $0x6b0] sm:$0xff]  ;;  %s8863_s16 = sld [smem:[#allocation6 + $0x4]] }
 0x12e   :  { %v7720_v38 = vstv %s7670_s2  ;;  %v1496_v13 = vmul.f32 %v5411_v63, %v7590_v24  ;;  %v793_v42 = vmax.f32 %v743_v12, %v768_v44  ;;  %v2357_v6 = vmul.f32 %v5407_v27, %v7710_v36  ;;  %s8870_s13 = sld [smem:[#allocation3 + $0x280]] }
 0x12f   :  { %v1887_v55 = vadd.f32 %v1862_v39, %v1835_v26  ;;  %v2278_v19 = vadd.f32 %v2253_v15, %v2226_v60  ;;  %v1549_v23 = vmul.f32 %v5412_v28, %v7604_v48  ;;  %v1601_v22 = vmul.f32 %v5413_v10, %v7607_v47  ;;  %s8975_s1 = sld [smem:[#allocation3 + $0x285]] }
 0x130   :  { %v1522_v40 = vadd.f32 %v7601_v53, %v1496_v13  ;;  %1472 = vmatpush2.msra.mxu1 %v793_v42  ;;  %v2409_v14 = vmul.f32 %v5408_v20, %v7714_v9  ;;  %v2461_v35 = vmul.f32 %v5409_v17, %v7717_v54  ;;  %v2513_v46 = vmul.f32 %v5410_v21, %v7720_v38  ;;  %v5415_v20 = vld [vmem:[%s11620_s0 + $0x390] sm:$0xff]  ;;  %s8993_s7 = sld [smem:[#allocation3 + $0x287]] }
 0x131   :  { %v1939_v7 = vadd.f32 %v1914_v34, %v1887_v55  ;;  %2606 = vmatprep.subr.mxu1 %v6135_v0  ;;  %1474 = vmatmul.mubr.f32.vlgmr.msra.gmra.mxu1 %v7634_v41  ;;  %v2330_v59 = vadd.f32 %v2305_v5, %v2278_v19  ;;  %v1653_v29 = vmul.f32 %v5414_v8, %v7624_v45  ;;  %v5421_v19 = vld [vmem:[%s11620_s0 + $0x130] sm:$0xff] }
 0x132   :  { %v1574_v27 = vadd.f32 %v1549_v23, %v1522_v40  ;;  %v1705_v25 = vmul.f32 %v5415_v20, %v7627_v11  ;;  %v1757_v41 = vmul.f32 %v5416_v31, %v7645_v52  ;;  %v2095_v51 = vmul.f32 %v5411_v63, %v7668_v2  ;;  %v5420_v63 = vld [vmem:[%s11620_s0 + $0x68] sm:$0xff] }
 0x133   :  { %v1964_v16 = vmul.f32 0.2, %v1939_v7  ;;  %v2382_v18 = vadd.f32 %v2357_v6, %v2330_v59  ;;  %v1809_v56 = vmul.f32 %v5417_v4, %v7648_v30  ;;  %v2148_v43 = vmul.f32 %v5412_v28, %v7684_v33 }
 0x134   :  { %v1626_v50 = vadd.f32 %v1601_v22, %v1574_v27  ;;  %v1861_v17 = vmul.f32 %v5418_v1, %v7674_v3  ;;  %v2121_v39 = vadd.f32 %v7681_v37, %v2095_v51  ;;  %v2200_v49 = vmul.f32 %v5413_v10, %v7690_v61  ;;  %v5422_v22 = vld [vmem:[%s11620_s0 + $0x1f8] sm:$0xff]  ;;  %v5423_v27 = vld [vmem:[%s11620_s0 + $0x2c0] sm:$0xff] }
 0x135   :  { %v1989_v12 = vmax.f32 %v1939_v7, %v1964_v16  ;;  %v2434_v21 = vadd.f32 %v2409_v14, %v2382_v18  ;;  %v1913_v15 = vmul.f32 %v5419_v58, %v7677_v32  ;;  %v2252_v44 = vmul.f32 %v5414_v8, %v7693_v62 }
 0x136   :  { %v1678_v34 = vadd.f32 %v1653_v29, %v1626_v50  ;;  %v2173_v26 = vadd.f32 %v2148_v43, %v2121_v39  ;;  %v2304_v5 = vmul.f32 %v5415_v20, %v7696_v57  ;;  %v2356_v60 = vmul.f32 %v5416_v31, %v7710_v36  ;;  %v5424_v20 = vld [vmem:[%s11620_s0 + $0x388] sm:$0xff]  ;;  %v5427_v39 = vld [vmem:[%s11620_s0 + $0x5e0] sm:$0xff] }
 0x137   :  { %2008 = vmatpush1.msra.mxu0 %v1989_v12  ;;  %v1495_v13 = vmul.f32 %v5420_v63, %v7590_v24  ;;  %v2486_v42 = vadd.f32 %v2461_v35, %v2434_v21  ;;  %v2408_v6 = vmul.f32 %v5417_v4, %v7714_v9  ;;  %v1548_v40 = vmul.f32 %v5421_v19, %v7604_v48  ;;  %v5426_v12 = vld [vmem:[%s11620_s0 + $0x518] sm:$0xff] }
 0x138   :  { %2009 = vmatprep.subr.mxu0 %v6135_v0  ;;  %v1730_v55 = vadd.f32 %v1705_v25, %v1678_v34  ;;  %v2225_v28 = vadd.f32 %v2200_v49, %v2173_v26  ;;  %v2460_v23 = vmul.f32 %v5418_v1, %v7717_v54  ;;  %v1600_v7 = vmul.f32 %v5422_v22, %v7607_v47 }
 0x139   :  { %v1521_v10 = vadd.f32 %v7601_v53, %v1495_v13  ;;  %v2538_v14 = vadd.f32 %v2513_v46, %v2486_v42  ;;  %v2512_v59 = vmul.f32 %v5419_v58, %v7720_v38  ;;  %v1652_v8 = vmul.f32 %v5423_v27, %v7624_v45  ;;  %v5425_v46 = vld [vmem:[%s11620_s0 + $0x450] sm:$0xff] }
 0x13a   :  { %v1782_v35 = vadd.f32 %v1757_v41, %v1730_v55  ;;  %v2277_v29 = vadd.f32 %v2252_v44, %v2225_v28  ;;  %v1704_v25 = vmul.f32 %v5424_v20, %v7627_v11  ;;  %v1756_v31 = vmul.f32 %v5425_v46, %v7645_v52  ;;  %v5429_v28 = vld [vmem:[%s11620_s0 + $0x60] sm:$0xff] }
 0x13b   :  { %v1573_v16 = vadd.f32 %v1548_v40, %v1521_v10  ;;  %v2563_v41 = vmul.f32 0.2, %v2538_v14  ;;  %v2094_v18 = vmul.f32 %v5420_v63, %v7668_v2  ;;  %v2147_v50 = vmul.f32 %v5421_v19, %v7684_v33 }
 0x13c   :  { %v1834_v51 = vadd.f32 %v1809_v56, %v1782_v35  ;;  %v2329_v4 = vadd.f32 %v2304_v5, %v2277_v29  ;;  %v1808_v1 = vmul.f32 %v5426_v12, %v7648_v30  ;;  %v1860_v49 = vmul.f32 %v5427_v39, %v7674_v3  ;;  %v5428_v5 = vld [vmem:[%s11620_s0 + $0x6a8] sm:$0xff] }
 0x13d   :  { %v1625_v43 = vadd.f32 %v1600_v7, %v1573_v16  ;;  %v2588_v21 = vmax.f32 %v2538_v14, %v2563_v41  ;;  %v2120_v34 = vadd.f32 %v7681_v37, %v2094_v18  ;;  %v2199_v58 = vmul.f32 %v5422_v22, %v7690_v61  ;;  %v5430_v22 = vld [vmem:[%s11620_s0 + $0x128] sm:$0xff]  ;;  %v5431_v16 = vld [vmem:[%s11620_s0 + $0x1f0] sm:$0xff] }
 0x13e   :  { %v1886_v56 = vadd.f32 %v1861_v17, %v1834_v51  ;;  %v2381_v44 = vadd.f32 %v2356_v60, %v2329_v4  ;;  %v1912_v63 = vmul.f32 %v5428_v5, %v7677_v32  ;;  %v2251_v13 = vmul.f32 %v5423_v27, %v7693_v62  ;;  %v5432_v51 = vld [vmem:[%s11620_s0 + $0x2b8] sm:$0xff]  ;;  %v5433_v4 = vld [vmem:[%s11620_s0 + $0x380] sm:$0xff] }
 0x13f   :  { %v1677_v26 = vadd.f32 %v1652_v8, %v1625_v43  ;;  %2607 = vmatpush1.msra.mxu1 %v2588_v21  ;;  %v2172_v55 = vadd.f32 %v2147_v50, %v2120_v34  ;;  %v2303_v19 = vmul.f32 %v5424_v20, %v7696_v57  ;;  %v2355_v17 = vmul.f32 %v5425_v46, %v7710_v36 }
 0x140   :  { %v1938_v42 = vadd.f32 %v1913_v15, %v1886_v56  ;;  %2608 = vmatprep.subr.mxu1 %v6135_v0  ;;  %v2433_v40 = vadd.f32 %v2408_v6, %v2381_v44  ;;  %v1494_v10 = vmul.f32 %v5429_v28, %v7590_v24  ;;  %v1547_v15 = vmul.f32 %v5430_v22, %v7604_v48  ;;  %v5435_v44 = vld [vmem:[%s11620_s0 + $0x510] sm:$0xff] }
 0x141   :  { %v1729_v60 = vadd.f32 %v1704_v25, %v1677_v26  ;;  %v2224_v14 = vadd.f32 %v2199_v58, %v2172_v55  ;;  %v2407_v35 = vmul.f32 %v5426_v12, %v7714_v9  ;;  %v2459_v27 = vmul.f32 %v5427_v39, %v7717_v54  ;;  %v5434_v39 = vld [vmem:[%s11620_s0 + $0x448] sm:$0xff] }
 0x142   :  { %v1963_v7 = vmul.f32 0.2, %v1938_v42  ;;  %v2485_v6 = vadd.f32 %v2460_v23, %v2433_v40  ;;  %v1520_v29 = vadd.f32 %v7601_v53, %v1494_v10  ;;  %v1599_v20 = vmul.f32 %v5431_v16, %v7607_v47 }
 0x143   :  { %v1781_v8 = vadd.f32 %v1756_v31, %v1729_v60  ;;  %v2276_v46 = vadd.f32 %v2251_v13, %v2224_v14  ;;  %v2511_v41 = vmul.f32 %v5428_v5, %v7720_v38  ;;  %v1651_v18 = vmul.f32 %v5432_v51, %v7624_v45  ;;  %v5436_v13 = vld [vmem:[%s11620_s0 + $0x5d8] sm:$0xff] }
 0x144   :  { %v1988_v25 = vmax.f32 %v1938_v42, %v1963_v7  ;;  %v2537_v23 = vadd.f32 %v2512_v59, %v2485_v6  ;;  %v1572_v50 = vadd.f32 %v1547_v15, %v1520_v29  ;;  %v1703_v43 = vmul.f32 %v5433_v4, %v7627_v11 }
 0x145   :  { %v1833_v31 = vadd.f32 %v1808_v1, %v1781_v8  ;;  %v2328_v12 = vadd.f32 %v2303_v19, %v2276_v46  ;;  %v1755_v21 = vmul.f32 %v5434_v39, %v7645_v52  ;;  %v2093_v56 = vmul.f32 %v5429_v28, %v7668_v2  ;;  %v5437_v28 = vld [vmem:[%s11620_s0 + $0x6a0] sm:$0xff] }
 0x146   :  { %2010 = vmatpush1.msra.mxu0 %v1988_v25  ;;  %v2146_v59 = vmul.f32 %v5430_v22, %v7684_v33  ;;  %v2562_v1 = vmul.f32 0.2, %v2537_v23  ;;  %v1624_v58 = vadd.f32 %v1599_v20, %v1572_v50  ;;  %v1807_v26 = vmul.f32 %v5435_v44, %v7648_v30  ;;  %v5439_v25 = vld [vmem:[%s11620_s0 + $0x120] sm:$0xff] }
 0x147   :  { %2011 = vmatprep.subr.mxu0 %v6135_v0  ;;  %v1885_v34 = vadd.f32 %v1860_v49, %v1833_v31  ;;  %v2380_v5 = vadd.f32 %v2355_v17, %v2328_v12  ;;  %v1859_v42 = vmul.f32 %v5436_v13, %v7674_v3  ;;  %v2119_v55 = vadd.f32 %v7681_v37, %v2093_v56  ;;  %v5440_v31 = vld [vmem:[%s11620_s0 + $0x1e8] sm:$0xff] }
 0x148   :  { %v2198_v19 = vmul.f32 %v5431_v16, %v7690_v61  ;;  %v2587_v40 = vmax.f32 %v2537_v23, %v2562_v1  ;;  %v1676_v60 = vadd.f32 %v1651_v18, %v1624_v58  ;;  %v1911_v10 = vmul.f32 %v5437_v28, %v7677_v32  ;;  %v5442_v1 = vld [vmem:[%s11620_s0 + $0x378] sm:$0xff] }
 0x149   :  { %v1937_v49 = vadd.f32 %v1912_v63, %v1885_v34  ;;  %v2432_v17 = vadd.f32 %v2407_v35, %v2380_v5  ;;  %v2171_v22 = vadd.f32 %v2146_v59, %v2119_v55  ;;  %v2250_v15 = vmul.f32 %v5432_v51, %v7693_v62  ;;  %v5438_v63 = vld [vmem:[%s11620_s0 + $0x58] sm:$0xff] }
 0x14a   :  { %v2302_v7 = vmul.f32 %v5433_v4, %v7696_v57  ;;  %2609 = vmatpush1.msra.mxu1 %v2587_v40  ;;  %v1728_v6 = vadd.f32 %v1703_v43, %v1676_v60  ;;  %v2354_v8 = vmul.f32 %v5434_v39, %v7710_v36  ;;  %v1493_v29 = vmul.f32 %v5438_v63, %v7590_v24 }
 0x14b   :  { %v1962_v14 = vmul.f32 0.2, %v1937_v49  ;;  %2610 = vmatprep.subr.mxu1 %v6135_v0  ;;  %v2484_v16 = vadd.f32 %v2459_v27, %v2432_v17  ;;  %v2223_v35 = vadd.f32 %v2198_v19, %v2171_v22  ;;  %v2406_v20 = vmul.f32 %v5435_v44, %v7714_v9  ;;  %v5443_v44 = vld [vmem:[%s11620_s0 + $0x440] sm:$0xff]  ;;  %v5444_v19 = vld [vmem:[%s11620_s0 + $0x508] sm:$0xff] }
 0x14c   :  { %v1546_v46 = vmul.f32 %v5439_v25, %v7604_v48  ;;  %v1780_v18 = vadd.f32 %v1755_v21, %v1728_v6  ;;  %v1519_v23 = vadd.f32 %v7601_v53, %v1493_v29  ;;  %v1598_v50 = vmul.f32 %v5440_v31, %v7607_v47  ;;  %v5441_v21 = vld [vmem:[%s11620_s0 + $0x2b0] sm:$0xff]  ;;  %v5446_v6 = vld [vmem:[%s11620_s0 + $0x698] sm:$0xff] }
 0x14d   :  { %v1987_v51 = vmax.f32 %v1937_v49, %v1962_v14  ;;  %v2536_v27 = vadd.f32 %v2511_v41, %v2484_v16  ;;  %v2275_v4 = vadd.f32 %v2250_v15, %v2223_v35  ;;  %v2458_v43 = vmul.f32 %v5436_v13, %v7717_v54 }
 0x14e   :  { %v2510_v12 = vmul.f32 %v5437_v28, %v7720_v38  ;;  %v1832_v39 = vadd.f32 %v1807_v26, %v1780_v18  ;;  %v1571_v56 = vadd.f32 %v1546_v46, %v1519_v23  ;;  %v1650_v59 = vmul.f32 %v5441_v21, %v7624_v45 }
 0x14f   :  { %2012 = vmatpush1.msra.mxu0 %v1987_v51  ;;  %v1702_v41 = vmul.f32 %v5442_v1, %v7627_v11  ;;  %v2561_v34 = vmul.f32 0.2, %v2536_v27  ;;  %v2327_v58 = vadd.f32 %v2302_v7, %v2275_v4  ;;  %v1754_v26 = vmul.f32 %v5443_v44, %v7645_v52  ;;  %v5447_v51 = vld [vmem:[%s11620_s0 + $0x50] sm:$0xff] }
 0x150   :  { %2013 = vmatprep.subr.mxu0 %v6135_v0  ;;  %v2092_v5 = vmul.f32 %v5438_v63, %v7668_v2  ;;  %v1884_v13 = vadd.f32 %v1859_v42, %v1832_v39  ;;  %v1623_v55 = vadd.f32 %v1598_v50, %v1571_v56  ;;  %v1806_v40 = vmul.f32 %v5444_v19, %v7648_v30  ;;  %v5445_v42 = vld [vmem:[%s11620_s0 + $0x5d0] sm:$0xff]  ;;  %v5448_v50 = vld [vmem:[%s11620_s0 + $0x118] sm:$0xff] }
 0x151   :  { %v2145_v49 = vmul.f32 %v5439_v25, %v7684_v33  ;;  %v2586_v60 = vmax.f32 %v2536_v27, %v2561_v34  ;;  %v2379_v28 = vadd.f32 %v2354_v8, %v2327_v58  ;;  %v2197_v22 = vmul.f32 %v5440_v31, %v7690_v61 }
 0x152   :  { %v2118_v17 = vadd.f32 %v7681_v37, %v2092_v5  ;;  %v1936_v15 = vadd.f32 %v1911_v10, %v1884_v13  ;;  %v1675_v7 = vadd.f32 %v1650_v59, %v1623_v55  ;;  %v1858_v14 = vmul.f32 %v5445_v42, %v7674_v3  ;;  %v5451_v13 = vld [vmem:[%s11620_s0 + $0x370] sm:$0xff] }
 0x153   :  { %v1910_v63 = vmul.f32 %v5446_v6, %v7677_v32  ;;  %2611 = vmatpush1.msra.mxu1 %v2586_v60  ;;  %v2431_v8 = vadd.f32 %v2406_v20, %v2379_v28  ;;  %v2249_v16 = vmul.f32 %v5441_v21, %v7693_v62  ;;  %v2301_v10 = vmul.f32 %v5442_v1, %v7696_v57  ;;  %v5449_v21 = vld [vmem:[%s11620_s0 + $0x1e0] sm:$0xff] }
 0x154   :  { %v2170_v29 = vadd.f32 %v2145_v49, %v2118_v17  ;;  %2612 = vmatprep.subr.mxu1 %v6135_v0  ;;  %v1961_v35 = vmul.f32 0.2, %v1936_v15  ;;  %v1727_v25 = vadd.f32 %v1702_v41, %v1675_v7  ;;  %v2353_v46 = vmul.f32 %v5443_v44, %v7710_v36 }
 0x155   :  { %v1492_v18 = vmul.f32 %v5447_v51, %v7590_v24  ;;  %v2483_v23 = vadd.f32 %v2458_v43, %v2431_v8  ;;  %v2405_v20 = vmul.f32 %v5444_v19, %v7714_v9  ;;  %v1545_v27 = vmul.f32 %v5448_v50, %v7604_v48 }
 0x156   :  { %v2222_v31 = vadd.f32 %v2197_v22, %v2170_v29  ;;  %v1986_v4 = vmax.f32 %v1936_v15, %v1961_v35  ;;  %v1779_v39 = vadd.f32 %v1754_v26, %v1727_v25  ;;  %v1597_v59 = vmul.f32 %v5449_v21, %v7607_v47  ;;  %v5450_v26 = vld [vmem:[%s11620_s0 + $0x2a8] sm:$0xff]  ;;  %v5453_v22 = vld [vmem:[%s11620_s0 + $0x500] sm:$0xff]  ;;  %v5455_v25 = vld [vmem:[%s11620_s0 + $0x690] sm:$0xff] }
 0x157   :  { %v1518_v56 = vadd.f32 %v7601_v53, %v1492_v18  ;;  %v2535_v43 = vadd.f32 %v2510_v12, %v2483_v23  ;;  %v2457_v41 = vmul.f32 %v5445_v42, %v7717_v54  ;;  %v2509_v34 = vmul.f32 %v5446_v6, %v7720_v38 }
 0x158   :  { %v2274_v1 = vadd.f32 %v2249_v16, %v2222_v31  ;;  %2014 = vmatpush1.msra.mxu0 %v1986_v4  ;;  %v1831_v58 = vadd.f32 %v1806_v40, %v1779_v39  ;;  %v1649_v5 = vmul.f32 %v5450_v26, %v7624_v45  ;;  %v1701_v12 = vmul.f32 %v5451_v13, %v7627_v11  ;;  %v5452_v40 = vld [vmem:[%s11620_s0 + $0x438] sm:$0xff]  ;;  %v5456_v4 = vld [vmem:[%s11620_s0 + $0x48] sm:$0xff] }
 0x159   :  { %v1570_v44 = vadd.f32 %v1545_v27, %v1518_v56  ;;  %v2560_v55 = vmul.f32 0.2, %v2535_v43  ;;  %2015 = vmatprep.subr.mxu0 %v6135_v0  ;;  %v1753_v49 = vmul.f32 %v5452_v40, %v7645_v52  ;;  %v2091_v60 = vmul.f32 %v5447_v51, %v7668_v2 }
 0x15a   :  { %v2326_v19 = vadd.f32 %v2301_v10, %v2274_v1  ;;  %v1883_v28 = vadd.f32 %v1858_v14, %v1831_v58  ;;  %v1805_v15 = vmul.f32 %v5453_v22, %v7648_v30  ;;  %v2144_v7 = vmul.f32 %v5448_v50, %v7684_v33  ;;  %v5454_v14 = vld [vmem:[%s11620_s0 + $0x5c8] sm:$0xff] }
 0x15b   :  { %v1622_v17 = vadd.f32 %v1597_v59, %v1570_v44  ;;  %v2585_v42 = vmax.f32 %v2535_v43, %v2560_v55  ;;  %v2117_v8 = vadd.f32 %v7681_v37, %v2091_v60  ;;  %v2196_v29 = vmul.f32 %v5449_v21, %v7690_v61  ;;  %v5457_v59 = vld [vmem:[%s11620_s0 + $0x110] sm:$0xff] }
 0x15c   :  { %v2378_v6 = vadd.f32 %v2353_v46, %v2326_v19  ;;  %v1935_v16 = vadd.f32 %v1910_v63, %v1883_v28  ;;  %v1857_v35 = vmul.f32 %v5454_v14, %v7674_v3  ;;  %v1909_v51 = vmul.f32 %v5455_v25, %v7677_v32  ;;  %v5460_v28 = vld [vmem:[%s11620_s0 + $0x368] sm:$0xff] }
 0x15d   :  { %v1674_v10 = vadd.f32 %v1649_v5, %v1622_v17  ;;  %2613 = vmatpush1.msra.mxu1 %v2585_v42  ;;  %v2169_v18 = vadd.f32 %v2144_v7, %v2117_v8  ;;  %v2248_v23 = vmul.f32 %v5450_v26, %v7693_v62  ;;  %v2300_v63 = vmul.f32 %v5451_v13, %v7696_v57  ;;  %v5458_v26 = vld [vmem:[%s11620_s0 + $0x1d8] sm:$0xff] }
 0x15e   :  { %v2430_v46 = vadd.f32 %v2405_v20, %v2378_v6  ;;  %2614 = vmatprep.subr.mxu1 %v6135_v0  ;;  %v1960_v31 = vmul.f32 0.2, %v1935_v16  ;;  %v2352_v27 = vmul.f32 %v5452_v40, %v7710_v36  ;;  %v1491_v39 = vmul.f32 %v5456_v4, %v7590_v24 }
 0x15f   :  { %v1726_v50 = vadd.f32 %v1701_v12, %v1674_v10  ;;  %v2221_v21 = vadd.f32 %v2196_v29, %v2169_v18  ;;  %v2404_v20 = vmul.f32 %v5453_v22, %v7714_v9  ;;  %v1544_v43 = vmul.f32 %v5457_v59, %v7604_v48  ;;  %v5462_v29 = vld [vmem:[%s11620_s0 + $0x4f8] sm:$0xff] }
 0x160   :  { %v2482_v56 = vadd.f32 %v2457_v41, %v2430_v46  ;;  %v1985_v1 = vmax.f32 %v1935_v16, %v1960_v31  ;;  %v1517_v44 = vadd.f32 %v7601_v53, %v1491_v39  ;;  %v1596_v5 = vmul.f32 %v5458_v26, %v7607_v47 }
 0x161   :  { %v1778_v58 = vadd.f32 %v1753_v49, %v1726_v50  ;;  %v2273_v13 = vadd.f32 %v2248_v23, %v2221_v21  ;;  %v2456_v12 = vmul.f32 %v5454_v14, %v7717_v54  ;;  %v2508_v55 = vmul.f32 %v5455_v25, %v7720_v38  ;;  %v5459_v49 = vld [vmem:[%s11620_s0 + $0x2a0] sm:$0xff]  ;;  %v5464_v50 = vld [vmem:[%s11620_s0 + $0x688] sm:$0xff] }
 0x162   :  { %v2534_v41 = vadd.f32 %v2509_v34, %v2482_v56  ;;  %2016 = vmatpush1.msra.mxu0 %v1985_v1  ;;  %v1569_v40 = vadd.f32 %v1544_v43, %v1517_v44  ;;  %v1648_v60 = vmul.f32 %v5459_v49, %v7624_v45  ;;  %v1700_v34 = vmul.f32 %v5460_v28, %v7627_v11  ;;  %v5465_v1 = vld [vmem:[%s11620_s0 + $0x40] sm:$0xff] }
 0x163   :  { %v1830_v19 = vadd.f32 %v1805_v15, %v1778_v58  ;;  %2017 = vmatprep.subr.mxu0 %v6135_v0  ;;  %v2325_v22 = vadd.f32 %v2300_v63, %v2273_v13  ;;  %v5461_v15 = vld [vmem:[%s11620_s0 + $0x430] sm:$0xff]  ;;  %v2090_v42 = vmul.f32 %v5456_v4, %v7668_v2  ;;  %v1804_v16 = vmul.f32 %v5462_v29, %v7648_v30 }
 0x164   :  { %v2559_v17 = vmul.f32 0.2, %v2534_v41  ;;  %v1752_v7 = vmul.f32 %v5461_v15, %v7645_v52  ;;  %v1621_v8 = vadd.f32 %v1596_v5, %v1569_v40  ;;  %v2143_v10 = vmul.f32 %v5457_v59, %v7684_v33  ;;  %v5466_v5 = vld [vmem:[%s11620_s0 + $0x108] sm:$0xff] }
 0x165   :  { %v1882_v6 = vadd.f32 %v1857_v35, %v1830_v19  ;;  %v2377_v25 = vadd.f32 %v2352_v27, %v2325_v22  ;;  %v2116_v46 = vadd.f32 %v7681_v37, %v2090_v42  ;;  %v2195_v18 = vmul.f32 %v5458_v26, %v7690_v61  ;;  %v5463_v35 = vld [vmem:[%s11620_s0 + $0x5c0] sm:$0xff] }
 0x166   :  { %v2584_v14 = vmax.f32 %v2534_v41, %v2559_v17  ;;  %v1673_v63 = vadd.f32 %v1648_v60, %v1621_v8  ;;  %v1856_v31 = vmul.f32 %v5463_v35, %v7674_v3  ;;  %v1908_v4 = vmul.f32 %v5464_v50, %v7677_v32 }
 0x167   :  { %v1934_v23 = vadd.f32 %v1909_v51, %v1882_v6  ;;  %v2429_v27 = vadd.f32 %v2404_v20, %v2377_v25  ;;  %v2168_v39 = vadd.f32 %v2143_v10, %v2116_v46  ;;  %v2247_v56 = vmul.f32 %v5459_v49, %v7693_v62  ;;  %v5467_v49 = vld [vmem:[%s11620_s0 + $0x1d0] sm:$0xff]  ;;  %v5469_v6 = vld [vmem:[%s11620_s0 + $0x360] sm:$0xff] }
 0x168   :  { %2615 = vmatpush1.msra.mxu1 %v2584_v14  ;;  %v2299_v51 = vmul.f32 %v5460_v28, %v7696_v57  ;;  %v1725_v59 = vadd.f32 %v1700_v34, %v1673_v63  ;;  %v2351_v43 = vmul.f32 %v5461_v15, %v7710_v36  ;;  %v1490_v58 = vmul.f32 %v5465_v1, %v7590_v24 }
 0x169   :  { %2616 = vmatprep.subr.mxu1 %v6135_v0  ;;  %v1959_v21 = vmul.f32 0.2, %v1934_v23  ;;  %v2481_v44 = vadd.f32 %v2456_v12, %v2429_v27  ;;  %v2220_v26 = vadd.f32 %v2195_v18, %v2168_v39  ;;  %v2403_v20 = vmul.f32 %v5462_v29, %v7714_v9  ;;  %v5471_v18 = vld [vmem:[%s11620_s0 + $0x4f0] sm:$0xff] }
 0x16a   :  { %v1543_v41 = vmul.f32 %v5466_v5, %v7604_v48  ;;  %v1777_v19 = vadd.f32 %v1752_v7, %v1725_v59  ;;  %v1516_v40 = vadd.f32 %v7601_v53, %v1490_v58  ;;  %v1595_v60 = vmul.f32 %v5467_v49, %v7607_v47  ;;  %v5468_v7 = vld [vmem:[%s11620_s0 + $0x298] sm:$0xff]  ;;  %v5473_v59 = vld [vmem:[%s11620_s0 + $0x680] sm:$0xff] }
 0x16b   :  { %v1984_v13 = vmax.f32 %v1934_v23, %v1959_v21  ;;  %v2533_v12 = vadd.f32 %v2508_v55, %v2481_v44  ;;  %v2272_v28 = vadd.f32 %v2247_v56, %v2220_v26  ;;  %v2455_v34 = vmul.f32 %v5463_v35, %v7717_v54 }
 0x16c   :  { %v2507_v17 = vmul.f32 %v5464_v50, %v7720_v38  ;;  %v1829_v22 = vadd.f32 %v1804_v16, %v1777_v19  ;;  %v1568_v15 = vadd.f32 %v1543_v41, %v1516_v40  ;;  %v1647_v42 = vmul.f32 %v5468_v7, %v7624_v45  ;;  %v5470_v16 = vld [vmem:[%s11620_s0 + $0x428] sm:$0xff] }
 0x16d   :  { %2018 = vmatpush1.msra.mxu0 %v1984_v13  ;;  %v1699_v55 = vmul.f32 %v5469_v6, %v7627_v11  ;;  %v2558_v8 = vmul.f32 0.2, %v2533_v12  ;;  %v2324_v29 = vadd.f32 %v2299_v51, %v2272_v28  ;;  %v1751_v10 = vmul.f32 %v5470_v16, %v7645_v52  ;;  %v5474_v13 = vld [vmem:[%s11620_s0 + $0x38] sm:$0xff] }
 0x16e   :  { %2019 = vmatprep.subr.mxu0 %v6135_v0  ;;  %v2089_v14 = vmul.f32 %v5465_v1, %v7668_v2  ;;  %v1881_v25 = vadd.f32 %v1856_v31, %v1829_v22  ;;  %v1620_v46 = vadd.f32 %v1595_v60, %v1568_v15  ;;  %v1803_v23 = vmul.f32 %v5471_v18, %v7648_v30  ;;  %v5472_v31 = vld [vmem:[%s11620_s0 + $0x5b8] sm:$0xff]  ;;  %v5475_v60 = vld [vmem:[%s11620_s0 + $0x100] sm:$0xff] }
 0x16f   :  { %v2142_v63 = vmul.f32 %v5466_v5, %v7684_v33  ;;  %v2583_v35 = vmax.f32 %v2533_v12, %v2558_v8  ;;  %v2376_v50 = vadd.f32 %v2351_v43, %v2324_v29  ;;  %v2194_v39 = vmul.f32 %v5467_v49, %v7690_v61 }
 0x170   :  { %v2115_v27 = vadd.f32 %v7681_v37, %v2089_v14  ;;  %v1933_v56 = vadd.f32 %v1908_v4, %v1881_v25  ;;  %v1672_v51 = vadd.f32 %v1647_v42, %v1620_v46  ;;  %v1855_v21 = vmul.f32 %v5472_v31, %v7674_v3  ;;  %v5478_v25 = vld [vmem:[%s11620_s0 + $0x358] sm:$0xff] }
 0x171   :  { %v1907_v1 = vmul.f32 %v5473_v59, %v7677_v32  ;;  %2617 = vmatpush1.msra.mxu1 %v2583_v35  ;;  %v2428_v43 = vadd.f32 %v2403_v20, %v2376_v50  ;;  %v2246_v44 = vmul.f32 %v5468_v7, %v7693_v62  ;;  %v2298_v4 = vmul.f32 %v5469_v6, %v7696_v57  ;;  %v5476_v7 = vld [vmem:[%s11620_s0 + $0x1c8] sm:$0xff] }
 0x172   :  { %v2167_v58 = vadd.f32 %v2142_v63, %v2115_v27  ;;  %2618 = vmatprep.subr.mxu1 %v6135_v0  ;;  %v1958_v26 = vmul.f32 0.2, %v1933_v56  ;;  %v1724_v5 = vadd.f32 %v1699_v55, %v1672_v51  ;;  %v2350_v41 = vmul.f32 %v5470_v16, %v7710_v36 }
 0x173   :  { %v1489_v19 = vmul.f32 %v5474_v13, %v7590_v24  ;;  %v2480_v40 = vadd.f32 %v2455_v34, %v2428_v43  ;;  %v2402_v20 = vmul.f32 %v5471_v18, %v7714_v9  ;;  %v1542_v12 = vmul.f32 %v5475_v60, %v7604_v48 }
 0x174   :  { %v2219_v49 = vadd.f32 %v2194_v39, %v2167_v58  ;;  %v1983_v28 = vmax.f32 %v1933_v56, %v1958_v26  ;;  %v1776_v22 = vadd.f32 %v1751_v10, %v1724_v5  ;;  %v1594_v42 = vmul.f32 %v5476_v7, %v7607_v47  ;;  %v5477_v10 = vld [vmem:[%s11620_s0 + $0x290] sm:$0xff]  ;;  %v5480_v39 = vld [vmem:[%s11620_s0 + $0x4e8] sm:$0xff]  ;;  %v5482_v5 = vld [vmem:[%s11620_s0 + $0x678] sm:$0xff] }
 0x175   :  { %v1515_v15 = vadd.f32 %v7601_v53, %v1489_v19  ;;  %v2532_v34 = vadd.f32 %v2507_v17, %v2480_v40  ;;  %v2454_v55 = vmul.f32 %v5472_v31, %v7717_v54  ;;  %v2506_v8 = vmul.f32 %v5473_v59, %v7720_v38 }
 0x176   :  { %v2271_v6 = vadd.f32 %v2246_v44, %v2219_v49  ;;  %2020 = vmatpush1.msra.mxu0 %v1983_v28  ;;  %v1828_v29 = vadd.f32 %v1803_v23, %v1776_v22  ;;  %v1646_v14 = vmul.f32 %v5477_v10, %v7624_v45  ;;  %v1698_v17 = vmul.f32 %v5478_v25, %v7627_v11  ;;  %v5479_v23 = vld [vmem:[%s11620_s0 + $0x420] sm:$0xff]  ;;  %v5483_v28 = vld [vmem:[%s11620_s0 + $0x30] sm:$0xff] }
 0x177   :  { %v1567_v16 = vadd.f32 %v1542_v12, %v1515_v15  ;;  %v2557_v46 = vmul.f32 0.2, %v2532_v34  ;;  %2021 = vmatprep.subr.mxu0 %v6135_v0  ;;  %v1750_v63 = vmul.f32 %v5479_v23, %v7645_v52  ;;  %v2088_v35 = vmul.f32 %v5474_v13, %v7668_v2 }
 0x178   :  { %v2323_v18 = vadd.f32 %v2298_v4, %v2271_v6  ;;  %v1880_v50 = vadd.f32 %v1855_v21, %v1828_v29  ;;  %v1802_v56 = vmul.f32 %v5480_v39, %v7648_v30  ;;  %v2141_v51 = vmul.f32 %v5475_v60, %v7684_v33  ;;  %v5481_v21 = vld [vmem:[%s11620_s0 + $0x5b0] sm:$0xff] }
 0x179   :  { %v1619_v27 = vadd.f32 %v1594_v42, %v1567_v16  ;;  %v2582_v31 = vmax.f32 %v2532_v34, %v2557_v46  ;;  %v2114_v43 = vadd.f32 %v7681_v37, %v2088_v35  ;;  %v2193_v58 = vmul.f32 %v5476_v7, %v7690_v61  ;;  %v5484_v42 = vld [vmem:[%s11620_s0 + $0xf8] sm:$0xff] }
 0x17a   :  { %v2375_v59 = vadd.f32 %v2350_v41, %v2323_v18  ;;  %v1932_v44 = vadd.f32 %v1907_v1, %v1880_v50  ;;  %v1854_v26 = vmul.f32 %v5481_v21, %v7674_v3  ;;  %v1906_v13 = vmul.f32 %v5482_v5, %v7677_v32  ;;  %v5487_v50 = vld [vmem:[%s11620_s0 + $0x350] sm:$0xff] }
 0x17b   :  { %v1671_v4 = vadd.f32 %v1646_v14, %v1619_v27  ;;  %2619 = vmatpush1.msra.mxu1 %v2582_v31  ;;  %v2166_v19 = vadd.f32 %v2141_v51, %v2114_v43  ;;  %v2245_v40 = vmul.f32 %v5477_v10, %v7693_v62  ;;  %v2297_v1 = vmul.f32 %v5478_v25, %v7696_v57  ;;  %v5485_v10 = vld [vmem:[%s11620_s0 + $0x1c0] sm:$0xff] }
 0x17c   :  { %v2427_v41 = vadd.f32 %v2402_v20, %v2375_v59  ;;  %2620 = vmatprep.subr.mxu1 %v6135_v0  ;;  %v1957_v49 = vmul.f32 0.2, %v1932_v44  ;;  %v2349_v12 = vmul.f32 %v5479_v23, %v7710_v36  ;;  %v1488_v22 = vmul.f32 %v5483_v28, %v7590_v24 }
 0x17d   :  { %v1723_v60 = vadd.f32 %v1698_v17, %v1671_v4  ;;  %v2218_v7 = vadd.f32 %v2193_v58, %v2166_v19  ;;  %v2401_v20 = vmul.f32 %v5480_v39, %v7714_v9  ;;  %v1541_v34 = vmul.f32 %v5484_v42, %v7604_v48  ;;  %v5489_v58 = vld [vmem:[%s11620_s0 + $0x4e0] sm:$0xff] }
 0x17e   :  { %v2479_v15 = vadd.f32 %v2454_v55, %v2427_v41  ;;  %v1982_v6 = vmax.f32 %v1932_v44, %v1957_v49  ;;  %v1514_v16 = vadd.f32 %v7601_v53, %v1488_v22  ;;  %v1593_v14 = vmul.f32 %v5485_v10, %v7607_v47 }
 0x17f   :  { %v1775_v29 = vadd.f32 %v1750_v63, %v1723_v60  ;;  %v2270_v25 = vadd.f32 %v2245_v40, %v2218_v7  ;;  %v2453_v17 = vmul.f32 %v5481_v21, %v7717_v54  ;;  %v2505_v46 = vmul.f32 %v5482_v5, %v7720_v38  ;;  %v5486_v63 = vld [vmem:[%s11620_s0 + $0x288] sm:$0xff]  ;;  %v5491_v60 = vld [vmem:[%s11620_s0 + $0x670] sm:$0xff] }
 0x180   :  { %v2531_v55 = vadd.f32 %v2506_v8, %v2479_v15  ;;  %2022 = vmatpush1.msra.mxu0 %v1982_v6  ;;  %v1566_v23 = vadd.f32 %v1541_v34, %v1514_v16  ;;  %v1645_v35 = vmul.f32 %v5486_v63, %v7624_v45  ;;  %v1697_v8 = vmul.f32 %v5487_v50, %v7627_v11  ;;  %v5492_v6 = vld [vmem:[%s11620_s0 + $0x28] sm:$0xff] }
 0x181   :  { %v1827_v18 = vadd.f32 %v1802_v56, %v1775_v29  ;;  %2023 = vmatprep.subr.mxu0 %v6135_v0  ;;  %v2322_v39 = vadd.f32 %v2297_v1, %v2270_v25  ;;  %v5488_v56 = vld [vmem:[%s11620_s0 + $0x418] sm:$0xff]  ;;  %v2087_v31 = vmul.f32 %v5483_v28, %v7668_v2  ;;  %v1801_v44 = vmul.f32 %v5489_v58, %v7648_v30 }
 0x182   :  { %v2556_v27 = vmul.f32 0.2, %v2531_v55  ;;  %v1749_v51 = vmul.f32 %v5488_v56, %v7645_v52  ;;  %v1618_v43 = vadd.f32 %v1593_v14, %v1566_v23  ;;  %v2140_v4 = vmul.f32 %v5484_v42, %v7684_v33  ;;  %v5493_v14 = vld [vmem:[%s11620_s0 + $0xf0] sm:$0xff] }
 0x183   :  { %v1879_v59 = vadd.f32 %v1854_v26, %v1827_v18  ;;  %v2374_v5 = vadd.f32 %v2349_v12, %v2322_v39  ;;  %v2113_v41 = vadd.f32 %v7681_v37, %v2087_v31  ;;  %v2192_v19 = vmul.f32 %v5485_v10, %v7690_v61  ;;  %v5490_v26 = vld [vmem:[%s11620_s0 + $0x5a8] sm:$0xff] }
 0x184   :  { %v2581_v21 = vmax.f32 %v2531_v55, %v2556_v27  ;;  %v1670_v1 = vadd.f32 %v1645_v35, %v1618_v43  ;;  %v1853_v49 = vmul.f32 %v5490_v26, %v7674_v3  ;;  %v1905_v28 = vmul.f32 %v5491_v60, %v7677_v32 }
 0x185   :  { %v1931_v40 = vadd.f32 %v1906_v13, %v1879_v59  ;;  %v2426_v12 = vadd.f32 %v2401_v20, %v2374_v5  ;;  %v2165_v22 = vadd.f32 %v2140_v4, %v2113_v41  ;;  %v2244_v15 = vmul.f32 %v5486_v63, %v7693_v62  ;;  %v5494_v63 = vld [vmem:[%s11620_s0 + $0x1b8] sm:$0xff]  ;;  %v5496_v59 = vld [vmem:[%s11620_s0 + $0x348] sm:$0xff] }
 0x186   :  { %2621 = vmatpush1.msra.mxu1 %v2581_v21  ;;  %v2296_v13 = vmul.f32 %v5487_v50, %v7696_v57  ;;  %v1722_v42 = vadd.f32 %v1697_v8, %v1670_v1  ;;  %v2348_v34 = vmul.f32 %v5488_v56, %v7710_v36  ;;  %v1487_v29 = vmul.f32 %v5492_v6, %v7590_v24 }
 0x187   :  { %2622 = vmatprep.subr.mxu1 %v6135_v0  ;;  %v1956_v7 = vmul.f32 0.2, %v1931_v40  ;;  %v2478_v16 = vadd.f32 %v2453_v17, %v2426_v12  ;;  %v2217_v10 = vadd.f32 %v2192_v19, %v2165_v22  ;;  %v2400_v20 = vmul.f32 %v5489_v58, %v7714_v9  ;;  %v5498_v19 = vld [vmem:[%s11620_s0 + $0x4d8] sm:$0xff] }
 0x188   :  { %v1540_v55 = vmul.f32 %v5493_v14, %v7604_v48  ;;  %v1774_v18 = vadd.f32 %v1749_v51, %v1722_v42  ;;  %v1513_v23 = vadd.f32 %v7601_v53, %v1487_v29  ;;  %v1592_v35 = vmul.f32 %v5494_v63, %v7607_v47  ;;  %v5495_v51 = vld [vmem:[%s11620_s0 + $0x280] sm:$0xff]  ;;  %v5500_v42 = vld [vmem:[%s11620_s0 + $0x668] sm:$0xff] }
 0x189   :  { %v1981_v25 = vmax.f32 %v1931_v40, %v1956_v7  ;;  %v2530_v17 = vadd.f32 %v2505_v46, %v2478_v16  ;;  %v2269_v50 = vadd.f32 %v2244_v15, %v2217_v10  ;;  %v2452_v8 = vmul.f32 %v5490_v26, %v7717_v54 }
 0x18a   :  { %v2504_v27 = vmul.f32 %v5491_v60, %v7720_v38  ;;  %v1826_v39 = vadd.f32 %v1801_v44, %v1774_v18  ;;  %v1565_v56 = vadd.f32 %v1540_v55, %v1513_v23  ;;  %v1644_v31 = vmul.f32 %v5495_v51, %v7624_v45  ;;  %v5497_v44 = vld [vmem:[%s11620_s0 + $0x410] sm:$0xff] }
 0x18b   :  { %2024 = vmatpush1.msra.mxu0 %v1981_v25  ;;  %v1696_v46 = vmul.f32 %v5496_v59, %v7627_v11  ;;  %v2555_v43 = vmul.f32 0.2, %v2530_v17  ;;  %v2321_v58 = vadd.f32 %v2296_v13, %v2269_v50  ;;  %v1748_v4 = vmul.f32 %v5497_v44, %v7645_v52  ;;  %v5501_v25 = vld [vmem:[%s11620_s0 + $0x20] sm:$0xff] }
 0x18c   :  { %2025 = vmatprep.subr.mxu0 %v6135_v0  ;;  %v2086_v21 = vmul.f32 %v5492_v6, %v7668_v2  ;;  %v1878_v5 = vadd.f32 %v1853_v49, %v1826_v39  ;;  %v1617_v41 = vadd.f32 %v1592_v35, %v1565_v56  ;;  %v1800_v40 = vmul.f32 %v5498_v19, %v7648_v30  ;;  %v5499_v49 = vld [vmem:[%s11620_s0 + $0x5a0] sm:$0xff]  ;;  %v5502_v35 = vld [vmem:[%s11620_s0 + $0xe8] sm:$0xff] }
 0x18d   :  { %v2139_v1 = vmul.f32 %v5493_v14, %v7684_v33  ;;  %v2580_v26 = vmax.f32 %v2530_v17, %v2555_v43  ;;  %v2373_v60 = vadd.f32 %v2348_v34, %v2321_v58  ;;  %v2191_v22 = vmul.f32 %v5494_v63, %v7690_v61 }
 0x18e   :  { %v2112_v12 = vadd.f32 %v7681_v37, %v2086_v21  ;;  %v1930_v15 = vadd.f32 %v1905_v28, %v1878_v5  ;;  %v1669_v13 = vadd.f32 %v1644_v31, %v1617_v41  ;;  %v1852_v7 = vmul.f32 %v5499_v49, %v7674_v3  ;;  %v5505_v5 = vld [vmem:[%s11620_s0 + $0x340] sm:$0xff] }
 0x18f   :  { %v1904_v6 = vmul.f32 %v5500_v42, %v7677_v32  ;;  %2623 = vmatpush1.msra.mxu1 %v2580_v26  ;;  %v2425_v34 = vadd.f32 %v2400_v20, %v2373_v60  ;;  %v2243_v16 = vmul.f32 %v5495_v51, %v7693_v62  ;;  %v2295_v28 = vmul.f32 %v5496_v59, %v7696_v57  ;;  %v5503_v51 = vld [vmem:[%s11620_s0 + $0x1b0] sm:$0xff] }
 0x190   :  { %v2164_v29 = vadd.f32 %v2139_v1, %v2112_v12  ;;  %2624 = vmatprep.subr.mxu1 %v6135_v0  ;;  %v1955_v10 = vmul.f32 0.2, %v1930_v15  ;;  %v1721_v14 = vadd.f32 %v1696_v46, %v1669_v13  ;;  %v2347_v55 = vmul.f32 %v5497_v44, %v7710_v36 }
 0x191   :  { %v1486_v18 = vmul.f32 %v5501_v25, %v7590_v24  ;;  %v2477_v23 = vadd.f32 %v2452_v8, %v2425_v34  ;;  %v2399_v20 = vmul.f32 %v5498_v19, %v7714_v9  ;;  %v1539_v17 = vmul.f32 %v5502_v35, %v7604_v48 }
 0x192   :  { %v2216_v63 = vadd.f32 %v2191_v22, %v2164_v29  ;;  %v1980_v50 = vmax.f32 %v1930_v15, %v1955_v10  ;;  %v1773_v39 = vadd.f32 %v1748_v4, %v1721_v14  ;;  %v1591_v31 = vmul.f32 %v5503_v51, %v7607_v47  ;;  %v5504_v4 = vld [vmem:[%s11620_s0 + $0x278] sm:$0xff]  ;;  %v5507_v22 = vld [vmem:[%s11620_s0 + $0x4d0] sm:$0xff]  ;;  %v5509_v14 = vld [vmem:[%s11620_s0 + $0x660] sm:$0xff] }
 0x193   :  { %v1512_v56 = vadd.f32 %v7601_v53, %v1486_v18  ;;  %v2529_v8 = vadd.f32 %v2504_v27, %v2477_v23  ;;  %v2451_v46 = vmul.f32 %v5499_v49, %v7717_v54  ;;  %v2503_v43 = vmul.f32 %v5500_v42, %v7720_v38 }
 0x194   :  { %v2268_v59 = vadd.f32 %v2243_v16, %v2216_v63  ;;  %2026 = vmatpush1.msra.mxu0 %v1980_v50  ;;  %v1825_v58 = vadd.f32 %v1800_v40, %v1773_v39  ;;  %v1643_v21 = vmul.f32 %v5504_v4, %v7624_v45  ;;  %v1695_v27 = vmul.f32 %v5505_v5, %v7627_v11  ;;  %v5506_v40 = vld [vmem:[%s11620_s0 + $0x408] sm:$0xff]  ;;  %v5510_v50 = vld [vmem:[%s11620_s0 + $0x18] sm:$0xff] }
 0x195   :  { %v1564_v44 = vadd.f32 %v1539_v17, %v1512_v56  ;;  %v2554_v41 = vmul.f32 0.2, %v2529_v8  ;;  %2027 = vmatprep.subr.mxu0 %v6135_v0  ;;  %v1747_v1 = vmul.f32 %v5506_v40, %v7645_v52  ;;  %v2085_v26 = vmul.f32 %v5501_v25, %v7668_v2 }
 0x196   :  { %v2320_v19 = vadd.f32 %v2295_v28, %v2268_v59  ;;  %v1877_v60 = vadd.f32 %v1852_v7, %v1825_v58  ;;  %v1799_v15 = vmul.f32 %v5507_v22, %v7648_v30  ;;  %v2138_v13 = vmul.f32 %v5502_v35, %v7684_v33  ;;  %v5508_v7 = vld [vmem:[%s11620_s0 + $0x598] sm:$0xff] }
 0x197   :  { %v1616_v12 = vadd.f32 %v1591_v31, %v1564_v44  ;;  %v2579_v49 = vmax.f32 %v2529_v8, %v2554_v41  ;;  %v2111_v34 = vadd.f32 %v7681_v37, %v2085_v26  ;;  %v2190_v29 = vmul.f32 %v5503_v51, %v7690_v61  ;;  %v5511_v31 = vld [vmem:[%s11620_s0 + $0xe0] sm:$0xff] }
 0x198   :  { %v2372_v42 = vadd.f32 %v2347_v55, %v2320_v19  ;;  %v1929_v16 = vadd.f32 %v1904_v6, %v1877_v60  ;;  %v1851_v10 = vmul.f32 %v5508_v7, %v7674_v3  ;;  %v1903_v25 = vmul.f32 %v5509_v14, %v7677_v32  ;;  %v5514_v60 = vld [vmem:[%s11620_s0 + $0x338] sm:$0xff] }
 0x199   :  { %v1668_v28 = vadd.f32 %v1643_v21, %v1616_v12  ;;  %2625 = vmatpush1.msra.mxu1 %v2579_v49  ;;  %v2163_v18 = vadd.f32 %v2138_v13, %v2111_v34  ;;  %v2242_v23 = vmul.f32 %v5504_v4, %v7693_v62  ;;  %v2294_v6 = vmul.f32 %v5505_v5, %v7696_v57  ;;  %v5512_v4 = vld [vmem:[%s11620_s0 + $0x1a8] sm:$0xff] }
 0x19a   :  { %v2424_v55 = vadd.f32 %v2399_v20, %v2372_v42  ;;  %2626 = vmatprep.subr.mxu1 %v6135_v0  ;;  %v1954_v63 = vmul.f32 0.2, %v1929_v16  ;;  %v2346_v17 = vmul.f32 %v5506_v40, %v7710_v36  ;;  %v1485_v39 = vmul.f32 %v5510_v50, %v7590_v24 }
 0x19b   :  { %v1720_v35 = vadd.f32 %v1695_v27, %v1668_v28  ;;  %v2215_v51 = vadd.f32 %v2190_v29, %v2163_v18  ;;  %v2398_v20 = vmul.f32 %v5507_v22, %v7714_v9  ;;  %v1538_v8 = vmul.f32 %v5511_v31, %v7604_v48  ;;  %v5516_v29 = vld [vmem:[%s11620_s0 + $0x4c8] sm:$0xff] }
 0x19c   :  { %v2476_v56 = vadd.f32 %v2451_v46, %v2424_v55  ;;  %v1979_v59 = vmax.f32 %v1929_v16, %v1954_v63  ;;  %v1511_v44 = vadd.f32 %v7601_v53, %v1485_v39  ;;  %v1590_v21 = vmul.f32 %v5512_v4, %v7607_v47 }
 0x19d   :  { %v1772_v58 = vadd.f32 %v1747_v1, %v1720_v35  ;;  %v2267_v5 = vadd.f32 %v2242_v23, %v2215_v51  ;;  %v2450_v27 = vmul.f32 %v5508_v7, %v7717_v54  ;;  %v2502_v41 = vmul.f32 %v5509_v14, %v7720_v38  ;;  %v5513_v1 = vld [vmem:[%s11620_s0 + $0x270] sm:$0xff]  ;;  %v5518_v35 = vld [vmem:[%s11620_s0 + $0x658] sm:$0xff] }
 0x19e   :  { %v2528_v46 = vadd.f32 %v2503_v43, %v2476_v56  ;;  %2028 = vmatpush1.msra.mxu0 %v1979_v59  ;;  %v1563_v40 = vadd.f32 %v1538_v8, %v1511_v44  ;;  %v1642_v26 = vmul.f32 %v5513_v1, %v7624_v45  ;;  %v1694_v43 = vmul.f32 %v5514_v60, %v7627_v11  ;;  %v5519_v59 = vld [vmem:[%s11620_s0 + $0x10] sm:$0xff] }
 0x19f   :  { %v1824_v19 = vadd.f32 %v1799_v15, %v1772_v58  ;;  %2029 = vmatprep.subr.mxu0 %v6135_v0  ;;  %v2319_v22 = vadd.f32 %v2294_v6, %v2267_v5  ;;  %v5515_v15 = vld [vmem:[%s11620_s0 + $0x400] sm:$0xff]  ;;  %v2084_v49 = vmul.f32 %v5510_v50, %v7668_v2  ;;  %v1798_v16 = vmul.f32 %v5516_v29, %v7648_v30 }
 0x1a0   :  { %v2553_v12 = vmul.f32 0.2, %v2528_v46  ;;  %v1746_v13 = vmul.f32 %v5515_v15, %v7645_v52  ;;  %v1615_v34 = vadd.f32 %v1590_v21, %v1563_v40  ;;  %v2137_v28 = vmul.f32 %v5511_v31, %v7684_v33  ;;  %v5520_v21 = vld [vmem:[%s11620_s0 + $0xd8] sm:$0xff] }
 0x1a1   :  { %v1876_v42 = vadd.f32 %v1851_v10, %v1824_v19  ;;  %v2371_v14 = vadd.f32 %v2346_v17, %v2319_v22  ;;  %v2110_v55 = vadd.f32 %v7681_v37, %v2084_v49  ;;  %v2189_v18 = vmul.f32 %v5512_v4, %v7690_v61  ;;  %v5517_v10 = vld [vmem:[%s11620_s0 + $0x590] sm:$0xff] }
 0x1a2   :  { %v2578_v7 = vmax.f32 %v2528_v46, %v2553_v12  ;;  %v1667_v6 = vadd.f32 %v1642_v26, %v1615_v34  ;;  %v1850_v63 = vmul.f32 %v5517_v10, %v7674_v3  ;;  %v1902_v50 = vmul.f32 %v5518_v35, %v7677_v32 }
 0x1a3   :  { %v1928_v23 = vadd.f32 %v1903_v25, %v1876_v42  ;;  %v2423_v17 = vadd.f32 %v2398_v20, %v2371_v14  ;;  %v2162_v39 = vadd.f32 %v2137_v28, %v2110_v55  ;;  %v2241_v56 = vmul.f32 %v5513_v1, %v7693_v62  ;;  %v5521_v1 = vld [vmem:[%s11620_s0 + $0x1a0] sm:$0xff]  ;;  %v5523_v42 = vld [vmem:[%s11620_s0 + $0x330] sm:$0xff] }
 0x1a4   :  { %2627 = vmatpush1.msra.mxu1 %v2578_v7  ;;  %v2293_v25 = vmul.f32 %v5514_v60, %v7696_v57  ;;  %v1719_v31 = vadd.f32 %v1694_v43, %v1667_v6  ;;  %v2345_v8 = vmul.f32 %v5515_v15, %v7710_v36  ;;  %v1484_v58 = vmul.f32 %v5519_v59, %v7590_v24 }
 0x1a5   :  { %2628 = vmatprep.subr.mxu1 %v6135_v0  ;;  %v1953_v51 = vmul.f32 0.2, %v1928_v23  ;;  %v2475_v44 = vadd.f32 %v2450_v27, %v2423_v17  ;;  %v2214_v4 = vadd.f32 %v2189_v18, %v2162_v39  ;;  %v2397_v20 = vmul.f32 %v5516_v29, %v7714_v9  ;;  %v5525_v18 = vld [vmem:[%s11620_s0 + $0x4c0] sm:$0xff] }
 0x1a6   :  { %v1537_v46 = vmul.f32 %v5520_v21, %v7604_v48  ;;  %v1771_v19 = vadd.f32 %v1746_v13, %v1719_v31  ;;  %v1510_v40 = vadd.f32 %v7601_v53, %v1484_v58  ;;  %v1589_v26 = vmul.f32 %v5521_v1, %v7607_v47  ;;  %v5522_v13 = vld [vmem:[%s11620_s0 + $0x268] sm:$0xff]  ;;  %v5527_v31 = vld [vmem:[%s11620_s0 + $0x650] sm:$0xff] }
 0x1a7   :  { %v1978_v5 = vmax.f32 %v1928_v23, %v1953_v51  ;;  %v2527_v27 = vadd.f32 %v2502_v41, %v2475_v44  ;;  %v2266_v60 = vadd.f32 %v2241_v56, %v2214_v4  ;;  %v2449_v43 = vmul.f32 %v5517_v10, %v7717_v54 }
 0x1a8   :  { %v2501_v12 = vmul.f32 %v5518_v35, %v7720_v38  ;;  %v1823_v22 = vadd.f32 %v1798_v16, %v1771_v19  ;;  %v1562_v15 = vadd.f32 %v1537_v46, %v1510_v40  ;;  %v1641_v49 = vmul.f32 %v5522_v13, %v7624_v45  ;;  %v5524_v16 = vld [vmem:[%s11620_s0 + $0x3f8] sm:$0xff] }
 0x1a9   :  { %2030 = vmatpush1.msra.mxu0 %v1978_v5  ;;  %v1693_v41 = vmul.f32 %v5523_v42, %v7627_v11  ;;  %v2552_v34 = vmul.f32 0.2, %v2527_v27  ;;  %v2318_v29 = vadd.f32 %v2293_v25, %v2266_v60  ;;  %v1745_v28 = vmul.f32 %v5524_v16, %v7645_v52  ;;  %v5528_v5 = vld [vmem:[%s11620_s0 + $0x8] sm:$0xff] }
 0x1aa   :  { %2031 = vmatprep.subr.mxu0 %v6135_v0  ;;  %v2083_v7 = vmul.f32 %v5519_v59, %v7668_v2  ;;  %v1875_v14 = vadd.f32 %v1850_v63, %v1823_v22  ;;  %v1614_v55 = vadd.f32 %v1589_v26, %v1562_v15  ;;  %v1797_v23 = vmul.f32 %v5525_v18, %v7648_v30  ;;  %v5526_v63 = vld [vmem:[%s11620_s0 + $0x588] sm:$0xff]  ;;  %v5529_v26 = vld [vmem:[%s11620_s0 + $0xd0] sm:$0xff] }
 0x1ab   :  { %v2136_v6 = vmul.f32 %v5520_v21, %v7684_v33  ;;  %v2577_v10 = vmax.f32 %v2527_v27, %v2552_v34  ;;  %v2370_v35 = vadd.f32 %v2345_v8, %v2318_v29  ;;  %v2188_v39 = vmul.f32 %v5521_v1, %v7690_v61 }
 0x1ac   :  { %v2109_v17 = vadd.f32 %v7681_v37, %v2083_v7  ;;  %v1927_v56 = vadd.f32 %v1902_v50, %v1875_v14  ;;  %v1666_v25 = vadd.f32 %v1641_v49, %v1614_v55  ;;  %v1849_v51 = vmul.f32 %v5526_v63, %v7674_v3  ;;  %v5532_v14 = vld [vmem:[%s11620_s0 + $0x328] sm:$0xff] }
 0x1ad   :  { %v1901_v59 = vmul.f32 %v5527_v31, %v7677_v32  ;;  %2629 = vmatpush1.msra.mxu1 %v2577_v10  ;;  %v2422_v8 = vadd.f32 %v2397_v20, %v2370_v35  ;;  %v2240_v44 = vmul.f32 %v5522_v13, %v7693_v62  ;;  %v2292_v50 = vmul.f32 %v5523_v42, %v7696_v57  ;;  %v5530_v13 = vld [vmem:[%s11620_s0 + $0x198] sm:$0xff] }
 0x1ae   :  { %v2161_v58 = vadd.f32 %v2136_v6, %v2109_v17  ;;  %2630 = vmatprep.subr.mxu1 %v6135_v0  ;;  %v1952_v4 = vmul.f32 0.2, %v1927_v56  ;;  %v1718_v21 = vadd.f32 %v1693_v41, %v1666_v25  ;;  %v2344_v46 = vmul.f32 %v5524_v16, %v7710_v36 }
 0x1af   :  { %v1483_v19 = vmul.f32 %v5528_v5, %v7590_v24  ;;  %v2474_v40 = vadd.f32 %v2449_v43, %v2422_v8  ;;  %v2396_v20 = vmul.f32 %v5525_v18, %v7714_v9  ;;  %v1536_v27 = vmul.f32 %v5529_v26, %v7604_v48 }
 0x1b0   :  { %v2213_v1 = vadd.f32 %v2188_v39, %v2161_v58  ;;  %v1977_v60 = vmax.f32 %v1927_v56, %v1952_v4  ;;  %v1770_v22 = vadd.f32 %v1745_v28, %v1718_v21  ;;  %v1588_v49 = vmul.f32 %v5530_v13, %v7607_v47  ;;  %v5531_v28 = vld [vmem:[%s11620_s0 + $0x260] sm:$0xff]  ;;  %v5534_v39 = vld [vmem:[%s11620_s0 + $0x4b8] sm:$0xff]  ;;  %v5536_v21 = vld [vmem:[%s11620_s0 + $0x648] sm:$0xff] }
 0x1b1   :  { %v1509_v15 = vadd.f32 %v7601_v53, %v1483_v19  ;;  %v2526_v43 = vadd.f32 %v2501_v12, %v2474_v40  ;;  %v2448_v41 = vmul.f32 %v5526_v63, %v7717_v54  ;;  %v2500_v34 = vmul.f32 %v5527_v31, %v7720_v38 }
 0x1b2   :  { %v2265_v42 = vadd.f32 %v2240_v44, %v2213_v1  ;;  %2032 = vmatpush1.msra.mxu0 %v1977_v60  ;;  %v1822_v29 = vadd.f32 %v1797_v23, %v1770_v22  ;;  %v1640_v7 = vmul.f32 %v5531_v28, %v7624_v45  ;;  %v1692_v12 = vmul.f32 %v5532_v14, %v7627_v11  ;;  %v5533_v23 = vld [vmem:[%s11620_s0 + $0x3f0] sm:$0xff]  ;;  %v5537_v60 = vld [vmem:[%s11620_s0] sm:$0xff] }
 0x1b3   :  { %v1561_v16 = vadd.f32 %v1536_v27, %v1509_v15  ;;  %v2551_v55 = vmul.f32 0.2, %v2526_v43  ;;  %2033 = vmatprep.subr.mxu0 %v6135_v0  ;;  %v1744_v6 = vmul.f32 %v5533_v23, %v7645_v52  ;;  %v2082_v10 = vmul.f32 %v5528_v5, %v7668_v2 }
 0x1b4   :  { %v2317_v18 = vadd.f32 %v2292_v50, %v2265_v42  ;;  %v1874_v35 = vadd.f32 %v1849_v51, %v1822_v29  ;;  %v1796_v56 = vmul.f32 %v5534_v39, %v7648_v30  ;;  %v2135_v25 = vmul.f32 %v5529_v26, %v7684_v33  ;;  %v5535_v51 = vld [vmem:[%s11620_s0 + $0x580] sm:$0xff] }
 0x1b5   :  { %v1613_v17 = vadd.f32 %v1588_v49, %v1561_v16  ;;  %v2576_v63 = vmax.f32 %v2526_v43, %v2551_v55  ;;  %v2108_v8 = vadd.f32 %v7681_v37, %v2082_v10  ;;  %v2187_v58 = vmul.f32 %v5530_v13, %v7690_v61  ;;  %v5538_v49 = vld [vmem:[%s11620_s0 + $0xc8] sm:$0xff] }
 0x1b6   :  { %v2369_v31 = vadd.f32 %v2344_v46, %v2317_v18  ;;  %v1926_v44 = vadd.f32 %v1901_v59, %v1874_v35  ;;  %v1848_v4 = vmul.f32 %v5535_v51, %v7674_v3  ;;  %v1900_v5 = vmul.f32 %v5536_v21, %v7677_v32  ;;  %v5541_v35 = vld [vmem:[%s11620_s0 + $0x320] sm:$0xff] }
 0x1b7   :  { %v1665_v50 = vadd.f32 %v1640_v7, %v1613_v17  ;;  %2631 = vmatpush1.msra.mxu1 %v2576_v63  ;;  %v2160_v19 = vadd.f32 %v2135_v25, %v2108_v8  ;;  %v2239_v40 = vmul.f32 %v5531_v28, %v7693_v62  ;;  %v2291_v59 = vmul.f32 %v5532_v14, %v7696_v57  ;;  %v5539_v28 = vld [vmem:[%s11620_s0 + $0x190] sm:$0xff] }
 0x1b8   :  { %v2421_v46 = vadd.f32 %v2396_v20, %v2369_v31  ;;  %2632 = vmatprep.subr.mxu1 %v6135_v0  ;;  %v1951_v1 = vmul.f32 0.2, %v1926_v44  ;;  %v2343_v27 = vmul.f32 %v5533_v23, %v7710_v36  ;;  %v1482_v22 = vmul.f32 %v5537_v60, %v7590_v24 }
 0x1b9   :  { %v1717_v26 = vadd.f32 %v1692_v12, %v1665_v50  ;;  %v2212_v13 = vadd.f32 %v2187_v58, %v2160_v19  ;;  %v2395_v20 = vmul.f32 %v5534_v39, %v7714_v9  ;;  %v1535_v43 = vmul.f32 %v5538_v49, %v7604_v48  ;;  %v5543_v58 = vld [vmem:[%s11620_s0 + $0x4b0] sm:$0xff] }
 0x1ba   :  { %v2473_v15 = vadd.f32 %v2448_v41, %v2421_v46  ;;  %v1976_v42 = vmax.f32 %v1926_v44, %v1951_v1  ;;  %v1508_v16 = vadd.f32 %v7601_v53, %v1482_v22  ;;  %v1587_v7 = vmul.f32 %v5539_v28, %v7607_v47 }
 0x1bb   :  { %v1769_v29 = vadd.f32 %v1744_v6, %v1717_v26  ;;  %v2264_v14 = vadd.f32 %v2239_v40, %v2212_v13  ;;  %v2447_v12 = vmul.f32 %v5535_v51, %v7717_v54  ;;  %v2499_v55 = vmul.f32 %v5536_v21, %v7720_v38  ;;  %v5540_v6 = vld [vmem:[%s11620_s0 + $0x258] sm:$0xff]  ;;  %v5545_v26 = vld [vmem:[%s11620_s0 + $0x640] sm:$0xff] }
 0x1bc   :  { %v2525_v41 = vadd.f32 %v2500_v34, %v2473_v15  ;;  %2034 = vmatpush1.msra.mxu0 %v1976_v42  ;;  %v1560_v23 = vadd.f32 %v1535_v43, %v1508_v16  ;;  %v1639_v10 = vmul.f32 %v5540_v6, %v7624_v45  ;;  %v1691_v34 = vmul.f32 %v5541_v35, %v7627_v11  ;;  %v5546_v42 = vld [vmem:[%s11620_s0 + $0xc0] sm:$0xf] }
 0x1bd   :  { %v1821_v18 = vadd.f32 %v1796_v56, %v1769_v29  ;;  %2035 = vmatprep.subr.mxu0 %v6135_v0  ;;  %v2316_v39 = vadd.f32 %v2291_v59, %v2264_v14  ;;  %v5542_v56 = vld [vmem:[%s11620_s0 + $0x3e8] sm:$0xff]  ;;  %v2081_v63 = vmul.f32 %v5537_v60, %v7668_v2  ;;  %v1795_v44 = vmul.f32 %v5543_v58, %v7648_v30 }
 0x1be   :  { %v2550_v17 = vmul.f32 0.2, %v2525_v41  ;;  %v1743_v25 = vmul.f32 %v5542_v56, %v7645_v52  ;;  %v1612_v8 = vadd.f32 %v1587_v7, %v1560_v23  ;;  %v2134_v50 = vmul.f32 %v5538_v49, %v7684_v33  ;;  %v5547_v7 = vld [vmem:[%s11620_s0 + $0x188] sm:$0xf] }
 0x1bf   :  { %v1873_v31 = vadd.f32 %v1848_v4, %v1821_v18  ;;  %v2368_v21 = vadd.f32 %v2343_v27, %v2316_v39  ;;  %v2107_v46 = vadd.f32 %v7681_v37, %v2081_v63  ;;  %v2186_v19 = vmul.f32 %v5539_v28, %v7690_v61  ;;  %v5544_v4 = vld [vmem:[%s11620_s0 + $0x578] sm:$0xff] }
 0x1c0   :  { %v2575_v51 = vmax.f32 %v2525_v41, %v2550_v17  ;;  %v1664_v59 = vadd.f32 %v1639_v10, %v1612_v8  ;;  %v1847_v1 = vmul.f32 %v5544_v4, %v7674_v3  ;;  %v1899_v60 = vmul.f32 %v5545_v26, %v7677_v32 }
 0x1c1   :  { %v1925_v40 = vadd.f32 %v1900_v5, %v1873_v31  ;;  %v2420_v27 = vadd.f32 %v2395_v20, %v2368_v21  ;;  %v2159_v22 = vadd.f32 %v2134_v50, %v2107_v46  ;;  %v2238_v15 = vmul.f32 %v5540_v6, %v7693_v62  ;;  %v5548_v6 = vld [vmem:[%s11620_s0 + $0x250] sm:$0xf]  ;;  %v5550_v31 = vld [vmem:[%s11620_s0 + $0x3e0] sm:$0xf] }
 0x1c2   :  { %2633 = vmatpush1.msra.mxu1 %v2575_v51  ;;  %v2290_v5 = vmul.f32 %v5541_v35, %v7696_v57  ;;  %v1716_v49 = vadd.f32 %v1691_v34, %v1664_v59  ;;  %v2342_v43 = vmul.f32 %v5542_v56, %v7710_v36  ;;  %v1506_v29 = vmul.f32 %v5546_v42, %v7590_v24 }
 0x1c3   :  { %2634 = vmatprep.subr.mxu1 %v6135_v0  ;;  %v1950_v13 = vmul.f32 0.2, %v1925_v40  ;;  %v2472_v16 = vadd.f32 %v2447_v12, %v2420_v27  ;;  %v2211_v28 = vadd.f32 %v2186_v19, %v2159_v22  ;;  %v2394_v20 = vmul.f32 %v5543_v58, %v7714_v9  ;;  %v5552_v19 = vld [vmem:[%s11620_s0 + $0x570] sm:$0xf] }
 0x1c4   :  { %v1559_v41 = vmul.f32 %v5547_v7, %v7604_v48  ;;  %v1768_v18 = vadd.f32 %v1743_v25, %v1716_v49  ;;  %v1532_v23 = vadd.f32 %v7601_v53, %v1506_v29  ;;  %v1611_v10 = vmul.f32 %v5548_v6, %v7607_v47  ;;  %v5549_v25 = vld [vmem:[%s11620_s0 + $0x318] sm:$0xf]  ;;  %v5554_v49 = vld [vmem:[%s11620_s0 + $0x700] sm:$0xf] }
 0x1c5   :  { %v1975_v14 = vmax.f32 %v1925_v40, %v1950_v13  ;;  %v2524_v12 = vadd.f32 %v2499_v55, %v2472_v16  ;;  %v2263_v35 = vadd.f32 %v2238_v15, %v2211_v28  ;;  %v2446_v34 = vmul.f32 %v5544_v4, %v7717_v54 }
 0x1c6   :  { %v2498_v17 = vmul.f32 %v5545_v26, %v7720_v38  ;;  %v1820_v39 = vadd.f32 %v1795_v44, %v1768_v18  ;;  %v1584_v56 = vadd.f32 %v1559_v41, %v1532_v23  ;;  %v1663_v63 = vmul.f32 %v5549_v25, %v7624_v45  ;;  %v5551_v44 = vld [vmem:[%s11620_s0 + $0x4a8] sm:$0xf] }
 0x1c7   :  { %2036 = vmatpush1.msra.mxu0 %v1975_v14  ;;  %v1715_v55 = vmul.f32 %v5550_v31, %v7627_v11  ;;  %v2549_v8 = vmul.f32 0.2, %v2524_v12  ;;  %v2315_v58 = vadd.f32 %v2290_v5, %v2263_v35  ;;  %v1767_v50 = vmul.f32 %v5551_v44, %v7645_v52  ;;  %v5555_v14 = vld [vmem:[%s11620_s0 + $0xb8] sm:$0xff] }
 0x1c8   :  { %2037 = vmatprep.subr.mxu0 %v6135_v0  ;;  %v2105_v51 = vmul.f32 %v5546_v42, %v7668_v2  ;;  %v1872_v21 = vadd.f32 %v1847_v1, %v1820_v39  ;;  %v1636_v46 = vadd.f32 %v1611_v10, %v1584_v56  ;;  %v1819_v40 = vmul.f32 %v5552_v19, %v7648_v30  ;;  %v5553_v1 = vld [vmem:[%s11620_s0 + $0x638] sm:$0xf]  ;;  %v5556_v10 = vld [vmem:[%s11620_s0 + $0x180] sm:$0xff] }
 0x1c9   :  { %v2158_v59 = vmul.f32 %v5547_v7, %v7684_v33  ;;  %v2574_v4 = vmax.f32 %v2524_v12, %v2549_v8  ;;  %v2367_v26 = vadd.f32 %v2342_v43, %v2315_v58  ;;  %v2210_v22 = vmul.f32 %v5548_v6, %v7690_v61 }
 0x1ca   :  { %v2131_v27 = vadd.f32 %v7681_v37, %v2105_v51  ;;  %v1924_v15 = vadd.f32 %v1899_v60, %v1872_v21  ;;  %v1688_v5 = vadd.f32 %v1663_v63, %v1636_v46  ;;  %v1871_v13 = vmul.f32 %v5553_v1, %v7674_v3  ;;  %v5559_v21 = vld [vmem:[%s11620_s0 + $0x3d8] sm:$0xff] }
 0x1cb   :  { %v1923_v42 = vmul.f32 %v5554_v49, %v7677_v32  ;;  %2635 = vmatpush1.msra.mxu1 %v2574_v4  ;;  %v2419_v43 = vadd.f32 %v2394_v20, %v2367_v26  ;;  %v2262_v16 = vmul.f32 %v5549_v25, %v7693_v62  ;;  %v2314_v60 = vmul.f32 %v5550_v31, %v7696_v57  ;;  %v5557_v25 = vld [vmem:[%s11620_s0 + $0x248] sm:$0xff] }
 0x1cc   :  { %v2183_v29 = vadd.f32 %v2158_v59, %v2131_v27  ;;  %2636 = vmatprep.subr.mxu1 %v6135_v0  ;;  %v1949_v28 = vmul.f32 0.2, %v1924_v15  ;;  %v1740_v7 = vadd.f32 %v1715_v55, %v1688_v5  ;;  %v2366_v41 = vmul.f32 %v5551_v44, %v7710_v36 }
 0x1cd   :  { %v1505_v18 = vmul.f32 %v5555_v14, %v7590_v24  ;;  %v2471_v23 = vadd.f32 %v2446_v34, %v2419_v43  ;;  %v2418_v20 = vmul.f32 %v5552_v19, %v7714_v9  ;;  %v1558_v12 = vmul.f32 %v5556_v10, %v7604_v48 }
 0x1ce   :  { %v2235_v6 = vadd.f32 %v2210_v22, %v2183_v29  ;;  %v1974_v35 = vmax.f32 %v1924_v15, %v1949_v28  ;;  %v1792_v39 = vadd.f32 %v1767_v50, %v1740_v7  ;;  %v1610_v63 = vmul.f32 %v5557_v25, %v7607_v47  ;;  %v5558_v50 = vld [vmem:[%s11620_s0 + $0x310] sm:$0xff]  ;;  %v5561_v22 = vld [vmem:[%s11620_s0 + $0x568] sm:$0xff]  ;;  %v5563_v7 = vld [vmem:[%s11620_s0 + $0x6f8] sm:$0xff] }
 0x1cf   :  { %v1531_v56 = vadd.f32 %v7601_v53, %v1505_v18  ;;  %v2523_v34 = vadd.f32 %v2498_v17, %v2471_v23  ;;  %v2470_v55 = vmul.f32 %v5553_v1, %v7717_v54  ;;  %v2522_v8 = vmul.f32 %v5554_v49, %v7720_v38 }
 0x1d0   :  { %v2287_v31 = vadd.f32 %v2262_v16, %v2235_v6  ;;  %2038 = vmatpush1.msra.mxu0 %v1974_v35  ;;  %v1844_v58 = vadd.f32 %v1819_v40, %v1792_v39  ;;  %v1662_v51 = vmul.f32 %v5558_v50, %v7624_v45  ;;  %v1714_v17 = vmul.f32 %v5559_v21, %v7627_v11  ;;  %v5560_v40 = vld [vmem:[%s11620_s0 + $0x4a0] sm:$0xff]  ;;  %v5564_v35 = vld [vmem:[%s11620_s0 + $0xb0] sm:$0xff] }
 0x1d1   :  { %v1583_v44 = vadd.f32 %v1558_v12, %v1531_v56  ;;  %v2548_v46 = vmul.f32 0.2, %v2523_v34  ;;  %2053 = vmatprep.subr.mxu0 %v6135_v0  ;;  %v1766_v59 = vmul.f32 %v5560_v40, %v7645_v52  ;;  %v2104_v4 = vmul.f32 %v5555_v14, %v7668_v2 }
 0x1d2   :  { %v2339_v19 = vadd.f32 %v2314_v60, %v2287_v31  ;;  %v1896_v26 = vadd.f32 %v1871_v13, %v1844_v58  ;;  %v1818_v15 = vmul.f32 %v5561_v22, %v7648_v30  ;;  %v2157_v5 = vmul.f32 %v5556_v10, %v7684_v33  ;;  %v5562_v13 = vld [vmem:[%s11620_s0 + $0x630] sm:$0xff] }
 0x1d3   :  { %v1635_v27 = vadd.f32 %v1610_v63, %v1583_v44  ;;  %v2573_v1 = vmax.f32 %v2523_v34, %v2548_v46  ;;  %v2130_v43 = vadd.f32 %v7681_v37, %v2104_v4  ;;  %v2209_v29 = vmul.f32 %v5557_v25, %v7690_v61  ;;  %v5565_v63 = vld [vmem:[%s11620_s0 + $0x178] sm:$0xff] }
 0x1d4   :  { %v2391_v49 = vadd.f32 %v2366_v41, %v2339_v19  ;;  %v1948_v16 = vadd.f32 %v1923_v42, %v1896_v26  ;;  %v1870_v28 = vmul.f32 %v5562_v13, %v7674_v3  ;;  %v1922_v14 = vmul.f32 %v5563_v7, %v7677_v32  ;;  %v5568_v26 = vld [vmem:[%s11620_s0 + $0x3d0] sm:$0xff] }
 0x1d5   :  { %v1687_v60 = vadd.f32 %v1662_v51, %v1635_v27  ;;  %2637 = vmatpush1.msra.mxu1 %v2573_v1  ;;  %v2182_v18 = vadd.f32 %v2157_v5, %v2130_v43  ;;  %v2261_v23 = vmul.f32 %v5558_v50, %v7693_v62  ;;  %v2313_v42 = vmul.f32 %v5559_v21, %v7696_v57  ;;  %v5566_v50 = vld [vmem:[%s11620_s0 + $0x240] sm:$0xff] }
 0x1d6   :  { %v2443_v41 = vadd.f32 %v2418_v20, %v2391_v49  ;;  %2652 = vmatprep.subr.mxu1 %v6135_v0  ;;  %v1973_v6 = vmul.f32 0.2, %v1948_v16  ;;  %v2365_v12 = vmul.f32 %v5560_v40, %v7710_v36  ;;  %v1504_v39 = vmul.f32 %v5564_v35, %v7590_v24 }
 0x1d7   :  { %v1739_v10 = vadd.f32 %v1714_v17, %v1687_v60  ;;  %v2234_v25 = vadd.f32 %v2209_v29, %v2182_v18  ;;  %v2417_v20 = vmul.f32 %v5561_v22, %v7714_v9  ;;  %v1557_v34 = vmul.f32 %v5565_v63, %v7604_v48  ;;  %v5570_v29 = vld [vmem:[%s11620_s0 + $0x560] sm:$0xff] }
 0x1d8   :  { %v2495_v56 = vadd.f32 %v2470_v55, %v2443_v41  ;;  %v1998_v31 = vmax.f32 %v1948_v16, %v1973_v6  ;;  %v1530_v44 = vadd.f32 %v7601_v53, %v1504_v39  ;;  %v1609_v51 = vmul.f32 %v5566_v50, %v7607_v47 }
 0x1d9   :  { %v1791_v58 = vadd.f32 %v1766_v59, %v1739_v10  ;;  %v2286_v21 = vadd.f32 %v2261_v23, %v2234_v25  ;;  %v2469_v17 = vmul.f32 %v5562_v13, %v7717_v54  ;;  %v2521_v46 = vmul.f32 %v5563_v7, %v7720_v38  ;;  %v5567_v59 = vld [vmem:[%s11620_s0 + $0x308] sm:$0xff]  ;;  %v5572_v10 = vld [vmem:[%s11620_s0 + $0x6f0] sm:$0xff] }
 0x1da   :  { %v2547_v55 = vadd.f32 %v2522_v8, %v2495_v56  ;;  %5332 = vmatpush2.msk.msra.mxu0 %vm1330_vm0, %v1998_v31  ;;  %v1582_v40 = vadd.f32 %v1557_v34, %v1530_v44  ;;  %v1661_v4 = vmul.f32 %v5567_v59, %v7624_v45  ;;  %v1713_v8 = vmul.f32 %v5568_v26, %v7627_v11  ;;  %v5573_v31 = vld [vmem:[%s11620_s0 + $0xa8] sm:$0xff] }
 0x1db   :  { %v1843_v19 = vadd.f32 %v1818_v15, %v1791_v58  ;;  %2055 = vmatprep.subr.mxu0 %v6135_v0  ;;  %v2338_v22 = vadd.f32 %v2313_v42, %v2286_v21  ;;  %v5569_v15 = vld [vmem:[%s11620_s0 + $0x498] sm:$0xff]  ;;  %v2103_v1 = vmul.f32 %v5564_v35, %v7668_v2  ;;  %v1817_v16 = vmul.f32 %v5570_v29, %v7648_v30 }
 0x1dc   :  { %v2572_v27 = vmul.f32 0.2, %v2547_v55  ;;  %v1765_v5 = vmul.f32 %v5569_v15, %v7645_v52  ;;  %v1634_v43 = vadd.f32 %v1609_v51, %v1582_v40  ;;  %v2156_v60 = vmul.f32 %v5565_v63, %v7684_v33  ;;  %v5574_v51 = vld [vmem:[%s11620_s0 + $0x170] sm:$0xff] }
 0x1dd   :  { %v1895_v49 = vadd.f32 %v1870_v28, %v1843_v19  ;;  %v2390_v7 = vadd.f32 %v2365_v12, %v2338_v22  ;;  %v2129_v41 = vadd.f32 %v7681_v37, %v2103_v1  ;;  %v2208_v18 = vmul.f32 %v5566_v50, %v7690_v61  ;;  %v5571_v28 = vld [vmem:[%s11620_s0 + $0x628] sm:$0xff] }
 0x1de   :  { %v2597_v13 = vmax.f32 %v2547_v55, %v2572_v27  ;;  %v1686_v42 = vadd.f32 %v1661_v4, %v1634_v43  ;;  %v1869_v6 = vmul.f32 %v5571_v28, %v7674_v3  ;;  %v1921_v35 = vmul.f32 %v5572_v10, %v7677_v32 }
 0x1df   :  { %v1947_v23 = vadd.f32 %v1922_v14, %v1895_v49  ;;  %v2442_v12 = vadd.f32 %v2417_v20, %v2390_v7  ;;  %v2181_v39 = vadd.f32 %v2156_v60, %v2129_v41  ;;  %v2260_v56 = vmul.f32 %v5567_v59, %v7693_v62  ;;  %v5575_v59 = vld [vmem:[%s11620_s0 + $0x238] sm:$0xff]  ;;  %v5577_v49 = vld [vmem:[%s11620_s0 + $0x3c8] sm:$0xff] }
 0x1e0   :  { %5344 = vmatpush2.msk.msra.mxu1 %vm1330_vm0, %v2597_v13  ;;  %v2312_v14 = vmul.f32 %v5568_v26, %v7696_v57  ;;  %v1738_v63 = vadd.f32 %v1713_v8, %v1686_v42  ;;  %v2364_v34 = vmul.f32 %v5569_v15, %v7710_v36  ;;  %v1503_v58 = vmul.f32 %v5573_v31, %v7590_v24 }
 0x1e1   :  { %2654 = vmatprep.subr.mxu1 %v6135_v0  ;;  %v1972_v25 = vmul.f32 0.2, %v1947_v23  ;;  %v2494_v44 = vadd.f32 %v2469_v17, %v2442_v12  ;;  %v2233_v50 = vadd.f32 %v2208_v18, %v2181_v39  ;;  %v2416_v20 = vmul.f32 %v5570_v29, %v7714_v9  ;;  %v5579_v18 = vld [vmem:[%s11620_s0 + $0x558] sm:$0xff] }
 0x1e2   :  { %v1556_v55 = vmul.f32 %v5574_v51, %v7604_v48  ;;  %v1790_v19 = vadd.f32 %v1765_v5, %v1738_v63  ;;  %v1529_v40 = vadd.f32 %v7601_v53, %v1503_v58  ;;  %v1608_v4 = vmul.f32 %v5575_v59, %v7607_v47  ;;  %v5576_v5 = vld [vmem:[%s11620_s0 + $0x300] sm:$0xff]  ;;  %v5581_v63 = vld [vmem:[%s11620_s0 + $0x6e8] sm:$0xff] }
 0x1e3   :  { %v1997_v21 = vmax.f32 %v1947_v23, %v1972_v25  ;;  %v2546_v17 = vadd.f32 %v2521_v46, %v2494_v44  ;;  %v2285_v26 = vadd.f32 %v2260_v56, %v2233_v50  ;;  %v2468_v8 = vmul.f32 %v5571_v28, %v7717_v54 }
 0x1e4   :  { %v2520_v27 = vmul.f32 %v5572_v10, %v7720_v38  ;;  %v1842_v22 = vadd.f32 %v1817_v16, %v1790_v19  ;;  %v1581_v15 = vadd.f32 %v1556_v55, %v1529_v40  ;;  %v1660_v1 = vmul.f32 %v5576_v5, %v7624_v45  ;;  %v5578_v16 = vld [vmem:[%s11620_s0 + $0x490] sm:$0xff] }
 0x1e5   :  { %2056 = vmatpush2.msra.mxu0 %v1997_v21  ;;  %v1712_v46 = vmul.f32 %v5577_v49, %v7627_v11  ;;  %v2571_v43 = vmul.f32 0.2, %v2546_v17  ;;  %v2337_v29 = vadd.f32 %v2312_v14, %v2285_v26  ;;  %v1764_v60 = vmul.f32 %v5578_v16, %v7645_v52  ;;  %v5582_v21 = vld [vmem:[%s11620_s0 + $0xa0] sm:$0xff] }
 0x1e6   :  { %2057 = vmatprep.subr.mxu0 %v6135_v0  ;;  %v2102_v13 = vmul.f32 %v5573_v31, %v7668_v2  ;;  %v1894_v7 = vadd.f32 %v1869_v6, %v1842_v22  ;;  %v1633_v41 = vadd.f32 %v1608_v4, %v1581_v15  ;;  %v1816_v23 = vmul.f32 %v5579_v18, %v7648_v30  ;;  %v5580_v6 = vld [vmem:[%s11620_s0 + $0x620] sm:$0xff]  ;;  %v5583_v4 = vld [vmem:[%s11620_s0 + $0x168] sm:$0xff] }
 0x1e7   :  { %v2155_v42 = vmul.f32 %v5574_v51, %v7684_v33  ;;  %v2596_v28 = vmax.f32 %v2546_v17, %v2571_v43  ;;  %v2389_v10 = vadd.f32 %v2364_v34, %v2337_v29  ;;  %v2207_v39 = vmul.f32 %v5575_v59, %v7690_v61 }
 0x1e8   :  { %v2128_v12 = vadd.f32 %v7681_v37, %v2102_v13  ;;  %v1946_v56 = vadd.f32 %v1921_v35, %v1894_v7  ;;  %v1685_v14 = vadd.f32 %v1660_v1, %v1633_v41  ;;  %v1868_v25 = vmul.f32 %v5580_v6, %v7674_v3  ;;  %v5586_v7 = vld [vmem:[%s11620_s0 + $0x3c0] sm:$0xff] }
 0x1e9   :  { %v1920_v31 = vmul.f32 %v5581_v63, %v7677_v32  ;;  %2655 = vmatpush2.msra.mxu1 %v2596_v28  ;;  %v2441_v34 = vadd.f32 %v2416_v20, %v2389_v10  ;;  %v2259_v44 = vmul.f32 %v5576_v5, %v7693_v62  ;;  %v2311_v35 = vmul.f32 %v5577_v49, %v7696_v57  ;;  %v5584_v5 = vld [vmem:[%s11620_s0 + $0x230] sm:$0xff] }
 0x1ea   :  { %v2180_v58 = vadd.f32 %v2155_v42, %v2128_v12  ;;  %2656 = vmatprep.subr.mxu1 %v6135_v0  ;;  %v1971_v50 = vmul.f32 0.2, %v1946_v56  ;;  %v1737_v51 = vadd.f32 %v1712_v46, %v1685_v14  ;;  %v2363_v55 = vmul.f32 %v5578_v16, %v7710_v36 }
 0x1eb   :  { %v1502_v19 = vmul.f32 %v5582_v21, %v7590_v24  ;;  %v2493_v40 = vadd.f32 %v2468_v8, %v2441_v34  ;;  %v2415_v20 = vmul.f32 %v5579_v18, %v7714_v9  ;;  %v1555_v17 = vmul.f32 %v5583_v4, %v7604_v48 }
 0x1ec   :  { %v2232_v59 = vadd.f32 %v2207_v39, %v2180_v58  ;;  %v1996_v26 = vmax.f32 %v1946_v56, %v1971_v50  ;;  %v1789_v22 = vadd.f32 %v1764_v60, %v1737_v51  ;;  %v1607_v1 = vmul.f32 %v5584_v5, %v7607_v47  ;;  %v5585_v60 = vld [vmem:[%s11620_s0 + $0x2f8] sm:$0xff]  ;;  %v5588_v39 = vld [vmem:[%s11620_s0 + $0x550] sm:$0xff]  ;;  %v5590_v51 = vld [vmem:[%s11620_s0 + $0x6e0] sm:$0xff] }
 0x1ed   :  { %v1528_v15 = vadd.f32 %v7601_v53, %v1502_v19  ;;  %v2545_v8 = vadd.f32 %v2520_v27, %v2493_v40  ;;  %v2467_v46 = vmul.f32 %v5580_v6, %v7717_v54  ;;  %v2519_v43 = vmul.f32 %v5581_v63, %v7720_v38 }
 0x1ee   :  { %v2284_v49 = vadd.f32 %v2259_v44, %v2232_v59  ;;  %2058 = vmatpush2.msra.mxu0 %v1996_v26  ;;  %v1841_v29 = vadd.f32 %v1816_v23, %v1789_v22  ;;  %v1659_v13 = vmul.f32 %v5585_v60, %v7624_v45  ;;  %v1711_v27 = vmul.f32 %v5586_v7, %v7627_v11  ;;  %v5587_v23 = vld [vmem:[%s11620_s0 + $0x488] sm:$0xff]  ;;  %v5591_v26 = vld [vmem:[%s11620_s0 + $0x98] sm:$0xff] }
 0x1ef   :  { %v1580_v16 = vadd.f32 %v1555_v17, %v1528_v15  ;;  %v2570_v41 = vmul.f32 0.2, %v2545_v8  ;;  %2059 = vmatprep.subr.mxu0 %v6135_v0  ;;  %v1763_v42 = vmul.f32 %v5587_v23, %v7645_v52  ;;  %v2101_v28 = vmul.f32 %v5582_v21, %v7668_v2 }
 0x1f0   :  { %v2336_v18 = vadd.f32 %v2311_v35, %v2284_v49  ;;  %v1893_v10 = vadd.f32 %v1868_v25, %v1841_v29  ;;  %v1815_v56 = vmul.f32 %v5588_v39, %v7648_v30  ;;  %v2154_v14 = vmul.f32 %v5583_v4, %v7684_v33  ;;  %v5589_v25 = vld [vmem:[%s11620_s0 + $0x618] sm:$0xff] }
 0x1f1   :  { %v1632_v12 = vadd.f32 %v1607_v1, %v1580_v16  ;;  %v2595_v6 = vmax.f32 %v2545_v8, %v2570_v41  ;;  %v2127_v34 = vadd.f32 %v7681_v37, %v2101_v28  ;;  %v2206_v58 = vmul.f32 %v5584_v5, %v7690_v61  ;;  %v5592_v1 = vld [vmem:[%s11620_s0 + $0x160] sm:$0xff] }
 0x1f2   :  { %v2388_v63 = vadd.f32 %v2363_v55, %v2336_v18  ;;  %v1945_v44 = vadd.f32 %v1920_v31, %v1893_v10  ;;  %v1867_v50 = vmul.f32 %v5589_v25, %v7674_v3  ;;  %v1919_v21 = vmul.f32 %v5590_v51, %v7677_v32  ;;  %v5595_v10 = vld [vmem:[%s11620_s0 + $0x3b8] sm:$0xff] }
 0x1f3   :  { %v1684_v35 = vadd.f32 %v1659_v13, %v1632_v12  ;;  %2657 = vmatpush2.msra.mxu1 %v2595_v6  ;;  %v2179_v19 = vadd.f32 %v2154_v14, %v2127_v34  ;;  %v2258_v40 = vmul.f32 %v5585_v60, %v7693_v62  ;;  %v2310_v31 = vmul.f32 %v5586_v7, %v7696_v57  ;;  %v5593_v60 = vld [vmem:[%s11620_s0 + $0x228] sm:$0xff] }
 0x1f4   :  { %v2440_v55 = vadd.f32 %v2415_v20, %v2388_v63  ;;  %2658 = vmatprep.subr.mxu1 %v6135_v0  ;;  %v1970_v59 = vmul.f32 0.2, %v1945_v44  ;;  %v2362_v17 = vmul.f32 %v5587_v23, %v7710_v36  ;;  %v1501_v22 = vmul.f32 %v5591_v26, %v7590_v24 }
 0x1f5   :  { %v1736_v4 = vadd.f32 %v1711_v27, %v1684_v35  ;;  %v2231_v5 = vadd.f32 %v2206_v58, %v2179_v19  ;;  %v2414_v20 = vmul.f32 %v5588_v39, %v7714_v9  ;;  %v1554_v8 = vmul.f32 %v5592_v1, %v7604_v48  ;;  %v5597_v58 = vld [vmem:[%s11620_s0 + $0x548] sm:$0xff] }
 0x1f6   :  { %v2492_v15 = vadd.f32 %v2467_v46, %v2440_v55  ;;  %v1995_v49 = vmax.f32 %v1945_v44, %v1970_v59  ;;  %v1527_v16 = vadd.f32 %v7601_v53, %v1501_v22  ;;  %v1606_v13 = vmul.f32 %v5593_v60, %v7607_v47 }
 0x1f7   :  { %v1788_v29 = vadd.f32 %v1763_v42, %v1736_v4  ;;  %v2283_v7 = vadd.f32 %v2258_v40, %v2231_v5  ;;  %v2466_v27 = vmul.f32 %v5589_v25, %v7717_v54  ;;  %v2518_v41 = vmul.f32 %v5590_v51, %v7720_v38  ;;  %v5594_v42 = vld [vmem:[%s11620_s0 + $0x2f0] sm:$0xff]  ;;  %v5599_v4 = vld [vmem:[%s11620_s0 + $0x6d8] sm:$0xff] }
 0x1f8   :  { %v2544_v46 = vadd.f32 %v2519_v43, %v2492_v15  ;;  %2060 = vmatpush2.msra.mxu0 %v1995_v49  ;;  %v1579_v23 = vadd.f32 %v1554_v8, %v1527_v16  ;;  %v1658_v28 = vmul.f32 %v5594_v42, %v7624_v45  ;;  %v1710_v43 = vmul.f32 %v5595_v10, %v7627_v11  ;;  %v5600_v49 = vld [vmem:[%s11620_s0 + $0x90] sm:$0xff] }
 0x1f9   :  { %v1840_v18 = vadd.f32 %v1815_v56, %v1788_v29  ;;  %2061 = vmatprep.subr.mxu0 %v6135_v0  ;;  %v2335_v39 = vadd.f32 %v2310_v31, %v2283_v7  ;;  %v5596_v56 = vld [vmem:[%s11620_s0 + $0x480] sm:$0xff]  ;;  %v2100_v6 = vmul.f32 %v5591_v26, %v7668_v2  ;;  %v1814_v44 = vmul.f32 %v5597_v58, %v7648_v30 }
 0x1fa   :  { %v2569_v12 = vmul.f32 0.2, %v2544_v46  ;;  %v1762_v14 = vmul.f32 %v5596_v56, %v7645_v52  ;;  %v1631_v34 = vadd.f32 %v1606_v13, %v1579_v23  ;;  %v2153_v35 = vmul.f32 %v5592_v1, %v7684_v33  ;;  %v5601_v13 = vld [vmem:[%s11620_s0 + $0x158] sm:$0xff] }
 0x1fb   :  { %v1892_v63 = vadd.f32 %v1867_v50, %v1840_v18  ;;  %v2387_v51 = vadd.f32 %v2362_v17, %v2335_v39  ;;  %v2126_v55 = vadd.f32 %v7681_v37, %v2100_v6  ;;  %v2205_v19 = vmul.f32 %v5593_v60, %v7690_v61  ;;  %v5598_v50 = vld [vmem:[%s11620_s0 + $0x610] sm:$0xff] }
 0x1fc   :  { %v2594_v25 = vmax.f32 %v2544_v46, %v2569_v12  ;;  %v1683_v31 = vadd.f32 %v1658_v28, %v1631_v34  ;;  %v1866_v59 = vmul.f32 %v5598_v50, %v7674_v3  ;;  %v1918_v26 = vmul.f32 %v5599_v4, %v7677_v32 }
 0x1fd   :  { %v1944_v40 = vadd.f32 %v1919_v21, %v1892_v63  ;;  %v2439_v17 = vadd.f32 %v2414_v20, %v2387_v51  ;;  %v2178_v22 = vadd.f32 %v2153_v35, %v2126_v55  ;;  %v2257_v15 = vmul.f32 %v5594_v42, %v7693_v62  ;;  %v5602_v42 = vld [vmem:[%s11620_s0 + $0x220] sm:$0xff]  ;;  %v5604_v63 = vld [vmem:[%s11620_s0 + $0x3b0] sm:$0xff] }
 0x1fe   :  { %2659 = vmatpush2.msra.mxu1 %v2594_v25  ;;  %v2309_v21 = vmul.f32 %v5595_v10, %v7696_v57  ;;  %v1735_v1 = vadd.f32 %v1710_v43, %v1683_v31  ;;  %v2361_v8 = vmul.f32 %v5596_v56, %v7710_v36  ;;  %v1500_v29 = vmul.f32 %v5600_v49, %v7590_v24 }
 0x1ff   :  { %2660 = vmatprep.subr.mxu1 %v6135_v0  ;;  %v1969_v5 = vmul.f32 0.2, %v1944_v40  ;;  %v2491_v16 = vadd.f32 %v2466_v27, %v2439_v17  ;;  %v2230_v60 = vadd.f32 %v2205_v19, %v2178_v22  ;;  %v2413_v20 = vmul.f32 %v5597_v58, %v7714_v9  ;;  %v5606_v19 = vld [vmem:[%s11620_s0 + $0x540] sm:$0xff] }
 0x200   :  { %v1553_v46 = vmul.f32 %v5601_v13, %v7604_v48  ;;  %v1787_v18 = vadd.f32 %v1762_v14, %v1735_v1  ;;  %v1526_v23 = vadd.f32 %v7601_v53, %v1500_v29  ;;  %v1605_v28 = vmul.f32 %v5602_v42, %v7607_v47  ;;  %v5603_v14 = vld [vmem:[%s11620_s0 + $0x2e8] sm:$0xff]  ;;  %v5608_v1 = vld [vmem:[%s11620_s0 + $0x6d0] sm:$0xff] }
 0x201   :  { %v1994_v7 = vmax.f32 %v1944_v40, %v1969_v5  ;;  %v2543_v27 = vadd.f32 %v2518_v41, %v2491_v16  ;;  %v2282_v10 = vadd.f32 %v2257_v15, %v2230_v60  ;;  %v2465_v43 = vmul.f32 %v5598_v50, %v7717_v54 }
 0x202   :  { %v2517_v12 = vmul.f32 %v5599_v4, %v7720_v38  ;;  %v1839_v39 = vadd.f32 %v1814_v44, %v1787_v18  ;;  %v1578_v56 = vadd.f32 %v1553_v46, %v1526_v23  ;;  %v1657_v6 = vmul.f32 %v5603_v14, %v7624_v45  ;;  %v5605_v44 = vld [vmem:[%s11620_s0 + $0x478] sm:$0xff] }
 0x203   :  { %2062 = vmatpush2.msra.mxu0 %v1994_v7  ;;  %v1709_v41 = vmul.f32 %v5604_v63, %v7627_v11  ;;  %v2568_v34 = vmul.f32 0.2, %v2543_v27  ;;  %v2334_v58 = vadd.f32 %v2309_v21, %v2282_v10  ;;  %v1761_v35 = vmul.f32 %v5605_v44, %v7645_v52  ;;  %v5609_v7 = vld [vmem:[%s11620_s0 + $0x88] sm:$0xff] }
 0x204   :  { %2063 = vmatprep.subr.mxu0 %v6135_v0  ;;  %v2099_v25 = vmul.f32 %v5600_v49, %v7668_v2  ;;  %v1891_v51 = vadd.f32 %v1866_v59, %v1839_v39  ;;  %v1630_v55 = vadd.f32 %v1605_v28, %v1578_v56  ;;  %v1813_v40 = vmul.f32 %v5606_v19, %v7648_v30  ;;  %v5607_v59 = vld [vmem:[%s11620_s0 + $0x608] sm:$0xff]  ;;  %v5610_v28 = vld [vmem:[%s11620_s0 + $0x150] sm:$0xff] }
 0x205   :  { %v2152_v31 = vmul.f32 %v5601_v13, %v7684_v33  ;;  %v2593_v50 = vmax.f32 %v2543_v27, %v2568_v34  ;;  %v2386_v4 = vadd.f32 %v2361_v8, %v2334_v58  ;;  %v2204_v22 = vmul.f32 %v5602_v42, %v7690_v61 }
 0x206   :  { %v2125_v17 = vadd.f32 %v7681_v37, %v2099_v25  ;;  %v1943_v15 = vadd.f32 %v1918_v26, %v1891_v51  ;;  %v1682_v21 = vadd.f32 %v1657_v6, %v1630_v55  ;;  %v1865_v5 = vmul.f32 %v5607_v59, %v7674_v3  ;;  %v5613_v51 = vld [vmem:[%s11620_s0 + $0x3a8] sm:$0xff] }
 0x207   :  { %v1917_v49 = vmul.f32 %v5608_v1, %v7677_v32  ;;  %2661 = vmatpush2.msra.mxu1 %v2593_v50  ;;  %v2438_v8 = vadd.f32 %v2413_v20, %v2386_v4  ;;  %v2256_v16 = vmul.f32 %v5603_v14, %v7693_v62  ;;  %v2308_v26 = vmul.f32 %v5604_v63, %v7696_v57  ;;  %v5611_v14 = vld [vmem:[%s11620_s0 + $0x218] sm:$0xff] }
 0x208   :  { %v2177_v29 = vadd.f32 %v2152_v31, %v2125_v17  ;;  %2662 = vmatprep.subr.mxu1 %v6135_v0  ;;  %v1968_v60 = vmul.f32 0.2, %v1943_v15  ;;  %v1734_v13 = vadd.f32 %v1709_v41, %v1682_v21  ;;  %v2360_v46 = vmul.f32 %v5605_v44, %v7710_v36 }
 0x209   :  { %v1499_v18 = vmul.f32 %v5609_v7, %v7590_v24  ;;  %v2490_v23 = vadd.f32 %v2465_v43, %v2438_v8  ;;  %v2412_v20 = vmul.f32 %v5606_v19, %v7714_v9  ;;  %v1552_v27 = vmul.f32 %v5610_v28, %v7604_v48 }
 0x20a   :  { %v2229_v42 = vadd.f32 %v2204_v22, %v2177_v29  ;;  %v1993_v10 = vmax.f32 %v1943_v15, %v1968_v60  ;;  %v1786_v39 = vadd.f32 %v1761_v35, %v1734_v13  ;;  %v1604_v6 = vmul.f32 %v5611_v14, %v7607_v47  ;;  %v5612_v35 = vld [vmem:[%s11620_s0 + $0x2e0] sm:$0xff]  ;;  %v5615_v22 = vld [vmem:[%s11620_s0 + $0x538] sm:$0xff]  ;;  %v5617_v13 = vld [vmem:[%s11620_s0 + $0x6c8] sm:$0xff] }
 0x20b   :  { %v1525_v56 = vadd.f32 %v7601_v53, %v1499_v18  ;;  %v2542_v43 = vadd.f32 %v2517_v12, %v2490_v23  ;;  %v2464_v41 = vmul.f32 %v5607_v59, %v7717_v54  ;;  %v2516_v34 = vmul.f32 %v5608_v1, %v7720_v38 }
 0x20c   :  { %v2281_v63 = vadd.f32 %v2256_v16, %v2229_v42  ;;  %2064 = vmatpush2.msra.mxu0 %v1993_v10  ;;  %v1838_v58 = vadd.f32 %v1813_v40, %v1786_v39  ;;  %v1656_v25 = vmul.f32 %v5612_v35, %v7624_v45  ;;  %v1708_v12 = vmul.f32 %v5613_v51, %v7627_v11  ;;  %v5614_v40 = vld [vmem:[%s11620_s0 + $0x470] sm:$0xff]  ;;  %v5618_v10 = vld [vmem:[%s11620_s0 + $0x80] sm:$0xff] }
 0x20d   :  { %v1577_v44 = vadd.f32 %v1552_v27, %v1525_v56  ;;  %v2567_v55 = vmul.f32 0.2, %v2542_v43  ;;  %2065 = vmatprep.subr.mxu0 %v6135_v0  ;;  %v1760_v31 = vmul.f32 %v5614_v40, %v7645_v52  ;;  %v2098_v50 = vmul.f32 %v5609_v7, %v7668_v2 }
 0x20e   :  { %v2333_v19 = vadd.f32 %v2308_v26, %v2281_v63  ;;  %v1890_v4 = vadd.f32 %v1865_v5, %v1838_v58  ;;  %v1812_v15 = vmul.f32 %v5615_v22, %v7648_v30  ;;  %v2151_v21 = vmul.f32 %v5610_v28, %v7684_v33  ;;  %v5616_v5 = vld [vmem:[%s11620_s0 + $0x600] sm:$0xff] }
 0x20f   :  { %v1629_v17 = vadd.f32 %v1604_v6, %v1577_v44  ;;  %v2592_v59 = vmax.f32 %v2542_v43, %v2567_v55  ;;  %v2124_v8 = vadd.f32 %v7681_v37, %v2098_v50  ;;  %v2203_v29 = vmul.f32 %v5611_v14, %v7690_v61  ;;  %v5619_v6 = vld [vmem:[%s11620_s0 + $0x148] sm:$0xff] }
 0x210   :  { %v2385_v1 = vadd.f32 %v2360_v46, %v2333_v19  ;;  %v1942_v16 = vadd.f32 %v1917_v49, %v1890_v4  ;;  %v1864_v60 = vmul.f32 %v5616_v5, %v7674_v3  ;;  %v1916_v7 = vmul.f32 %v5617_v13, %v7677_v32  ;;  %v5623_v50 = vld [vmem:[%s11620_s0 + $0x468] sm:$0xff] }
 0x211   :  { %v1681_v26 = vadd.f32 %v1656_v25, %v1629_v17  ;;  %2663 = vmatpush2.msra.mxu1 %v2592_v59  ;;  %v2176_v18 = vadd.f32 %v2151_v21, %v2124_v8  ;;  %v2255_v23 = vmul.f32 %v5612_v35, %v7693_v62  ;;  %v2307_v49 = vmul.f32 %v5613_v51, %v7696_v57 }
 0x212   :  { %v2437_v46 = vadd.f32 %v2412_v20, %v2385_v1  ;;  %2664 = vmatprep.subr.mxu1 %v6135_v0  ;;  %v1967_v42 = vmul.f32 0.2, %v1942_v16  ;;  %v2359_v27 = vmul.f32 %v5614_v40, %v7710_v36  ;;  %v1498_v39 = vmul.f32 %v5618_v10, %v7590_v24  ;;  %v5620_v24 = vld [vmem:[%s11620_s0 + $0x210] sm:$0xff] }
 0x213   :  { %v1733_v28 = vadd.f32 %v1708_v12, %v1681_v26  ;;  %v2228_v56 = vadd.f32 %v2203_v29, %v2176_v18  ;;  %v2411_v14 = vmul.f32 %v5615_v22, %v7714_v9  ;;  %v1551_v43 = vmul.f32 %v5619_v6, %v7604_v48  ;;  %v5626_v29 = vld [vmem:[%s11620_s0 + $0x5f8] sm:$0xff] }
 0x214   :  { %v2489_v20 = vadd.f32 %v2464_v41, %v2437_v46  ;;  %v1992_v63 = vmax.f32 %v1942_v16, %v1967_v42  ;;  %v1524_v44 = vadd.f32 %v7601_v53, %v1498_v39  ;;  %v1603_v41 = vmul.f32 %v5620_v24, %v7607_v47  ;;  %v5621_v53 = vld [vmem:[%s11620_s0 + $0x2d8] sm:$0xff]  ;;  %v5622_v47 = vld [vmem:[%s11620_s0 + $0x3a0] sm:$0xff] }
 0x215   :  { %v1785_v58 = vadd.f32 %v1760_v31, %v1733_v28  ;;  %v2280_v25 = vadd.f32 %v2255_v23, %v2228_v56  ;;  %v2463_v51 = vmul.f32 %v5616_v5, %v7717_v54  ;;  %v2515_v48 = vmul.f32 %v5617_v13, %v7720_v38 }
 0x216   :  { %v2541_v35 = vadd.f32 %v2516_v34, %v2489_v20  ;;  %2066 = vmatpush2.msra.mxu0 %v1992_v63  ;;  %v1576_v55 = vadd.f32 %v1551_v43, %v1524_v44  ;;  %v1655_v19 = vmul.f32 %v5621_v53, %v7624_v45  ;;  %v1707_v34 = vmul.f32 %v5622_v47, %v7627_v11  ;;  %v5624_v45 = vld [vmem:[%s11623_s3 + $0x8] sm:$0xff] }
 0x217   :  { %v1837_v12 = vadd.f32 %v1812_v15, %v1785_v58  ;;  %2067 = vmatprep.subr.mxu0 %v6135_v0  ;;  %v2332_v31 = vadd.f32 %v2307_v49, %v2280_v25  ;;  %v1759_v4 = vmul.f32 %v5623_v50, %v7645_v52  ;;  %v2000_v17 = vrot.slane %v5624_v45, 2  ;;  %v5625_v52 = vld [vmem:[%s11620_s0 + $0x530] sm:$0xff]  ;;  %v5630_v44 = vld [vmem:[%s11620_s0 + $0x208] sm:$0xff] }
 0x218   :  { %v2566_v40 = vmul.f32 0.2, %v2541_v35  ;;  %v1628_v22 = vadd.f32 %v1603_v41, %v1576_v55  ;;  %v2097_v15 = vmul.f32 %v5618_v10, %v7668_v2  ;;  %v2150_v21 = vmul.f32 %v5619_v6, %v7684_v33 }
 0x219   :  { %v1889_v11 = vadd.f32 %v1864_v60, %v1837_v12  ;;  %v2384_v1 = vadd.f32 %v2359_v27, %v2332_v31  ;;  %v1811_v8 = vmul.f32 %v5625_v52, %v7648_v30  ;;  %v1863_v16 = vmul.f32 %v5626_v29, %v7674_v3  ;;  %5333 = vmatprep.mubr.msk.f32.mxu0 %vm1327_vm1, %v2000_v17  ;;  %v5627_v60 = vld [vmem:[%s11620_s0 + $0x6c0] sm:$0xff] }
 0x21a   :  { %v2591_v59 = vmax.f32 %v2541_v35, %v2566_v40  ;;  %v1680_v33 = vadd.f32 %v1655_v19, %v1628_v22  ;;  %v2123_v26 = vadd.f32 %v7681_v37, %v2097_v15  ;;  %v2202_v5 = vmul.f32 %v5620_v24, %v7690_v61 }
 0x21b   :  { %v1941_v2 = vadd.f32 %v1916_v7, %v1889_v11  ;;  %v2436_v30 = vadd.f32 %v2411_v14, %v2384_v1  ;;  %v1915_v3 = vmul.f32 %v5627_v60, %v7677_v32  ;;  %v2254_v13 = vmul.f32 %v5621_v53, %v7693_v62  ;;  %v5629_v14 = vld [vmem:[%s11620_s0 + $0x140] sm:$0xff]  ;;  %v5631_v53 = vld [vmem:[%s11620_s0 + $0x2d0] sm:$0xff] }
 0x21c   :  { %2665 = vmatpush2.msra.mxu1 %v2591_v59  ;;  %v2306_v46 = vmul.f32 %v5622_v47, %v7696_v57  ;;  %v1732_v61 = vadd.f32 %v1707_v34, %v1680_v33  ;;  %v2175_v7 = vadd.f32 %v2150_v21, %v2123_v26  ;;  %v2358_v18 = vmul.f32 %v5623_v50, %v7710_v36  ;;  %v5634_v11 = vld [vmem:[%s11620_s0 + $0x460] sm:$0xff] }
 0x21d   :  { %2666 = vmatprep.subr.mxu1 %v6135_v0  ;;  %v1966_v37 = vmul.f32 0.2, %v1941_v2  ;;  %v2488_v23 = vadd.f32 %v2463_v51, %v2436_v30  ;;  %v2410_v32 = vmul.f32 %v5625_v52, %v7714_v9  ;;  %v8929_v62 = vmul.f32 %v5626_v29, %v7717_v54  ;;  %v5628_v9 = vld [vmem:[%s11620_s0 + $0x78] sm:$0xff] }
 0x21e   :  { %v2599_v57 = vrot.slane %v5624_v45, 3  ;;  %v1784_v42 = vadd.f32 %v1759_v4, %v1732_v61  ;;  %v2227_v28 = vadd.f32 %v2202_v5, %v2175_v7  ;;  %v8934_v27 = vstv %s8856_s12  ;;  %v5633_v45 = vld [vmem:[%s11620_s0 + $0x398] sm:$0xff]  ;;  %v5636_v7 = vld [vmem:[%s11620_s0 + $0x5f0] sm:$0xff] }
 0x21f   :  { %v1991_v49 = vmax.f32 %v1941_v2, %v1966_v37  ;;  %v2540_v36 = vadd.f32 %v2515_v48, %v2488_v23  ;;  %v2695_v54 = vmul.f32 %v5628_v9, %v8934_v27  ;;  %v8944_v10 = vstv %s8863_s16  ;;  %s10253_s16 = sld [smem:[#allocation3 + $0x303]] }
 0x220   :  { %5345 = vmatprep.mubr.msk.f32.mxu1 %vm1327_vm1, %v2599_v57  ;;  %v8947_v39 = vstv %s8874_s22  ;;  %v1836_v20 = vadd.f32 %v1811_v8, %v1784_v42  ;;  %v2279_v56 = vadd.f32 %v2254_v13, %v2227_v28  ;;  %v8956_v43 = vstv %s8894_s28  ;;  %v5637_v57 = vld [vmem:[%s11620_s0 + $0x6b8] sm:$0xff]  ;;  %s10257_s22 = sld [smem:[#allocation3 + $0x304]] }
 0x221   :  { %2068 = vmatpush2.msra.mxu0 %v1991_v49  ;;  %v2748_v6 = vmul.f32 %v5629_v14, %v8947_v39  ;;  %v2565_v63 = vmul.f32 0.2, %v2540_v36  ;;  %v2721_v58 = vadd.f32 %v8944_v10, %v2695_v54  ;;  %v2800_v24 = vmul.f32 %v5630_v44, %v8956_v43  ;;  %s10269_s28 = sld [smem:[#allocation3 + $0x306]] }
 0x222   :  { %2069 = vmatprep.subr.mxu0 %v6135_v0  ;;  %v8967_v41 = vstv %s8898_s24  ;;  %v1888_v35 = vadd.f32 %v1863_v16, %v1836_v20  ;;  %v2331_v25 = vadd.f32 %v2306_v46, %v2279_v56  ;;  %v2514_v51 = vmul.f32 %v5627_v60, %v7720_v38  ;;  %s8984_s24 = sld [smem:[#allocation3 + $0x286]]  ;;  %v8989_v38 = vld [vmem:[%s11623_s3] sm:$0xff] }
 0x223   :  { %v8973_v48 = vstv %s8909_s30  ;;  %v2590_v12 = vmax.f32 %v2540_v36, %v2565_v63  ;;  %v2773_v55 = vadd.f32 %v2748_v6, %v2721_v58  ;;  %v2852_v19 = vmul.f32 %v5631_v53, %v8967_v41  ;;  %v5638_v63 = vld [vmem:[%s11620_s0 + $0x70] sm:$0xff]  ;;  %s10218_s30 = sld [smem:[#allocation3 + $0x380]] }
 0x224   :  { %v8982_v47 = vstv %s8913_s9  ;;  %v1940_v34 = vadd.f32 %v1915_v3, %v1888_v35  ;;  %v2383_v40 = vadd.f32 %v2358_v18, %v2331_v25  ;;  %v1999_v31 = vrot.slane %v8989_v38, 2  ;;  %v5635_v3 = vld [vmem:[%s11620_s0 + $0x528] sm:$0xff] }
 0x225   :  { %v2598_v50 = vrot.slane %v8989_v38, 3  ;;  %2667 = vmatpush2.msra.mxu1 %v2590_v12  ;;  %v2825_v4 = vadd.f32 %v2800_v24, %v2773_v55  ;;  %v2904_v17 = vmul.f32 %v5633_v45, %v8973_v48  ;;  %v2956_v22 = vmul.f32 %v5634_v11, %v8982_v47  ;;  %v5639_v55 = vld [vmem:[%s11620_s0 + $0x138] sm:$0xff] }
 0x226   :  { %v9004_v15 = vstv %s8925_s8  ;;  %2668 = vmatprep.subr.mxu1 %v6135_v0  ;;  %v1965_v21 = vmul.f32 0.2, %v1940_v34  ;;  %v2435_v59 = vadd.f32 %v2410_v32, %v2383_v40  ;;  %v9010_v1 = vstv %s8931_s19  ;;  %v5643_v38 = vld [vmem:[%s11620_s0 + $0x458] sm:$0xff]  ;;  %s10228_s19 = sld [smem:[#allocation3 + $0x301]] }
 0x227   :  { %v9013_v52 = vstv %s8936_s20  ;;  %v2877_v8 = vadd.f32 %v2852_v19, %v2825_v4  ;;  %v9016_v29 = vstv %s8870_s13  ;;  %v9019_v16 = vstv %s8884_s14  ;;  %v5640_v19 = vld [vmem:[%s11620_s0 + $0x200] sm:$0xff]  ;;  %s10317_s14 = sld [smem:[#allocation3 + $0x384]] }
 0x228   :  { %v9022_v2 = vstv %s8921_s15  ;;  %v1990_v33 = vmax.f32 %v1940_v34, %v1965_v21  ;;  %v2487_v26 = vadd.f32 %v8929_v62, %v2435_v59  ;;  %v3294_v5 = vmul.f32 %v5628_v9, %v9016_v29 }
 0x229   :  { %v3347_v30 = vmul.f32 %v5629_v14, %v9022_v2  ;;  %v2929_v60 = vadd.f32 %v2904_v17, %v2877_v8  ;;  %v3008_v13 = vmul.f32 %v5635_v3, %v9004_v15  ;;  %v9032_v46 = vstv %s8949_s26  ;;  %v5642_v8 = vld [vmem:[%s11620_s0 + $0x390] sm:$0xff]  ;;  %s10332_s26 = sld [smem:[#allocation3 + $0x386]] }
 0x22a   :  { %v9035_v37 = vstv %s8958_s17  ;;  %2070 = vmatpush2.msra.mxu0 %v1990_v33  ;;  %v2539_v61 = vadd.f32 %v2514_v51, %v2487_v26  ;;  %v3060_v18 = vmul.f32 %v5636_v7, %v9010_v1  ;;  %v3320_v23 = vadd.f32 %v9019_v16, %v3294_v5 }
 0x22b   :  { %v3399_v32 = vmul.f32 %v5630_v44, %v9032_v46  ;;  %2072 = vmatmul.mubr.f32.vlgmr.msra.gmra.mxu0 %v1999_v31  ;;  %3205 = vmatprep.subr.mxu0 %v6135_v0  ;;  %v2981_v62 = vadd.f32 %v2956_v22, %v2929_v60  ;;  %v3112_v49 = vmul.f32 %v5637_v57, %v9013_v52  ;;  %v9049_v42 = vstv %s8969_s18  ;;  %v5641_v22 = vld [vmem:[%s11620_s0 + $0x2c8] sm:$0xff]  ;;  %v5644_v60 = vld [vmem:[%s11620_s0 + $0x520] sm:$0xff] }
 0x22c   :  { %v9052_v28 = vstv %s8975_s1  ;;  %v2564_v36 = vmul.f32 0.2, %v2539_v61  ;;  %v3372_v9 = vadd.f32 %v3347_v30, %v3320_v23  ;;  %v3451_v54 = vmul.f32 %v5631_v53, %v9035_v37  ;;  %s10345_s1 = sld [smem:[#allocation3 + $0x387]] }
 0x22d   :  { %v9056_v20 = vstv %s8984_s24  ;;  %v3033_v56 = vadd.f32 %v3008_v13, %v2981_v62  ;;  %v9059_v14 = vstv %s8993_s7  ;;  %v9062_v6 = vstv %s9006_s11  ;;  %s10273_s24 = sld [smem:[#allocation3 + $0x381]] }
 0x22e   :  { %v2694_v58 = vmul.f32 %v5638_v63, %v8934_v27  ;;  %v2589_v44 = vmax.f32 %v2539_v61, %v2564_v36  ;;  %v3424_v24 = vadd.f32 %v3399_v32, %v3372_v9  ;;  %v3503_v35 = vmul.f32 %v5633_v45, %v9049_v42  ;;  %s10364_s7 = sld [smem:[#allocation3 + $0x388]] }
 0x22f   :  { %v3555_v25 = vmul.f32 %v5634_v11, %v9052_v28  ;;  %v3085_v51 = vadd.f32 %v3060_v18, %v3033_v56  ;;  %v2747_v53 = vmul.f32 %v5639_v55, %v8947_v39  ;;  %v2799_v34 = vmul.f32 %v5640_v19, %v8956_v43 }
 0x230   :  { %v2720_v12 = vadd.f32 %v8944_v10, %v2694_v58  ;;  %2669 = vmatpush2.msra.mxu1 %v2589_v44  ;;  %v3476_v40 = vadd.f32 %v3451_v54, %v3424_v24  ;;  %v3607_v31 = vmul.f32 %v5635_v3, %v9056_v20  ;;  %v3659_v4 = vmul.f32 %v5636_v7, %v9059_v14  ;;  %v5645_v7 = vld [vmem:[%s11620_s0 + $0x5e8] sm:$0xff] }
 0x231   :  { %v3711_v45 = vmul.f32 %v5637_v57, %v9062_v6  ;;  %3804 = vmatprep.subr.mxu1 %v6135_v0  ;;  %2671 = vmatmul.mubr.f32.vlgmr.msra.gmra.mxu1 %v2598_v50  ;;  %v3137_v17 = vadd.f32 %v3112_v49, %v3085_v51  ;;  %v2851_v21 = vmul.f32 %v5641_v22, %v8967_v41  ;;  %v5646_v49 = vld [vmem:[%s11620_s0 + $0x6b0] sm:$0xff] }
 0x232   :  { %v2772_v11 = vadd.f32 %v2747_v53, %v2720_v12  ;;  %v3528_v59 = vadd.f32 %v3503_v35, %v3476_v40  ;;  %v2903_v33 = vmul.f32 %v5642_v8, %v8973_v48  ;;  %v2955_v50 = vmul.f32 %v5643_v38, %v8982_v47  ;;  %v5647_v35 = vld [vmem:[%s11620_s0 + $0x68] sm:$0xff]  ;;  %v5648_v51 = vld [vmem:[%s11620_s0 + $0x130] sm:$0xff] }
 0x233   :  { %v3293_v26 = vmul.f32 %v5638_v63, %v9016_v29  ;;  %v3162_v5 = vmul.f32 0.2, %v3137_v17  ;;  %v3007_v3 = vmul.f32 %v5644_v60, %v9004_v15  ;;  %v3346_v13 = vmul.f32 %v5639_v55, %v9022_v2 }
 0x234   :  { %v2824_v30 = vadd.f32 %v2799_v34, %v2772_v11  ;;  %v3580_v61 = vadd.f32 %v3555_v25, %v3528_v59  ;;  %v3059_v18 = vmul.f32 %v5645_v7, %v9010_v1  ;;  %v3398_v32 = vmul.f32 %v5640_v19, %v9032_v46 }
 0x235   :  { %v3319_v23 = vadd.f32 %v9019_v16, %v3293_v26  ;;  %v3187_v62 = vmax.f32 %v3137_v17, %v3162_v5  ;;  %v3111_v36 = vmul.f32 %v5646_v49, %v9013_v52  ;;  %v3450_v9 = vmul.f32 %v5641_v22, %v9035_v37  ;;  %v5649_v17 = vld [vmem:[%s11620_s0 + $0x1f8] sm:$0xff] }
 0x236   :  { %v2876_v57 = vadd.f32 %v2851_v21, %v2824_v30  ;;  %v3632_v54 = vadd.f32 %v3607_v31, %v3580_v61  ;;  %v3502_v63 = vmul.f32 %v5642_v8, %v9049_v42  ;;  %v3554_v58 = vmul.f32 %v5643_v38, %v9052_v28  ;;  %v5651_v8 = vld [vmem:[%s11620_s0 + $0x388] sm:$0xff]  ;;  %v5652_v38 = vld [vmem:[%s11620_s0 + $0x450] sm:$0xff]  ;;  %v5653_v61 = vld [vmem:[%s11620_s0 + $0x518] sm:$0xff] }
 0x237   :  { %v3371_v56 = vadd.f32 %v3346_v13, %v3319_v23  ;;  %3206 = vmatpush1.msra.mxu0 %v3187_v62  ;;  %v3606_v24 = vmul.f32 %v5644_v60, %v9056_v20  ;;  %v2693_v25 = vmul.f32 %v5647_v35, %v8934_v27  ;;  %v2746_v12 = vmul.f32 %v5648_v51, %v8947_v39  ;;  %v5654_v23 = vld [vmem:[%s11620_s0 + $0x5e0] sm:$0xff] }
 0x238   :  { %v2928_v44 = vadd.f32 %v2903_v33, %v2876_v57  ;;  %v3684_v55 = vadd.f32 %v3659_v4, %v3632_v54  ;;  %3207 = vmatprep.subr.mxu0 %v6135_v0  ;;  %v3658_v19 = vmul.f32 %v5645_v7, %v9059_v14  ;;  %v3710_v34 = vmul.f32 %v5646_v49, %v9062_v6  ;;  %v5650_v4 = vld [vmem:[%s11620_s0 + $0x2c0] sm:$0xff] }
 0x239   :  { %v3423_v53 = vadd.f32 %v3398_v32, %v3371_v56  ;;  %v2719_v31 = vadd.f32 %v8944_v10, %v2693_v25  ;;  %v2798_v11 = vmul.f32 %v5649_v17, %v8956_v43  ;;  %v2850_v22 = vmul.f32 %v5650_v4, %v8967_v41  ;;  %v5655_v56 = vld [vmem:[%s11620_s0 + $0x6a8] sm:$0xff] }
 0x23a   :  { %v2980_v40 = vadd.f32 %v2955_v50, %v2928_v44  ;;  %v3736_v21 = vadd.f32 %v3711_v45, %v3684_v55  ;;  %v2902_v33 = vmul.f32 %v5651_v8, %v8973_v48  ;;  %v2954_v50 = vmul.f32 %v5652_v38, %v8982_v47 }
 0x23b   :  { %v3475_v59 = vadd.f32 %v3450_v9, %v3423_v53  ;;  %v2771_v5 = vadd.f32 %v2746_v12, %v2719_v31  ;;  %v3292_v30 = vmul.f32 %v5647_v35, %v9016_v29  ;;  %v3345_v60 = vmul.f32 %v5648_v51, %v9022_v2 }
 0x23c   :  { %v3032_v26 = vadd.f32 %v3007_v3, %v2980_v40  ;;  %v3761_v45 = vmul.f32 0.2, %v3736_v21  ;;  %v3006_v7 = vmul.f32 %v5653_v61, %v9004_v15  ;;  %v3058_v32 = vmul.f32 %v5654_v23, %v9010_v1  ;;  %v5657_v40 = vld [vmem:[%s11620_s0 + $0x128] sm:$0xff] }
 0x23d   :  { %v3527_v13 = vadd.f32 %v3502_v63, %v3475_v59  ;;  %v2823_v62 = vadd.f32 %v2798_v11, %v2771_v5  ;;  %v3318_v57 = vadd.f32 %v9019_v16, %v3292_v30  ;;  %v3397_v49 = vmul.f32 %v5649_v17, %v9032_v46  ;;  %v5658_v59 = vld [vmem:[%s11620_s0 + $0x1f0] sm:$0xff] }
 0x23e   :  { %v3084_v3 = vadd.f32 %v3059_v18, %v3032_v26  ;;  %v3786_v9 = vmax.f32 %v3736_v21, %v3761_v45  ;;  %v3110_v63 = vmul.f32 %v5655_v56, %v9013_v52  ;;  %v3449_v44 = vmul.f32 %v5650_v4, %v9035_v37 }
 0x23f   :  { %v3579_v54 = vadd.f32 %v3554_v58, %v3527_v13  ;;  %v2875_v25 = vadd.f32 %v2850_v22, %v2823_v62  ;;  %v3370_v51 = vadd.f32 %v3345_v60, %v3318_v57  ;;  %v3501_v18 = vmul.f32 %v5651_v8, %v9049_v42  ;;  %v5656_v58 = vld [vmem:[%s11620_s0 + $0x60] sm:$0xff] }
 0x240   :  { %v3136_v35 = vadd.f32 %v3111_v36, %v3084_v3  ;;  %3805 = vmatpush1.msra.mxu1 %v3786_v9  ;;  %v3553_v55 = vmul.f32 %v5652_v38, %v9052_v28  ;;  %v2692_v53 = vmul.f32 %v5656_v58, %v8934_v27  ;;  %v2745_v36 = vmul.f32 %v5657_v40, %v8947_v39  ;;  %v5660_v13 = vld [vmem:[%s11620_s0 + $0x380] sm:$0xff]  ;;  %v5662_v9 = vld [vmem:[%s11620_s0 + $0x510] sm:$0xff] }
 0x241   :  { %v3631_v12 = vadd.f32 %v3606_v24, %v3579_v54  ;;  %3806 = vmatprep.subr.mxu1 %v6135_v0  ;;  %v2927_v17 = vadd.f32 %v2902_v33, %v2875_v25  ;;  %v3422_v11 = vadd.f32 %v3397_v49, %v3370_v51  ;;  %v3605_v24 = vmul.f32 %v5653_v61, %v9056_v20 }
 0x242   :  { %v3161_v31 = vmul.f32 0.2, %v3136_v35  ;;  %v3657_v22 = vmul.f32 %v5654_v23, %v9059_v14  ;;  %v2718_v21 = vadd.f32 %v8944_v10, %v2692_v53  ;;  %v2797_v8 = vmul.f32 %v5658_v59, %v8956_v43  ;;  %v5664_v53 = vld [vmem:[%s11620_s0 + $0x6a0] sm:$0xff] }
 0x243   :  { %v3683_v4 = vadd.f32 %v3658_v19, %v3631_v12  ;;  %v2979_v26 = vadd.f32 %v2954_v50, %v2927_v17  ;;  %v3474_v5 = vadd.f32 %v3449_v44, %v3422_v11  ;;  %v3709_v30 = vmul.f32 %v5655_v56, %v9062_v6  ;;  %v5659_v19 = vld [vmem:[%s11620_s0 + $0x2b8] sm:$0xff] }
 0x244   :  { %v3186_v38 = vmax.f32 %v3136_v35, %v3161_v31  ;;  %v2770_v60 = vadd.f32 %v2745_v36, %v2718_v21  ;;  %v2849_v45 = vmul.f32 %v5659_v19, %v8967_v41  ;;  %v2901_v61 = vmul.f32 %v5660_v13, %v8973_v48  ;;  %v5663_v12 = vld [vmem:[%s11620_s0 + $0x5d8] sm:$0xff] }
 0x245   :  { %v3735_v33 = vadd.f32 %v3710_v34, %v3683_v4  ;;  %v3031_v23 = vadd.f32 %v3006_v7, %v2979_v26  ;;  %v3526_v50 = vadd.f32 %v3501_v18, %v3474_v5  ;;  %v5661_v34 = vld [vmem:[%s11620_s0 + $0x448] sm:$0xff]  ;;  %v3291_v62 = vmul.f32 %v5656_v58, %v9016_v29  ;;  %v5665_v21 = vld [vmem:[%s11620_s0 + $0x58] sm:$0xff] }
 0x246   :  { %3208 = vmatpush1.msra.mxu0 %v3186_v38  ;;  %v2953_v3 = vmul.f32 %v5661_v34, %v8982_v47  ;;  %v2822_v49 = vadd.f32 %v2797_v8, %v2770_v60  ;;  %v3005_v54 = vmul.f32 %v5662_v9, %v9004_v15  ;;  %v3344_v7 = vmul.f32 %v5657_v40, %v9022_v2  ;;  %v5666_v38 = vld [vmem:[%s11620_s0 + $0x120] sm:$0xff] }
 0x247   :  { %v3760_v57 = vmul.f32 0.2, %v3735_v33  ;;  %3209 = vmatprep.subr.mxu0 %v6135_v0  ;;  %v3083_v56 = vadd.f32 %v3058_v32, %v3031_v23  ;;  %v3578_v44 = vadd.f32 %v3553_v55, %v3526_v50  ;;  %v3317_v35 = vadd.f32 %v9019_v16, %v3291_v62 }
 0x248   :  { %v3396_v25 = vmul.f32 %v5658_v59, %v9032_v46  ;;  %v2874_v18 = vadd.f32 %v2849_v45, %v2822_v49  ;;  %v3057_v58 = vmul.f32 %v5663_v12, %v9010_v1  ;;  %v3109_v40 = vmul.f32 %v5664_v53, %v9013_v52 }
 0x249   :  { %v3785_v51 = vmax.f32 %v3735_v33, %v3760_v57  ;;  %v3135_v32 = vadd.f32 %v3110_v63, %v3083_v56  ;;  %v3630_v55 = vadd.f32 %v3605_v24, %v3578_v44  ;;  %v3369_v36 = vadd.f32 %v3344_v7, %v3317_v35 }
 0x24a   :  { %v3448_v31 = vmul.f32 %v5659_v19, %v9035_v37  ;;  %v2926_v17 = vadd.f32 %v2901_v61, %v2874_v18  ;;  %v3500_v11 = vmul.f32 %v5660_v13, %v9049_v42  ;;  %v3552_v4 = vmul.f32 %v5661_v34, %v9052_v28  ;;  %v5667_v19 = vld [vmem:[%s11620_s0 + $0x1e8] sm:$0xff] }
 0x24b   :  { %3807 = vmatpush1.msra.mxu1 %v3785_v51  ;;  %v2691_v59 = vmul.f32 %v5665_v21, %v8934_v27  ;;  %v3160_v8 = vmul.f32 0.2, %v3135_v32  ;;  %v3682_v63 = vadd.f32 %v3657_v22, %v3630_v55  ;;  %v3421_v24 = vadd.f32 %v3396_v25, %v3369_v36  ;;  %v5672_v55 = vld [vmem:[%s11620_s0 + $0x5d0] sm:$0xff] }
 0x24c   :  { %3808 = vmatprep.subr.mxu1 %v6135_v0  ;;  %v2744_v26 = vmul.f32 %v5666_v38, %v8947_v39  ;;  %v2978_v5 = vadd.f32 %v2953_v3, %v2926_v17  ;;  %v3604_v33 = vmul.f32 %v5662_v9, %v9056_v20  ;;  %v2796_v45 = vmul.f32 %v5667_v19, %v8956_v43  ;;  %v5668_v3 = vld [vmem:[%s11620_s0 + $0x2b0] sm:$0xff] }
 0x24d   :  { %v2717_v60 = vadd.f32 %v8944_v10, %v2691_v59  ;;  %v3185_v13 = vmax.f32 %v3135_v32, %v3160_v8  ;;  %v3734_v22 = vadd.f32 %v3709_v30, %v3682_v63  ;;  %v3473_v61 = vadd.f32 %v3448_v31, %v3421_v24  ;;  %v5669_v30 = vld [vmem:[%s11620_s0 + $0x378] sm:$0xff] }
 0x24e   :  { %v3656_v23 = vmul.f32 %v5663_v12, %v9059_v14  ;;  %v3030_v50 = vadd.f32 %v3005_v54, %v2978_v5  ;;  %v3708_v34 = vmul.f32 %v5664_v53, %v9062_v6  ;;  %v2848_v57 = vmul.f32 %v5668_v3, %v8967_v41  ;;  %v5670_v54 = vld [vmem:[%s11620_s0 + $0x440] sm:$0xff]  ;;  %v5671_v53 = vld [vmem:[%s11620_s0 + $0x508] sm:$0xff] }
 0x24f   :  { %v2769_v62 = vadd.f32 %v2744_v26, %v2717_v60  ;;  %3210 = vmatpush1.msra.mxu0 %v3185_v13  ;;  %v3759_v49 = vmul.f32 0.2, %v3734_v22  ;;  %v3525_v9 = vadd.f32 %v3500_v11, %v3473_v61  ;;  %v2900_v7 = vmul.f32 %v5669_v30, %v8973_v48  ;;  %v5674_v60 = vld [vmem:[%s11620_s0 + $0x50] sm:$0xff] }
 0x250   :  { %v2952_v56 = vmul.f32 %v5670_v54, %v8982_v47  ;;  %3211 = vmatprep.subr.mxu0 %v6135_v0  ;;  %v3082_v44 = vadd.f32 %v3057_v58, %v3030_v50  ;;  %v3290_v25 = vmul.f32 %v5665_v21, %v9016_v29  ;;  %v3343_v51 = vmul.f32 %v5666_v38, %v9022_v2  ;;  %v5673_v21 = vld [vmem:[%s11620_s0 + $0x698] sm:$0xff] }
 0x251   :  { %v2821_v35 = vadd.f32 %v2796_v45, %v2769_v62  ;;  %v3784_v18 = vmax.f32 %v3734_v22, %v3759_v49  ;;  %v3577_v12 = vadd.f32 %v3552_v4, %v3525_v9  ;;  %v3004_v32 = vmul.f32 %v5671_v53, %v9004_v15  ;;  %v5675_v45 = vld [vmem:[%s11620_s0 + $0x118] sm:$0xff]  ;;  %v5676_v49 = vld [vmem:[%s11620_s0 + $0x1e0] sm:$0xff] }
 0x252   :  { %v3056_v36 = vmul.f32 %v5672_v55, %v9010_v1  ;;  %v3134_v58 = vadd.f32 %v3109_v40, %v3082_v44  ;;  %v3316_v17 = vadd.f32 %v9019_v16, %v3290_v25  ;;  %v3395_v11 = vmul.f32 %v5667_v19, %v9032_v46 }
 0x253   :  { %v2873_v31 = vadd.f32 %v2848_v57, %v2821_v35  ;;  %3809 = vmatpush1.msra.mxu1 %v3784_v18  ;;  %v3629_v4 = vadd.f32 %v3604_v33, %v3577_v12  ;;  %v3108_v59 = vmul.f32 %v5673_v21, %v9013_v52  ;;  %v3447_v8 = vmul.f32 %v5668_v3, %v9035_v37 }
 0x254   :  { %v3499_v63 = vmul.f32 %v5669_v30, %v9049_v42  ;;  %3810 = vmatprep.subr.mxu1 %v6135_v0  ;;  %v3159_v40 = vmul.f32 0.2, %v3134_v58  ;;  %v3368_v38 = vadd.f32 %v3343_v51, %v3316_v17  ;;  %v3551_v26 = vmul.f32 %v5670_v54, %v9052_v28  ;;  %v5677_v54 = vld [vmem:[%s11620_s0 + $0x2a8] sm:$0xff]  ;;  %v5679_v51 = vld [vmem:[%s11620_s0 + $0x438] sm:$0xff] }
 0x255   :  { %v2925_v24 = vadd.f32 %v2900_v7, %v2873_v31  ;;  %v3681_v5 = vadd.f32 %v3656_v23, %v3629_v4  ;;  %v3603_v33 = vmul.f32 %v5671_v53, %v9056_v20  ;;  %v2690_v19 = vmul.f32 %v5674_v60, %v8934_v27 }
 0x256   :  { %v2743_v13 = vmul.f32 %v5675_v45, %v8947_v39  ;;  %v3184_v22 = vmax.f32 %v3134_v58, %v3159_v40  ;;  %v3420_v50 = vadd.f32 %v3395_v11, %v3368_v38  ;;  %v3655_v62 = vmul.f32 %v5672_v55, %v9059_v14  ;;  %v5680_v55 = vld [vmem:[%s11620_s0 + $0x500] sm:$0xff] }
 0x257   :  { %v2977_v61 = vadd.f32 %v2952_v56, %v2925_v24  ;;  %v3733_v23 = vadd.f32 %v3708_v34, %v3681_v5  ;;  %v3707_v3 = vmul.f32 %v5673_v21, %v9062_v6  ;;  %v2716_v57 = vadd.f32 %v8944_v10, %v2690_v19  ;;  %v5678_v34 = vld [vmem:[%s11620_s0 + $0x370] sm:$0xff] }
 0x258   :  { %v2795_v9 = vmul.f32 %v5676_v49, %v8956_v43  ;;  %3212 = vmatpush1.msra.mxu0 %v3184_v22  ;;  %v3472_v7 = vadd.f32 %v3447_v8, %v3420_v50  ;;  %v2847_v56 = vmul.f32 %v5677_v54, %v8967_v41  ;;  %v2899_v44 = vmul.f32 %v5678_v34, %v8973_v48  ;;  %v5682_v24 = vld [vmem:[%s11620_s0 + $0x690] sm:$0xff]  ;;  %v5683_v22 = vld [vmem:[%s11620_s0 + $0x48] sm:$0xff] }
 0x259   :  { %v3029_v30 = vadd.f32 %v3004_v32, %v2977_v61  ;;  %v3758_v35 = vmul.f32 0.2, %v3733_v23  ;;  %3213 = vmatprep.subr.mxu0 %v6135_v0  ;;  %v2768_v25 = vadd.f32 %v2743_v13, %v2716_v57  ;;  %v2951_v18 = vmul.f32 %v5679_v51, %v8982_v47 }
 0x25a   :  { %v3289_v12 = vmul.f32 %v5674_v60, %v9016_v29  ;;  %v3524_v32 = vadd.f32 %v3499_v63, %v3472_v7  ;;  %v3003_v58 = vmul.f32 %v5680_v55, %v9004_v15  ;;  %v3342_v31 = vmul.f32 %v5675_v45, %v9022_v2 }
 0x25b   :  { %v3081_v53 = vadd.f32 %v3056_v36, %v3029_v30  ;;  %v3783_v17 = vmax.f32 %v3733_v23, %v3758_v35  ;;  %v2820_v11 = vadd.f32 %v2795_v9, %v2768_v25  ;;  %v3394_v21 = vmul.f32 %v5676_v49, %v9032_v46  ;;  %v5681_v36 = vld [vmem:[%s11620_s0 + $0x5c8] sm:$0xff]  ;;  %v5684_v49 = vld [vmem:[%s11620_s0 + $0x110] sm:$0xff] }
 0x25c   :  { %v3315_v4 = vadd.f32 %v9019_v16, %v3289_v12  ;;  %v3576_v40 = vadd.f32 %v3551_v26, %v3524_v32  ;;  %v3055_v63 = vmul.f32 %v5681_v36, %v9010_v1  ;;  %v3107_v38 = vmul.f32 %v5682_v24, %v9013_v52  ;;  %v5687_v32 = vld [vmem:[%s11620_s0 + $0x368] sm:$0xff] }
 0x25d   :  { %v3133_v8 = vadd.f32 %v3108_v59, %v3081_v53  ;;  %3811 = vmatpush1.msra.mxu1 %v3783_v17  ;;  %v2872_v5 = vadd.f32 %v2847_v56, %v2820_v11  ;;  %v3446_v19 = vmul.f32 %v5677_v54, %v9035_v37  ;;  %v3498_v59 = vmul.f32 %v5678_v34, %v9049_v42  ;;  %v5685_v54 = vld [vmem:[%s11620_s0 + $0x1d8] sm:$0xff] }
 0x25e   :  { %v3367_v60 = vadd.f32 %v3342_v31, %v3315_v4  ;;  %3812 = vmatprep.subr.mxu1 %v6135_v0  ;;  %v3628_v45 = vadd.f32 %v3603_v33, %v3576_v40  ;;  %v3550_v13 = vmul.f32 %v5679_v51, %v9052_v28  ;;  %v2689_v61 = vmul.f32 %v5683_v22, %v8934_v27 }
 0x25f   :  { %v3158_v26 = vmul.f32 0.2, %v3133_v8  ;;  %v2924_v50 = vadd.f32 %v2899_v44, %v2872_v5  ;;  %v3602_v57 = vmul.f32 %v5680_v55, %v9056_v20  ;;  %v2742_v9 = vmul.f32 %v5684_v49, %v8947_v39 }
 0x260   :  { %v3419_v23 = vadd.f32 %v3394_v21, %v3367_v60  ;;  %v3680_v33 = vadd.f32 %v3655_v62, %v3628_v45  ;;  %v2715_v7 = vadd.f32 %v8944_v10, %v2689_v61  ;;  %v2794_v56 = vmul.f32 %v5685_v54, %v8956_v43  ;;  %v5686_v62 = vld [vmem:[%s11620_s0 + $0x2a0] sm:$0xff] }
 0x261   :  { %v3183_v30 = vmax.f32 %v3133_v8, %v3158_v26  ;;  %v2976_v34 = vadd.f32 %v2951_v18, %v2924_v50  ;;  %v3654_v35 = vmul.f32 %v5681_v36, %v9059_v14  ;;  %v3706_v25 = vmul.f32 %v5682_v24, %v9062_v6  ;;  %v5689_v8 = vld [vmem:[%s11620_s0 + $0x4f8] sm:$0xff]  ;;  %v5690_v26 = vld [vmem:[%s11620_s0 + $0x5c0] sm:$0xff] }
 0x262   :  { %v3471_v44 = vadd.f32 %v3446_v19, %v3419_v23  ;;  %v3732_v51 = vadd.f32 %v3707_v3, %v3680_v33  ;;  %v2767_v12 = vadd.f32 %v2742_v9, %v2715_v7  ;;  %v2846_v53 = vmul.f32 %v5686_v62, %v8967_v41  ;;  %v5688_v3 = vld [vmem:[%s11620_s0 + $0x430] sm:$0xff]  ;;  %v5692_v33 = vld [vmem:[%s11620_s0 + $0x40] sm:$0xff] }
 0x263   :  { %3214 = vmatpush1.msra.mxu0 %v3183_v30  ;;  %v2898_v18 = vmul.f32 %v5687_v32, %v8973_v48  ;;  %v3028_v55 = vadd.f32 %v3003_v58, %v2976_v34  ;;  %v2950_v17 = vmul.f32 %v5688_v3, %v8982_v47  ;;  %v3288_v11 = vmul.f32 %v5683_v22, %v9016_v29  ;;  %v5691_v22 = vld [vmem:[%s11620_s0 + $0x688] sm:$0xff] }
 0x264   :  { %3215 = vmatprep.subr.mxu0 %v6135_v0  ;;  %v3523_v31 = vadd.f32 %v3498_v59, %v3471_v44  ;;  %v3757_v4 = vmul.f32 0.2, %v3732_v51  ;;  %v2819_v21 = vadd.f32 %v2794_v56, %v2767_v12  ;;  %v3002_v40 = vmul.f32 %v5689_v8, %v9004_v15  ;;  %v5693_v56 = vld [vmem:[%s11620_s0 + $0x108] sm:$0xff] }
 0x265   :  { %v3341_v36 = vmul.f32 %v5684_v49, %v9022_v2  ;;  %v3080_v58 = vadd.f32 %v3055_v63, %v3028_v55  ;;  %v3314_v5 = vadd.f32 %v9019_v16, %v3288_v11  ;;  %v3393_v60 = vmul.f32 %v5685_v54, %v9032_v46 }
 0x266   :  { %v3575_v24 = vadd.f32 %v3550_v13, %v3523_v31  ;;  %v3782_v19 = vmax.f32 %v3732_v51, %v3757_v4  ;;  %v2871_v59 = vadd.f32 %v2846_v53, %v2819_v21  ;;  %v3054_v45 = vmul.f32 %v5690_v26, %v9010_v1 }
 0x267   :  { %v3106_v61 = vmul.f32 %v5691_v22, %v9013_v52  ;;  %v3132_v63 = vadd.f32 %v3107_v38, %v3080_v58  ;;  %v3366_v50 = vadd.f32 %v3341_v36, %v3314_v5  ;;  %v3445_v23 = vmul.f32 %v5686_v62, %v9035_v37  ;;  %v5694_v62 = vld [vmem:[%s11620_s0 + $0x1d0] sm:$0xff] }
 0x268   :  { %v3627_v13 = vadd.f32 %v3602_v57, %v3575_v24  ;;  %3813 = vmatpush1.msra.mxu1 %v3782_v19  ;;  %v2923_v49 = vadd.f32 %v2898_v18, %v2871_v59  ;;  %v3497_v9 = vmul.f32 %v5687_v32, %v9049_v42  ;;  %v3549_v30 = vmul.f32 %v5688_v3, %v9052_v28 }
 0x269   :  { %v2688_v7 = vmul.f32 %v5692_v33, %v8934_v27  ;;  %3814 = vmatprep.subr.mxu1 %v6135_v0  ;;  %v3157_v54 = vmul.f32 0.2, %v3132_v63  ;;  %v3418_v57 = vadd.f32 %v3393_v60, %v3366_v50  ;;  %v2741_v34 = vmul.f32 %v5693_v56, %v8947_v39 }
 0x26a   :  { %v3679_v38 = vadd.f32 %v3654_v35, %v3627_v13  ;;  %v2975_v44 = vadd.f32 %v2950_v17, %v2923_v49  ;;  %v3601_v51 = vmul.f32 %v5689_v8, %v9056_v20  ;;  %v2793_v53 = vmul.f32 %v5694_v62, %v8956_v43  ;;  %v5695_v17 = vld [vmem:[%s11620_s0 + $0x298] sm:$0xff] }
 0x26b   :  { %v2714_v12 = vadd.f32 %v8944_v10, %v2688_v7  ;;  %v3182_v32 = vmax.f32 %v3132_v63, %v3157_v54  ;;  %v3470_v18 = vadd.f32 %v3445_v23, %v3418_v57  ;;  %v3653_v55 = vmul.f32 %v5690_v26, %v9059_v14  ;;  %v5699_v13 = vld [vmem:[%s11620_s0 + $0x5b8] sm:$0xff] }
 0x26c   :  { %v3731_v35 = vadd.f32 %v3706_v25, %v3679_v38  ;;  %v3027_v31 = vadd.f32 %v3002_v40, %v2975_v44  ;;  %v3705_v3 = vmul.f32 %v5691_v22, %v9062_v6  ;;  %v2845_v4 = vmul.f32 %v5695_v17, %v8967_v41  ;;  %v5696_v25 = vld [vmem:[%s11620_s0 + $0x360] sm:$0xff]  ;;  %v5697_v40 = vld [vmem:[%s11620_s0 + $0x428] sm:$0xff]  ;;  %v5698_v22 = vld [vmem:[%s11620_s0 + $0x4f0] sm:$0xff] }
 0x26d   :  { %v2766_v11 = vadd.f32 %v2741_v34, %v2714_v12  ;;  %3216 = vmatpush1.msra.mxu0 %v3182_v32  ;;  %v3522_v8 = vadd.f32 %v3497_v9, %v3470_v18  ;;  %v2897_v36 = vmul.f32 %v5696_v25, %v8973_v48  ;;  %v2949_v58 = vmul.f32 %v5697_v40, %v8982_v47  ;;  %v5701_v12 = vld [vmem:[%s11620_s0 + $0x38] sm:$0xff] }
 0x26e   :  { %v3756_v21 = vmul.f32 0.2, %v3731_v35  ;;  %3217 = vmatprep.subr.mxu0 %v6135_v0  ;;  %v3079_v24 = vadd.f32 %v3054_v45, %v3027_v31  ;;  %v3287_v60 = vmul.f32 %v5692_v33, %v9016_v29  ;;  %v3340_v19 = vmul.f32 %v5693_v56, %v9022_v2  ;;  %v5700_v33 = vld [vmem:[%s11620_s0 + $0x680] sm:$0xff] }
 0x26f   :  { %v2818_v5 = vadd.f32 %v2793_v53, %v2766_v11  ;;  %v3574_v26 = vadd.f32 %v3549_v30, %v3522_v8  ;;  %v3001_v63 = vmul.f32 %v5698_v22, %v9004_v15  ;;  %v3053_v50 = vmul.f32 %v5699_v13, %v9010_v1  ;;  %v5702_v53 = vld [vmem:[%s11620_s0 + $0x100] sm:$0xff] }
 0x270   :  { %v3781_v59 = vmax.f32 %v3731_v35, %v3756_v21  ;;  %v3131_v45 = vadd.f32 %v3106_v61, %v3079_v24  ;;  %v3313_v49 = vadd.f32 %v9019_v16, %v3287_v60  ;;  %v3392_v9 = vmul.f32 %v5694_v62, %v9032_v46  ;;  %v5703_v21 = vld [vmem:[%s11620_s0 + $0x1c8] sm:$0xff] }
 0x271   :  { %v2870_v23 = vadd.f32 %v2845_v4, %v2818_v5  ;;  %v3626_v30 = vadd.f32 %v3601_v51, %v3574_v26  ;;  %v3105_v7 = vmul.f32 %v5700_v33, %v9013_v52  ;;  %v3444_v54 = vmul.f32 %v5695_v17, %v9035_v37 }
 0x272   :  { %3815 = vmatpush1.msra.mxu1 %v3781_v59  ;;  %v3496_v38 = vmul.f32 %v5696_v25, %v9049_v42  ;;  %v3156_v61 = vmul.f32 0.2, %v3131_v45  ;;  %v3365_v56 = vadd.f32 %v3340_v19, %v3313_v49  ;;  %v3548_v34 = vmul.f32 %v5697_v40, %v9052_v28  ;;  %v5704_v40 = vld [vmem:[%s11620_s0 + $0x290] sm:$0xff]  ;;  %v5706_v19 = vld [vmem:[%s11620_s0 + $0x420] sm:$0xff] }
 0x273   :  { %3816 = vmatprep.subr.mxu1 %v6135_v0  ;;  %v2922_v57 = vadd.f32 %v2897_v36, %v2870_v23  ;;  %v3678_v44 = vadd.f32 %v3653_v55, %v3626_v30  ;;  %v3600_v51 = vmul.f32 %v5698_v22, %v9056_v20  ;;  %v2687_v62 = vmul.f32 %v5701_v12, %v8934_v27 }
 0x274   :  { %v2740_v32 = vmul.f32 %v5702_v53, %v8947_v39  ;;  %v3181_v35 = vmax.f32 %v3131_v45, %v3156_v61  ;;  %v3417_v31 = vadd.f32 %v3392_v9, %v3365_v56  ;;  %v3652_v11 = vmul.f32 %v5699_v13, %v9059_v14  ;;  %v5707_v13 = vld [vmem:[%s11620_s0 + $0x4e8] sm:$0xff] }
 0x275   :  { %v2974_v18 = vadd.f32 %v2949_v58, %v2922_v57  ;;  %v3730_v55 = vadd.f32 %v3705_v3, %v3678_v44  ;;  %v3704_v17 = vmul.f32 %v5700_v33, %v9062_v6  ;;  %v2713_v4 = vadd.f32 %v8944_v10, %v2687_v62  ;;  %v5705_v3 = vld [vmem:[%s11620_s0 + $0x358] sm:$0xff] }
 0x276   :  { %v2792_v8 = vmul.f32 %v5703_v21, %v8956_v43  ;;  %3218 = vmatpush1.msra.mxu0 %v3181_v35  ;;  %v3469_v36 = vadd.f32 %v3444_v54, %v3417_v31  ;;  %v2844_v58 = vmul.f32 %v5704_v40, %v8967_v41  ;;  %v2896_v24 = vmul.f32 %v5705_v3, %v8973_v48  ;;  %v5709_v57 = vld [vmem:[%s11620_s0 + $0x678] sm:$0xff]  ;;  %v5710_v35 = vld [vmem:[%s11620_s0 + $0x30] sm:$0xff] }
 0x277   :  { %v3026_v25 = vadd.f32 %v3001_v63, %v2974_v18  ;;  %v3755_v5 = vmul.f32 0.2, %v3730_v55  ;;  %3219 = vmatprep.subr.mxu0 %v6135_v0  ;;  %v2765_v60 = vadd.f32 %v2740_v32, %v2713_v4  ;;  %v2948_v59 = vmul.f32 %v5706_v19, %v8982_v47 }
 0x278   :  { %v3286_v26 = vmul.f32 %v5701_v12, %v9016_v29  ;;  %v3521_v63 = vadd.f32 %v3496_v38, %v3469_v36  ;;  %v3000_v45 = vmul.f32 %v5707_v13, %v9004_v15  ;;  %v3339_v23 = vmul.f32 %v5702_v53, %v9022_v2 }
 0x279   :  { %v3078_v22 = vadd.f32 %v3053_v50, %v3026_v25  ;;  %v3780_v49 = vmax.f32 %v3730_v55, %v3755_v5  ;;  %v2817_v9 = vadd.f32 %v2792_v8, %v2765_v60  ;;  %v3391_v33 = vmul.f32 %v5703_v21, %v9032_v46  ;;  %v5708_v50 = vld [vmem:[%s11620_s0 + $0x5b0] sm:$0xff]  ;;  %v5711_v21 = vld [vmem:[%s11620_s0 + $0xf8] sm:$0xff] }
 0x27a   :  { %v3312_v30 = vadd.f32 %v9019_v16, %v3286_v26  ;;  %v3573_v61 = vadd.f32 %v3548_v34, %v3521_v63  ;;  %v3052_v38 = vmul.f32 %v5708_v50, %v9010_v1  ;;  %v3104_v56 = vmul.f32 %v5709_v57, %v9013_v52  ;;  %v5714_v63 = vld [vmem:[%s11620_s0 + $0x350] sm:$0xff] }
 0x27b   :  { %v3130_v54 = vadd.f32 %v3105_v7, %v3078_v22  ;;  %3817 = vmatpush1.msra.mxu1 %v3780_v49  ;;  %v2869_v44 = vadd.f32 %v2844_v58, %v2817_v9  ;;  %v3443_v62 = vmul.f32 %v5704_v40, %v9035_v37  ;;  %v3495_v7 = vmul.f32 %v5705_v3, %v9049_v42  ;;  %v5712_v40 = vld [vmem:[%s11620_s0 + $0x1c0] sm:$0xff] }
 0x27c   :  { %v3364_v12 = vadd.f32 %v3339_v23, %v3312_v30  ;;  %3818 = vmatprep.subr.mxu1 %v6135_v0  ;;  %v3625_v53 = vadd.f32 %v3600_v51, %v3573_v61  ;;  %v3547_v32 = vmul.f32 %v5706_v19, %v9052_v28  ;;  %v2686_v18 = vmul.f32 %v5710_v35, %v8934_v27 }
 0x27d   :  { %v3155_v34 = vmul.f32 0.2, %v3130_v54  ;;  %v2921_v31 = vadd.f32 %v2896_v24, %v2869_v44  ;;  %v3599_v4 = vmul.f32 %v5707_v13, %v9056_v20  ;;  %v2739_v8 = vmul.f32 %v5711_v21, %v8947_v39 }
 0x27e   :  { %v3416_v55 = vadd.f32 %v3391_v33, %v3364_v12  ;;  %v3677_v51 = vadd.f32 %v3652_v11, %v3625_v53  ;;  %v2712_v36 = vadd.f32 %v8944_v10, %v2686_v18  ;;  %v2791_v58 = vmul.f32 %v5712_v40, %v8956_v43  ;;  %v5713_v11 = vld [vmem:[%s11620_s0 + $0x288] sm:$0xff] }
 0x27f   :  { %v3180_v25 = vmax.f32 %v3130_v54, %v3155_v34  ;;  %v2973_v3 = vadd.f32 %v2948_v59, %v2921_v31  ;;  %v3651_v5 = vmul.f32 %v5708_v50, %v9059_v14  ;;  %v3703_v60 = vmul.f32 %v5709_v57, %v9062_v6  ;;  %v5716_v54 = vld [vmem:[%s11620_s0 + $0x4e0] sm:$0xff]  ;;  %v5717_v34 = vld [vmem:[%s11620_s0 + $0x5a8] sm:$0xff] }
 0x280   :  { %v3468_v24 = vadd.f32 %v3443_v62, %v3416_v55  ;;  %v3729_v19 = vadd.f32 %v3704_v17, %v3677_v51  ;;  %v2764_v26 = vadd.f32 %v2739_v8, %v2712_v36  ;;  %v2843_v22 = vmul.f32 %v5713_v11, %v8967_v41  ;;  %v5715_v17 = vld [vmem:[%s11620_s0 + $0x418] sm:$0xff]  ;;  %v5719_v51 = vld [vmem:[%s11620_s0 + $0x28] sm:$0xff] }
 0x281   :  { %3220 = vmatpush1.msra.mxu0 %v3180_v25  ;;  %v2895_v59 = vmul.f32 %v5714_v63, %v8973_v48  ;;  %v3025_v13 = vadd.f32 %v3000_v45, %v2973_v3  ;;  %v2947_v49 = vmul.f32 %v5715_v17, %v8982_v47  ;;  %v3285_v9 = vmul.f32 %v5710_v35, %v9016_v29  ;;  %v5718_v35 = vld [vmem:[%s11620_s0 + $0x670] sm:$0xff] }
 0x282   :  { %3221 = vmatprep.subr.mxu0 %v6135_v0  ;;  %v3520_v23 = vadd.f32 %v3495_v7, %v3468_v24  ;;  %v3754_v30 = vmul.f32 0.2, %v3729_v19  ;;  %v2816_v33 = vadd.f32 %v2791_v58, %v2764_v26  ;;  %v2999_v61 = vmul.f32 %v5716_v54, %v9004_v15  ;;  %v5720_v58 = vld [vmem:[%s11620_s0 + $0xf0] sm:$0xff] }
 0x283   :  { %v3338_v50 = vmul.f32 %v5711_v21, %v9022_v2  ;;  %v3077_v45 = vadd.f32 %v3052_v38, %v3025_v13  ;;  %v3311_v44 = vadd.f32 %v9019_v16, %v3285_v9  ;;  %v3390_v12 = vmul.f32 %v5712_v40, %v9032_v46 }
 0x284   :  { %v3572_v57 = vadd.f32 %v3547_v32, %v3520_v23  ;;  %v3779_v62 = vmax.f32 %v3729_v19, %v3754_v30  ;;  %v2868_v7 = vadd.f32 %v2843_v22, %v2816_v33  ;;  %v3051_v53 = vmul.f32 %v5717_v34, %v9010_v1 }
 0x285   :  { %v3103_v18 = vmul.f32 %v5718_v35, %v9013_v52  ;;  %v3129_v38 = vadd.f32 %v3104_v56, %v3077_v45  ;;  %v3363_v31 = vadd.f32 %v3338_v50, %v3311_v44  ;;  %v3442_v55 = vmul.f32 %v5713_v11, %v9035_v37  ;;  %v5721_v11 = vld [vmem:[%s11620_s0 + $0x1b8] sm:$0xff] }
 0x286   :  { %v3624_v32 = vadd.f32 %v3599_v4, %v3572_v57  ;;  %3819 = vmatpush1.msra.mxu1 %v3779_v62  ;;  %v2920_v21 = vadd.f32 %v2895_v59, %v2868_v7  ;;  %v3494_v8 = vmul.f32 %v5714_v63, %v9049_v42  ;;  %v3546_v25 = vmul.f32 %v5715_v17, %v9052_v28 }
 0x287   :  { %v2685_v36 = vmul.f32 %v5719_v51, %v8934_v27  ;;  %3820 = vmatprep.subr.mxu1 %v6135_v0  ;;  %v3154_v40 = vmul.f32 0.2, %v3129_v38  ;;  %v3415_v4 = vadd.f32 %v3390_v12, %v3363_v31  ;;  %v2738_v3 = vmul.f32 %v5720_v58, %v8947_v39 }
 0x288   :  { %v3676_v56 = vadd.f32 %v3651_v5, %v3624_v32  ;;  %v2972_v24 = vadd.f32 %v2947_v49, %v2920_v21  ;;  %v3598_v19 = vmul.f32 %v5716_v54, %v9056_v20  ;;  %v2790_v22 = vmul.f32 %v5721_v11, %v8956_v43  ;;  %v5722_v49 = vld [vmem:[%s11620_s0 + $0x280] sm:$0xff] }
 0x289   :  { %v2711_v26 = vadd.f32 %v8944_v10, %v2685_v36  ;;  %v3179_v63 = vmax.f32 %v3129_v38, %v3154_v40  ;;  %v3467_v59 = vadd.f32 %v3442_v55, %v3415_v4  ;;  %v3650_v13 = vmul.f32 %v5717_v34, %v9059_v14  ;;  %v5726_v32 = vld [vmem:[%s11620_s0 + $0x5a0] sm:$0xff] }
 0x28a   :  { %v3728_v5 = vadd.f32 %v3703_v60, %v3676_v56  ;;  %v3024_v23 = vadd.f32 %v2999_v61, %v2972_v24  ;;  %v3702_v17 = vmul.f32 %v5718_v35, %v9062_v6  ;;  %v2842_v30 = vmul.f32 %v5722_v49, %v8967_v41  ;;  %v5723_v60 = vld [vmem:[%s11620_s0 + $0x348] sm:$0xff]  ;;  %v5724_v61 = vld [vmem:[%s11620_s0 + $0x410] sm:$0xff]  ;;  %v5725_v35 = vld [vmem:[%s11620_s0 + $0x4d8] sm:$0xff] }
 0x28b   :  { %v2763_v9 = vadd.f32 %v2738_v3, %v2711_v26  ;;  %3222 = vmatpush1.msra.mxu0 %v3179_v63  ;;  %v3519_v54 = vadd.f32 %v3494_v8, %v3467_v59  ;;  %v2894_v50 = vmul.f32 %v5723_v60, %v8973_v48  ;;  %v2946_v45 = vmul.f32 %v5724_v61, %v8982_v47  ;;  %v5728_v26 = vld [vmem:[%s11620_s0 + $0x20] sm:$0xff] }
 0x28c   :  { %v3753_v33 = vmul.f32 0.2, %v3728_v5  ;;  %3223 = vmatprep.subr.mxu0 %v6135_v0  ;;  %v3076_v57 = vadd.f32 %v3051_v53, %v3024_v23  ;;  %v3284_v12 = vmul.f32 %v5719_v51, %v9016_v29  ;;  %v3337_v62 = vmul.f32 %v5720_v58, %v9022_v2  ;;  %v5727_v51 = vld [vmem:[%s11620_s0 + $0x668] sm:$0xff] }
 0x28d   :  { %v2815_v44 = vadd.f32 %v2790_v22, %v2763_v9  ;;  %v3571_v34 = vadd.f32 %v3546_v25, %v3519_v54  ;;  %v2998_v38 = vmul.f32 %v5725_v35, %v9004_v15  ;;  %v3050_v31 = vmul.f32 %v5726_v32, %v9010_v1  ;;  %v5729_v22 = vld [vmem:[%s11620_s0 + $0xe8] sm:$0xff] }
 0x28e   :  { %v3778_v7 = vmax.f32 %v3728_v5, %v3753_v33  ;;  %v3128_v53 = vadd.f32 %v3103_v18, %v3076_v57  ;;  %v3310_v21 = vadd.f32 %v9019_v16, %v3284_v12  ;;  %v3389_v8 = vmul.f32 %v5721_v11, %v9032_v46  ;;  %v5730_v33 = vld [vmem:[%s11620_s0 + $0x1b0] sm:$0xff] }
 0x28f   :  { %v2867_v55 = vadd.f32 %v2842_v30, %v2815_v44  ;;  %v3623_v25 = vadd.f32 %v3598_v19, %v3571_v34  ;;  %v3102_v36 = vmul.f32 %v5727_v51, %v9013_v52  ;;  %v3441_v40 = vmul.f32 %v5722_v49, %v9035_v37 }
 0x290   :  { %3821 = vmatpush1.msra.mxu1 %v3778_v7  ;;  %v3493_v56 = vmul.f32 %v5723_v60, %v9049_v42  ;;  %v3153_v18 = vmul.f32 0.2, %v3128_v53  ;;  %v3362_v58 = vadd.f32 %v3337_v62, %v3310_v21  ;;  %v3545_v3 = vmul.f32 %v5724_v61, %v9052_v28  ;;  %v5731_v61 = vld [vmem:[%s11620_s0 + $0x278] sm:$0xff]  ;;  %v5733_v62 = vld [vmem:[%s11620_s0 + $0x408] sm:$0xff] }
 0x291   :  { %3822 = vmatprep.subr.mxu1 %v6135_v0  ;;  %v2919_v4 = vadd.f32 %v2894_v50, %v2867_v55  ;;  %v3675_v24 = vadd.f32 %v3650_v13, %v3623_v25  ;;  %v3597_v19 = vmul.f32 %v5725_v35, %v9056_v20  ;;  %v2684_v11 = vmul.f32 %v5728_v26, %v8934_v27 }
 0x292   :  { %v2737_v63 = vmul.f32 %v5729_v22, %v8947_v39  ;;  %v3178_v5 = vmax.f32 %v3128_v53, %v3153_v18  ;;  %v3414_v23 = vadd.f32 %v3389_v8, %v3362_v58  ;;  %v3649_v9 = vmul.f32 %v5726_v32, %v9059_v14  ;;  %v5734_v32 = vld [vmem:[%s11620_s0 + $0x4d0] sm:$0xff] }
 0x293   :  { %v2971_v59 = vadd.f32 %v2946_v45, %v2919_v4  ;;  %v3727_v13 = vadd.f32 %v3702_v17, %v3675_v24  ;;  %v3701_v49 = vmul.f32 %v5727_v51, %v9062_v6  ;;  %v2710_v30 = vadd.f32 %v8944_v10, %v2684_v11  ;;  %v5732_v17 = vld [vmem:[%s11620_s0 + $0x340] sm:$0xff] }
 0x294   :  { %v2789_v54 = vmul.f32 %v5730_v33, %v8956_v43  ;;  %3224 = vmatpush1.msra.mxu0 %v3178_v5  ;;  %v3466_v50 = vadd.f32 %v3441_v40, %v3414_v23  ;;  %v2841_v45 = vmul.f32 %v5731_v61, %v8967_v41  ;;  %v2893_v57 = vmul.f32 %v5732_v17, %v8973_v48  ;;  %v5736_v4 = vld [vmem:[%s11620_s0 + $0x660] sm:$0xff]  ;;  %v5737_v5 = vld [vmem:[%s11620_s0 + $0x18] sm:$0xff] }
 0x295   :  { %v3023_v60 = vadd.f32 %v2998_v38, %v2971_v59  ;;  %v3752_v44 = vmul.f32 0.2, %v3727_v13  ;;  %3225 = vmatprep.subr.mxu0 %v6135_v0  ;;  %v2762_v12 = vadd.f32 %v2737_v63, %v2710_v30  ;;  %v2945_v7 = vmul.f32 %v5733_v62, %v8982_v47 }
 0x296   :  { %v3283_v34 = vmul.f32 %v5728_v26, %v9016_v29  ;;  %v3518_v38 = vadd.f32 %v3493_v56, %v3466_v50  ;;  %v2997_v53 = vmul.f32 %v5734_v32, %v9004_v15  ;;  %v3336_v55 = vmul.f32 %v5729_v22, %v9022_v2 }
 0x297   :  { %v3075_v35 = vadd.f32 %v3050_v31, %v3023_v60  ;;  %v3777_v21 = vmax.f32 %v3727_v13, %v3752_v44  ;;  %v2814_v8 = vadd.f32 %v2789_v54, %v2762_v12  ;;  %v3388_v51 = vmul.f32 %v5730_v33, %v9032_v46  ;;  %v5735_v31 = vld [vmem:[%s11620_s0 + $0x598] sm:$0xff]  ;;  %v5738_v33 = vld [vmem:[%s11620_s0 + $0xe0] sm:$0xff] }
 0x298   :  { %v3309_v25 = vadd.f32 %v9019_v16, %v3283_v34  ;;  %v3570_v18 = vadd.f32 %v3545_v3, %v3518_v38  ;;  %v3049_v56 = vmul.f32 %v5735_v31, %v9010_v1  ;;  %v3101_v58 = vmul.f32 %v5736_v4, %v9013_v52  ;;  %v5741_v38 = vld [vmem:[%s11620_s0 + $0x338] sm:$0xff] }
 0x299   :  { %v3127_v40 = vadd.f32 %v3102_v36, %v3075_v35  ;;  %3823 = vmatpush1.msra.mxu1 %v3777_v21  ;;  %v2866_v24 = vadd.f32 %v2841_v45, %v2814_v8  ;;  %v3440_v11 = vmul.f32 %v5731_v61, %v9035_v37  ;;  %v3492_v36 = vmul.f32 %v5732_v17, %v9049_v42  ;;  %v5739_v61 = vld [vmem:[%s11620_s0 + $0x1a8] sm:$0xff] }
 0x29a   :  { %v3361_v26 = vadd.f32 %v3336_v55, %v3309_v25  ;;  %3824 = vmatprep.subr.mxu1 %v6135_v0  ;;  %v3622_v22 = vadd.f32 %v3597_v19, %v3570_v18  ;;  %v3544_v63 = vmul.f32 %v5733_v62, %v9052_v28  ;;  %v2683_v59 = vmul.f32 %v5737_v5, %v8934_v27 }
 0x29b   :  { %v3152_v3 = vmul.f32 0.2, %v3127_v40  ;;  %v2918_v23 = vadd.f32 %v2893_v57, %v2866_v24  ;;  %v3596_v30 = vmul.f32 %v5734_v32, %v9056_v20  ;;  %v2736_v54 = vmul.f32 %v5738_v33, %v8947_v39 }
 0x29c   :  { %v3413_v13 = vadd.f32 %v3388_v51, %v3361_v26  ;;  %v3674_v19 = vadd.f32 %v3649_v9, %v3622_v22  ;;  %v2709_v50 = vadd.f32 %v8944_v10, %v2683_v59  ;;  %v2788_v45 = vmul.f32 %v5739_v61, %v8956_v43  ;;  %v5740_v9 = vld [vmem:[%s11620_s0 + $0x270] sm:$0xff] }
 0x29d   :  { %v3177_v60 = vmax.f32 %v3127_v40, %v3152_v3  ;;  %v2970_v17 = vadd.f32 %v2945_v7, %v2918_v23  ;;  %v3648_v44 = vmul.f32 %v5735_v31, %v9059_v14  ;;  %v3700_v12 = vmul.f32 %v5736_v4, %v9062_v6  ;;  %v5743_v40 = vld [vmem:[%s11620_s0 + $0x4c8] sm:$0xff]  ;;  %v5744_v3 = vld [vmem:[%s11620_s0 + $0x590] sm:$0xff] }
 0x29e   :  { %v3465_v57 = vadd.f32 %v3440_v11, %v3413_v13  ;;  %v3726_v62 = vadd.f32 %v3701_v49, %v3674_v19  ;;  %v2761_v34 = vadd.f32 %v2736_v54, %v2709_v50  ;;  %v2840_v35 = vmul.f32 %v5740_v9, %v8967_v41  ;;  %v5742_v49 = vld [vmem:[%s11620_s0 + $0x400] sm:$0xff]  ;;  %v5746_v19 = vld [vmem:[%s11620_s0 + $0x10] sm:$0xff] }
 0x29f   :  { %3226 = vmatpush1.msra.mxu0 %v3177_v60  ;;  %v2892_v7 = vmul.f32 %v5741_v38, %v8973_v48  ;;  %v3022_v32 = vadd.f32 %v2997_v53, %v2970_v17  ;;  %v2944_v21 = vmul.f32 %v5742_v49, %v8982_v47  ;;  %v3282_v8 = vmul.f32 %v5737_v5, %v9016_v29  ;;  %v5745_v5 = vld [vmem:[%s11620_s0 + $0x658] sm:$0xff] }
 0x2a0   :  { %3227 = vmatprep.subr.mxu0 %v6135_v0  ;;  %v3517_v55 = vadd.f32 %v3492_v36, %v3465_v57  ;;  %v3751_v25 = vmul.f32 0.2, %v3726_v62  ;;  %v2813_v51 = vadd.f32 %v2788_v45, %v2761_v34  ;;  %v2996_v18 = vmul.f32 %v5743_v40, %v9004_v15  ;;  %v5747_v45 = vld [vmem:[%s11620_s0 + $0xd8] sm:$0xff] }
 0x2a1   :  { %v3335_v31 = vmul.f32 %v5738_v33, %v9022_v2  ;;  %v3074_v53 = vadd.f32 %v3049_v56, %v3022_v32  ;;  %v3308_v24 = vadd.f32 %v9019_v16, %v3282_v8  ;;  %v3387_v26 = vmul.f32 %v5739_v61, %v9032_v46 }
 0x2a2   :  { %v3569_v4 = vadd.f32 %v3544_v63, %v3517_v55  ;;  %v3776_v11 = vmax.f32 %v3726_v62, %v3751_v25  ;;  %v2865_v36 = vadd.f32 %v2840_v35, %v2813_v51  ;;  %v3048_v22 = vmul.f32 %v5744_v3, %v9010_v1 }
 0x2a3   :  { %v3100_v59 = vmul.f32 %v5745_v5, %v9013_v52  ;;  %v3126_v56 = vadd.f32 %v3101_v58, %v3074_v53  ;;  %v3360_v23 = vadd.f32 %v3335_v31, %v3308_v24  ;;  %v3439_v13 = vmul.f32 %v5740_v9, %v9035_v37  ;;  %v5748_v9 = vld [vmem:[%s11620_s0 + $0x1a0] sm:$0xff] }
 0x2a4   :  { %v3621_v63 = vadd.f32 %v3596_v30, %v3569_v4  ;;  %3825 = vmatpush1.msra.mxu1 %v3776_v11  ;;  %v2917_v33 = vadd.f32 %v2892_v7, %v2865_v36  ;;  %v3491_v54 = vmul.f32 %v5741_v38, %v9049_v42  ;;  %v3543_v60 = vmul.f32 %v5742_v49, %v9052_v28 }
 0x2a5   :  { %v2682_v50 = vmul.f32 %v5746_v19, %v8934_v27  ;;  %3826 = vmatprep.subr.mxu1 %v6135_v0  ;;  %v3151_v61 = vmul.f32 0.2, %v3126_v56  ;;  %v3412_v30 = vadd.f32 %v3387_v26, %v3360_v23  ;;  %v2735_v17 = vmul.f32 %v5747_v45, %v8947_v39 }
 0x2a6   :  { %v3673_v58 = vadd.f32 %v3648_v44, %v3621_v63  ;;  %v2969_v57 = vadd.f32 %v2944_v21, %v2917_v33  ;;  %v3595_v62 = vmul.f32 %v5743_v40, %v9056_v20  ;;  %v2787_v35 = vmul.f32 %v5748_v9, %v8956_v43  ;;  %v5749_v21 = vld [vmem:[%s11620_s0 + $0x268] sm:$0xff] }
 0x2a7   :  { %v2708_v34 = vadd.f32 %v8944_v10, %v2682_v50  ;;  %v3176_v38 = vmax.f32 %v3126_v56, %v3151_v61  ;;  %v3464_v7 = vadd.f32 %v3439_v13, %v3412_v30  ;;  %v3647_v32 = vmul.f32 %v5744_v3, %v9059_v14  ;;  %v5753_v63 = vld [vmem:[%s11620_s0 + $0x588] sm:$0xff] }
 0x2a8   :  { %v3725_v44 = vadd.f32 %v3700_v12, %v3673_v58  ;;  %v3021_v55 = vadd.f32 %v2996_v18, %v2969_v57  ;;  %v3699_v49 = vmul.f32 %v5745_v5, %v9062_v6  ;;  %v2839_v25 = vmul.f32 %v5749_v21, %v8967_v41  ;;  %v5750_v12 = vld [vmem:[%s11620_s0 + $0x330] sm:$0xff]  ;;  %v5751_v18 = vld [vmem:[%s11620_s0 + $0x3f8] sm:$0xff]  ;;  %v5752_v5 = vld [vmem:[%s11620_s0 + $0x4c0] sm:$0xff] }
 0x2a9   :  { %v2760_v8 = vadd.f32 %v2735_v17, %v2708_v34  ;;  %3228 = vmatpush1.msra.mxu0 %v3176_v38  ;;  %v3516_v40 = vadd.f32 %v3491_v54, %v3464_v7  ;;  %v2891_v31 = vmul.f32 %v5750_v12, %v8973_v48  ;;  %v2943_v53 = vmul.f32 %v5751_v18, %v8982_v47  ;;  %v5755_v34 = vld [vmem:[%s11620_s0 + $0x8] sm:$0xff] }
 0x2aa   :  { %v3750_v51 = vmul.f32 0.2, %v3725_v44  ;;  %3229 = vmatprep.subr.mxu0 %v6135_v0  ;;  %v3073_v4 = vadd.f32 %v3048_v22, %v3021_v55  ;;  %v3281_v26 = vmul.f32 %v5746_v19, %v9016_v29  ;;  %v3334_v11 = vmul.f32 %v5747_v45, %v9022_v2  ;;  %v5754_v19 = vld [vmem:[%s11620_s0 + $0x650] sm:$0xff] }
 0x2ab   :  { %v2812_v24 = vadd.f32 %v2787_v35, %v2760_v8  ;;  %v3568_v3 = vadd.f32 %v3543_v60, %v3516_v40  ;;  %v2995_v56 = vmul.f32 %v5752_v5, %v9004_v15  ;;  %v3047_v23 = vmul.f32 %v5753_v63, %v9010_v1  ;;  %v5756_v35 = vld [vmem:[%s11620_s0 + $0xd0] sm:$0xff] }
 0x2ac   :  { %v3775_v36 = vmax.f32 %v3725_v44, %v3750_v51  ;;  %v3125_v22 = vadd.f32 %v3100_v59, %v3073_v4  ;;  %v3307_v33 = vadd.f32 %v9019_v16, %v3281_v26  ;;  %v3386_v54 = vmul.f32 %v5748_v9, %v9032_v46  ;;  %v5757_v51 = vld [vmem:[%s11620_s0 + $0x198] sm:$0xff] }
 0x2ad   :  { %v2864_v13 = vadd.f32 %v2839_v25, %v2812_v24  ;;  %v3620_v60 = vadd.f32 %v3595_v62, %v3568_v3  ;;  %v3099_v50 = vmul.f32 %v5754_v19, %v9013_v52  ;;  %v3438_v61 = vmul.f32 %v5749_v21, %v9035_v37 }
 0x2ae   :  { %3827 = vmatpush1.msra.mxu1 %v3775_v36  ;;  %v3490_v58 = vmul.f32 %v5750_v12, %v9049_v42  ;;  %v3150_v59 = vmul.f32 0.2, %v3125_v22  ;;  %v3359_v45 = vadd.f32 %v3334_v11, %v3307_v33  ;;  %v3542_v17 = vmul.f32 %v5751_v18, %v9052_v28  ;;  %v5758_v18 = vld [vmem:[%s11620_s0 + $0x260] sm:$0xff]  ;;  %v5760_v11 = vld [vmem:[%s11620_s0 + $0x3f0] sm:$0xff] }
 0x2af   :  { %3828 = vmatprep.subr.mxu1 %v6135_v0  ;;  %v2916_v30 = vadd.f32 %v2891_v31, %v2864_v13  ;;  %v3672_v57 = vadd.f32 %v3647_v32, %v3620_v60  ;;  %v3594_v62 = vmul.f32 %v5752_v5, %v9056_v20  ;;  %v2681_v9 = vmul.f32 %v5755_v34, %v8934_v27 }
 0x2b0   :  { %v2734_v38 = vmul.f32 %v5756_v35, %v8947_v39  ;;  %v3175_v44 = vmax.f32 %v3125_v22, %v3150_v59  ;;  %v3411_v55 = vadd.f32 %v3386_v54, %v3359_v45  ;;  %v3646_v8 = vmul.f32 %v5753_v63, %v9059_v14  ;;  %v5761_v63 = vld [vmem:[%s11620_s0 + $0x4b8] sm:$0xff] }
 0x2b1   :  { %v2968_v7 = vadd.f32 %v2943_v53, %v2916_v30  ;;  %v3724_v32 = vadd.f32 %v3699_v49, %v3672_v57  ;;  %v3698_v21 = vmul.f32 %v5754_v19, %v9062_v6  ;;  %v2707_v25 = vadd.f32 %v8944_v10, %v2681_v9  ;;  %v5759_v49 = vld [vmem:[%s11620_s0 + $0x328] sm:$0xff] }
 0x2b2   :  { %v2786_v40 = vmul.f32 %v5757_v51, %v8956_v43  ;;  %3230 = vmatpush1.msra.mxu0 %v3175_v44  ;;  %v3463_v31 = vadd.f32 %v3438_v61, %v3411_v55  ;;  %v2838_v53 = vmul.f32 %v5758_v18, %v8967_v41  ;;  %v2890_v4 = vmul.f32 %v5759_v49, %v8973_v48  ;;  %v5763_v30 = vld [vmem:[%s11620_s0 + $0x648] sm:$0xff]  ;;  %v5764_v44 = vld [vmem:[%s11620_s0] sm:$0xff] }
 0x2b3   :  { %v3020_v12 = vadd.f32 %v2995_v56, %v2968_v7  ;;  %v3749_v24 = vmul.f32 0.2, %v3724_v32  ;;  %3231 = vmatprep.subr.mxu0 %v6135_v0  ;;  %v2759_v26 = vadd.f32 %v2734_v38, %v2707_v25  ;;  %v2942_v36 = vmul.f32 %v5760_v11, %v8982_v47 }
 0x2b4   :  { %v3280_v3 = vmul.f32 %v5755_v34, %v9016_v29  ;;  %v3515_v56 = vadd.f32 %v3490_v58, %v3463_v31  ;;  %v2994_v22 = vmul.f32 %v5761_v63, %v9004_v15  ;;  %v3333_v13 = vmul.f32 %v5756_v35, %v9022_v2 }
 0x2b5   :  { %v3072_v5 = vadd.f32 %v3047_v23, %v3020_v12  ;;  %v3774_v33 = vmax.f32 %v3724_v32, %v3749_v24  ;;  %v2811_v54 = vadd.f32 %v2786_v40, %v2759_v26  ;;  %v3385_v19 = vmul.f32 %v5757_v51, %v9032_v46  ;;  %v5762_v23 = vld [vmem:[%s11620_s0 + $0x580] sm:$0xff]  ;;  %v5765_v51 = vld [vmem:[%s11620_s0 + $0xc8] sm:$0xff] }
 0x2b6   :  { %v3306_v60 = vadd.f32 %v9019_v16, %v3280_v3  ;;  %v3567_v59 = vadd.f32 %v3542_v17, %v3515_v56  ;;  %v3046_v58 = vmul.f32 %v5762_v23, %v9010_v1  ;;  %v3098_v45 = vmul.f32 %v5763_v30, %v9013_v52  ;;  %v5768_v56 = vld [vmem:[%s11620_s0 + $0x320] sm:$0xff] }
 0x2b7   :  { %v3124_v61 = vadd.f32 %v3099_v50, %v3072_v5  ;;  %3829 = vmatpush1.msra.mxu1 %v3774_v33  ;;  %v2863_v57 = vadd.f32 %v2838_v53, %v2811_v54  ;;  %v3437_v9 = vmul.f32 %v5758_v18, %v9035_v37  ;;  %v3489_v50 = vmul.f32 %v5759_v49, %v9049_v42  ;;  %v5766_v18 = vld [vmem:[%s11620_s0 + $0x190] sm:$0xff] }
 0x2b8   :  { %v3358_v34 = vadd.f32 %v3333_v13, %v3306_v60  ;;  %3830 = vmatprep.subr.mxu1 %v6135_v0  ;;  %v3619_v35 = vadd.f32 %v3594_v62, %v3567_v59  ;;  %v3541_v38 = vmul.f32 %v5760_v11, %v9052_v28  ;;  %v2680_v7 = vmul.f32 %v5764_v44, %v8934_v27 }
 0x2b9   :  { %v3149_v17 = vmul.f32 0.2, %v3124_v61  ;;  %v2915_v55 = vadd.f32 %v2890_v4, %v2863_v57  ;;  %v3593_v25 = vmul.f32 %v5761_v63, %v9056_v20  ;;  %v2733_v40 = vmul.f32 %v5765_v51, %v8947_v39 }
 0x2ba   :  { %v3410_v32 = vadd.f32 %v3385_v19, %v3358_v34  ;;  %v3671_v62 = vadd.f32 %v3646_v8, %v3619_v35  ;;  %v2706_v31 = vadd.f32 %v8944_v10, %v2680_v7  ;;  %v2785_v53 = vmul.f32 %v5766_v18, %v8956_v43  ;;  %v5767_v8 = vld [vmem:[%s11620_s0 + $0x258] sm:$0xff] }
 0x2bb   :  { %v3174_v12 = vmax.f32 %v3124_v61, %v3149_v17  ;;  %v2967_v49 = vadd.f32 %v2942_v36, %v2915_v55  ;;  %v3645_v24 = vmul.f32 %v5762_v23, %v9059_v14  ;;  %v3697_v26 = vmul.f32 %v5763_v30, %v9062_v6  ;;  %v5770_v61 = vld [vmem:[%s11620_s0 + $0x4b0] sm:$0xff]  ;;  %v5771_v17 = vld [vmem:[%s11620_s0 + $0x578] sm:$0xff] }
 0x2bc   :  { %v3462_v4 = vadd.f32 %v3437_v9, %v3410_v32  ;;  %v3723_v11 = vadd.f32 %v3698_v21, %v3671_v62  ;;  %v2758_v3 = vadd.f32 %v2733_v40, %v2706_v31  ;;  %v2837_v5 = vmul.f32 %v5767_v8, %v8967_v41  ;;  %v5769_v21 = vld [vmem:[%s11620_s0 + $0x3e8] sm:$0xff]  ;;  %v5773_v62 = vld [vmem:[%s11620_s0 + $0xc0] sm:$0xf] }
 0x2bd   :  { %3232 = vmatpush1.msra.mxu0 %v3174_v12  ;;  %v2889_v36 = vmul.f32 %v5768_v56, %v8973_v48  ;;  %v3019_v63 = vadd.f32 %v2994_v22, %v2967_v49  ;;  %v2941_v33 = vmul.f32 %v5769_v21, %v8982_v47  ;;  %v3279_v54 = vmul.f32 %v5764_v44, %v9016_v29  ;;  %v5772_v44 = vld [vmem:[%s11620_s0 + $0x640] sm:$0xff] }
 0x2be   :  { %3233 = vmatprep.subr.mxu0 %v6135_v0  ;;  %v3514_v13 = vadd.f32 %v3489_v50, %v3462_v4  ;;  %v3748_v60 = vmul.f32 0.2, %v3723_v11  ;;  %v2810_v19 = vadd.f32 %v2785_v53, %v2758_v3  ;;  %v2993_v59 = vmul.f32 %v5770_v61, %v9004_v15  ;;  %v5774_v53 = vld [vmem:[%s11620_s0 + $0x188] sm:$0xf] }
 0x2bf   :  { %v3332_v23 = vmul.f32 %v5765_v51, %v9022_v2  ;;  %v3071_v22 = vadd.f32 %v3046_v58, %v3019_v63  ;;  %v3305_v57 = vadd.f32 %v9019_v16, %v3279_v54  ;;  %v3384_v34 = vmul.f32 %v5766_v18, %v9032_v46 }
 0x2c0   :  { %v3566_v30 = vadd.f32 %v3541_v38, %v3514_v13  ;;  %v3773_v9 = vmax.f32 %v3723_v11, %v3748_v60  ;;  %v2862_v50 = vadd.f32 %v2837_v5, %v2810_v19  ;;  %v3045_v35 = vmul.f32 %v5771_v17, %v9010_v1 }
 0x2c1   :  { %v3097_v7 = vmul.f32 %v5772_v44, %v9013_v52  ;;  %v3123_v58 = vadd.f32 %v3098_v45, %v3071_v22  ;;  %v3357_v55 = vadd.f32 %v3332_v23, %v3305_v57  ;;  %v3436_v32 = vmul.f32 %v5767_v8, %v9035_v37  ;;  %v5775_v8 = vld [vmem:[%s11620_s0 + $0x250] sm:$0xf] }
 0x2c2   :  { %v3618_v38 = vadd.f32 %v3593_v25, %v3566_v30  ;;  %3831 = vmatpush1.msra.mxu1 %v3773_v9  ;;  %v2914_v51 = vadd.f32 %v2889_v36, %v2862_v50  ;;  %v3488_v40 = vmul.f32 %v5768_v56, %v9049_v42  ;;  %v3540_v12 = vmul.f32 %v5769_v21, %v9052_v28 }
 0x2c3   :  { %v2704_v31 = vmul.f32 %v5773_v62, %v8934_v27  ;;  %3832 = vmatprep.subr.mxu1 %v6135_v0  ;;  %v3148_v18 = vmul.f32 0.2, %v3123_v58  ;;  %v3409_v25 = vadd.f32 %v3384_v34, %v3357_v55  ;;  %v2757_v49 = vmul.f32 %v5774_v53, %v8947_v39 }
 0x2c4   :  { %v3670_v45 = vadd.f32 %v3645_v24, %v3618_v38  ;;  %v2966_v4 = vadd.f32 %v2941_v33, %v2914_v51  ;;  %v3592_v11 = vmul.f32 %v5770_v61, %v9056_v20  ;;  %v2809_v5 = vmul.f32 %v5775_v8, %v8956_v43  ;;  %v5776_v33 = vld [vmem:[%s11620_s0 + $0x318] sm:$0xf] }
 0x2c5   :  { %v2730_v3 = vadd.f32 %v8944_v10, %v2704_v31  ;;  %v3173_v56 = vmax.f32 %v3123_v58, %v3148_v18  ;;  %v3461_v36 = vadd.f32 %v3436_v32, %v3409_v25  ;;  %v3644_v63 = vmul.f32 %v5771_v17, %v9059_v14  ;;  %v5780_v38 = vld [vmem:[%s11620_s0 + $0x638] sm:$0xf] }
 0x2c6   :  { %v3722_v24 = vadd.f32 %v3697_v26, %v3670_v45  ;;  %v3018_v13 = vadd.f32 %v2993_v59, %v2966_v4  ;;  %v3696_v21 = vmul.f32 %v5772_v44, %v9062_v6  ;;  %v2861_v60 = vmul.f32 %v5776_v33, %v8967_v41  ;;  %v5777_v26 = vld [vmem:[%s11620_s0 + $0x3e0] sm:$0xf]  ;;  %v5778_v59 = vld [vmem:[%s11620_s0 + $0x4a8] sm:$0xf]  ;;  %v5779_v44 = vld [vmem:[%s11620_s0 + $0x570] sm:$0xf] }
 0x2c7   :  { %v2782_v54 = vadd.f32 %v2757_v49, %v2730_v3  ;;  %3234 = vmatpush1.msra.mxu0 %v3173_v56  ;;  %v3513_v61 = vadd.f32 %v3488_v40, %v3461_v36  ;;  %v2913_v23 = vmul.f32 %v5777_v26, %v8973_v48  ;;  %v2965_v22 = vmul.f32 %v5778_v59, %v8982_v47  ;;  %v5782_v3 = vld [vmem:[%s11620_s0 + $0xb8] sm:$0xff] }
 0x2c8   :  { %v3747_v19 = vmul.f32 0.2, %v3722_v24  ;;  %3235 = vmatprep.subr.mxu0 %v6135_v0  ;;  %v3070_v30 = vadd.f32 %v3045_v35, %v3018_v13  ;;  %v3303_v34 = vmul.f32 %v5773_v62, %v9016_v29  ;;  %v3356_v9 = vmul.f32 %v5774_v53, %v9022_v2  ;;  %v5781_v62 = vld [vmem:[%s11620_s0 + $0x700] sm:$0xf] }
 0x2c9   :  { %v2834_v57 = vadd.f32 %v2809_v5, %v2782_v54  ;;  %v3565_v17 = vadd.f32 %v3540_v12, %v3513_v61  ;;  %v3017_v58 = vmul.f32 %v5779_v44, %v9004_v15  ;;  %v3069_v55 = vmul.f32 %v5780_v38, %v9010_v1  ;;  %v5783_v5 = vld [vmem:[%s11620_s0 + $0x180] sm:$0xff] }
 0x2ca   :  { %v3772_v50 = vmax.f32 %v3722_v24, %v3747_v19  ;;  %v3122_v35 = vadd.f32 %v3097_v7, %v3070_v30  ;;  %v3329_v51 = vadd.f32 %v9019_v16, %v3303_v34  ;;  %v3408_v40 = vmul.f32 %v5775_v8, %v9032_v46  ;;  %v5784_v19 = vld [vmem:[%s11620_s0 + $0x248] sm:$0xff] }
 0x2cb   :  { %v2886_v32 = vadd.f32 %v2861_v60, %v2834_v57  ;;  %v3617_v12 = vadd.f32 %v3592_v11, %v3565_v17  ;;  %v3121_v31 = vmul.f32 %v5781_v62, %v9013_v52  ;;  %v3460_v18 = vmul.f32 %v5776_v33, %v9035_v37 }
 0x2cc   :  { %3833 = vmatpush1.msra.mxu1 %v3772_v50  ;;  %v3512_v45 = vmul.f32 %v5777_v26, %v9049_v42  ;;  %v3147_v7 = vmul.f32 0.2, %v3122_v35  ;;  %v3381_v53 = vadd.f32 %v3356_v9, %v3329_v51  ;;  %v3564_v49 = vmul.f32 %v5778_v59, %v9052_v28  ;;  %v5785_v59 = vld [vmem:[%s11620_s0 + $0x310] sm:$0xff]  ;;  %v5787_v9 = vld [vmem:[%s11620_s0 + $0x4a0] sm:$0xff] }
 0x2cd   :  { %3834 = vmatprep.subr.mxu1 %v6135_v0  ;;  %v2938_v25 = vadd.f32 %v2913_v23, %v2886_v32  ;;  %v3669_v4 = vadd.f32 %v3644_v63, %v3617_v12  ;;  %v3616_v11 = vmul.f32 %v5779_v44, %v9056_v20  ;;  %v2703_v8 = vmul.f32 %v5782_v3, %v8934_v27 }
 0x2ce   :  { %v2756_v56 = vmul.f32 %v5783_v5, %v8947_v39  ;;  %v3172_v24 = vmax.f32 %v3122_v35, %v3147_v7  ;;  %v3433_v13 = vadd.f32 %v3408_v40, %v3381_v53  ;;  %v3668_v54 = vmul.f32 %v5780_v38, %v9059_v14  ;;  %v5788_v38 = vld [vmem:[%s11620_s0 + $0x568] sm:$0xff] }
 0x2cf   :  { %v2990_v36 = vadd.f32 %v2965_v22, %v2938_v25  ;;  %v3721_v63 = vadd.f32 %v3696_v21, %v3669_v4  ;;  %v3720_v33 = vmul.f32 %v5781_v62, %v9062_v6  ;;  %v2729_v60 = vadd.f32 %v8944_v10, %v2703_v8  ;;  %v5786_v21 = vld [vmem:[%s11620_s0 + $0x3d8] sm:$0xff] }
 0x2d0   :  { %v2808_v61 = vmul.f32 %v5784_v19, %v8956_v43  ;;  %3236 = vmatpush1.msra.mxu0 %v3172_v24  ;;  %v3485_v23 = vadd.f32 %v3460_v18, %v3433_v13  ;;  %v2860_v22 = vmul.f32 %v5785_v59, %v8967_v41  ;;  %v2912_v30 = vmul.f32 %v5786_v21, %v8973_v48  ;;  %v5790_v25 = vld [vmem:[%s11620_s0 + $0x6f8] sm:$0xff]  ;;  %v5791_v24 = vld [vmem:[%s11620_s0 + $0xb0] sm:$0xff] }
 0x2d1   :  { %v3042_v26 = vadd.f32 %v3017_v58, %v2990_v36  ;;  %v3746_v57 = vmul.f32 0.2, %v3721_v63  ;;  %3251 = vmatprep.subr.mxu0 %v6135_v0  ;;  %v2781_v34 = vadd.f32 %v2756_v56, %v2729_v60  ;;  %v2964_v50 = vmul.f32 %v5787_v9, %v8982_v47 }
 0x2d2   :  { %v3302_v17 = vmul.f32 %v5782_v3, %v9016_v29  ;;  %v3537_v58 = vadd.f32 %v3512_v45, %v3485_v23  ;;  %v3016_v35 = vmul.f32 %v5788_v38, %v9004_v15  ;;  %v3355_v32 = vmul.f32 %v5783_v5, %v9022_v2 }
 0x2d3   :  { %v3094_v44 = vadd.f32 %v3069_v55, %v3042_v26  ;;  %v3771_v51 = vmax.f32 %v3721_v63, %v3746_v57  ;;  %v2833_v40 = vadd.f32 %v2808_v61, %v2781_v34  ;;  %v3407_v62 = vmul.f32 %v5784_v19, %v9032_v46  ;;  %v5789_v55 = vld [vmem:[%s11620_s0 + $0x630] sm:$0xff]  ;;  %v5792_v19 = vld [vmem:[%s11620_s0 + $0x178] sm:$0xff] }
 0x2d4   :  { %v3328_v12 = vadd.f32 %v9019_v16, %v3302_v17  ;;  %v3589_v7 = vadd.f32 %v3564_v49, %v3537_v58  ;;  %v3068_v45 = vmul.f32 %v5789_v55, %v9010_v1  ;;  %v3120_v53 = vmul.f32 %v5790_v25, %v9013_v52  ;;  %v5795_v58 = vld [vmem:[%s11620_s0 + $0x3d0] sm:$0xff] }
 0x2d5   :  { %v3146_v18 = vadd.f32 %v3121_v31, %v3094_v44  ;;  %3835 = vmatpush1.msra.mxu1 %v3771_v51  ;;  %v2885_v4 = vadd.f32 %v2860_v22, %v2833_v40  ;;  %v3459_v8 = vmul.f32 %v5785_v59, %v9035_v37  ;;  %v3511_v31 = vmul.f32 %v5786_v21, %v9049_v42  ;;  %v5793_v59 = vld [vmem:[%s11620_s0 + $0x240] sm:$0xff] }
 0x2d6   :  { %v3380_v3 = vadd.f32 %v3355_v32, %v3328_v12  ;;  %3850 = vmatprep.subr.mxu1 %v6135_v0  ;;  %v3641_v5 = vadd.f32 %v3616_v11, %v3589_v7  ;;  %v3563_v56 = vmul.f32 %v5787_v9, %v9052_v28  ;;  %v2702_v36 = vmul.f32 %v5791_v24, %v8934_v27 }
 0x2d7   :  { %v3171_v49 = vmul.f32 0.2, %v3146_v18  ;;  %v2937_v13 = vadd.f32 %v2912_v30, %v2885_v4  ;;  %v3615_v60 = vmul.f32 %v5788_v38, %v9056_v20  ;;  %v2755_v61 = vmul.f32 %v5792_v19, %v8947_v39 }
 0x2d8   :  { %v3432_v63 = vadd.f32 %v3407_v62, %v3380_v3  ;;  %v3693_v11 = vadd.f32 %v3668_v54, %v3641_v5  ;;  %v2728_v23 = vadd.f32 %v8944_v10, %v2702_v36  ;;  %v2807_v22 = vmul.f32 %v5793_v59, %v8956_v43  ;;  %v5794_v54 = vld [vmem:[%s11620_s0 + $0x308] sm:$0xff] }
 0x2d9   :  { %v3196_v26 = vmax.f32 %v3146_v18, %v3171_v49  ;;  %v2989_v21 = vadd.f32 %v2964_v50, %v2937_v13  ;;  %v3667_v57 = vmul.f32 %v5789_v55, %v9059_v14  ;;  %v3719_v34 = vmul.f32 %v5790_v25, %v9062_v6  ;;  %v5797_v18 = vld [vmem:[%s11620_s0 + $0x560] sm:$0xff]  ;;  %v5798_v49 = vld [vmem:[%s11620_s0 + $0x628] sm:$0xff] }
 0x2da   :  { %v3484_v30 = vadd.f32 %v3459_v8, %v3432_v63  ;;  %v3745_v9 = vadd.f32 %v3720_v33, %v3693_v11  ;;  %v2780_v17 = vadd.f32 %v2755_v61, %v2728_v23  ;;  %v2859_v44 = vmul.f32 %v5794_v54, %v8967_v41  ;;  %v5796_v33 = vld [vmem:[%s11620_s0 + $0x498] sm:$0xff]  ;;  %v5800_v11 = vld [vmem:[%s11620_s0 + $0xa8] sm:$0xff] }
 0x2db   :  { %5356 = vmatpush2.msk.msra.mxu0 %vm1330_vm0, %v3196_v26  ;;  %v2911_v50 = vmul.f32 %v5795_v58, %v8973_v48  ;;  %v3041_v38 = vadd.f32 %v3016_v35, %v2989_v21  ;;  %v2963_v51 = vmul.f32 %v5796_v33, %v8982_v47  ;;  %v3301_v40 = vmul.f32 %v5791_v24, %v9016_v29  ;;  %v5799_v24 = vld [vmem:[%s11620_s0 + $0x6f0] sm:$0xff] }
 0x2dc   :  { %3253 = vmatprep.subr.mxu0 %v6135_v0  ;;  %v3536_v32 = vadd.f32 %v3511_v31, %v3484_v30  ;;  %v3770_v12 = vmul.f32 0.2, %v3745_v9  ;;  %v2832_v62 = vadd.f32 %v2807_v22, %v2780_v17  ;;  %v3015_v7 = vmul.f32 %v5797_v18, %v9004_v15  ;;  %v5801_v22 = vld [vmem:[%s11620_s0 + $0x170] sm:$0xff] }
 0x2dd   :  { %v3354_v55 = vmul.f32 %v5792_v19, %v9022_v2  ;;  %v3093_v35 = vadd.f32 %v3068_v45, %v3041_v38  ;;  %v3327_v4 = vadd.f32 %v9019_v16, %v3301_v40  ;;  %v3406_v3 = vmul.f32 %v5793_v59, %v9032_v46 }
 0x2de   :  { %v3588_v25 = vadd.f32 %v3563_v56, %v3536_v32  ;;  %v3795_v8 = vmax.f32 %v3745_v9, %v3770_v12  ;;  %v2884_v31 = vadd.f32 %v2859_v44, %v2832_v62  ;;  %v3067_v5 = vmul.f32 %v5798_v49, %v9010_v1 }
 0x2df   :  { %v3119_v36 = vmul.f32 %v5799_v24, %v9013_v52  ;;  %v3145_v45 = vadd.f32 %v3120_v53, %v3093_v35  ;;  %v3379_v13 = vadd.f32 %v3354_v55, %v3327_v4  ;;  %v3458_v63 = vmul.f32 %v5794_v54, %v9035_v37  ;;  %v5802_v54 = vld [vmem:[%s11620_s0 + $0x238] sm:$0xff] }
 0x2e0   :  { %v3640_v56 = vadd.f32 %v3615_v60, %v3588_v25  ;;  %5368 = vmatpush2.msk.msra.mxu1 %vm1330_vm0, %v3795_v8  ;;  %v2936_v19 = vadd.f32 %v2911_v50, %v2884_v31  ;;  %v3510_v61 = vmul.f32 %v5795_v58, %v9049_v42  ;;  %v3562_v26 = vmul.f32 %v5796_v33, %v9052_v28 }
 0x2e1   :  { %v2701_v23 = vmul.f32 %v5800_v11, %v8934_v27  ;;  %3852 = vmatprep.subr.mxu1 %v6135_v0  ;;  %v3170_v53 = vmul.f32 0.2, %v3145_v45  ;;  %v3431_v59 = vadd.f32 %v3406_v3, %v3379_v13  ;;  %v2754_v21 = vmul.f32 %v5801_v22, %v8947_v39 }
 0x2e2   :  { %v3692_v60 = vadd.f32 %v3667_v57, %v3640_v56  ;;  %v2988_v30 = vadd.f32 %v2963_v51, %v2936_v19  ;;  %v3614_v9 = vmul.f32 %v5797_v18, %v9056_v20  ;;  %v2806_v44 = vmul.f32 %v5802_v54, %v8956_v43  ;;  %v5803_v51 = vld [vmem:[%s11620_s0 + $0x300] sm:$0xff] }
 0x2e3   :  { %v2727_v17 = vadd.f32 %v8944_v10, %v2701_v23  ;;  %v3195_v58 = vmax.f32 %v3145_v45, %v3170_v53  ;;  %v3483_v50 = vadd.f32 %v3458_v63, %v3431_v59  ;;  %v3666_v38 = vmul.f32 %v5798_v49, %v9059_v14  ;;  %v5807_v56 = vld [vmem:[%s11620_s0 + $0x620] sm:$0xff] }
 0x2e4   :  { %v3744_v57 = vadd.f32 %v3719_v34, %v3692_v60  ;;  %v3040_v32 = vadd.f32 %v3015_v7, %v2988_v30  ;;  %v3718_v33 = vmul.f32 %v5799_v24, %v9062_v6  ;;  %v2858_v12 = vmul.f32 %v5803_v51, %v8967_v41  ;;  %v5804_v34 = vld [vmem:[%s11620_s0 + $0x3c8] sm:$0xff]  ;;  %v5805_v7 = vld [vmem:[%s11620_s0 + $0x490] sm:$0xff]  ;;  %v5806_v24 = vld [vmem:[%s11620_s0 + $0x558] sm:$0xff] }
 0x2e5   :  { %v2779_v40 = vadd.f32 %v2754_v21, %v2727_v17  ;;  %3254 = vmatpush2.msra.mxu0 %v3195_v58  ;;  %v3535_v18 = vadd.f32 %v3510_v61, %v3483_v50  ;;  %v2910_v55 = vmul.f32 %v5804_v34, %v8973_v48  ;;  %v2962_v35 = vmul.f32 %v5805_v7, %v8982_v47  ;;  %v5809_v17 = vld [vmem:[%s11620_s0 + $0xa0] sm:$0xff] }
 0x2e6   :  { %v3769_v62 = vmul.f32 0.2, %v3744_v57  ;;  %3255 = vmatprep.subr.mxu0 %v6135_v0  ;;  %v3092_v25 = vadd.f32 %v3067_v5, %v3040_v32  ;;  %v3300_v3 = vmul.f32 %v5800_v11, %v9016_v29  ;;  %v3353_v8 = vmul.f32 %v5801_v22, %v9022_v2  ;;  %v5808_v11 = vld [vmem:[%s11620_s0 + $0x6e8] sm:$0xff] }
 0x2e7   :  { %v2831_v4 = vadd.f32 %v2806_v44, %v2779_v40  ;;  %v3587_v49 = vadd.f32 %v3562_v26, %v3535_v18  ;;  %v3014_v45 = vmul.f32 %v5806_v24, %v9004_v15  ;;  %v3066_v13 = vmul.f32 %v5807_v56, %v9010_v1  ;;  %v5810_v44 = vld [vmem:[%s11620_s0 + $0x168] sm:$0xff] }
 0x2e8   :  { %v3794_v31 = vmax.f32 %v3744_v57, %v3769_v62  ;;  %v3144_v5 = vadd.f32 %v3119_v36, %v3092_v25  ;;  %v3326_v19 = vadd.f32 %v9019_v16, %v3300_v3  ;;  %v3405_v61 = vmul.f32 %v5802_v54, %v9032_v46  ;;  %v5811_v62 = vld [vmem:[%s11620_s0 + $0x230] sm:$0xff] }
 0x2e9   :  { %v2883_v63 = vadd.f32 %v2858_v12, %v2831_v4  ;;  %v3639_v26 = vadd.f32 %v3614_v9, %v3587_v49  ;;  %v3118_v23 = vmul.f32 %v5808_v11, %v9013_v52  ;;  %v3457_v53 = vmul.f32 %v5803_v51, %v9035_v37 }
 0x2ea   :  { %3853 = vmatpush2.msra.mxu1 %v3794_v31  ;;  %v3509_v60 = vmul.f32 %v5804_v34, %v9049_v42  ;;  %v3169_v36 = vmul.f32 0.2, %v3144_v5  ;;  %v3378_v22 = vadd.f32 %v3353_v8, %v3326_v19  ;;  %v3561_v21 = vmul.f32 %v5805_v7, %v9052_v28  ;;  %v5812_v7 = vld [vmem:[%s11620_s0 + $0x2f8] sm:$0xff]  ;;  %v5814_v8 = vld [vmem:[%s11620_s0 + $0x488] sm:$0xff] }
 0x2eb   :  { %3854 = vmatprep.subr.mxu1 %v6135_v0  ;;  %v2935_v59 = vadd.f32 %v2910_v55, %v2883_v63  ;;  %v3691_v30 = vadd.f32 %v3666_v38, %v3639_v26  ;;  %v3613_v9 = vmul.f32 %v5806_v24, %v9056_v20  ;;  %v2700_v54 = vmul.f32 %v5809_v17, %v8934_v27 }
 0x2ec   :  { %v2753_v58 = vmul.f32 %v5810_v44, %v8947_v39  ;;  %v3194_v57 = vmax.f32 %v3144_v5, %v3169_v36  ;;  %v3430_v32 = vadd.f32 %v3405_v61, %v3378_v22  ;;  %v3665_v40 = vmul.f32 %v5807_v56, %v9059_v14  ;;  %v5815_v56 = vld [vmem:[%s11620_s0 + $0x550] sm:$0xff] }
 0x2ed   :  { %v2987_v50 = vadd.f32 %v2962_v35, %v2935_v59  ;;  %v3743_v38 = vadd.f32 %v3718_v33, %v3691_v30  ;;  %v3717_v51 = vmul.f32 %v5808_v11, %v9062_v6  ;;  %v2726_v12 = vadd.f32 %v8944_v10, %v2700_v54  ;;  %v5813_v33 = vld [vmem:[%s11620_s0 + $0x3c0] sm:$0xff] }
 0x2ee   :  { %v2805_v18 = vmul.f32 %v5811_v62, %v8956_v43  ;;  %3256 = vmatpush2.msra.mxu0 %v3194_v57  ;;  %v3482_v55 = vadd.f32 %v3457_v53, %v3430_v32  ;;  %v2857_v35 = vmul.f32 %v5812_v7, %v8967_v41  ;;  %v2909_v25 = vmul.f32 %v5813_v33, %v8973_v48  ;;  %v5817_v59 = vld [vmem:[%s11620_s0 + $0x6e0] sm:$0xff]  ;;  %v5818_v57 = vld [vmem:[%s11620_s0 + $0x98] sm:$0xff] }
 0x2ef   :  { %v3039_v34 = vadd.f32 %v3014_v45, %v2987_v50  ;;  %v3768_v4 = vmul.f32 0.2, %v3743_v38  ;;  %3257 = vmatprep.subr.mxu0 %v6135_v0  ;;  %v2778_v3 = vadd.f32 %v2753_v58, %v2726_v12  ;;  %v2961_v31 = vmul.f32 %v5814_v8, %v8982_v47 }
 0x2f0   :  { %v3299_v49 = vmul.f32 %v5809_v17, %v9016_v29  ;;  %v3534_v45 = vadd.f32 %v3509_v60, %v3482_v55  ;;  %v3013_v5 = vmul.f32 %v5815_v56, %v9004_v15  ;;  %v3352_v63 = vmul.f32 %v5810_v44, %v9022_v2 }
 0x2f1   :  { %v3091_v24 = vadd.f32 %v3066_v13, %v3039_v34  ;;  %v3793_v19 = vmax.f32 %v3743_v38, %v3768_v4  ;;  %v2830_v61 = vadd.f32 %v2805_v18, %v2778_v3  ;;  %v3404_v11 = vmul.f32 %v5811_v62, %v9032_v46  ;;  %v5816_v13 = vld [vmem:[%s11620_s0 + $0x618] sm:$0xff]  ;;  %v5819_v62 = vld [vmem:[%s11620_s0 + $0x160] sm:$0xff] }
 0x2f2   :  { %v3325_v26 = vadd.f32 %v9019_v16, %v3299_v49  ;;  %v3586_v36 = vadd.f32 %v3561_v21, %v3534_v45  ;;  %v3065_v60 = vmul.f32 %v5816_v13, %v9010_v1  ;;  %v3117_v22 = vmul.f32 %v5817_v59, %v9013_v52  ;;  %v5822_v45 = vld [vmem:[%s11620_s0 + $0x3b8] sm:$0xff] }
 0x2f3   :  { %v3143_v53 = vadd.f32 %v3118_v23, %v3091_v24  ;;  %3855 = vmatpush2.msra.mxu1 %v3793_v19  ;;  %v2882_v30 = vadd.f32 %v2857_v35, %v2830_v61  ;;  %v3456_v54 = vmul.f32 %v5812_v7, %v9035_v37  ;;  %v3508_v23 = vmul.f32 %v5813_v33, %v9049_v42  ;;  %v5820_v7 = vld [vmem:[%s11620_s0 + $0x228] sm:$0xff] }
 0x2f4   :  { %v3377_v17 = vadd.f32 %v3352_v63, %v3325_v26  ;;  %3856 = vmatprep.subr.mxu1 %v6135_v0  ;;  %v3638_v44 = vadd.f32 %v3613_v9, %v3586_v36  ;;  %v3560_v58 = vmul.f32 %v5814_v8, %v9052_v28  ;;  %v2699_v50 = vmul.f32 %v5818_v57, %v8934_v27 }
 0x2f5   :  { %v3168_v21 = vmul.f32 0.2, %v3143_v53  ;;  %v2934_v32 = vadd.f32 %v2909_v25, %v2882_v30  ;;  %v3612_v12 = vmul.f32 %v5815_v56, %v9056_v20  ;;  %v2752_v18 = vmul.f32 %v5819_v62, %v8947_v39 }
 0x2f6   :  { %v3429_v38 = vadd.f32 %v3404_v11, %v3377_v17  ;;  %v3690_v9 = vadd.f32 %v3665_v40, %v3638_v44  ;;  %v2725_v55 = vadd.f32 %v8944_v10, %v2699_v50  ;;  %v2804_v35 = vmul.f32 %v5820_v7, %v8956_v43  ;;  %v5821_v40 = vld [vmem:[%s11620_s0 + $0x2f0] sm:$0xff] }
 0x2f7   :  { %v3193_v34 = vmax.f32 %v3143_v53, %v3168_v21  ;;  %v2986_v33 = vadd.f32 %v2961_v31, %v2934_v32  ;;  %v3664_v4 = vmul.f32 %v5816_v13, %v9059_v14  ;;  %v3716_v3 = vmul.f32 %v5817_v59, %v9062_v6  ;;  %v5824_v53 = vld [vmem:[%s11620_s0 + $0x548] sm:$0xff]  ;;  %v5825_v21 = vld [vmem:[%s11620_s0 + $0x610] sm:$0xff] }
 0x2f8   :  { %v3481_v25 = vadd.f32 %v3456_v54, %v3429_v38  ;;  %v3742_v8 = vadd.f32 %v3717_v51, %v3690_v9  ;;  %v2777_v49 = vadd.f32 %v2752_v18, %v2725_v55  ;;  %v2856_v24 = vmul.f32 %v5821_v40, %v8967_v41  ;;  %v5823_v51 = vld [vmem:[%s11620_s0 + $0x480] sm:$0xff]  ;;  %v5827_v9 = vld [vmem:[%s11620_s0 + $0x90] sm:$0xff] }
 0x2f9   :  { %3258 = vmatpush2.msra.mxu0 %v3193_v34  ;;  %v2908_v31 = vmul.f32 %v5822_v45, %v8973_v48  ;;  %v3038_v56 = vadd.f32 %v3013_v5, %v2986_v33  ;;  %v2960_v19 = vmul.f32 %v5823_v51, %v8982_v47  ;;  %v3298_v61 = vmul.f32 %v5818_v57, %v9016_v29  ;;  %v5826_v57 = vld [vmem:[%s11620_s0 + $0x6d8] sm:$0xff] }
 0x2fa   :  { %3259 = vmatprep.subr.mxu0 %v6135_v0  ;;  %v3533_v63 = vadd.f32 %v3508_v23, %v3481_v25  ;;  %v3767_v26 = vmul.f32 0.2, %v3742_v8  ;;  %v2829_v11 = vadd.f32 %v2804_v35, %v2777_v49  ;;  %v3012_v36 = vmul.f32 %v5824_v53, %v9004_v15  ;;  %v5828_v35 = vld [vmem:[%s11620_s0 + $0x158] sm:$0xff] }
 0x2fb   :  { %v3351_v13 = vmul.f32 %v5819_v62, %v9022_v2  ;;  %v3090_v5 = vadd.f32 %v3065_v60, %v3038_v56  ;;  %v3324_v30 = vadd.f32 %v9019_v16, %v3298_v61  ;;  %v3403_v17 = vmul.f32 %v5820_v7, %v9032_v46 }
 0x2fc   :  { %v3585_v59 = vadd.f32 %v3560_v58, %v3533_v63  ;;  %v3792_v54 = vmax.f32 %v3742_v8, %v3767_v26  ;;  %v2881_v23 = vadd.f32 %v2856_v24, %v2829_v11  ;;  %v3064_v44 = vmul.f32 %v5825_v21, %v9010_v1 }
 0x2fd   :  { %v3116_v50 = vmul.f32 %v5826_v57, %v9013_v52  ;;  %v3142_v60 = vadd.f32 %v3117_v22, %v3090_v5  ;;  %v3376_v32 = vadd.f32 %v3351_v13, %v3324_v30  ;;  %v3455_v38 = vmul.f32 %v5821_v40, %v9035_v37  ;;  %v5829_v40 = vld [vmem:[%s11620_s0 + $0x220] sm:$0xff] }
 0x2fe   :  { %v3637_v58 = vadd.f32 %v3612_v12, %v3585_v59  ;;  %3857 = vmatpush2.msra.mxu1 %v3792_v54  ;;  %v2933_v62 = vadd.f32 %v2908_v31, %v2881_v23  ;;  %v3507_v18 = vmul.f32 %v5822_v45, %v9049_v42  ;;  %v3559_v34 = vmul.f32 %v5823_v51, %v9052_v28 }
 0x2ff   :  { %v2698_v55 = vmul.f32 %v5827_v9, %v8934_v27  ;;  %3858 = vmatprep.subr.mxu1 %v6135_v0  ;;  %v3167_v7 = vmul.f32 0.2, %v3142_v60  ;;  %v3428_v12 = vadd.f32 %v3403_v17, %v3376_v32  ;;  %v2751_v33 = vmul.f32 %v5828_v35, %v8947_v39 }
 0x300   :  { %v3689_v22 = vadd.f32 %v3664_v4, %v3637_v58  ;;  %v2985_v25 = vadd.f32 %v2960_v19, %v2933_v62  ;;  %v3611_v8 = vmul.f32 %v5824_v53, %v9056_v20  ;;  %v2803_v24 = vmul.f32 %v5829_v40, %v8956_v43  ;;  %v5830_v19 = vld [vmem:[%s11620_s0 + $0x2e8] sm:$0xff] }
 0x301   :  { %v2724_v49 = vadd.f32 %v8944_v10, %v2698_v55  ;;  %v3192_v45 = vmax.f32 %v3142_v60, %v3167_v7  ;;  %v3480_v31 = vadd.f32 %v3455_v38, %v3428_v12  ;;  %v3663_v56 = vmul.f32 %v5825_v21, %v9059_v14  ;;  %v5834_v58 = vld [vmem:[%s11620_s0 + $0x608] sm:$0xff] }
 0x302   :  { %v3741_v4 = vadd.f32 %v3716_v3, %v3689_v22  ;;  %v3037_v63 = vadd.f32 %v3012_v36, %v2985_v25  ;;  %v3715_v51 = vmul.f32 %v5826_v57, %v9062_v6  ;;  %v2855_v26 = vmul.f32 %v5830_v19, %v8967_v41  ;;  %v5831_v3 = vld [vmem:[%s11620_s0 + $0x3b0] sm:$0xff]  ;;  %v5832_v36 = vld [vmem:[%s11620_s0 + $0x478] sm:$0xff]  ;;  %v5833_v57 = vld [vmem:[%s11620_s0 + $0x540] sm:$0xff] }
 0x303   :  { %v2776_v61 = vadd.f32 %v2751_v33, %v2724_v49  ;;  %3260 = vmatpush2.msra.mxu0 %v3192_v45  ;;  %v3532_v53 = vadd.f32 %v3507_v18, %v3480_v31  ;;  %v2907_v13 = vmul.f32 %v5831_v3, %v8973_v48  ;;  %v2959_v5 = vmul.f32 %v5832_v36, %v8982_v47  ;;  %v5836_v49 = vld [vmem:[%s11620_s0 + $0x88] sm:$0xff] }
 0x304   :  { %v3766_v11 = vmul.f32 0.2, %v3741_v4  ;;  %3261 = vmatprep.subr.mxu0 %v6135_v0  ;;  %v3089_v59 = vadd.f32 %v3064_v44, %v3037_v63  ;;  %v3297_v17 = vmul.f32 %v5827_v9, %v9016_v29  ;;  %v3350_v54 = vmul.f32 %v5828_v35, %v9022_v2  ;;  %v5835_v9 = vld [vmem:[%s11620_s0 + $0x6d0] sm:$0xff] }
 0x305   :  { %v2828_v30 = vadd.f32 %v2803_v24, %v2776_v61  ;;  %v3584_v21 = vadd.f32 %v3559_v34, %v3532_v53  ;;  %v3011_v60 = vmul.f32 %v5833_v57, %v9004_v15  ;;  %v3063_v32 = vmul.f32 %v5834_v58, %v9010_v1  ;;  %v5837_v24 = vld [vmem:[%s11620_s0 + $0x150] sm:$0xff] }
 0x306   :  { %v3791_v23 = vmax.f32 %v3741_v4, %v3766_v11  ;;  %v3141_v44 = vadd.f32 %v3116_v50, %v3089_v59  ;;  %v3323_v62 = vadd.f32 %v9019_v16, %v3297_v17  ;;  %v3402_v18 = vmul.f32 %v5829_v40, %v9032_v46  ;;  %v5838_v11 = vld [vmem:[%s11620_s0 + $0x218] sm:$0xff] }
 0x307   :  { %v2880_v38 = vadd.f32 %v2855_v26, %v2828_v30  ;;  %v3636_v34 = vadd.f32 %v3611_v8, %v3584_v21  ;;  %v3115_v55 = vmul.f32 %v5835_v9, %v9013_v52  ;;  %v3454_v7 = vmul.f32 %v5830_v19, %v9035_v37 }
 0x308   :  { %3859 = vmatpush2.msra.mxu1 %v3791_v23  ;;  %v3506_v22 = vmul.f32 %v5831_v3, %v9049_v42  ;;  %v3166_v50 = vmul.f32 0.2, %v3141_v44  ;;  %v3375_v35 = vadd.f32 %v3350_v54, %v3323_v62  ;;  %v3558_v33 = vmul.f32 %v5832_v36, %v9052_v28  ;;  %v5839_v36 = vld [vmem:[%s11620_s0 + $0x2e0] sm:$0xff]  ;;  %v5841_v54 = vld [vmem:[%s11620_s0 + $0x470] sm:$0xff] }
 0x309   :  { %3860 = vmatprep.subr.mxu1 %v6135_v0  ;;  %v2932_v12 = vadd.f32 %v2907_v13, %v2880_v38  ;;  %v3688_v25 = vadd.f32 %v3663_v56, %v3636_v34  ;;  %v3610_v8 = vmul.f32 %v5833_v57, %v9056_v20  ;;  %v2697_v40 = vmul.f32 %v5836_v49, %v8934_v27 }
 0x30a   :  { %v2750_v45 = vmul.f32 %v5837_v24, %v8947_v39  ;;  %v3191_v4 = vmax.f32 %v3141_v44, %v3166_v50  ;;  %v3427_v63 = vadd.f32 %v3402_v18, %v3375_v35  ;;  %v3662_v61 = vmul.f32 %v5834_v58, %v9059_v14  ;;  %v5842_v58 = vld [vmem:[%s11620_s0 + $0x538] sm:$0xff] }
 0x30b   :  { %v2984_v31 = vadd.f32 %v2959_v5, %v2932_v12  ;;  %v3740_v56 = vadd.f32 %v3715_v51, %v3688_v25  ;;  %v3714_v19 = vmul.f32 %v5835_v9, %v9062_v6  ;;  %v2723_v26 = vadd.f32 %v8944_v10, %v2697_v40  ;;  %v5840_v51 = vld [vmem:[%s11620_s0 + $0x3a8] sm:$0xff] }
 0x30c   :  { %v2802_v53 = vmul.f32 %v5838_v11, %v8956_v43  ;;  %3262 = vmatpush2.msra.mxu0 %v3191_v4  ;;  %v3479_v13 = vadd.f32 %v3454_v7, %v3427_v63  ;;  %v2854_v5 = vmul.f32 %v5839_v36, %v8967_v41  ;;  %v2906_v59 = vmul.f32 %v5840_v51, %v8973_v48  ;;  %v5844_v12 = vld [vmem:[%s11620_s0 + $0x6c8] sm:$0xff]  ;;  %v5845_v4 = vld [vmem:[%s11620_s0 + $0x80] sm:$0xff] }
 0x30d   :  { %v3036_v3 = vadd.f32 %v3011_v60, %v2984_v31  ;;  %v3765_v30 = vmul.f32 0.2, %v3740_v56  ;;  %3263 = vmatprep.subr.mxu0 %v6135_v0  ;;  %v2775_v17 = vadd.f32 %v2750_v45, %v2723_v26  ;;  %v2958_v23 = vmul.f32 %v5841_v54, %v8982_v47 }
 0x30e   :  { %v3296_v21 = vmul.f32 %v5836_v49, %v9016_v29  ;;  %v3531_v60 = vadd.f32 %v3506_v22, %v3479_v13  ;;  %v3010_v44 = vmul.f32 %v5842_v58, %v9004_v15  ;;  %v3349_v38 = vmul.f32 %v5837_v24, %v9022_v2 }
 0x30f   :  { %v3088_v57 = vadd.f32 %v3063_v32, %v3036_v3  ;;  %v3790_v62 = vmax.f32 %v3740_v56, %v3765_v30  ;;  %v2827_v18 = vadd.f32 %v2802_v53, %v2775_v17  ;;  %v3401_v9 = vmul.f32 %v5838_v11, %v9032_v46  ;;  %v5843_v32 = vld [vmem:[%s11620_s0 + $0x600] sm:$0xff]  ;;  %v5846_v11 = vld [vmem:[%s11620_s0 + $0x148] sm:$0xff] }
 0x310   :  { %v3322_v34 = vadd.f32 %v9019_v16, %v3296_v21  ;;  %v3583_v50 = vadd.f32 %v3558_v33, %v3531_v60  ;;  %v3062_v22 = vmul.f32 %v5843_v32, %v9010_v1  ;;  %v10192_v35 = vmul.f32 %v5844_v12, %v9013_v52 }
 0x311   :  { %v3140_v7 = vadd.f32 %v3115_v55, %v3088_v57  ;;  %3861 = vmatpush2.msra.mxu1 %v3790_v62  ;;  %v2879_v25 = vadd.f32 %v2854_v5, %v2827_v18  ;;  %v3453_v40 = vmul.f32 %v5839_v36, %v9035_v37  ;;  %v3505_v55 = vmul.f32 %v5840_v51, %v9049_v42 }
 0x312   :  { %v3374_v49 = vadd.f32 %v3349_v38, %v3322_v34  ;;  %3862 = vmatprep.subr.mxu1 %v6135_v0  ;;  %v3635_v24 = vadd.f32 %v3610_v8, %v3583_v50  ;;  %v3557_v45 = vmul.f32 %v5841_v54, %v9052_v28  ;;  %v2696_v31 = vmul.f32 %v5845_v4, %v8934_v27  ;;  %v5847_v27 = vld [vmem:[%s11620_s0 + $0x210] sm:$0xff] }
 0x313   :  { %v3165_v33 = vmul.f32 0.2, %v3140_v7  ;;  %v2931_v63 = vadd.f32 %v2906_v59, %v2879_v25  ;;  %v3609_v26 = vmul.f32 %v5842_v58, %v9056_v20  ;;  %v2749_v53 = vmul.f32 %v5846_v11, %v8947_v39 }
 0x314   :  { %v3426_v56 = vadd.f32 %v3401_v9, %v3374_v49  ;;  %v3687_v3 = vadd.f32 %v3662_v61, %v3635_v24  ;;  %v2722_v13 = vadd.f32 %v8944_v10, %v2696_v31  ;;  %v2801_v36 = vmul.f32 %v5847_v27, %v8956_v43  ;;  %v5848_v10 = vld [vmem:[%s11620_s0 + $0x2d8] sm:$0xff]  ;;  %v5849_v43 = vld [vmem:[%s11620_s0 + $0x3a0] sm:$0xff] }
 0x315   :  { %v3190_v8 = vmax.f32 %v3140_v7, %v3165_v33  ;;  %v2983_v5 = vadd.f32 %v2958_v23, %v2931_v63  ;;  %v3661_v59 = vmul.f32 %v5843_v32, %v9059_v14  ;;  %v3713_v39 = vmul.f32 %v5844_v12, %v9062_v6  ;;  %v5853_v9 = vld [vmem:[%s11620_s0 + $0x5f8] sm:$0xff]  ;;  %v5854_v12 = vld [vmem:[%s11620_s0 + $0x6c0] sm:$0xff] }
 0x316   :  { %v3478_v51 = vadd.f32 %v3453_v40, %v3426_v56  ;;  %v3739_v61 = vadd.f32 %v3714_v19, %v3687_v3  ;;  %v2774_v30 = vadd.f32 %v2749_v53, %v2722_v13  ;;  %v2853_v17 = vmul.f32 %v5848_v10, %v8967_v41  ;;  %v5850_v19 = vld [vmem:[%s11620_s0 + $0x468] sm:$0xff]  ;;  %v5856_v3 = vld [vmem:[%s11620_s0 + $0x140] sm:$0xff] }
 0x317   :  { %3264 = vmatpush2.msra.mxu0 %v3190_v8  ;;  %v2905_v54 = vmul.f32 %v5849_v43, %v8973_v48  ;;  %v3035_v23 = vadd.f32 %v3010_v44, %v2983_v5  ;;  %v2957_v57 = vmul.f32 %v5850_v19, %v8982_v47  ;;  %v5851_v41 = vld [vmem:[%s11623_s3 + $0x8] sm:$0xff]  ;;  %v3295_v38 = vmul.f32 %v5845_v4, %v9016_v29  ;;  %v5852_v47 = vld [vmem:[%s11620_s0 + $0x530] sm:$0xff] }
 0x318   :  { %3265 = vmatprep.subr.mxu0 %v6135_v0  ;;  %v3530_v21 = vadd.f32 %v3505_v55, %v3478_v51  ;;  %v3198_v60 = vrot.slane %v5851_v41, 4  ;;  %v3764_v48 = vmul.f32 0.2, %v3739_v61  ;;  %v2826_v58 = vadd.f32 %v2801_v36, %v2774_v30 }
 0x319   :  { %v3348_v44 = vmul.f32 %v5846_v11, %v9022_v2  ;;  %v3087_v62 = vadd.f32 %v3062_v22, %v3035_v23  ;;  %v3009_v34 = vmul.f32 %v5852_v47, %v9004_v15  ;;  %v3061_v7 = vmul.f32 %v5853_v9, %v9010_v1 }
 0x31a   :  { %v3582_v18 = vadd.f32 %v3557_v45, %v3530_v21  ;;  %5357 = vmatprep.mubr.msk.f32.mxu0 %vm1327_vm1, %v3198_v60  ;;  %v3789_v29 = vmax.f32 %v3739_v61, %v3764_v48  ;;  %v2878_v2 = vadd.f32 %v2853_v17, %v2826_v58  ;;  %v3321_v50 = vadd.f32 %v9019_v16, %v3295_v38  ;;  %v5858_v17 = vld [vmem:[%s11620_s0 + $0x2d0] sm:$0xff]  ;;  %v5860_v60 = vld [vmem:[%s11620_s0 + $0x398] sm:$0xff]  ;;  %v5861_v58 = vld [vmem:[%s11620_s0 + $0x460] sm:$0xff] }
 0x31b   :  { %v3400_v32 = vmul.f32 %v5847_v27, %v9032_v46  ;;  %v3139_v15 = vadd.f32 %v10192_v35, %v3087_v62  ;;  %v3113_v1 = vmul.f32 %v5854_v12, %v9013_v52  ;;  %v3452_v25 = vmul.f32 %v5848_v10, %v9035_v37  ;;  %v5857_v27 = vld [vmem:[%s11620_s0 + $0x208] sm:$0xff] }
 0x31c   :  { %v3634_v22 = vadd.f32 %v3609_v26, %v3582_v18  ;;  %3863 = vmatpush2.msra.mxu1 %v3789_v29  ;;  %v2930_v16 = vadd.f32 %v2905_v54, %v2878_v2  ;;  %v3373_v49 = vadd.f32 %v3348_v44, %v3321_v50  ;;  %v3504_v46 = vmul.f32 %v5849_v43, %v9049_v42  ;;  %v5862_v18 = vld [vmem:[%s11620_s0 + $0x528] sm:$0xff] }
 0x31d   :  { %v3556_v40 = vmul.f32 %v5850_v19, %v9052_v28  ;;  %3864 = vmatprep.subr.mxu1 %v6135_v0  ;;  %v3164_v35 = vmul.f32 0.2, %v3139_v15  ;;  %v3608_v52 = vmul.f32 %v5852_v47, %v9056_v20  ;;  %v3797_v37 = vrot.slane %v5851_v41, 5  ;;  %v5855_v20 = vld [vmem:[%s11620_s0 + $0x78] sm:$0xff] }
 0x31e   :  { %v3686_v55 = vadd.f32 %v3661_v59, %v3634_v22  ;;  %v2982_v33 = vadd.f32 %v2957_v57, %v2930_v16  ;;  %v3425_v24 = vadd.f32 %v3400_v32, %v3373_v49  ;;  %v3660_v42 = vmul.f32 %v5853_v9, %v9059_v14 }
 0x31f   :  { %v10277_v45 = vstv %s10207_s29  ;;  %v3189_v28 = vmax.f32 %v3139_v15, %v3164_v35  ;;  %5369 = vmatprep.mubr.msk.f32.mxu1 %vm1327_vm1, %v3797_v37  ;;  %v10287_v63 = vstv %s10214_s27  ;;  %v10292_v26 = vstv %s10228_s19  ;;  %s10297_s29 = sld [smem:[#allocation3 + $0x382]] }
 0x320   :  { %v3738_v4 = vadd.f32 %v3713_v39, %v3686_v55  ;;  %v3893_v31 = vmul.f32 %v5855_v20, %v10277_v45  ;;  %v3034_v56 = vadd.f32 %v3009_v34, %v2982_v33  ;;  %v3477_v14 = vadd.f32 %v3452_v25, %v3425_v24  ;;  %s10308_s19 = sld [smem:[#allocation3 + $0x383]] }
 0x321   :  { %v10295_v11 = vstv %s10242_s25  ;;  %3266 = vmatpush2.msra.mxu0 %v3189_v28  ;;  %v3946_v13 = vmul.f32 %v5856_v3, %v10292_v26  ;;  %v10312_v59 = vstv %s10253_s16  ;;  %v10315_v39 = vstv %s10257_s22  ;;  %s10324_s25 = sld [smem:[#allocation3 + $0x385]] }
 0x322   :  { %v3763_v53 = vmul.f32 0.2, %v3738_v4  ;;  %v3919_v8 = vadd.f32 %v10287_v63, %v3893_v31  ;;  %v3998_v36 = vmul.f32 %v5857_v27, %v10295_v11  ;;  %3267 = vmatprep.subr.mxu0 %v6135_v0  ;;  %v3086_v5 = vadd.f32 %v3061_v7, %v3034_v56 }
 0x323   :  { %v3529_v51 = vadd.f32 %v3504_v46, %v3477_v14  ;;  %v3712_v30 = vmul.f32 %v5854_v12, %v9062_v6  ;;  %v4050_v43 = vmul.f32 %v5858_v17, %v10312_v59  ;;  %v10327_v21 = vstv %s10265_s21  ;;  %v5859_v6 = vld [vmem:[%s11623_s3] sm:$0xff] }
 0x324   :  { %v3788_v61 = vmax.f32 %v3738_v4, %v3763_v53  ;;  %v3971_v10 = vadd.f32 %v3946_v13, %v3919_v8  ;;  %v3138_v54 = vadd.f32 %v3113_v1, %v3086_v5  ;;  %v10330_v19 = vstv %s10269_s28  ;;  %v5865_v5 = vld [vmem:[%s11620_s0 + $0x70] sm:$0xff] }
 0x325   :  { %v3581_v23 = vadd.f32 %v3556_v40, %v3529_v51  ;;  %v3197_v57 = vrot.slane %v5859_v6, 4  ;;  %v4102_v48 = vmul.f32 %v5860_v60, %v10315_v39  ;;  %v4154_v38 = vmul.f32 %v5861_v58, %v10327_v21 }
 0x326   :  { %3865 = vmatpush2.msra.mxu1 %v3788_v61  ;;  %v4023_v41 = vadd.f32 %v3998_v36, %v3971_v10  ;;  %v3163_v44 = vmul.f32 0.2, %v3138_v54  ;;  %v4206_v47 = vmul.f32 %v5862_v18, %v10330_v19  ;;  %v10353_v34 = vstv %s10279_s6  ;;  %v5866_v61 = vld [vmem:[%s11620_s0 + $0x138] sm:$0xff] }
 0x327   :  { %3866 = vmatprep.subr.mxu1 %v6135_v0  ;;  %v3633_v62 = vadd.f32 %v3608_v52, %v3581_v23  ;;  %v10356_v7 = vstv %s10289_s10  ;;  %v10359_v29 = vstv %s10218_s30  ;;  %v10362_v2 = vstv %s10238_s23  ;;  %v5863_v52 = vld [vmem:[%s11620_s0 + $0x5f0] sm:$0xff] }
 0x328   :  { %v4075_v9 = vadd.f32 %v4050_v43, %v4023_v41  ;;  %v3188_v50 = vmax.f32 %v3138_v54, %v3163_v44  ;;  %v4492_v15 = vmul.f32 %v5855_v20, %v10359_v29  ;;  %v10368_v22 = vstv %s10273_s24 }
 0x329   :  { %v3685_v32 = vadd.f32 %v3660_v42, %v3633_v62  ;;  %v4545_v1 = vmul.f32 %v5856_v3, %v10368_v22  ;;  %v10372_v25 = vstv %s10297_s29  ;;  %v10375_v16 = vstv %s10308_s19  ;;  %v5864_v42 = vld [vmem:[%s11620_s0 + $0x6b8] sm:$0xff] }
 0x32a   :  { %v4127_v12 = vadd.f32 %v4102_v48, %v4075_v9  ;;  %3268 = vmatpush2.msra.mxu0 %v3188_v50  ;;  %v4518_v46 = vadd.f32 %v10362_v2, %v4492_v15  ;;  %v4597_v40 = vmul.f32 %v5857_v27, %v10372_v25  ;;  %v3796_v35 = vrot.slane %v5859_v6, 5  ;;  %v5870_v15 = vld [vmem:[%s11620_s0 + $0x458] sm:$0xff] }
 0x32b   :  { %v3737_v49 = vadd.f32 %v3712_v30, %v3685_v32  ;;  %3270 = vmatmul.mubr.f32.vlgmr.msra.gmra.mxu0 %v3197_v57  ;;  %4403 = vmatprep.subr.mxu0 %v6135_v0  ;;  %v4258_v37 = vmul.f32 %v5863_v52, %v10353_v34  ;;  %v10385_v33 = vstv %s10317_s14  ;;  %v4310_v28 = vmul.f32 %v5864_v42, %v10356_v7  ;;  %v5867_v57 = vld [vmem:[%s11620_s0 + $0x200] sm:$0xff] }
 0x32c   :  { %v4179_v55 = vadd.f32 %v4154_v38, %v4127_v12  ;;  %v4570_v4 = vadd.f32 %v4545_v1, %v4518_v46  ;;  %v4649_v20 = vmul.f32 %v5858_v17, %v10375_v16  ;;  %v10393_v56 = vstv %s10324_s25 }
 0x32d   :  { %v3762_v24 = vmul.f32 0.2, %v3737_v49  ;;  %v10396_v14 = vstv %s10332_s26  ;;  %v10399_v53 = vstv %s10345_s1  ;;  %v4701_v13 = vmul.f32 %v5860_v60, %v10385_v33 }
 0x32e   :  { %v4231_v31 = vadd.f32 %v4206_v47, %v4179_v55  ;;  %v4622_v3 = vadd.f32 %v4597_v40, %v4570_v4  ;;  %v10403_v36 = vstv %s10364_s7  ;;  %v3892_v51 = vmul.f32 %v5865_v5, %v10277_v45  ;;  %v5869_v47 = vld [vmem:[%s11620_s0 + $0x390] sm:$0xff] }
 0x32f   :  { %v3787_v8 = vmax.f32 %v3737_v49, %v3762_v24  ;;  %v3945_v30 = vmul.f32 %v5866_v61, %v10292_v26  ;;  %v4753_v17 = vmul.f32 %v5861_v58, %v10393_v56  ;;  %v4805_v43 = vmul.f32 %v5862_v18, %v10396_v14  ;;  %v5868_v58 = vld [vmem:[%s11620_s0 + $0x2c8] sm:$0xff] }
 0x330   :  { %v4283_v27 = vadd.f32 %v4258_v37, %v4231_v31  ;;  %v4674_v10 = vadd.f32 %v4649_v20, %v4622_v3  ;;  %v4857_v54 = vmul.f32 %v5863_v52, %v10399_v53  ;;  %v3918_v6 = vadd.f32 %v10287_v63, %v3892_v51  ;;  %v5872_v52 = vld [vmem:[%s11620_s0 + $0x5e8] sm:$0xff] }
 0x331   :  { %3867 = vmatpush2.msra.mxu1 %v3787_v8  ;;  %v3997_v41 = vmul.f32 %v5867_v57, %v10295_v11  ;;  %v4909_v48 = vmul.f32 %v5864_v42, %v10403_v36  ;;  %v4049_v38 = vmul.f32 %v5868_v58, %v10312_v59  ;;  %v4491_v44 = vmul.f32 %v5865_v5, %v10359_v29  ;;  %v5873_v42 = vld [vmem:[%s11620_s0 + $0x6b0] sm:$0xff]  ;;  %v5874_v3 = vld [vmem:[%s11620_s0 + $0x68] sm:$0xff] }
 0x332   :  { %5002 = vmatprep.subr.mxu1 %v6135_v0  ;;  %3869 = vmatmul.mubr.f32.vlgmr.msra.gmra.mxu1 %v3796_v35  ;;  %v4335_v23 = vadd.f32 %v4310_v28, %v4283_v27  ;;  %v4726_v60 = vadd.f32 %v4701_v13, %v4674_v10  ;;  %v3970_v18 = vadd.f32 %v3945_v30, %v3918_v6  ;;  %v5871_v35 = vld [vmem:[%s11620_s0 + $0x520] sm:$0xff]  ;;  %v5875_v27 = vld [vmem:[%s11620_s0 + $0x130] sm:$0xff]  ;;  %v5876_v6 = vld [vmem:[%s11620_s0 + $0x1f8] sm:$0xff] }
 0x333   :  { %v4101_v9 = vmul.f32 %v5869_v47, %v10315_v39  ;;  %v4544_v50 = vmul.f32 %v5866_v61, %v10368_v22  ;;  %v4153_v12 = vmul.f32 %v5870_v15, %v10327_v21  ;;  %v4517_v1 = vadd.f32 %v10362_v2, %v4491_v44 }
 0x334   :  { %v4360_v62 = vmul.f32 0.2, %v4335_v23  ;;  %v4778_v32 = vadd.f32 %v4753_v17, %v4726_v60  ;;  %v4596_v49 = vmul.f32 %v5867_v57, %v10372_v25  ;;  %v4022_v40 = vadd.f32 %v3997_v41, %v3970_v18 }
 0x335   :  { %v4205_v55 = vmul.f32 %v5871_v35, %v10330_v19  ;;  %v4257_v37 = vmul.f32 %v5872_v52, %v10353_v34  ;;  %v4309_v28 = vmul.f32 %v5873_v42, %v10356_v7  ;;  %v4569_v4 = vadd.f32 %v4544_v50, %v4517_v1 }
 0x336   :  { %v4385_v46 = vmax.f32 %v4335_v23, %v4360_v62  ;;  %v4830_v24 = vadd.f32 %v4805_v43, %v4778_v32  ;;  %v4648_v20 = vmul.f32 %v5868_v58, %v10375_v16  ;;  %v4074_v31 = vadd.f32 %v4049_v38, %v4022_v40  ;;  %v5877_v58 = vld [vmem:[%s11620_s0 + $0x2c0] sm:$0xff] }
 0x337   :  { %v4700_v8 = vmul.f32 %v5869_v47, %v10385_v33  ;;  %v3891_v13 = vmul.f32 %v5874_v3, %v10277_v45  ;;  %v3944_v5 = vmul.f32 %v5875_v27, %v10292_v26  ;;  %v4621_v61 = vadd.f32 %v4596_v49, %v4569_v4  ;;  %v5881_v4 = vld [vmem:[%s11620_s0 + $0x5e0] sm:$0xff] }
 0x338   :  { %4404 = vmatpush1.msra.mxu0 %v4385_v46  ;;  %v4882_v51 = vadd.f32 %v4857_v54, %v4830_v24  ;;  %v4752_v30 = vmul.f32 %v5870_v15, %v10393_v56  ;;  %v4804_v10 = vmul.f32 %v5871_v35, %v10396_v14  ;;  %v4126_v17 = vadd.f32 %v4101_v9, %v4074_v31  ;;  %v5879_v15 = vld [vmem:[%s11620_s0 + $0x450] sm:$0xff]  ;;  %v5880_v24 = vld [vmem:[%s11620_s0 + $0x518] sm:$0xff] }
 0x339   :  { %4405 = vmatprep.subr.mxu0 %v6135_v0  ;;  %v4856_v43 = vmul.f32 %v5872_v52, %v10399_v53  ;;  %v3917_v23 = vadd.f32 %v10287_v63, %v3891_v13  ;;  %v3996_v57 = vmul.f32 %v5876_v6, %v10295_v11  ;;  %v4673_v54 = vadd.f32 %v4648_v20, %v4621_v61 }
 0x33a   :  { %v4934_v41 = vadd.f32 %v4909_v48, %v4882_v51  ;;  %v4908_v60 = vmul.f32 %v5873_v42, %v10403_v36  ;;  %v4048_v38 = vmul.f32 %v5877_v58, %v10312_v59  ;;  %v4178_v44 = vadd.f32 %v4153_v12, %v4126_v17  ;;  %v5878_v48 = vld [vmem:[%s11620_s0 + $0x388] sm:$0xff]  ;;  %v5883_v51 = vld [vmem:[%s11620_s0 + $0x60] sm:$0xff] }
 0x33b   :  { %v3969_v62 = vadd.f32 %v3944_v5, %v3917_v23  ;;  %v4490_v18 = vmul.f32 %v5874_v3, %v10359_v29  ;;  %v4543_v47 = vmul.f32 %v5875_v27, %v10368_v22  ;;  %v4725_v50 = vadd.f32 %v4700_v8, %v4673_v54  ;;  %v5882_v27 = vld [vmem:[%s11620_s0 + $0x6a8] sm:$0xff] }
 0x33c   :  { %v4959_v9 = vmul.f32 0.2, %v4934_v41  ;;  %v4100_v32 = vmul.f32 %v5878_v48, %v10315_v39  ;;  %v4152_v1 = vmul.f32 %v5879_v15, %v10327_v21  ;;  %v4230_v12 = vadd.f32 %v4205_v55, %v4178_v44 }
 0x33d   :  { %v4021_v49 = vadd.f32 %v3996_v57, %v3969_v62  ;;  %v4516_v46 = vadd.f32 %v10362_v2, %v4490_v18  ;;  %v4595_v40 = vmul.f32 %v5876_v6, %v10372_v25  ;;  %v4777_v52 = vadd.f32 %v4752_v30, %v4725_v50 }
 0x33e   :  { %v4984_v35 = vmax.f32 %v4934_v41, %v4959_v9  ;;  %v4204_v42 = vmul.f32 %v5880_v24, %v10330_v19  ;;  %v4256_v20 = vmul.f32 %v5881_v4, %v10353_v34  ;;  %v4282_v55 = vadd.f32 %v4257_v37, %v4230_v12  ;;  %v5884_v37 = vld [vmem:[%s11620_s0 + $0x128] sm:$0xff] }
 0x33f   :  { %v4073_v31 = vadd.f32 %v4048_v38, %v4021_v49  ;;  %v4568_v8 = vadd.f32 %v4543_v47, %v4516_v46  ;;  %v4647_v3 = vmul.f32 %v5877_v58, %v10375_v16  ;;  %v4829_v13 = vadd.f32 %v4804_v10, %v4777_v52  ;;  %v5885_v58 = vld [vmem:[%s11620_s0 + $0x1f0] sm:$0xff] }
 0x340   :  { %5003 = vmatpush1.msra.mxu1 %v4984_v35  ;;  %v4308_v5 = vmul.f32 %v5882_v27, %v10356_v7  ;;  %v3890_v61 = vmul.f32 %v5883_v51, %v10277_v45  ;;  %v3943_v30 = vmul.f32 %v5884_v37, %v10292_v26  ;;  %v4334_v10 = vadd.f32 %v4309_v28, %v4282_v55 }
 0x341   :  { %5004 = vmatprep.subr.mxu1 %v6135_v0  ;;  %v4125_v17 = vadd.f32 %v4100_v32, %v4073_v31  ;;  %v4620_v23 = vadd.f32 %v4595_v40, %v4568_v8  ;;  %v4699_v6 = vmul.f32 %v5878_v48, %v10385_v33  ;;  %v4881_v57 = vadd.f32 %v4856_v43, %v4829_v13  ;;  %v5886_v43 = vld [vmem:[%s11620_s0 + $0x2b8] sm:$0xff] }
 0x342   :  { %v4751_v41 = vmul.f32 %v5879_v15, %v10393_v56  ;;  %v3916_v54 = vadd.f32 %v10287_v63, %v3890_v61  ;;  %v3995_v38 = vmul.f32 %v5885_v58, %v10295_v11  ;;  %v4359_v44 = vmul.f32 0.2, %v4334_v10 }
 0x343   :  { %v4177_v62 = vadd.f32 %v4152_v1, %v4125_v17  ;;  %v4672_v18 = vadd.f32 %v4647_v3, %v4620_v23  ;;  %v4803_v28 = vmul.f32 %v5880_v24, %v10396_v14  ;;  %v4933_v47 = vadd.f32 %v4908_v60, %v4881_v57  ;;  %v5887_v1 = vld [vmem:[%s11620_s0 + $0x380] sm:$0xff] }
 0x344   :  { %v4855_v9 = vmul.f32 %v5881_v4, %v10399_v53  ;;  %v3968_v50 = vadd.f32 %v3943_v30, %v3916_v54  ;;  %v4047_v48 = vmul.f32 %v5886_v43, %v10312_v59  ;;  %v4384_v32 = vmax.f32 %v4334_v10, %v4359_v44  ;;  %v5891_v17 = vld [vmem:[%s11620_s0 + $0x6a0] sm:$0xff]  ;;  %v5892_v54 = vld [vmem:[%s11620_s0 + $0x58] sm:$0xff] }
 0x345   :  { %v4229_v15 = vadd.f32 %v4204_v42, %v4177_v62  ;;  %v4724_v12 = vadd.f32 %v4699_v6, %v4672_v18  ;;  %v4099_v49 = vmul.f32 %v5887_v1, %v10315_v39  ;;  %v4958_v46 = vmul.f32 0.2, %v4933_v47  ;;  %v5888_v42 = vld [vmem:[%s11620_s0 + $0x448] sm:$0xff] }
 0x346   :  { %v4020_v60 = vadd.f32 %v3995_v38, %v3968_v50  ;;  %v4489_v40 = vmul.f32 %v5883_v51, %v10359_v29  ;;  %v4542_v35 = vmul.f32 %v5884_v37, %v10368_v22  ;;  %4406 = vmatpush1.msra.mxu0 %v4384_v32  ;;  %v4907_v4 = vmul.f32 %v5882_v27, %v10403_v36  ;;  %v5890_v37 = vld [vmem:[%s11620_s0 + $0x5d8] sm:$0xff]  ;;  %v5893_v38 = vld [vmem:[%s11620_s0 + $0x120] sm:$0xff] }
 0x347   :  { %v4281_v52 = vadd.f32 %v4256_v20, %v4229_v15  ;;  %v4776_v24 = vadd.f32 %v4751_v41, %v4724_v12  ;;  %v4151_v55 = vmul.f32 %v5888_v42, %v10327_v21  ;;  %v4983_v31 = vmax.f32 %v4933_v47, %v4958_v46  ;;  %4407 = vmatprep.subr.mxu0 %v6135_v0  ;;  %v5889_v20 = vld [vmem:[%s11620_s0 + $0x510] sm:$0xff] }
 0x348   :  { %v4072_v8 = vadd.f32 %v4047_v48, %v4020_v60  ;;  %v4515_v3 = vadd.f32 %v10362_v2, %v4489_v40  ;;  %v4594_v13 = vmul.f32 %v5885_v58, %v10372_v25  ;;  %v4203_v27 = vmul.f32 %v5889_v20, %v10330_v19  ;;  %v5894_v48 = vld [vmem:[%s11620_s0 + $0x1e8] sm:$0xff] }
 0x349   :  { %v4333_v51 = vadd.f32 %v4308_v5, %v4281_v52  ;;  %v4828_v61 = vadd.f32 %v4803_v28, %v4776_v24  ;;  %v4255_v30 = vmul.f32 %v5890_v37, %v10353_v34  ;;  %5005 = vmatpush1.msra.mxu1 %v4983_v31  ;;  %v4307_v5 = vmul.f32 %v5891_v17, %v10356_v7 }
 0x34a   :  { %v4124_v10 = vadd.f32 %v4099_v49, %v4072_v8  ;;  %v4567_v23 = vadd.f32 %v4542_v35, %v4515_v3  ;;  %v4646_v6 = vmul.f32 %v5886_v43, %v10375_v16  ;;  %5006 = vmatprep.subr.mxu1 %v6135_v0  ;;  %v3889_v58 = vmul.f32 %v5892_v54, %v10277_v45  ;;  %v5895_v35 = vld [vmem:[%s11620_s0 + $0x2b0] sm:$0xff]  ;;  %v5896_v3 = vld [vmem:[%s11620_s0 + $0x378] sm:$0xff] }
 0x34b   :  { %v4358_v57 = vmul.f32 0.2, %v4333_v51  ;;  %v4880_v41 = vadd.f32 %v4855_v9, %v4828_v61  ;;  %v3942_v44 = vmul.f32 %v5893_v38, %v10292_v26  ;;  %v4698_v28 = vmul.f32 %v5887_v1, %v10385_v33 }
 0x34c   :  { %v4176_v62 = vadd.f32 %v4151_v55, %v4124_v10  ;;  %v4619_v18 = vadd.f32 %v4594_v13, %v4567_v23  ;;  %v4750_v47 = vmul.f32 %v5888_v42, %v10393_v56  ;;  %v3915_v43 = vadd.f32 %v10287_v63, %v3889_v58 }
 0x34d   :  { %v4383_v50 = vmax.f32 %v4333_v51, %v4358_v57  ;;  %v4932_v9 = vadd.f32 %v4907_v4, %v4880_v41  ;;  %v3994_v32 = vmul.f32 %v5894_v48, %v10295_v11  ;;  %v4802_v49 = vmul.f32 %v5889_v20, %v10396_v14  ;;  %v5897_v51 = vld [vmem:[%s11620_s0 + $0x440] sm:$0xff] }
 0x34e   :  { %v4228_v15 = vadd.f32 %v4203_v27, %v4176_v62  ;;  %v4671_v12 = vadd.f32 %v4646_v6, %v4619_v18  ;;  %v4854_v46 = vmul.f32 %v5890_v37, %v10399_v53  ;;  %v4906_v60 = vmul.f32 %v5891_v17, %v10403_v36  ;;  %v5898_v17 = vld [vmem:[%s11620_s0 + $0x508] sm:$0xff]  ;;  %v5899_v6 = vld [vmem:[%s11620_s0 + $0x5d0] sm:$0xff] }
 0x34f   :  { %4408 = vmatpush1.msra.mxu0 %v4383_v50  ;;  %v4957_v1 = vmul.f32 0.2, %v4932_v9  ;;  %v3967_v40 = vadd.f32 %v3942_v44, %v3915_v43  ;;  %v4046_v52 = vmul.f32 %v5895_v35, %v10312_v59  ;;  %v4488_v42 = vmul.f32 %v5892_v54, %v10359_v29  ;;  %v5902_v50 = vld [vmem:[%s11620_s0 + $0x118] sm:$0xff] }
 0x350   :  { %4409 = vmatprep.subr.mxu0 %v6135_v0  ;;  %v4280_v24 = vadd.f32 %v4255_v30, %v4228_v15  ;;  %v4723_v4 = vadd.f32 %v4698_v28, %v4671_v12  ;;  %v4541_v55 = vmul.f32 %v5893_v38, %v10368_v22  ;;  %v4098_v13 = vmul.f32 %v5896_v3, %v10315_v39  ;;  %v5901_v28 = vld [vmem:[%s11620_s0 + $0x50] sm:$0xff] }
 0x351   :  { %v4982_v31 = vmax.f32 %v4932_v9, %v4957_v1  ;;  %v4019_v8 = vadd.f32 %v3994_v32, %v3967_v40  ;;  %v4150_v61 = vmul.f32 %v5897_v51, %v10327_v21  ;;  %v4514_v37 = vadd.f32 %v10362_v2, %v4488_v42  ;;  %v5903_v40 = vld [vmem:[%s11620_s0 + $0x1e0] sm:$0xff] }
 0x352   :  { %v4332_v20 = vadd.f32 %v4307_v5, %v4280_v24  ;;  %v4775_v27 = vadd.f32 %v4750_v47, %v4723_v4  ;;  %v4593_v30 = vmul.f32 %v5894_v48, %v10372_v25  ;;  %v4202_v23 = vmul.f32 %v5898_v17, %v10330_v19  ;;  %v5900_v5 = vld [vmem:[%s11620_s0 + $0x698] sm:$0xff] }
 0x353   :  { %5007 = vmatpush1.msra.mxu1 %v4982_v31  ;;  %v4071_v10 = vadd.f32 %v4046_v52, %v4019_v8  ;;  %v4254_v57 = vmul.f32 %v5899_v6, %v10353_v34  ;;  %v4306_v41 = vmul.f32 %v5900_v5, %v10356_v7  ;;  %v4566_v38 = vadd.f32 %v4541_v55, %v4514_v37  ;;  %v5904_v31 = vld [vmem:[%s11620_s0 + $0x2a8] sm:$0xff] }
 0x354   :  { %5008 = vmatprep.subr.mxu1 %v6135_v0  ;;  %v4357_v54 = vmul.f32 0.2, %v4332_v20  ;;  %v4827_v58 = vadd.f32 %v4802_v49, %v4775_v27  ;;  %v4645_v44 = vmul.f32 %v5895_v35, %v10375_v16  ;;  %v4697_v18 = vmul.f32 %v5896_v3, %v10385_v33 }
 0x355   :  { %v4123_v62 = vadd.f32 %v4098_v13, %v4071_v10  ;;  %v3888_v47 = vmul.f32 %v5901_v28, %v10277_v45  ;;  %v3941_v9 = vmul.f32 %v5902_v50, %v10292_v26  ;;  %v4618_v32 = vadd.f32 %v4593_v30, %v4566_v38 }
 0x356   :  { %v4382_v43 = vmax.f32 %v4332_v20, %v4357_v54  ;;  %v4879_v48 = vadd.f32 %v4854_v46, %v4827_v58  ;;  %v4749_v15 = vmul.f32 %v5897_v51, %v10393_v56  ;;  %v4801_v49 = vmul.f32 %v5898_v17, %v10396_v14  ;;  %v5907_v54 = vld [vmem:[%s11620_s0 + $0x500] sm:$0xff] }
 0x357   :  { %v4175_v12 = vadd.f32 %v4150_v61, %v4123_v62  ;;  %v3914_v1 = vadd.f32 %v10287_v63, %v3888_v47  ;;  %v3993_v35 = vmul.f32 %v5903_v40, %v10295_v11  ;;  %v4670_v24 = vadd.f32 %v4645_v44, %v4618_v32 }
 0x358   :  { %4410 = vmatpush1.msra.mxu0 %v4382_v43  ;;  %v4931_v52 = vadd.f32 %v4906_v60, %v4879_v48  ;;  %v4853_v4 = vmul.f32 %v5899_v6, %v10399_v53  ;;  %v4905_v46 = vmul.f32 %v5900_v5, %v10403_v36  ;;  %v4045_v8 = vmul.f32 %v5904_v31, %v10312_v59  ;;  %v5905_v60 = vld [vmem:[%s11620_s0 + $0x370] sm:$0xff]  ;;  %v5906_v6 = vld [vmem:[%s11620_s0 + $0x438] sm:$0xff] }
 0x359   :  { %4411 = vmatprep.subr.mxu0 %v6135_v0  ;;  %v4227_v42 = vadd.f32 %v4202_v23, %v4175_v12  ;;  %v3966_v55 = vadd.f32 %v3941_v9, %v3914_v1  ;;  %v4487_v3 = vmul.f32 %v5901_v28, %v10359_v29  ;;  %v4722_v51 = vadd.f32 %v4697_v18, %v4670_v24  ;;  %v5908_v28 = vld [vmem:[%s11620_s0 + $0x5c8] sm:$0xff]  ;;  %v5911_v1 = vld [vmem:[%s11620_s0 + $0x690] sm:$0xff] }
 0x35a   :  { %v4956_v13 = vmul.f32 0.2, %v4931_v52  ;;  %v4097_v61 = vmul.f32 %v5905_v60, %v10315_v39  ;;  %v4540_v20 = vmul.f32 %v5902_v50, %v10368_v22  ;;  %v4592_v10 = vmul.f32 %v5903_v40, %v10372_v25  ;;  %v5909_v9 = vld [vmem:[%s11620_s0 + $0x48] sm:$0xff] }
 0x35b   :  { %v4279_v27 = vadd.f32 %v4254_v57, %v4227_v42  ;;  %v4018_v37 = vadd.f32 %v3993_v35, %v3966_v55  ;;  %v4513_v30 = vadd.f32 %v10362_v2, %v4487_v3  ;;  %v4774_v23 = vadd.f32 %v4749_v15, %v4722_v51  ;;  %v5910_v15 = vld [vmem:[%s11620_s0 + $0x110] sm:$0xff]  ;;  %v5913_v51 = vld [vmem:[%s11620_s0 + $0x2a0] sm:$0xff] }
 0x35c   :  { %v4981_v17 = vmax.f32 %v4931_v52, %v4956_v13  ;;  %v4149_v5 = vmul.f32 %v5906_v6, %v10327_v21  ;;  %v4201_v58 = vmul.f32 %v5907_v54, %v10330_v19  ;;  %v4644_v62 = vmul.f32 %v5904_v31, %v10375_v16  ;;  %v5912_v52 = vld [vmem:[%s11620_s0 + $0x1d8] sm:$0xff] }
 0x35d   :  { %v4331_v57 = vadd.f32 %v4306_v41, %v4279_v27  ;;  %v4070_v38 = vadd.f32 %v4045_v8, %v4018_v37  ;;  %v4565_v44 = vadd.f32 %v4540_v20, %v4513_v30  ;;  %v4826_v18 = vadd.f32 %v4801_v49, %v4774_v23  ;;  %v5914_v37 = vld [vmem:[%s11620_s0 + $0x368] sm:$0xff] }
 0x35e   :  { %5009 = vmatpush1.msra.mxu1 %v4981_v17  ;;  %v4253_v47 = vmul.f32 %v5908_v28, %v10353_v34  ;;  %v4696_v50 = vmul.f32 %v5905_v60, %v10385_v33  ;;  %v3887_v41 = vmul.f32 %v5909_v9, %v10277_v45  ;;  %v3940_v12 = vmul.f32 %v5910_v15, %v10292_v26 }
 0x35f   :  { %5010 = vmatprep.subr.mxu1 %v6135_v0  ;;  %v4356_v43 = vmul.f32 0.2, %v4331_v57  ;;  %v4122_v48 = vadd.f32 %v4097_v61, %v4070_v38  ;;  %v4617_v32 = vadd.f32 %v4592_v10, %v4565_v44  ;;  %v4878_v49 = vadd.f32 %v4853_v4, %v4826_v18 }
 0x360   :  { %v4305_v40 = vmul.f32 %v5911_v1, %v10356_v7  ;;  %v3913_v35 = vadd.f32 %v10287_v63, %v3887_v41  ;;  %v3992_v24 = vmul.f32 %v5912_v52, %v10295_v11  ;;  %v4748_v8 = vmul.f32 %v5906_v6, %v10393_v56  ;;  %v5917_v41 = vld [vmem:[%s11620_s0 + $0x5c0] sm:$0xff] }
 0x361   :  { %v4381_v42 = vmax.f32 %v4331_v57, %v4356_v43  ;;  %v4174_v55 = vadd.f32 %v4149_v5, %v4122_v48  ;;  %v4669_v31 = vadd.f32 %v4644_v62, %v4617_v32  ;;  %v4930_v4 = vadd.f32 %v4905_v46, %v4878_v49  ;;  %v5918_v32 = vld [vmem:[%s11620_s0 + $0x688] sm:$0xff] }
 0x362   :  { %v4800_v3 = vmul.f32 %v5907_v54, %v10396_v14  ;;  %v3965_v13 = vadd.f32 %v3940_v12, %v3913_v35  ;;  %v4044_v60 = vmul.f32 %v5913_v51, %v10312_v59  ;;  %v4852_v27 = vmul.f32 %v5908_v28, %v10399_v53  ;;  %v5919_v35 = vld [vmem:[%s11620_s0 + $0x40] sm:$0xff] }
 0x363   :  { %4412 = vmatpush1.msra.mxu0 %v4381_v42  ;;  %v4226_v61 = vadd.f32 %v4201_v58, %v4174_v55  ;;  %v4721_v20 = vadd.f32 %v4696_v50, %v4669_v31  ;;  %v4096_v46 = vmul.f32 %v5914_v37, %v10315_v39  ;;  %v4955_v30 = vmul.f32 0.2, %v4930_v4  ;;  %v5915_v58 = vld [vmem:[%s11620_s0 + $0x430] sm:$0xff] }
 0x364   :  { %4413 = vmatprep.subr.mxu0 %v6135_v0  ;;  %v4017_v10 = vadd.f32 %v3992_v24, %v3965_v13  ;;  %v4486_v17 = vmul.f32 %v5909_v9, %v10359_v29  ;;  %v4539_v23 = vmul.f32 %v5910_v15, %v10368_v22  ;;  %v4904_v54 = vmul.f32 %v5911_v1, %v10403_v36  ;;  %v5920_v24 = vld [vmem:[%s11620_s0 + $0x108] sm:$0xff] }
 0x365   :  { %v4278_v6 = vadd.f32 %v4253_v47, %v4226_v61  ;;  %v4773_v5 = vadd.f32 %v4748_v8, %v4721_v20  ;;  %v4148_v57 = vmul.f32 %v5915_v58, %v10327_v21  ;;  %v4980_v38 = vmax.f32 %v4930_v4, %v4955_v30  ;;  %v5916_v47 = vld [vmem:[%s11620_s0 + $0x4f8] sm:$0xff] }
 0x366   :  { %v4069_v44 = vadd.f32 %v4044_v60, %v4017_v10  ;;  %v4512_v62 = vadd.f32 %v10362_v2, %v4486_v17  ;;  %v4591_v18 = vmul.f32 %v5912_v52, %v10372_v25  ;;  %v4200_v9 = vmul.f32 %v5916_v47, %v10330_v19  ;;  %v5921_v60 = vld [vmem:[%s11620_s0 + $0x1d0] sm:$0xff] }
 0x367   :  { %v4330_v28 = vadd.f32 %v4305_v40, %v4278_v6  ;;  %v4825_v50 = vadd.f32 %v4800_v3, %v4773_v5  ;;  %v4252_v43 = vmul.f32 %v5917_v41, %v10353_v34  ;;  %5011 = vmatpush1.msra.mxu1 %v4980_v38  ;;  %v4304_v15 = vmul.f32 %v5918_v32, %v10356_v7 }
 0x368   :  { %v4121_v48 = vadd.f32 %v4096_v46, %v4069_v44  ;;  %v4564_v12 = vadd.f32 %v4539_v23, %v4512_v62  ;;  %v4643_v49 = vmul.f32 %v5913_v51, %v10375_v16  ;;  %5012 = vmatprep.subr.mxu1 %v6135_v0  ;;  %v3886_v52 = vmul.f32 %v5919_v35, %v10277_v45  ;;  %v5922_v23 = vld [vmem:[%s11620_s0 + $0x298] sm:$0xff]  ;;  %v5923_v62 = vld [vmem:[%s11620_s0 + $0x360] sm:$0xff] }
 0x369   :  { %v4355_v1 = vmul.f32 0.2, %v4330_v28  ;;  %v4877_v40 = vadd.f32 %v4852_v27, %v4825_v50  ;;  %v3939_v42 = vmul.f32 %v5920_v24, %v10292_v26  ;;  %v4695_v8 = vmul.f32 %v5914_v37, %v10385_v33 }
 0x36a   :  { %v4173_v55 = vadd.f32 %v4148_v57, %v4121_v48  ;;  %v4616_v31 = vadd.f32 %v4591_v18, %v4564_v12  ;;  %v4747_v4 = vmul.f32 %v5915_v58, %v10393_v56  ;;  %v3912_v51 = vadd.f32 %v10287_v63, %v3886_v52 }
 0x36b   :  { %v4380_v3 = vmax.f32 %v4330_v28, %v4355_v1  ;;  %v4929_v13 = vadd.f32 %v4904_v54, %v4877_v40  ;;  %v3991_v61 = vmul.f32 %v5921_v60, %v10295_v11  ;;  %v4799_v46 = vmul.f32 %v5916_v47, %v10396_v14  ;;  %v5924_v28 = vld [vmem:[%s11620_s0 + $0x428] sm:$0xff] }
 0x36c   :  { %v4225_v20 = vadd.f32 %v4200_v9, %v4173_v55  ;;  %v4668_v27 = vadd.f32 %v4643_v49, %v4616_v31  ;;  %v4851_v30 = vmul.f32 %v5917_v41, %v10399_v53  ;;  %v4903_v10 = vmul.f32 %v5918_v32, %v10403_v36  ;;  %v5925_v32 = vld [vmem:[%s11620_s0 + $0x4f0] sm:$0xff]  ;;  %v5926_v49 = vld [vmem:[%s11620_s0 + $0x5b8] sm:$0xff] }
 0x36d   :  { %4414 = vmatpush1.msra.mxu0 %v4380_v3  ;;  %v4954_v37 = vmul.f32 0.2, %v4929_v13  ;;  %v3964_v17 = vadd.f32 %v3939_v42, %v3912_v51  ;;  %v4043_v6 = vmul.f32 %v5922_v23, %v10312_v59  ;;  %v4485_v58 = vmul.f32 %v5919_v35, %v10359_v29  ;;  %v5929_v3 = vld [vmem:[%s11620_s0 + $0x100] sm:$0xff] }
 0x36e   :  { %4415 = vmatprep.subr.mxu0 %v6135_v0  ;;  %v4277_v5 = vadd.f32 %v4252_v43, %v4225_v20  ;;  %v4720_v54 = vadd.f32 %v4695_v8, %v4668_v27  ;;  %v4538_v57 = vmul.f32 %v5920_v24, %v10368_v22  ;;  %v4095_v18 = vmul.f32 %v5923_v62, %v10315_v39  ;;  %v5928_v8 = vld [vmem:[%s11620_s0 + $0x38] sm:$0xff] }
 0x36f   :  { %v4979_v38 = vmax.f32 %v4929_v13, %v4954_v37  ;;  %v4016_v44 = vadd.f32 %v3991_v61, %v3964_v17  ;;  %v4147_v50 = vmul.f32 %v5924_v28, %v10327_v21  ;;  %v4511_v41 = vadd.f32 %v10362_v2, %v4485_v58  ;;  %v5930_v17 = vld [vmem:[%s11620_s0 + $0x1c8] sm:$0xff] }
 0x370   :  { %v4329_v47 = vadd.f32 %v4304_v15, %v4277_v5  ;;  %v4772_v9 = vadd.f32 %v4747_v4, %v4720_v54  ;;  %v4590_v43 = vmul.f32 %v5921_v60, %v10372_v25  ;;  %v4199_v12 = vmul.f32 %v5925_v32, %v10330_v19  ;;  %v5927_v15 = vld [vmem:[%s11620_s0 + $0x680] sm:$0xff] }
 0x371   :  { %5013 = vmatpush1.msra.mxu1 %v4979_v38  ;;  %v4068_v48 = vadd.f32 %v4043_v6, %v4016_v44  ;;  %v4251_v1 = vmul.f32 %v5926_v49, %v10353_v34  ;;  %v4303_v40 = vmul.f32 %v5927_v15, %v10356_v7  ;;  %v4563_v24 = vadd.f32 %v4538_v57, %v4511_v41  ;;  %v5931_v38 = vld [vmem:[%s11620_s0 + $0x290] sm:$0xff] }
 0x372   :  { %5014 = vmatprep.subr.mxu1 %v6135_v0  ;;  %v4354_v35 = vmul.f32 0.2, %v4329_v47  ;;  %v4824_v52 = vadd.f32 %v4799_v46, %v4772_v9  ;;  %v4642_v42 = vmul.f32 %v5922_v23, %v10375_v16  ;;  %v4694_v31 = vmul.f32 %v5923_v62, %v10385_v33 }
 0x373   :  { %v4120_v55 = vadd.f32 %v4095_v18, %v4068_v48  ;;  %v3885_v4 = vmul.f32 %v5928_v8, %v10277_v45  ;;  %v3938_v13 = vmul.f32 %v5929_v3, %v10292_v26  ;;  %v4615_v61 = vadd.f32 %v4590_v43, %v4563_v24 }
 0x374   :  { %v4379_v51 = vmax.f32 %v4329_v47, %v4354_v35  ;;  %v4876_v60 = vadd.f32 %v4851_v30, %v4824_v52  ;;  %v4746_v20 = vmul.f32 %v5924_v28, %v10393_v56  ;;  %v4798_v46 = vmul.f32 %v5925_v32, %v10396_v14  ;;  %v5934_v35 = vld [vmem:[%s11620_s0 + $0x4e8] sm:$0xff] }
 0x375   :  { %v4172_v27 = vadd.f32 %v4147_v50, %v4120_v55  ;;  %v3911_v37 = vadd.f32 %v10287_v63, %v3885_v4  ;;  %v3990_v23 = vmul.f32 %v5930_v17, %v10295_v11  ;;  %v4667_v5 = vadd.f32 %v4642_v42, %v4615_v61 }
 0x376   :  { %4416 = vmatpush1.msra.mxu0 %v4379_v51  ;;  %v4928_v6 = vadd.f32 %v4903_v10, %v4876_v60  ;;  %v4850_v54 = vmul.f32 %v5926_v49, %v10399_v53  ;;  %v4902_v30 = vmul.f32 %v5927_v15, %v10403_v36  ;;  %v4042_v44 = vmul.f32 %v5931_v38, %v10312_v59  ;;  %v5932_v10 = vld [vmem:[%s11620_s0 + $0x358] sm:$0xff]  ;;  %v5933_v49 = vld [vmem:[%s11620_s0 + $0x420] sm:$0xff] }
 0x377   :  { %4417 = vmatprep.subr.mxu0 %v6135_v0  ;;  %v4224_v58 = vadd.f32 %v4199_v12, %v4172_v27  ;;  %v3963_v57 = vadd.f32 %v3938_v13, %v3911_v37  ;;  %v4484_v62 = vmul.f32 %v5928_v8, %v10359_v29  ;;  %v4719_v28 = vadd.f32 %v4694_v31, %v4667_v5  ;;  %v5935_v8 = vld [vmem:[%s11620_s0 + $0x5b0] sm:$0xff]  ;;  %v5938_v37 = vld [vmem:[%s11620_s0 + $0x678] sm:$0xff] }
 0x378   :  { %v4953_v18 = vmul.f32 0.2, %v4928_v6  ;;  %v4094_v50 = vmul.f32 %v5932_v10, %v10315_v39  ;;  %v4537_v47 = vmul.f32 %v5929_v3, %v10368_v22  ;;  %v4589_v48 = vmul.f32 %v5930_v17, %v10372_v25  ;;  %v5936_v13 = vld [vmem:[%s11620_s0 + $0x30] sm:$0xff] }
 0x379   :  { %v4276_v9 = vadd.f32 %v4251_v1, %v4224_v58  ;;  %v4015_v41 = vadd.f32 %v3990_v23, %v3963_v57  ;;  %v4510_v43 = vadd.f32 %v10362_v2, %v4484_v62  ;;  %v4771_v12 = vadd.f32 %v4746_v20, %v4719_v28  ;;  %v5937_v20 = vld [vmem:[%s11620_s0 + $0xf8] sm:$0xff]  ;;  %v5940_v28 = vld [vmem:[%s11620_s0 + $0x288] sm:$0xff] }
 0x37a   :  { %v4978_v32 = vmax.f32 %v4928_v6, %v4953_v18  ;;  %v4146_v15 = vmul.f32 %v5933_v49, %v10327_v21  ;;  %v4198_v52 = vmul.f32 %v5934_v35, %v10330_v19  ;;  %v4641_v55 = vmul.f32 %v5931_v38, %v10375_v16  ;;  %v5939_v6 = vld [vmem:[%s11620_s0 + $0x1c0] sm:$0xff] }
 0x37b   :  { %v4328_v1 = vadd.f32 %v4303_v40, %v4276_v9  ;;  %v4067_v24 = vadd.f32 %v4042_v44, %v4015_v41  ;;  %v4562_v42 = vadd.f32 %v4537_v47, %v4510_v43  ;;  %v4823_v31 = vadd.f32 %v4798_v46, %v4771_v12  ;;  %v5941_v41 = vld [vmem:[%s11620_s0 + $0x350] sm:$0xff] }
 0x37c   :  { %5015 = vmatpush1.msra.mxu1 %v4978_v32  ;;  %v4250_v4 = vmul.f32 %v5935_v8, %v10353_v34  ;;  %v4693_v3 = vmul.f32 %v5932_v10, %v10385_v33  ;;  %v3884_v40 = vmul.f32 %v5936_v13, %v10277_v45  ;;  %v3937_v27 = vmul.f32 %v5937_v20, %v10292_v26 }
 0x37d   :  { %5016 = vmatprep.subr.mxu1 %v6135_v0  ;;  %v4353_v51 = vmul.f32 0.2, %v4328_v1  ;;  %v4119_v60 = vadd.f32 %v4094_v50, %v4067_v24  ;;  %v4614_v61 = vadd.f32 %v4589_v48, %v4562_v42  ;;  %v4875_v46 = vadd.f32 %v4850_v54, %v4823_v31 }
 0x37e   :  { %v4302_v17 = vmul.f32 %v5938_v37, %v10356_v7  ;;  %v3910_v23 = vadd.f32 %v10287_v63, %v3884_v40  ;;  %v3989_v5 = vmul.f32 %v5939_v6, %v10295_v11  ;;  %v4745_v44 = vmul.f32 %v5933_v49, %v10393_v56  ;;  %v5944_v40 = vld [vmem:[%s11620_s0 + $0x5a8] sm:$0xff] }
 0x37f   :  { %v4378_v58 = vmax.f32 %v4328_v1, %v4353_v51  ;;  %v4171_v57 = vadd.f32 %v4146_v15, %v4119_v60  ;;  %v4666_v38 = vadd.f32 %v4641_v55, %v4614_v61  ;;  %v4927_v54 = vadd.f32 %v4902_v30, %v4875_v46  ;;  %v5945_v61 = vld [vmem:[%s11620_s0 + $0x670] sm:$0xff] }
 0x380   :  { %v4797_v62 = vmul.f32 %v5934_v35, %v10396_v14  ;;  %v3962_v18 = vadd.f32 %v3937_v27, %v3910_v23  ;;  %v4041_v10 = vmul.f32 %v5940_v28, %v10312_v59  ;;  %v4849_v9 = vmul.f32 %v5935_v8, %v10399_v53  ;;  %v5946_v23 = vld [vmem:[%s11620_s0 + $0x28] sm:$0xff] }
 0x381   :  { %4418 = vmatpush1.msra.mxu0 %v4378_v58  ;;  %v4223_v50 = vadd.f32 %v4198_v52, %v4171_v57  ;;  %v4718_v47 = vadd.f32 %v4693_v3, %v4666_v38  ;;  %v4093_v30 = vmul.f32 %v5941_v41, %v10315_v39  ;;  %v4952_v43 = vmul.f32 0.2, %v4927_v54  ;;  %v5942_v52 = vld [vmem:[%s11620_s0 + $0x418] sm:$0xff] }
 0x382   :  { %4419 = vmatprep.subr.mxu0 %v6135_v0  ;;  %v4014_v48 = vadd.f32 %v3989_v5, %v3962_v18  ;;  %v4483_v32 = vmul.f32 %v5936_v13, %v10359_v29  ;;  %v4536_v12 = vmul.f32 %v5937_v20, %v10368_v22  ;;  %v4901_v35 = vmul.f32 %v5938_v37, %v10403_v36  ;;  %v5947_v5 = vld [vmem:[%s11620_s0 + $0xf0] sm:$0xff] }
 0x383   :  { %v4275_v49 = vadd.f32 %v4250_v4, %v4223_v50  ;;  %v4770_v15 = vadd.f32 %v4745_v44, %v4718_v47  ;;  %v4145_v1 = vmul.f32 %v5942_v52, %v10327_v21  ;;  %v4977_v24 = vmax.f32 %v4927_v54, %v4952_v43  ;;  %v5943_v4 = vld [vmem:[%s11620_s0 + $0x4e0] sm:$0xff] }
 0x384   :  { %v4066_v42 = vadd.f32 %v4041_v10, %v4014_v48  ;;  %v4509_v55 = vadd.f32 %v10362_v2, %v4483_v32  ;;  %v4588_v31 = vmul.f32 %v5939_v6, %v10372_v25  ;;  %v4197_v13 = vmul.f32 %v5943_v4, %v10330_v19  ;;  %v5948_v10 = vld [vmem:[%s11620_s0 + $0x1b8] sm:$0xff] }
 0x385   :  { %v4327_v8 = vadd.f32 %v4302_v17, %v4275_v49  ;;  %v4822_v3 = vadd.f32 %v4797_v62, %v4770_v15  ;;  %v4249_v51 = vmul.f32 %v5944_v40, %v10353_v34  ;;  %5017 = vmatpush1.msra.mxu1 %v4977_v24  ;;  %v4301_v20 = vmul.f32 %v5945_v61, %v10356_v7 }
 0x386   :  { %v4118_v60 = vadd.f32 %v4093_v30, %v4066_v42  ;;  %v4561_v27 = vadd.f32 %v4536_v12, %v4509_v55  ;;  %v4640_v46 = vmul.f32 %v5940_v28, %v10375_v16  ;;  %5018 = vmatprep.subr.mxu1 %v6135_v0  ;;  %v3883_v6 = vmul.f32 %v5946_v23, %v10277_v45  ;;  %v5949_v12 = vld [vmem:[%s11620_s0 + $0x280] sm:$0xff]  ;;  %v5950_v55 = vld [vmem:[%s11620_s0 + $0x348] sm:$0xff] }
 0x387   :  { %v4352_v37 = vmul.f32 0.2, %v4327_v8  ;;  %v4874_v17 = vadd.f32 %v4849_v9, %v4822_v3  ;;  %v3936_v58 = vmul.f32 %v5947_v5, %v10292_v26  ;;  %v4692_v44 = vmul.f32 %v5941_v41, %v10385_v33 }
 0x388   :  { %v4170_v57 = vadd.f32 %v4145_v1, %v4118_v60  ;;  %v4613_v38 = vadd.f32 %v4588_v31, %v4561_v27  ;;  %v4744_v54 = vmul.f32 %v5942_v52, %v10393_v56  ;;  %v3909_v28 = vadd.f32 %v10287_v63, %v3883_v6 }
 0x389   :  { %v4377_v62 = vmax.f32 %v4327_v8, %v4352_v37  ;;  %v4926_v18 = vadd.f32 %v4901_v35, %v4874_v17  ;;  %v3988_v50 = vmul.f32 %v5948_v10, %v10295_v11  ;;  %v4796_v30 = vmul.f32 %v5943_v4, %v10396_v14  ;;  %v5951_v8 = vld [vmem:[%s11620_s0 + $0x410] sm:$0xff] }
 0x38a   :  { %v4222_v47 = vadd.f32 %v4197_v13, %v4170_v57  ;;  %v4665_v9 = vadd.f32 %v4640_v46, %v4613_v38  ;;  %v4848_v43 = vmul.f32 %v5944_v40, %v10399_v53  ;;  %v4900_v48 = vmul.f32 %v5945_v61, %v10403_v36  ;;  %v5952_v61 = vld [vmem:[%s11620_s0 + $0x4d8] sm:$0xff]  ;;  %v5953_v46 = vld [vmem:[%s11620_s0 + $0x5a0] sm:$0xff] }
 0x38b   :  { %4420 = vmatpush1.msra.mxu0 %v4377_v62  ;;  %v4951_v41 = vmul.f32 0.2, %v4926_v18  ;;  %v3961_v32 = vadd.f32 %v3936_v58, %v3909_v28  ;;  %v4040_v49 = vmul.f32 %v5949_v12, %v10312_v59  ;;  %v4482_v52 = vmul.f32 %v5946_v23, %v10359_v29  ;;  %v5956_v62 = vld [vmem:[%s11620_s0 + $0xe8] sm:$0xff] }
 0x38c   :  { %4421 = vmatprep.subr.mxu0 %v6135_v0  ;;  %v4274_v15 = vadd.f32 %v4249_v51, %v4222_v47  ;;  %v4717_v35 = vadd.f32 %v4692_v44, %v4665_v9  ;;  %v4535_v1 = vmul.f32 %v5947_v5, %v10368_v22  ;;  %v4092_v31 = vmul.f32 %v5950_v55, %v10315_v39  ;;  %v5955_v44 = vld [vmem:[%s11620_s0 + $0x20] sm:$0xff] }
 0x38d   :  { %v4976_v24 = vmax.f32 %v4926_v18, %v4951_v41  ;;  %v4013_v42 = vadd.f32 %v3988_v50, %v3961_v32  ;;  %v4144_v3 = vmul.f32 %v5951_v8, %v10327_v21  ;;  %v4508_v40 = vadd.f32 %v10362_v2, %v4482_v52  ;;  %v5957_v32 = vld [vmem:[%s11620_s0 + $0x1b0] sm:$0xff] }
 0x38e   :  { %v4326_v4 = vadd.f32 %v4301_v20, %v4274_v15  ;;  %v4769_v13 = vadd.f32 %v4744_v54, %v4717_v35  ;;  %v4587_v51 = vmul.f32 %v5948_v10, %v10372_v25  ;;  %v4196_v27 = vmul.f32 %v5952_v61, %v10330_v19  ;;  %v5954_v20 = vld [vmem:[%s11620_s0 + $0x668] sm:$0xff] }
 0x38f   :  { %5019 = vmatpush1.msra.mxu1 %v4976_v24  ;;  %v4065_v60 = vadd.f32 %v4040_v49, %v4013_v42  ;;  %v4248_v37 = vmul.f32 %v5953_v46, %v10353_v34  ;;  %v4300_v17 = vmul.f32 %v5954_v20, %v10356_v7  ;;  %v4560_v5 = vadd.f32 %v4535_v1, %v4508_v40  ;;  %v5958_v24 = vld [vmem:[%s11620_s0 + $0x278] sm:$0xff] }
 0x390   :  { %5020 = vmatprep.subr.mxu1 %v6135_v0  ;;  %v4351_v23 = vmul.f32 0.2, %v4326_v4  ;;  %v4821_v6 = vadd.f32 %v4796_v30, %v4769_v13  ;;  %v4639_v58 = vmul.f32 %v5949_v12, %v10375_v16  ;;  %v4691_v38 = vmul.f32 %v5950_v55, %v10385_v33 }
 0x391   :  { %v4117_v57 = vadd.f32 %v4092_v31, %v4065_v60  ;;  %v3882_v54 = vmul.f32 %v5955_v44, %v10277_v45  ;;  %v3935_v18 = vmul.f32 %v5956_v62, %v10292_v26  ;;  %v4612_v50 = vadd.f32 %v4587_v51, %v4560_v5 }
 0x392   :  { %v4376_v28 = vmax.f32 %v4326_v4, %v4351_v23  ;;  %v4873_v10 = vadd.f32 %v4848_v43, %v4821_v6  ;;  %v4743_v47 = vmul.f32 %v5951_v8, %v10393_v56  ;;  %v4795_v30 = vmul.f32 %v5952_v61, %v10396_v14  ;;  %v5961_v23 = vld [vmem:[%s11620_s0 + $0x4d0] sm:$0xff] }
 0x393   :  { %v4169_v9 = vadd.f32 %v4144_v3, %v4117_v57  ;;  %v3908_v41 = vadd.f32 %v10287_v63, %v3882_v54  ;;  %v3987_v12 = vmul.f32 %v5957_v32, %v10295_v11  ;;  %v4664_v15 = vadd.f32 %v4639_v58, %v4612_v50 }
 0x394   :  { %4422 = vmatpush1.msra.mxu0 %v4376_v28  ;;  %v4925_v49 = vadd.f32 %v4900_v48, %v4873_v10  ;;  %v4847_v35 = vmul.f32 %v5953_v46, %v10399_v53  ;;  %v4899_v43 = vmul.f32 %v5954_v20, %v10403_v36  ;;  %v4039_v42 = vmul.f32 %v5958_v24, %v10312_v59  ;;  %v5959_v48 = vld [vmem:[%s11620_s0 + $0x340] sm:$0xff]  ;;  %v5960_v46 = vld [vmem:[%s11620_s0 + $0x408] sm:$0xff] }
 0x395   :  { %4423 = vmatprep.subr.mxu0 %v6135_v0  ;;  %v4221_v52 = vadd.f32 %v4196_v27, %v4169_v9  ;;  %v3960_v1 = vadd.f32 %v3935_v18, %v3908_v41  ;;  %v4481_v55 = vmul.f32 %v5955_v44, %v10359_v29  ;;  %v4716_v8 = vadd.f32 %v4691_v38, %v4664_v15  ;;  %v5962_v44 = vld [vmem:[%s11620_s0 + $0x598] sm:$0xff]  ;;  %v5965_v41 = vld [vmem:[%s11620_s0 + $0x660] sm:$0xff] }
 0x396   :  { %v4950_v31 = vmul.f32 0.2, %v4925_v49  ;;  %v4091_v3 = vmul.f32 %v5959_v48, %v10315_v39  ;;  %v4534_v4 = vmul.f32 %v5956_v62, %v10368_v22  ;;  %v4586_v60 = vmul.f32 %v5957_v32, %v10372_v25  ;;  %v5963_v18 = vld [vmem:[%s11620_s0 + $0x18] sm:$0xff] }
 0x397   :  { %v4273_v13 = vadd.f32 %v4248_v37, %v4221_v52  ;;  %v4012_v40 = vadd.f32 %v3987_v12, %v3960_v1  ;;  %v4507_v51 = vadd.f32 %v10362_v2, %v4481_v55  ;;  %v4768_v27 = vadd.f32 %v4743_v47, %v4716_v8  ;;  %v5964_v47 = vld [vmem:[%s11620_s0 + $0xe0] sm:$0xff]  ;;  %v5967_v8 = vld [vmem:[%s11620_s0 + $0x270] sm:$0xff] }
 0x398   :  { %v4975_v61 = vmax.f32 %v4925_v49, %v4950_v31  ;;  %v4143_v20 = vmul.f32 %v5960_v46, %v10327_v21  ;;  %v4195_v6 = vmul.f32 %v5961_v23, %v10330_v19  ;;  %v4638_v57 = vmul.f32 %v5958_v24, %v10375_v16  ;;  %v5966_v49 = vld [vmem:[%s11620_s0 + $0x1a8] sm:$0xff] }
 0x399   :  { %v4325_v37 = vadd.f32 %v4300_v17, %v4273_v13  ;;  %v4064_v5 = vadd.f32 %v4039_v42, %v4012_v40  ;;  %v4559_v58 = vadd.f32 %v4534_v4, %v4507_v51  ;;  %v4820_v38 = vadd.f32 %v4795_v30, %v4768_v27  ;;  %v5968_v40 = vld [vmem:[%s11620_s0 + $0x338] sm:$0xff] }
 0x39a   :  { %5021 = vmatpush1.msra.mxu1 %v4975_v61  ;;  %v4247_v54 = vmul.f32 %v5962_v44, %v10353_v34  ;;  %v4690_v62 = vmul.f32 %v5959_v48, %v10385_v33  ;;  %v3881_v17 = vmul.f32 %v5963_v18, %v10277_v45  ;;  %v3934_v9 = vmul.f32 %v5964_v47, %v10292_v26 }
 0x39b   :  { %5022 = vmatprep.subr.mxu1 %v6135_v0  ;;  %v4350_v28 = vmul.f32 0.2, %v4325_v37  ;;  %v4116_v10 = vadd.f32 %v4091_v3, %v4064_v5  ;;  %v4611_v50 = vadd.f32 %v4586_v60, %v4559_v58  ;;  %v4872_v30 = vadd.f32 %v4847_v35, %v4820_v38 }
 0x39c   :  { %v4299_v32 = vmul.f32 %v5965_v41, %v10356_v7  ;;  %v3907_v12 = vadd.f32 %v10287_v63, %v3881_v17  ;;  %v3986_v15 = vmul.f32 %v5966_v49, %v10295_v11  ;;  %v4742_v42 = vmul.f32 %v5960_v46, %v10393_v56  ;;  %v5971_v17 = vld [vmem:[%s11620_s0 + $0x590] sm:$0xff] }
 0x39d   :  { %v4375_v52 = vmax.f32 %v4325_v37, %v4350_v28  ;;  %v4168_v1 = vadd.f32 %v4143_v20, %v4116_v10  ;;  %v4663_v24 = vadd.f32 %v4638_v57, %v4611_v50  ;;  %v4924_v35 = vadd.f32 %v4899_v43, %v4872_v30  ;;  %v5972_v50 = vld [vmem:[%s11620_s0 + $0x658] sm:$0xff] }
 0x39e   :  { %v4794_v55 = vmul.f32 %v5961_v23, %v10396_v14  ;;  %v3959_v31 = vadd.f32 %v3934_v9, %v3907_v12  ;;  %v4038_v48 = vmul.f32 %v5967_v8, %v10312_v59  ;;  %v4846_v13 = vmul.f32 %v5962_v44, %v10399_v53  ;;  %v5973_v12 = vld [vmem:[%s11620_s0 + $0x10] sm:$0xff] }
 0x39f   :  { %4424 = vmatpush1.msra.mxu0 %v4375_v52  ;;  %v4220_v3 = vadd.f32 %v4195_v6, %v4168_v1  ;;  %v4715_v4 = vadd.f32 %v4690_v62, %v4663_v24  ;;  %v4090_v43 = vmul.f32 %v5968_v40, %v10315_v39  ;;  %v4949_v51 = vmul.f32 0.2, %v4924_v35  ;;  %v5969_v6 = vld [vmem:[%s11620_s0 + $0x400] sm:$0xff] }
 0x3a0   :  { %4425 = vmatprep.subr.mxu0 %v6135_v0  ;;  %v4011_v60 = vadd.f32 %v3986_v15, %v3959_v31  ;;  %v4480_v61 = vmul.f32 %v5963_v18, %v10359_v29  ;;  %v4533_v27 = vmul.f32 %v5964_v47, %v10368_v22  ;;  %v4898_v23 = vmul.f32 %v5965_v41, %v10403_v36  ;;  %v5974_v15 = vld [vmem:[%s11620_s0 + $0xd8] sm:$0xff] }
 0x3a1   :  { %v4272_v46 = vadd.f32 %v4247_v54, %v4220_v3  ;;  %v4767_v20 = vadd.f32 %v4742_v42, %v4715_v4  ;;  %v4142_v37 = vmul.f32 %v5969_v6, %v10327_v21  ;;  %v4974_v5 = vmax.f32 %v4924_v35, %v4949_v51  ;;  %v5970_v54 = vld [vmem:[%s11620_s0 + $0x4c8] sm:$0xff] }
 0x3a2   :  { %v4063_v58 = vadd.f32 %v4038_v48, %v4011_v60  ;;  %v4506_v57 = vadd.f32 %v10362_v2, %v4480_v61  ;;  %v4585_v38 = vmul.f32 %v5966_v49, %v10372_v25  ;;  %v4194_v18 = vmul.f32 %v5970_v54, %v10330_v19  ;;  %v5975_v48 = vld [vmem:[%s11620_s0 + $0x1a0] sm:$0xff] }
 0x3a3   :  { %v4324_v44 = vadd.f32 %v4299_v32, %v4272_v46  ;;  %v4819_v62 = vadd.f32 %v4794_v55, %v4767_v20  ;;  %v4246_v28 = vmul.f32 %v5971_v17, %v10353_v34  ;;  %5023 = vmatpush1.msra.mxu1 %v4974_v5  ;;  %v4298_v47 = vmul.f32 %v5972_v50, %v10356_v7 }
 0x3a4   :  { %v4115_v10 = vadd.f32 %v4090_v43, %v4063_v58  ;;  %v4558_v9 = vadd.f32 %v4533_v27, %v4506_v57  ;;  %v4637_v30 = vmul.f32 %v5967_v8, %v10375_v16  ;;  %5024 = vmatprep.subr.mxu1 %v6135_v0  ;;  %v3880_v49 = vmul.f32 %v5973_v12, %v10277_v45  ;;  %v5976_v27 = vld [vmem:[%s11620_s0 + $0x268] sm:$0xff]  ;;  %v5977_v57 = vld [vmem:[%s11620_s0 + $0x330] sm:$0xff] }
 0x3a5   :  { %v4349_v41 = vmul.f32 0.2, %v4324_v44  ;;  %v4871_v32 = vadd.f32 %v4846_v13, %v4819_v62  ;;  %v3933_v52 = vmul.f32 %v5974_v15, %v10292_v26  ;;  %v4689_v42 = vmul.f32 %v5968_v40, %v10385_v33 }
 0x3a6   :  { %v4167_v1 = vadd.f32 %v4142_v37, %v4115_v10  ;;  %v4610_v24 = vadd.f32 %v4585_v38, %v4558_v9  ;;  %v4741_v35 = vmul.f32 %v5969_v6, %v10393_v56  ;;  %v3906_v8 = vadd.f32 %v10287_v63, %v3880_v49 }
 0x3a7   :  { %v4374_v55 = vmax.f32 %v4324_v44, %v4349_v41  ;;  %v4923_v31 = vadd.f32 %v4898_v23, %v4871_v32  ;;  %v3985_v3 = vmul.f32 %v5975_v48, %v10295_v11  ;;  %v4793_v43 = vmul.f32 %v5970_v54, %v10396_v14  ;;  %v5978_v44 = vld [vmem:[%s11620_s0 + $0x3f8] sm:$0xff] }
 0x3a8   :  { %v4219_v4 = vadd.f32 %v4194_v18, %v4167_v1  ;;  %v4662_v13 = vadd.f32 %v4637_v30, %v4610_v24  ;;  %v4845_v51 = vmul.f32 %v5971_v17, %v10399_v53  ;;  %v4897_v60 = vmul.f32 %v5972_v50, %v10403_v36  ;;  %v5979_v50 = vld [vmem:[%s11620_s0 + $0x4c0] sm:$0xff]  ;;  %v5980_v30 = vld [vmem:[%s11620_s0 + $0x588] sm:$0xff] }
 0x3a9   :  { %4426 = vmatpush1.msra.mxu0 %v4374_v55  ;;  %v4948_v40 = vmul.f32 0.2, %v4923_v31  ;;  %v3958_v61 = vadd.f32 %v3933_v52, %v3906_v8  ;;  %v4037_v46 = vmul.f32 %v5976_v27, %v10312_v59  ;;  %v4479_v6 = vmul.f32 %v5973_v12, %v10359_v29  ;;  %v5983_v55 = vld [vmem:[%s11620_s0 + $0xd0] sm:$0xff] }
 0x3aa   :  { %4427 = vmatprep.subr.mxu0 %v6135_v0  ;;  %v4271_v20 = vadd.f32 %v4246_v28, %v4219_v4  ;;  %v4714_v23 = vadd.f32 %v4689_v42, %v4662_v13  ;;  %v4532_v37 = vmul.f32 %v5974_v15, %v10368_v22  ;;  %v4089_v38 = vmul.f32 %v5977_v57, %v10315_v39  ;;  %v5982_v42 = vld [vmem:[%s11620_s0 + $0x8] sm:$0xff] }
 0x3ab   :  { %v4973_v5 = vmax.f32 %v4923_v31, %v4948_v40  ;;  %v4010_v58 = vadd.f32 %v3985_v3, %v3958_v61  ;;  %v4141_v62 = vmul.f32 %v5978_v44, %v10327_v21  ;;  %v4505_v17 = vadd.f32 %v10362_v2, %v4479_v6  ;;  %v5984_v61 = vld [vmem:[%s11620_s0 + $0x198] sm:$0xff] }
 0x3ac   :  { %v4323_v54 = vadd.f32 %v4298_v47, %v4271_v20  ;;  %v4766_v18 = vadd.f32 %v4741_v35, %v4714_v23  ;;  %v4584_v28 = vmul.f32 %v5975_v48, %v10372_v25  ;;  %v4193_v9 = vmul.f32 %v5979_v50, %v10330_v19  ;;  %v5981_v47 = vld [vmem:[%s11620_s0 + $0x650] sm:$0xff]  ;;  %v11058_v20 = vpop.f32.mrf.mxu1 }
 0x3ad   :  { %5025 = vmatpush1.msra.mxu1 %v4973_v5  ;;  %v4062_v10 = vadd.f32 %v4037_v46, %v4010_v58  ;;  %v4245_v41 = vmul.f32 %v5980_v30, %v10353_v34  ;;  %v4297_v32 = vmul.f32 %v5981_v47, %v10356_v7  ;;  %v4557_v15 = vadd.f32 %v4532_v37, %v4505_v17  ;;  %v11056_v46 = vpop.f32.mrf.mxu0  ;;  %v5986_v17 = vld [vmem:[%s11620_s0 + $0x328] sm:$0xff] }
 0x3ae   :  { %5026 = vmatprep.subr.mxu1 %v6135_v0  ;;  %v4348_v12 = vmul.f32 0.2, %v4323_v54  ;;  %v4818_v49 = vadd.f32 %v4793_v43, %v4766_v18  ;;  %v4636_v52 = vmul.f32 %v5976_v27, %v10375_v16  ;;  %v4688_v24 = vmul.f32 %v5977_v57, %v10385_v33  ;;  %v5985_v57 = vld [vmem:[%s11620_s0 + $0x260] sm:$0xff] }
 0x3af   :  { %v4114_v1 = vadd.f32 %v4089_v38, %v4062_v10  ;;  %v3879_v35 = vmul.f32 %v5982_v42, %v10277_v45  ;;  %v3932_v31 = vmul.f32 %v5983_v55, %v10292_v26  ;;  %v4609_v3 = vadd.f32 %v4584_v28, %v4557_v15 }
 0x3b0   :  { %v4373_v8 = vmax.f32 %v4323_v54, %v4348_v12  ;;  %v4870_v48 = vadd.f32 %v4845_v51, %v4818_v49  ;;  %v4740_v4 = vmul.f32 %v5978_v44, %v10393_v56  ;;  %v4792_v43 = vmul.f32 %v5979_v50, %v10396_v14  ;;  %v1477_v54 = vpop.f32.mrf.mxu1 }
 0x3b1   :  { %v4166_v13 = vadd.f32 %v4141_v62, %v4114_v1  ;;  %v3905_v40 = vadd.f32 %v10287_v63, %v3879_v35  ;;  %v3984_v27 = vmul.f32 %v5984_v61, %v10295_v11  ;;  %v4661_v23 = vadd.f32 %v4636_v52, %v4609_v3  ;;  %v1402_v62 = vpop.f32.mrf.mxu0  ;;  %v5987_v1 = vld [vmem:[%s11620_s0 + $0x3f0] sm:$0xff] }
 0x3b2   :  { %4428 = vmatpush1.msra.mxu0 %v4373_v8  ;;  %v4922_v51 = vadd.f32 %v4897_v60, %v4870_v48  ;;  %v4844_v6 = vmul.f32 %v5980_v30, %v10399_v53  ;;  %v4896_v37 = vmul.f32 %v5981_v47, %v10403_v36  ;;  %v4036_v38 = vmul.f32 %v5985_v57, %v10312_v59  ;;  %v11077_v49 = vpop.f32.mrf.mxu1  ;;  %v5993_v54 = vld [vmem:[%s11620_s0 + $0x190] sm:$0xff] }
 0x3b3   :  { %4429 = vmatprep.subr.mxu0 %v6135_v0  ;;  %v4218_v5 = vadd.f32 %v4193_v9, %v4166_v13  ;;  %v3957_v58 = vadd.f32 %v3932_v31, %v3905_v40  ;;  %v4478_v44 = vmul.f32 %v5982_v42, %v10359_v29  ;;  %v4713_v18 = vadd.f32 %v4688_v24, %v4661_v23  ;;  %v11075_v12 = vpop.f32.mrf.mxu0  ;;  %v5989_v13 = vld [vmem:[%s11620_s0 + $0x580] sm:$0xff] }
 0x3b4   :  { %v4947_v60 = vmul.f32 0.2, %v4922_v51  ;;  %v4088_v28 = vmul.f32 %v5986_v17, %v10315_v39  ;;  %v4531_v10 = vmul.f32 %v5983_v55, %v10368_v22  ;;  %v4583_v47 = vmul.f32 %v5984_v61, %v10372_v25  ;;  %v2674_v3 = vpop.f32.mrf.mxu1 }
 0x3b5   :  { %v4270_v50 = vadd.f32 %v4245_v41, %v4218_v5  ;;  %v4009_v9 = vadd.f32 %v3984_v27, %v3957_v58  ;;  %v4504_v30 = vadd.f32 %v10362_v2, %v4478_v44  ;;  %v4765_v52 = vadd.f32 %v4740_v4, %v4713_v18  ;;  %v5988_v41 = vld [vmem:[%s11620_s0 + $0x4b8] sm:$0xff]  ;;  %v2075_v48 = vpop.f32.mrf.mxu0  ;;  %v5996_v3 = vld [vmem:[%s11620_s0 + $0x3e8] sm:$0xff] }
 0x3b6   :  { %v4972_v15 = vmax.f32 %v4922_v51, %v4947_v60  ;;  %v4140_v24 = vmul.f32 %v5987_v1, %v10327_v21  ;;  %v4192_v42 = vmul.f32 %v5988_v41, %v10330_v19  ;;  %v4635_v8 = vmul.f32 %v5985_v57, %v10375_v16 }
 0x3b7   :  { %v4322_v35 = vadd.f32 %v4297_v32, %v4270_v50  ;;  %v4061_v55 = vadd.f32 %v4036_v38, %v4009_v9  ;;  %v4556_v31 = vadd.f32 %v4531_v10, %v4504_v30  ;;  %v4817_v4 = vadd.f32 %v4792_v43, %v4765_v52  ;;  %v5990_v32 = vld [vmem:[%s11620_s0] sm:$0xff]  ;;  %v5991_v43 = vld [vmem:[%s11620_s0 + $0xc8] sm:$0xff]  ;;  %v5994_v30 = vld [vmem:[%s11620_s0 + $0x258] sm:$0xff] }
 0x3b8   :  { %5027 = vmatpush1.msra.mxu1 %v4972_v15  ;;  %v4244_v40 = vmul.f32 %v5989_v13, %v10353_v34  ;;  %v4687_v61 = vmul.f32 %v5986_v17, %v10385_v33  ;;  %v3878_v27 = vmul.f32 %v5990_v32, %v10277_v45  ;;  %v3931_v58 = vmul.f32 %v5991_v43, %v10292_v26  ;;  %v5992_v38 = vld [vmem:[%s11620_s0 + $0x648] sm:$0xff] }
 0x3b9   :  { %5028 = vmatprep.subr.mxu1 %v6135_v0  ;;  %v4347_v51 = vmul.f32 0.2, %v4322_v35  ;;  %v4113_v23 = vadd.f32 %v4088_v28, %v4061_v55  ;;  %v4608_v5 = vadd.f32 %v4583_v47, %v4556_v31  ;;  %v4869_v57 = vadd.f32 %v4844_v6, %v4817_v4 }
 0x3ba   :  { %v4296_v44 = vmul.f32 %v5992_v38, %v10356_v7  ;;  %v3904_v62 = vadd.f32 %v10287_v63, %v3878_v27  ;;  %v3983_v60 = vmul.f32 %v5993_v54, %v10295_v11  ;;  %v4739_v10 = vmul.f32 %v5987_v1, %v10393_v56 }
 0x3bb   :  { %v4372_v18 = vmax.f32 %v4322_v35, %v4347_v51  ;;  %v4165_v17 = vadd.f32 %v4140_v24, %v4113_v23  ;;  %v4660_v28 = vadd.f32 %v4635_v8, %v4608_v5  ;;  %v4921_v6 = vadd.f32 %v4896_v37, %v4869_v57  ;;  %v5995_v24 = vld [vmem:[%s11620_s0 + $0x320] sm:$0xff] }
 0x3bc   :  { %v4791_v50 = vmul.f32 %v5988_v41, %v10396_v14  ;;  %v3956_v9 = vadd.f32 %v3931_v58, %v3904_v62  ;;  %v4035_v47 = vmul.f32 %v5994_v30, %v10312_v59  ;;  %v4843_v55 = vmul.f32 %v5989_v13, %v10399_v53 }
 0x3bd   :  { %4430 = vmatpush1.msra.mxu0 %v4372_v18  ;;  %v4217_v15 = vadd.f32 %v4192_v42, %v4165_v17  ;;  %v4712_v52 = vadd.f32 %v4687_v61, %v4660_v28  ;;  %v4087_v37 = vmul.f32 %v5995_v24, %v10315_v39  ;;  %v4946_v1 = vmul.f32 0.2, %v4921_v6  ;;  %v6000_v17 = vld [vmem:[%s11620_s0 + $0xc0] sm:$0xf] }
 0x3be   :  { %4431 = vmatprep.subr.mxu0 %v6135_v0  ;;  %v4008_v41 = vadd.f32 %v3983_v60, %v3956_v9  ;;  %v4477_v35 = vmul.f32 %v5990_v32, %v10359_v29  ;;  %v4530_v31 = vmul.f32 %v5991_v43, %v10368_v22  ;;  %v4895_v42 = vmul.f32 %v5992_v38, %v10403_v36  ;;  %v5998_v43 = vld [vmem:[%s11620_s0 + $0x578] sm:$0xff]  ;;  %v5999_v38 = vld [vmem:[%s11620_s0 + $0x640] sm:$0xff] }
 0x3bf   :  { %v4269_v8 = vadd.f32 %v4244_v40, %v4217_v15  ;;  %v4764_v48 = vadd.f32 %v4739_v10, %v4712_v52  ;;  %v4139_v4 = vmul.f32 %v5996_v3, %v10327_v21  ;;  %v4971_v13 = vmax.f32 %v4921_v6, %v4946_v1  ;;  %v5997_v40 = vld [vmem:[%s11620_s0 + $0x4b0] sm:$0xff]  ;;  %v6001_v10 = vld [vmem:[%s11620_s0 + $0x188] sm:$0xf] }
 0x3c0   :  { %v4060_v61 = vadd.f32 %v4035_v47, %v4008_v41  ;;  %v4503_v27 = vadd.f32 %v10362_v2, %v4477_v35  ;;  %v4582_v51 = vmul.f32 %v5993_v54, %v10372_v25  ;;  %v4191_v5 = vmul.f32 %v5997_v40, %v10330_v19 }
 0x3c1   :  { %v4321_v23 = vadd.f32 %v4296_v44, %v4269_v8  ;;  %v4816_v32 = vadd.f32 %v4791_v50, %v4764_v48  ;;  %v4243_v58 = vmul.f32 %v5998_v43, %v10353_v34  ;;  %5029 = vmatpush1.msra.mxu1 %v4971_v13  ;;  %v4295_v44 = vmul.f32 %v5999_v38, %v10356_v7 }
 0x3c2   :  { %v4112_v57 = vadd.f32 %v4087_v37, %v4060_v61  ;;  %v4555_v62 = vadd.f32 %v4530_v31, %v4503_v27  ;;  %v4634_v54 = vmul.f32 %v5994_v30, %v10375_v16  ;;  %5030 = vmatprep.subr.mxu1 %v6135_v0  ;;  %v3902_v28 = vmul.f32 %v6000_v17, %v10277_v45  ;;  %v6002_v37 = vld [vmem:[%s11620_s0 + $0x250] sm:$0xf] }
 0x3c3   :  { %v4346_v60 = vmul.f32 0.2, %v4321_v23  ;;  %v4868_v18 = vadd.f32 %v4843_v55, %v4816_v32  ;;  %v3955_v6 = vmul.f32 %v6001_v10, %v10292_v26  ;;  %v4686_v30 = vmul.f32 %v5995_v24, %v10385_v33 }
 0x3c4   :  { %v4164_v50 = vadd.f32 %v4139_v4, %v4112_v57  ;;  %v4607_v9 = vadd.f32 %v4582_v51, %v4555_v62  ;;  %v4738_v47 = vmul.f32 %v5996_v3, %v10393_v56  ;;  %v3928_v55 = vadd.f32 %v10287_v63, %v3902_v28  ;;  %v6007_v28 = vld [vmem:[%s11620_s0 + $0x638] sm:$0xf] }
 0x3c5   :  { %v4371_v15 = vmax.f32 %v4321_v23, %v4346_v60  ;;  %v4920_v52 = vadd.f32 %v4895_v42, %v4868_v18  ;;  %v4007_v1 = vmul.f32 %v6002_v37, %v10295_v11  ;;  %v4790_v31 = vmul.f32 %v5997_v40, %v10396_v14  ;;  %v6003_v42 = vld [vmem:[%s11620_s0 + $0x318] sm:$0xf]  ;;  %v6004_v40 = vld [vmem:[%s11620_s0 + $0x3e0] sm:$0xf]  ;;  %v6006_v18 = vld [vmem:[%s11620_s0 + $0x570] sm:$0xf] }
 0x3c6   :  { %v4216_v41 = vadd.f32 %v4191_v5, %v4164_v50  ;;  %v4659_v35 = vadd.f32 %v4634_v54, %v4607_v9  ;;  %v4842_v8 = vmul.f32 %v5998_v43, %v10399_v53  ;;  %v4894_v48 = vmul.f32 %v5999_v38, %v10403_v36  ;;  %v6005_v43 = vld [vmem:[%s11620_s0 + $0x4a8] sm:$0xf] }
 0x3c7   :  { %4432 = vmatpush1.msra.mxu0 %v4371_v15  ;;  %v4945_v24 = vmul.f32 0.2, %v4920_v52  ;;  %v3980_v3 = vadd.f32 %v3955_v6, %v3928_v55  ;;  %v4059_v4 = vmul.f32 %v6003_v42, %v10312_v59  ;;  %v4501_v27 = vmul.f32 %v6000_v17, %v10359_v29  ;;  %v6009_v55 = vld [vmem:[%s11620_s0 + $0xb8] sm:$0xff] }
 0x3c8   :  { %4433 = vmatprep.subr.mxu0 %v6135_v0  ;;  %v4268_v13 = vadd.f32 %v4243_v58, %v4216_v41  ;;  %v4711_v61 = vadd.f32 %v4686_v30, %v4659_v35  ;;  %v4554_v51 = vmul.f32 %v6001_v10, %v10368_v22  ;;  %v4111_v5 = vmul.f32 %v6004_v40, %v10315_v39 }
 0x3c9   :  { %v4970_v23 = vmax.f32 %v4920_v52, %v4945_v24  ;;  %v4032_v32 = vadd.f32 %v4007_v1, %v3980_v3  ;;  %v4163_v57 = vmul.f32 %v6005_v43, %v10327_v21  ;;  %v4527_v62 = vadd.f32 %v10362_v2, %v4501_v27  ;;  %v6010_v1 = vld [vmem:[%s11620_s0 + $0x180] sm:$0xff] }
 0x3ca   :  { %v4320_v58 = vadd.f32 %v4295_v44, %v4268_v13  ;;  %v4763_v38 = vadd.f32 %v4738_v47, %v4711_v61  ;;  %v4606_v54 = vmul.f32 %v6002_v37, %v10372_v25  ;;  %v4215_v17 = vmul.f32 %v6006_v18, %v10330_v19  ;;  %v6008_v44 = vld [vmem:[%s11620_s0 + $0x700] sm:$0xf]  ;;  %v6011_v61 = vld [vmem:[%s11620_s0 + $0x248] sm:$0xff] }
 0x3cb   :  { %5031 = vmatpush1.msra.mxu1 %v4970_v23  ;;  %v4084_v60 = vadd.f32 %v4059_v4, %v4032_v32  ;;  %v4267_v10 = vmul.f32 %v6007_v28, %v10353_v34  ;;  %v4319_v6 = vmul.f32 %v6008_v44, %v10356_v7  ;;  %v4579_v30 = vadd.f32 %v4554_v51, %v4527_v62 }
 0x3cc   :  { %5032 = vmatprep.subr.mxu1 %v6135_v0  ;;  %v4345_v50 = vmul.f32 0.2, %v4320_v58  ;;  %v4815_v9 = vadd.f32 %v4790_v31, %v4763_v38  ;;  %v4658_v47 = vmul.f32 %v6003_v42, %v10375_v16  ;;  %v4710_v52 = vmul.f32 %v6004_v40, %v10385_v33 }
 0x3cd   :  { %v4136_v15 = vadd.f32 %v4111_v5, %v4084_v60  ;;  %v3901_v37 = vmul.f32 %v6009_v55, %v10277_v45  ;;  %v3954_v41 = vmul.f32 %v6010_v1, %v10292_v26  ;;  %v4631_v24 = vadd.f32 %v4606_v54, %v4579_v30  ;;  %v6014_v30 = vld [vmem:[%s11620_s0 + $0x4a0] sm:$0xff] }
 0x3ce   :  { %v4370_v35 = vmax.f32 %v4320_v58, %v4345_v50  ;;  %v4867_v31 = vadd.f32 %v4842_v8, %v4815_v9  ;;  %v4762_v3 = vmul.f32 %v6005_v43, %v10393_v56  ;;  %v4814_v4 = vmul.f32 %v6006_v18, %v10396_v14  ;;  %v6012_v43 = vld [vmem:[%s11620_s0 + $0x310] sm:$0xff] }
 0x3cf   :  { %v4188_v42 = vadd.f32 %v4163_v57, %v4136_v15  ;;  %v3927_v13 = vadd.f32 %v10287_v63, %v3901_v37  ;;  %v4006_v27 = vmul.f32 %v6011_v61, %v10295_v11  ;;  %v4683_v23 = vadd.f32 %v4658_v47, %v4631_v24  ;;  %v6015_v15 = vld [vmem:[%s11620_s0 + $0x568] sm:$0xff] }
 0x3d0   :  { %4434 = vmatpush1.msra.mxu0 %v4370_v35  ;;  %v4919_v51 = vadd.f32 %v4894_v48, %v4867_v31  ;;  %v4866_v32 = vmul.f32 %v6007_v28, %v10399_v53  ;;  %v4918_v8 = vmul.f32 %v6008_v44, %v10403_v36  ;;  %v4058_v57 = vmul.f32 %v6012_v43, %v10312_v59  ;;  %v6013_v48 = vld [vmem:[%s11620_s0 + $0x3d8] sm:$0xff]  ;;  %v6016_v35 = vld [vmem:[%s11620_s0 + $0x630] sm:$0xff] }
 0x3d1   :  { %4449 = vmatprep.subr.mxu0 %v6135_v0  ;;  %v4240_v40 = vadd.f32 %v4215_v17, %v4188_v42  ;;  %v3979_v5 = vadd.f32 %v3954_v41, %v3927_v13  ;;  %v4500_v58 = vmul.f32 %v6009_v55, %v10359_v29  ;;  %v4735_v62 = vadd.f32 %v4710_v52, %v4683_v23  ;;  %v6019_v23 = vld [vmem:[%s11620_s0 + $0x6f8] sm:$0xff] }
 0x3d2   :  { %v4944_v38 = vmul.f32 0.2, %v4919_v51  ;;  %v4110_v54 = vmul.f32 %v6013_v48, %v10315_v39  ;;  %v4553_v60 = vmul.f32 %v6010_v1, %v10368_v22  ;;  %v4605_v44 = vmul.f32 %v6011_v61, %v10372_v25 }
 0x3d3   :  { %v4292_v18 = vadd.f32 %v4267_v10, %v4240_v40  ;;  %v4031_v17 = vadd.f32 %v4006_v27, %v3979_v5  ;;  %v4526_v28 = vadd.f32 %v10362_v2, %v4500_v58  ;;  %v4787_v9 = vadd.f32 %v4762_v3, %v4735_v62  ;;  %v6017_v3 = vld [vmem:[%s11620_s0 + $0xb0] sm:$0xff] }
 0x3d4   :  { %v4969_v50 = vmax.f32 %v4919_v51, %v4944_v38  ;;  %v4162_v47 = vmul.f32 %v6014_v30, %v10327_v21  ;;  %v4214_v52 = vmul.f32 %v6015_v15, %v10330_v19  ;;  %v4657_v1 = vmul.f32 %v6012_v43, %v10375_v16  ;;  %v6020_v43 = vld [vmem:[%s11620_s0 + $0x240] sm:$0xff] }
 0x3d5   :  { %v4344_v10 = vadd.f32 %v4319_v6, %v4292_v18  ;;  %v4083_v55 = vadd.f32 %v4058_v57, %v4031_v17  ;;  %v4578_v37 = vadd.f32 %v4553_v60, %v4526_v28  ;;  %v4839_v41 = vadd.f32 %v4814_v4, %v4787_v9  ;;  %v6018_v4 = vld [vmem:[%s11620_s0 + $0x178] sm:$0xff]  ;;  %v6021_v18 = vld [vmem:[%s11620_s0 + $0x308] sm:$0xff]  ;;  %v6022_v9 = vld [vmem:[%s11620_s0 + $0x3d0] sm:$0xff] }
 0x3d6   :  { %5033 = vmatpush1.msra.mxu1 %v4969_v50  ;;  %v4266_v31 = vmul.f32 %v6016_v35, %v10353_v34  ;;  %v4709_v24 = vmul.f32 %v6013_v48, %v10385_v33  ;;  %v3900_v6 = vmul.f32 %v6017_v3, %v10277_v45  ;;  %v3953_v27 = vmul.f32 %v6018_v4, %v10292_v26 }
 0x3d7   :  { %5048 = vmatprep.subr.mxu1 %v6135_v0  ;;  %v4369_v42 = vmul.f32 0.2, %v4344_v10  ;;  %v4135_v13 = vadd.f32 %v4110_v54, %v4083_v55  ;;  %v4630_v61 = vadd.f32 %v4605_v44, %v4578_v37  ;;  %v4891_v51 = vadd.f32 %v4866_v32, %v4839_v41 }
 0x3d8   :  { %v4318_v40 = vmul.f32 %v6019_v23, %v10356_v7  ;;  %v3926_v5 = vadd.f32 %v10287_v63, %v3900_v6  ;;  %v4005_v57 = vmul.f32 %v6020_v43, %v10295_v11  ;;  %v4761_v48 = vmul.f32 %v6014_v30, %v10393_v56 }
 0x3d9   :  { %v4394_v58 = vmax.f32 %v4344_v10, %v4369_v42  ;;  %v4187_v38 = vadd.f32 %v4162_v47, %v4135_v13  ;;  %v4682_v62 = vadd.f32 %v4657_v1, %v4630_v61  ;;  %v4943_v32 = vadd.f32 %v4918_v8, %v4891_v51  ;;  %v6023_v1 = vld [vmem:[%s11620_s0 + $0x498] sm:$0xff] }
 0x3da   :  { %v4813_v54 = vmul.f32 %v6015_v15, %v10396_v14  ;;  %v3978_v60 = vadd.f32 %v3953_v27, %v3926_v5  ;;  %v4057_v17 = vmul.f32 %v6021_v18, %v10312_v59  ;;  %v4865_v50 = vmul.f32 %v6016_v35, %v10399_v53 }
 0x3db   :  { %5380 = vmatpush2.msk.msra.mxu0 %vm1330_vm0, %v4394_v58  ;;  %v4239_v28 = vadd.f32 %v4214_v52, %v4187_v38  ;;  %v4734_v44 = vadd.f32 %v4709_v24, %v4682_v62  ;;  %v4109_v8 = vmul.f32 %v6022_v9, %v10315_v39  ;;  %v4968_v30 = vmul.f32 0.2, %v4943_v32  ;;  %v6027_v38 = vld [vmem:[%s11620_s0 + $0xa8] sm:$0xff] }
 0x3dc   :  { %4451 = vmatprep.subr.mxu0 %v6135_v0  ;;  %v4030_v47 = vadd.f32 %v4005_v57, %v3978_v60  ;;  %v4499_v15 = vmul.f32 %v6017_v3, %v10359_v29  ;;  %v4552_v10 = vmul.f32 %v6018_v4, %v10368_v22  ;;  %v4917_v52 = vmul.f32 %v6019_v23, %v10403_v36  ;;  %v6025_v4 = vld [vmem:[%s11620_s0 + $0x628] sm:$0xff]  ;;  %v6026_v23 = vld [vmem:[%s11620_s0 + $0x6f0] sm:$0xff] }
 0x3dd   :  { %v4291_v55 = vadd.f32 %v4266_v31, %v4239_v28  ;;  %v4786_v37 = vadd.f32 %v4761_v48, %v4734_v44  ;;  %v4161_v41 = vmul.f32 %v6023_v1, %v10327_v21  ;;  %v4993_v35 = vmax.f32 %v4943_v32, %v4968_v30  ;;  %v6024_v31 = vld [vmem:[%s11620_s0 + $0x560] sm:$0xff]  ;;  %v6028_v48 = vld [vmem:[%s11620_s0 + $0x170] sm:$0xff] }
 0x3de   :  { %v4082_v24 = vadd.f32 %v4057_v17, %v4030_v47  ;;  %v4525_v6 = vadd.f32 %v10362_v2, %v4499_v15  ;;  %v4604_v42 = vmul.f32 %v6020_v43, %v10372_v25  ;;  %v4213_v61 = vmul.f32 %v6024_v31, %v10330_v19 }
 0x3df   :  { %v4343_v13 = vadd.f32 %v4318_v40, %v4291_v55  ;;  %v4838_v3 = vadd.f32 %v4813_v54, %v4786_v37  ;;  %v4265_v27 = vmul.f32 %v6025_v4, %v10353_v34  ;;  %5392 = vmatpush2.msk.msra.mxu1 %vm1330_vm0, %v4993_v35  ;;  %v4317_v40 = vmul.f32 %v6026_v23, %v10356_v7 }
 0x3e0   :  { %v4134_v51 = vadd.f32 %v4109_v8, %v4082_v24  ;;  %v4577_v5 = vadd.f32 %v4552_v10, %v4525_v6  ;;  %v4656_v43 = vmul.f32 %v6021_v18, %v10375_v16  ;;  %5050 = vmatprep.subr.mxu1 %v6135_v0  ;;  %v3899_v62 = vmul.f32 %v6027_v38, %v10277_v45  ;;  %v6029_v8 = vld [vmem:[%s11620_s0 + $0x238] sm:$0xff] }
 0x3e1   :  { %v4368_v57 = vmul.f32 0.2, %v4343_v13  ;;  %v4890_v58 = vadd.f32 %v4865_v50, %v4838_v3  ;;  %v3952_v32 = vmul.f32 %v6028_v48, %v10292_v26  ;;  %v4708_v18 = vmul.f32 %v6022_v9, %v10385_v33 }
 0x3e2   :  { %v4186_v54 = vadd.f32 %v4161_v41, %v4134_v51  ;;  %v4629_v60 = vadd.f32 %v4604_v42, %v4577_v5  ;;  %v4760_v17 = vmul.f32 %v6023_v1, %v10393_v56  ;;  %v3925_v50 = vadd.f32 %v10287_v63, %v3899_v62  ;;  %v6034_v62 = vld [vmem:[%s11620_s0 + $0x620] sm:$0xff] }
 0x3e3   :  { %v4393_v28 = vmax.f32 %v4343_v13, %v4368_v57  ;;  %v4942_v44 = vadd.f32 %v4917_v52, %v4890_v58  ;;  %v4004_v30 = vmul.f32 %v6029_v8, %v10295_v11  ;;  %v4812_v10 = vmul.f32 %v6024_v31, %v10396_v14  ;;  %v6030_v52 = vld [vmem:[%s11620_s0 + $0x300] sm:$0xff]  ;;  %v6031_v31 = vld [vmem:[%s11620_s0 + $0x3c8] sm:$0xff]  ;;  %v6033_v58 = vld [vmem:[%s11620_s0 + $0x558] sm:$0xff] }
 0x3e4   :  { %v4238_v47 = vadd.f32 %v4213_v61, %v4186_v54  ;;  %v4681_v15 = vadd.f32 %v4656_v43, %v4629_v60  ;;  %v4864_v55 = vmul.f32 %v6025_v4, %v10399_v53  ;;  %v4916_v37 = vmul.f32 %v6026_v23, %v10403_v36  ;;  %v6032_v4 = vld [vmem:[%s11620_s0 + $0x490] sm:$0xff] }
 0x3e5   :  { %4452 = vmatpush2.msra.mxu0 %v4393_v28  ;;  %v4967_v9 = vmul.f32 0.2, %v4942_v44  ;;  %v3977_v1 = vadd.f32 %v3952_v32, %v3925_v50  ;;  %v4056_v41 = vmul.f32 %v6030_v52, %v10312_v59  ;;  %v4498_v6 = vmul.f32 %v6027_v38, %v10359_v29  ;;  %v6036_v50 = vld [vmem:[%s11620_s0 + $0xa0] sm:$0xff] }
 0x3e6   :  { %4453 = vmatprep.subr.mxu0 %v6135_v0  ;;  %v4290_v35 = vadd.f32 %v4265_v27, %v4238_v47  ;;  %v4733_v24 = vadd.f32 %v4708_v18, %v4681_v15  ;;  %v4551_v42 = vmul.f32 %v6028_v48, %v10368_v22  ;;  %v4108_v61 = vmul.f32 %v6031_v31, %v10315_v39 }
 0x3e7   :  { %v4992_v13 = vmax.f32 %v4942_v44, %v4967_v9  ;;  %v4029_v3 = vadd.f32 %v4004_v30, %v3977_v1  ;;  %v4160_v51 = vmul.f32 %v6032_v4, %v10327_v21  ;;  %v4524_v5 = vadd.f32 %v10362_v2, %v4498_v6  ;;  %v6037_v30 = vld [vmem:[%s11620_s0 + $0x168] sm:$0xff]  ;;  %v6038_v6 = vld [vmem:[%s11620_s0 + $0x230] sm:$0xff] }
 0x3e8   :  { %v4342_v27 = vadd.f32 %v4317_v40, %v4290_v35  ;;  %v4785_v23 = vadd.f32 %v4760_v17, %v4733_v24  ;;  %v4603_v43 = vmul.f32 %v6029_v8, %v10372_v25  ;;  %v4212_v38 = vmul.f32 %v6033_v58, %v10330_v19  ;;  %v6035_v40 = vld [vmem:[%s11620_s0 + $0x6e8] sm:$0xff] }
 0x3e9   :  { %5051 = vmatpush2.msra.mxu1 %v4992_v13  ;;  %v4081_v57 = vadd.f32 %v4056_v41, %v4029_v3  ;;  %v4264_v48 = vmul.f32 %v6034_v62, %v10353_v34  ;;  %v4316_v32 = vmul.f32 %v6035_v40, %v10356_v7  ;;  %v4576_v18 = vadd.f32 %v4551_v42, %v4524_v5 }
 0x3ea   :  { %5052 = vmatprep.subr.mxu1 %v6135_v0  ;;  %v4367_v54 = vmul.f32 0.2, %v4342_v27  ;;  %v4837_v60 = vadd.f32 %v4812_v10, %v4785_v23  ;;  %v4655_v17 = vmul.f32 %v6030_v52, %v10375_v16  ;;  %v4707_v44 = vmul.f32 %v6031_v31, %v10385_v33 }
 0x3eb   :  { %v4133_v28 = vadd.f32 %v4108_v61, %v4081_v57  ;;  %v3898_v8 = vmul.f32 %v6036_v50, %v10277_v45  ;;  %v3951_v47 = vmul.f32 %v6037_v30, %v10292_v26  ;;  %v11353_v15 = vpop.f32.mrf.mxu0  ;;  %v4628_v1 = vadd.f32 %v4603_v43, %v4576_v18 }
 0x3ec   :  { %v4392_v10 = vmax.f32 %v4342_v27, %v4367_v54  ;;  %v4889_v9 = vadd.f32 %v4864_v55, %v4837_v60  ;;  %v4759_v52 = vmul.f32 %v6032_v4, %v10393_v56  ;;  %v4811_v35 = vmul.f32 %v6033_v58, %v10396_v14  ;;  %v6039_v27 = vld [vmem:[%s11620_s0 + $0x2f8] sm:$0xff] }
 0x3ed   :  { %v4185_v41 = vadd.f32 %v4160_v51, %v4133_v28  ;;  %v3924_v24 = vadd.f32 %v10287_v63, %v3898_v8  ;;  %v4003_v42 = vmul.f32 %v6038_v6, %v10295_v11  ;;  %v3273_v13 = vpop.f32.mrf.mxu0  ;;  %v4680_v31 = vadd.f32 %v4655_v17, %v4628_v1  ;;  %v6042_v8 = vld [vmem:[%s11620_s0 + $0x550] sm:$0xff] }
 0x3ee   :  { %4454 = vmatpush2.msra.mxu0 %v4392_v10  ;;  %v4941_v3 = vadd.f32 %v4916_v37, %v4889_v9  ;;  %v4863_v55 = vmul.f32 %v6034_v62, %v10399_v53  ;;  %v4915_v61 = vmul.f32 %v6035_v40, %v10403_v36  ;;  %v4055_v23 = vmul.f32 %v6039_v27, %v10312_v59  ;;  %v6040_v37 = vld [vmem:[%s11620_s0 + $0x3c0] sm:$0xff] }
 0x3ef   :  { %4455 = vmatprep.subr.mxu0 %v6135_v0  ;;  %v4237_v4 = vadd.f32 %v4212_v38, %v4185_v41  ;;  %v3976_v51 = vadd.f32 %v3951_v47, %v3924_v24  ;;  %v4497_v5 = vmul.f32 %v6036_v50, %v10359_v29  ;;  %v4732_v57 = vadd.f32 %v4707_v44, %v4680_v31  ;;  %v6041_v44 = vld [vmem:[%s11620_s0 + $0x488] sm:$0xff]  ;;  %v6043_v41 = vld [vmem:[%s11620_s0 + $0x618] sm:$0xff] }
 0x3f0   :  { %v4966_v43 = vmul.f32 0.2, %v4941_v3  ;;  %v4107_v58 = vmul.f32 %v6040_v37, %v10315_v39  ;;  %v4550_v62 = vmul.f32 %v6037_v30, %v10368_v22  ;;  %v4602_v60 = vmul.f32 %v6038_v6, %v10372_v25 }
 0x3f1   :  { %v4289_v38 = vadd.f32 %v4264_v48, %v4237_v4  ;;  %v4028_v40 = vadd.f32 %v4003_v42, %v3976_v51  ;;  %v4523_v54 = vadd.f32 %v10362_v2, %v4497_v5  ;;  %v4784_v28 = vadd.f32 %v4759_v52, %v4732_v57  ;;  %v6044_v42 = vld [vmem:[%s11620_s0 + $0x98] sm:$0xff] }
 0x3f2   :  { %v11377_v18 = vpop.f32.mrf.mxu1  ;;  %v4991_v17 = vmax.f32 %v4941_v3, %v4966_v43  ;;  %v4159_v50 = vmul.f32 %v6041_v44, %v10327_v21  ;;  %v4211_v48 = vmul.f32 %v6042_v8, %v10330_v19  ;;  %v4654_v9 = vmul.f32 %v6039_v27, %v10375_v16  ;;  %v6046_v27 = vld [vmem:[%s11620_s0 + $0x6e0] sm:$0xff]  ;;  %v6047_v43 = vld [vmem:[%s11620_s0 + $0x228] sm:$0xff] }
 0x3f3   :  { %v4341_v30 = vadd.f32 %v4316_v32, %v4289_v38  ;;  %v4080_v47 = vadd.f32 %v4055_v23, %v4028_v40  ;;  %v4575_v10 = vadd.f32 %v4550_v62, %v4523_v54  ;;  %v4836_v52 = vadd.f32 %v4811_v35, %v4784_v28  ;;  %v6045_v35 = vld [vmem:[%s11620_s0 + $0x160] sm:$0xff] }
 0x3f4   :  { %v3872_v1 = vpop.f32.mrf.mxu1  ;;  %5053 = vmatpush2.msra.mxu1 %v4991_v17  ;;  %v4263_v24 = vmul.f32 %v6043_v41, %v10353_v34  ;;  %v4706_v6 = vmul.f32 %v6040_v37, %v10385_v33  ;;  %v3897_v32 = vmul.f32 %v6044_v42, %v10277_v45  ;;  %v3950_v4 = vmul.f32 %v6045_v35, %v10292_v26 }
 0x3f5   :  { %5054 = vmatprep.subr.mxu1 %v6135_v0  ;;  %v4366_v13 = vmul.f32 0.2, %v4341_v30  ;;  %v4132_v3 = vadd.f32 %v4107_v58, %v4080_v47  ;;  %v4627_v31 = vadd.f32 %v4602_v60, %v4575_v10  ;;  %v4888_v51 = vadd.f32 %v4863_v55, %v4836_v52  ;;  %v6048_v60 = vld [vmem:[%s11620_s0 + $0x2f0] sm:$0xff] }
 0x3f6   :  { %v4315_v23 = vmul.f32 %v6046_v27, %v10356_v7  ;;  %v3923_v5 = vadd.f32 %v10287_v63, %v3897_v32  ;;  %v4002_v57 = vmul.f32 %v6047_v43, %v10295_v11  ;;  %v4758_v38 = vmul.f32 %v6041_v44, %v10393_v56 }
 0x3f7   :  { %v4391_v37 = vmax.f32 %v4341_v30, %v4366_v13  ;;  %v4184_v58 = vadd.f32 %v4159_v50, %v4132_v3  ;;  %v4679_v62 = vadd.f32 %v4654_v9, %v4627_v31  ;;  %v4940_v55 = vadd.f32 %v4915_v61, %v4888_v51  ;;  %v6049_v50 = vld [vmem:[%s11620_s0 + $0x3b8] sm:$0xff]  ;;  %v6052_v51 = vld [vmem:[%s11620_s0 + $0x610] sm:$0xff] }
 0x3f8   :  { %v4810_v40 = vmul.f32 %v6042_v8, %v10396_v14  ;;  %v3975_v54 = vadd.f32 %v3950_v4, %v3923_v5  ;;  %v4054_v17 = vmul.f32 %v6048_v60, %v10312_v59  ;;  %v4862_v10 = vmul.f32 %v6043_v41, %v10399_v53  ;;  %v6050_v41 = vld [vmem:[%s11620_s0 + $0x480] sm:$0xff] }
 0x3f9   :  { %4456 = vmatpush2.msra.mxu0 %v4391_v37  ;;  %v4236_v28 = vadd.f32 %v4211_v48, %v4184_v58  ;;  %v4731_v47 = vadd.f32 %v4706_v6, %v4679_v62  ;;  %v4106_v61 = vmul.f32 %v6049_v50, %v10315_v39  ;;  %v4965_v44 = vmul.f32 0.2, %v4940_v55 }
 0x3fa   :  { %4457 = vmatprep.subr.mxu0 %v6135_v0  ;;  %v4027_v8 = vadd.f32 %v4002_v57, %v3975_v54  ;;  %v4496_v30 = vmul.f32 %v6044_v42, %v10359_v29  ;;  %v4549_v9 = vmul.f32 %v6045_v35, %v10368_v22  ;;  %v4914_v48 = vmul.f32 %v6046_v27, %v10403_v36 }
 0x3fb   :  { %v4288_v1 = vadd.f32 %v4263_v24, %v4236_v28  ;;  %v4783_v52 = vadd.f32 %v4758_v38, %v4731_v47  ;;  %v4158_v6 = vmul.f32 %v6050_v41, %v10327_v21  ;;  %v4990_v32 = vmax.f32 %v4940_v55, %v4965_v44  ;;  %v6051_v24 = vld [vmem:[%s11620_s0 + $0x548] sm:$0xff]  ;;  %v6054_v38 = vld [vmem:[%s11620_s0 + $0x90] sm:$0xff] }
 0x3fc   :  { %v4079_v13 = vadd.f32 %v4054_v17, %v4027_v8  ;;  %v4522_v3 = vadd.f32 %v10362_v2, %v4496_v30  ;;  %v4601_v31 = vmul.f32 %v6047_v43, %v10372_v25  ;;  %v4210_v35 = vmul.f32 %v6051_v24, %v10330_v19  ;;  %v6053_v43 = vld [vmem:[%s11620_s0 + $0x6d8] sm:$0xff]  ;;  %v6056_v8 = vld [vmem:[%s11620_s0 + $0x220] sm:$0xff] }
 0x3fd   :  { %v4340_v4 = vadd.f32 %v4315_v23, %v4288_v1  ;;  %v4835_v42 = vadd.f32 %v4810_v40, %v4783_v52  ;;  %v4262_v27 = vmul.f32 %v6052_v51, %v10353_v34  ;;  %5055 = vmatpush2.msra.mxu1 %v4990_v32  ;;  %v4314_v23 = vmul.f32 %v6053_v43, %v10356_v7  ;;  %v6055_v40 = vld [vmem:[%s11620_s0 + $0x158] sm:$0xff] }
 0x3fe   :  { %v4131_v5 = vadd.f32 %v4106_v61, %v4079_v13  ;;  %v4574_v57 = vadd.f32 %v4549_v9, %v4522_v3  ;;  %v4653_v37 = vmul.f32 %v6048_v60, %v10375_v16  ;;  %5056 = vmatprep.subr.mxu1 %v6135_v0  ;;  %v3896_v55 = vmul.f32 %v6054_v38, %v10277_v45 }
 0x3ff   :  { %v4365_v58 = vmul.f32 0.2, %v4340_v4  ;;  %v4887_v62 = vadd.f32 %v4862_v10, %v4835_v42  ;;  %v3949_v54 = vmul.f32 %v6055_v40, %v10292_v26  ;;  %v4705_v60 = vmul.f32 %v6049_v50, %v10385_v33 }
 0x400   :  { %v4183_v17 = vadd.f32 %v4158_v6, %v4131_v5  ;;  %v4626_v28 = vadd.f32 %v4601_v31, %v4574_v57  ;;  %v4757_v47 = vmul.f32 %v6050_v41, %v10393_v56  ;;  %v3922_v44 = vadd.f32 %v10287_v63, %v3896_v55  ;;  %v6060_v55 = vld [vmem:[%s11620_s0 + $0x540] sm:$0xff] }
 0x401   :  { %v4390_v61 = vmax.f32 %v4340_v4, %v4365_v58  ;;  %v4939_v10 = vadd.f32 %v4914_v48, %v4887_v62  ;;  %v4001_v30 = vmul.f32 %v6056_v8, %v10295_v11  ;;  %v4809_v52 = vmul.f32 %v6051_v24, %v10396_v14  ;;  %v6057_v48 = vld [vmem:[%s11620_s0 + $0x2e8] sm:$0xff] }
 0x402   :  { %v4235_v9 = vadd.f32 %v4210_v35, %v4183_v17  ;;  %v4678_v1 = vadd.f32 %v4653_v37, %v4626_v28  ;;  %v4861_v6 = vmul.f32 %v6052_v51, %v10399_v53  ;;  %v4913_v41 = vmul.f32 %v6053_v43, %v10403_v36  ;;  %v6058_v51 = vld [vmem:[%s11620_s0 + $0x3b0] sm:$0xff]  ;;  %v6059_v43 = vld [vmem:[%s11620_s0 + $0x478] sm:$0xff] }
 0x403   :  { %4458 = vmatpush2.msra.mxu0 %v4390_v61  ;;  %v4964_v50 = vmul.f32 0.2, %v4939_v10  ;;  %v3974_v32 = vadd.f32 %v3949_v54, %v3922_v44  ;;  %v4053_v13 = vmul.f32 %v6057_v48, %v10312_v59  ;;  %v4495_v4 = vmul.f32 %v6054_v38, %v10359_v29  ;;  %v6061_v54 = vld [vmem:[%s11620_s0 + $0x608] sm:$0xff] }
 0x404   :  { %4459 = vmatprep.subr.mxu0 %v6135_v0  ;;  %v4287_v3 = vadd.f32 %v4262_v27, %v4235_v9  ;;  %v4730_v31 = vadd.f32 %v4705_v60, %v4678_v1  ;;  %v4548_v42 = vmul.f32 %v6055_v40, %v10368_v22  ;;  %v4105_v5 = vmul.f32 %v6058_v51, %v10315_v39  ;;  %v6064_v1 = vld [vmem:[%s11620_s0 + $0x150] sm:$0xff] }
 0x405   :  { %v4989_v24 = vmax.f32 %v4939_v10, %v4964_v50  ;;  %v4026_v35 = vadd.f32 %v4001_v30, %v3974_v32  ;;  %v4157_v57 = vmul.f32 %v6059_v43, %v10327_v21  ;;  %v4521_v58 = vadd.f32 %v10362_v2, %v4495_v4  ;;  %v6063_v30 = vld [vmem:[%s11620_s0 + $0x88] sm:$0xff] }
 0x406   :  { %v4339_v27 = vadd.f32 %v4314_v23, %v4287_v3  ;;  %v4782_v37 = vadd.f32 %v4757_v47, %v4730_v31  ;;  %v4600_v62 = vmul.f32 %v6056_v8, %v10372_v25  ;;  %v4209_v40 = vmul.f32 %v6060_v55, %v10330_v19  ;;  %v6062_v23 = vld [vmem:[%s11620_s0 + $0x6d0] sm:$0xff] }
 0x407   :  { %5057 = vmatpush2.msra.mxu1 %v4989_v24  ;;  %v4078_v38 = vadd.f32 %v4053_v13, %v4026_v35  ;;  %v4261_v17 = vmul.f32 %v6061_v54, %v10353_v34  ;;  %v4313_v28 = vmul.f32 %v6062_v23, %v10356_v7  ;;  %v4573_v61 = vadd.f32 %v4548_v42, %v4521_v58  ;;  %v6065_v42 = vld [vmem:[%s11620_s0 + $0x218] sm:$0xff] }
 0x408   :  { %5058 = vmatprep.subr.mxu1 %v6135_v0  ;;  %v4364_v60 = vmul.f32 0.2, %v4339_v27  ;;  %v4834_v47 = vadd.f32 %v4809_v52, %v4782_v37  ;;  %v4652_v10 = vmul.f32 %v6057_v48, %v10375_v16  ;;  %v4704_v8 = vmul.f32 %v6058_v51, %v10385_v33 }
 0x409   :  { %v4130_v44 = vadd.f32 %v4105_v5, %v4078_v38  ;;  %v3895_v9 = vmul.f32 %v6063_v30, %v10277_v45  ;;  %v3948_v50 = vmul.f32 %v6064_v1, %v10292_v26  ;;  %v4625_v13 = vadd.f32 %v4600_v62, %v4573_v61 }
 0x40a   :  { %v4389_v32 = vmax.f32 %v4339_v27, %v4364_v60  ;;  %v4886_v52 = vadd.f32 %v4861_v6, %v4834_v47  ;;  %v4756_v48 = vmul.f32 %v6059_v43, %v10393_v56  ;;  %v4808_v31 = vmul.f32 %v6060_v55, %v10396_v14  ;;  %v6066_v27 = vld [vmem:[%s11620_s0 + $0x2e0] sm:$0xff] }
 0x40b   :  { %v4182_v3 = vadd.f32 %v4157_v57, %v4130_v44  ;;  %v3921_v4 = vadd.f32 %v10287_v63, %v3895_v9  ;;  %v4000_v24 = vmul.f32 %v6065_v42, %v10295_v11  ;;  %v4677_v51 = vadd.f32 %v4652_v10, %v4625_v13  ;;  %v6068_v44 = vld [vmem:[%s11620_s0 + $0x470] sm:$0xff]  ;;  %v6070_v13 = vld [vmem:[%s11620_s0 + $0x600] sm:$0xff] }
 0x40c   :  { %4460 = vmatpush2.msra.mxu0 %v4389_v32  ;;  %v4938_v35 = vadd.f32 %v4913_v41, %v4886_v52  ;;  %v4860_v5 = vmul.f32 %v6061_v54, %v10399_v53  ;;  %v4912_v6 = vmul.f32 %v6062_v23, %v10403_v36  ;;  %v4052_v37 = vmul.f32 %v6066_v27, %v10312_v59  ;;  %v6067_v41 = vld [vmem:[%s11620_s0 + $0x3a8] sm:$0xff] }
 0x40d   :  { %4461 = vmatprep.subr.mxu0 %v6135_v0  ;;  %v4234_v43 = vadd.f32 %v4209_v40, %v4182_v3  ;;  %v3973_v57 = vadd.f32 %v3948_v50, %v3921_v4  ;;  %v4494_v58 = vmul.f32 %v6063_v30, %v10359_v29  ;;  %v4729_v38 = vadd.f32 %v4704_v8, %v4677_v51  ;;  %v6069_v30 = vld [vmem:[%s11620_s0 + $0x538] sm:$0xff]  ;;  %v6071_v4 = vld [vmem:[%s11620_s0 + $0x80] sm:$0xff] }
 0x40e   :  { %v4963_v62 = vmul.f32 0.2, %v4938_v35  ;;  %v4104_v55 = vmul.f32 %v6067_v41, %v10315_v39  ;;  %v4547_v54 = vmul.f32 %v6064_v1, %v10368_v22  ;;  %v4599_v47 = vmul.f32 %v6065_v42, %v10372_v25 }
 0x40f   :  { %v4286_v40 = vadd.f32 %v4261_v17, %v4234_v43  ;;  %v4025_v23 = vadd.f32 %v4000_v24, %v3973_v57  ;;  %v4520_v60 = vadd.f32 %v10362_v2, %v4494_v58  ;;  %v4781_v10 = vadd.f32 %v4756_v48, %v4729_v38  ;;  %v6073_v57 = vld [vmem:[%s11620_s0 + $0x6c8] sm:$0xff] }
 0x410   :  { %v4988_v61 = vmax.f32 %v4938_v35, %v4963_v62  ;;  %v4156_v8 = vmul.f32 %v6068_v44, %v10327_v21  ;;  %v4208_v9 = vmul.f32 %v6069_v30, %v10330_v19  ;;  %v4651_v32 = vmul.f32 %v6066_v27, %v10375_v16 }
 0x411   :  { %v4338_v17 = vadd.f32 %v4313_v28, %v4286_v40  ;;  %v4077_v1 = vadd.f32 %v4052_v37, %v4025_v23  ;;  %v4572_v50 = vadd.f32 %v4547_v54, %v4520_v60  ;;  %v4833_v52 = vadd.f32 %v4808_v31, %v4781_v10  ;;  %v6072_v31 = vld [vmem:[%s11620_s0 + $0x148] sm:$0xff]  ;;  %v6074_v37 = vld [vmem:[%s11620_s0 + $0x210] sm:$0xff]  ;;  %v6075_v40 = vld [vmem:[%s11620_s0 + $0x2d8] sm:$0xff] }
 0x412   :  { %5059 = vmatpush2.msra.mxu1 %v4988_v61  ;;  %v4260_v48 = vmul.f32 %v6070_v13, %v10353_v34  ;;  %v4703_v3 = vmul.f32 %v6067_v41, %v10385_v33  ;;  %v3894_v28 = vmul.f32 %v6071_v4, %v10277_v45  ;;  %v3947_v51 = vmul.f32 %v6072_v31, %v10292_v26 }
 0x413   :  { %5060 = vmatprep.subr.mxu1 %v6135_v0  ;;  %v4363_v42 = vmul.f32 0.2, %v4338_v17  ;;  %v4129_v24 = vadd.f32 %v4104_v55, %v4077_v1  ;;  %v4624_v35 = vadd.f32 %v4599_v47, %v4572_v50  ;;  %v4885_v43 = vadd.f32 %v4860_v5, %v4833_v52  ;;  %v6076_v47 = vld [vmem:[%s11620_s0 + $0x3a0] sm:$0xff] }
 0x414   :  { %v4312_v27 = vmul.f32 %v6073_v57, %v10356_v7  ;;  %v3920_v45 = vadd.f32 %v10287_v63, %v3894_v28  ;;  %v3999_v58 = vmul.f32 %v6074_v37, %v10295_v11  ;;  %v4755_v26 = vmul.f32 %v6068_v44, %v10393_v56  ;;  %v6077_v44 = vld [vmem:[%s11623_s3 + $0x8] sm:$0xff] }
 0x415   :  { %v4388_v62 = vmax.f32 %v4338_v17, %v4363_v42  ;;  %v4181_v38 = vadd.f32 %v4156_v8, %v4129_v24  ;;  %v4676_v41 = vadd.f32 %v4651_v32, %v4624_v35  ;;  %v4937_v5 = vadd.f32 %v4912_v6, %v4885_v43  ;;  %v6078_v17 = vld [vmem:[%s11620_s0 + $0x468] sm:$0xff] }
 0x416   :  { %v4807_v55 = vmul.f32 %v6069_v30, %v10396_v14  ;;  %v3972_v54 = vadd.f32 %v3947_v51, %v3920_v45  ;;  %v4051_v63 = vmul.f32 %v6075_v40, %v10312_v59  ;;  %v4859_v11 = vmul.f32 %v6070_v13, %v10399_v53 }
 0x417   :  { %4462 = vmatpush2.msra.mxu0 %v4388_v62  ;;  %v4233_v23 = vadd.f32 %v4208_v9, %v4181_v38  ;;  %v4728_v60 = vadd.f32 %v4703_v3, %v4676_v41  ;;  %v4103_v6 = vmul.f32 %v6076_v47, %v10315_v39  ;;  %v4962_v61 = vmul.f32 0.2, %v4937_v5 }
 0x418   :  { %4463 = vmatprep.subr.mxu0 %v6135_v0  ;;  %v4024_v10 = vadd.f32 %v3999_v58, %v3972_v54  ;;  %v4396_v59 = vrot.slane %v6077_v44, 6  ;;  %v4493_v8 = vmul.f32 %v6071_v4, %v10359_v29  ;;  %v4155_v1 = vmul.f32 %v6078_v17, %v10327_v21  ;;  %v6079_v21 = vld [vmem:[%s11620_s0 + $0x530] sm:$0xff] }
 0x419   :  { %v4285_v30 = vadd.f32 %v4260_v48, %v4233_v23  ;;  %v4780_v9 = vadd.f32 %v4755_v26, %v4728_v60  ;;  %v4546_v39 = vmul.f32 %v6072_v31, %v10368_v22  ;;  %v4987_v50 = vmax.f32 %v4937_v5, %v4962_v61  ;;  %v6080_v31 = vld [vmem:[%s11620_s0 + $0x5f8] sm:$0xff] }
 0x41a   :  { %v4076_v32 = vadd.f32 %v4051_v63, %v4024_v10  ;;  %5381 = vmatprep.mubr.msk.f32.mxu0 %vm1327_vm1, %v4396_v59  ;;  %v4519_v52 = vadd.f32 %v10362_v2, %v4493_v8  ;;  %v4598_v13 = vmul.f32 %v6074_v37, %v10372_v25  ;;  %v4911_v48 = vmul.f32 %v6073_v57, %v10403_v36  ;;  %v6081_v37 = vld [vmem:[%s11620_s0 + $0x6c0] sm:$0xff] }
 0x41b   :  { %v4337_v3 = vadd.f32 %v4312_v27, %v4285_v30  ;;  %v4832_v29 = vadd.f32 %v4807_v55, %v4780_v9  ;;  %5061 = vmatpush2.msra.mxu1 %v4987_v50  ;;  %v4207_v22 = vmul.f32 %v6079_v21, %v10330_v19  ;;  %v4650_v42 = vmul.f32 %v6075_v40, %v10375_v16 }
 0x41c   :  { %v4128_v4 = vadd.f32 %v4103_v6, %v4076_v32  ;;  %v4571_v28 = vadd.f32 %v4546_v39, %v4519_v52  ;;  %5062 = vmatprep.subr.mxu1 %v6135_v0  ;;  %v4995_v25 = vrot.slane %v6077_v44, 7  ;;  %v4259_v51 = vmul.f32 %v6080_v31, %v10353_v34 }
 0x41d   :  { %v4362_v2 = vmul.f32 0.2, %v4337_v3  ;;  %v4884_v24 = vadd.f32 %v4859_v11, %v4832_v29  ;;  %v4702_v57 = vmul.f32 %v6076_v47, %v10385_v33  ;;  %v1476_v16 = vadd.f32 %v11058_v20, %v11056_v46 }
 0x41e   :  { %v4180_v35 = vadd.f32 %v4155_v1, %v4128_v4  ;;  %v4623_v43 = vadd.f32 %v4598_v13, %v4571_v28  ;;  %5393 = vmatprep.mubr.msk.f32.mxu1 %vm1327_vm1, %v4995_v25  ;;  %v4311_v58 = vmul.f32 %v6081_v37, %v10356_v7  ;;  %v4754_v34 = vmul.f32 %v6078_v17, %v10393_v56 }
 0x41f   :  { %v4387_v27 = vmax.f32 %v4337_v3, %v4362_v2  ;;  %v4936_v19 = vadd.f32 %v4911_v48, %v4884_v24  ;;  %v2077_v33 = vadd.f32 %v11075_v12, %v1476_v16  ;;  %v4806_v46 = vmul.f32 %v6079_v21, %v10396_v14  ;;  %v6082_v14 = vld [vmem:[%s11623_s3] sm:$0xff]  ;;  %s6136_s3 = smov [#allocation8]  }
 0x420   :  { %v4232_v45 = vadd.f32 %v4207_v22, %v4180_v35  ;;  %v4675_v62 = vadd.f32 %v4650_v42, %v4623_v43  ;;  %v4858_v7 = vmul.f32 %v6080_v31, %v10399_v53  ;;  %v4910_v63 = vmul.f32 %v6081_v37, %v10403_v36  ;;  %s5090_s27 = sshll.u32 %s6136_s3, 4  ;;  %s5091_s27 = int_to_ptr.vmem [resolvable:$true] %s5090_s27 }
 0x421   :  { %4464 = vmatpush2.msra.mxu0 %v4387_v27  ;;  %v4961_v38 = vmul.f32 0.2, %v4936_v19  ;;  %v2676_v5 = vadd.f32 %v11077_v49, %v2077_v33  ;;  %v4395_v23 = vrot.slane %v6082_v14, 6  ;;  %v5074_v44 = vstv %s11624_s4  ;;  %s6107_s13 = scalar_lea.vmem %s5091_s27, 16  ;;  %s6111_s19 = scalar_lea.vmem %s5091_s27, 32 }
 0x422   :  { %4465 = vmatprep.subr.mxu0 %v6135_v0  ;;  %v4284_v41 = vadd.f32 %v4259_v51, %v4232_v45  ;;  %v4727_v26 = vadd.f32 %v4702_v57, %v4675_v62  ;;  %p6108_p10 = scmp.ne.s32.totalorder %s5091_s27, %s6107_s13  ;;  %p6112_p11 = scmp.lt.s32.totalorder %s5091_s27, %s5091_s27 }
 0x423   :  { %v4986_v20 = vmax.f32 %v4936_v19, %v4961_v38  ;;  %v3275_v56 = vadd.f32 %v11353_v15, %v2676_v5  ;;  %v4994_v15 = vrot.slane %v6082_v14, 7  ;;  %p6113_p12 = scmp.lt.s32.totalorder %s6111_s19, %s6107_s13 }
 0x424   :  { %v4336_v55 = vadd.f32 %v4311_v58, %v4284_v41  ;;  %v4779_v54 = vadd.f32 %v4754_v34, %v4727_v26 }
 0x425   :  { %5063 = vmatpush2.msra.mxu1 %v4986_v20  ;;  %v3874_v49 = vadd.f32 %v11377_v18, %v3275_v56  ;;  %p6114_p13 = por %p6113_p12, %p6112_p11 }
 0x426   :  { %5064 = vmatprep.subr.mxu1 %v6135_v0  ;;  %v4361_v40 = vmul.f32 0.2, %v4336_v55  ;;  %v4831_v12 = vadd.f32 %v4806_v46, %v4779_v54 }
 0x427   :  { %p6115_p0 = pnand %p6114_p13, %p6108_p10 }
 0x428   :  { %v4386_v60 = vmax.f32 %v4336_v55, %v4361_v40  ;;  %v4883_v11 = vadd.f32 %v4858_v7, %v4831_v12 }
 0x42a   :  { %4466 = vmatpush2.msra.mxu0 %v4386_v60  ;;  %v4935_v53 = vadd.f32 %v4910_v63, %v4883_v11 }
 0x42b   :  { %4468 = vmatmul.mubr.f32.vlgmr.msra.gmra.mxu0 %v4395_v23 }
 0x42c   :  { %v4960_v47 = vmul.f32 0.2, %v4935_v53 }
 0x42e   :  { %v4985_v6 = vmax.f32 %v4935_v53, %v4960_v47 }
 0x430   :  { %5065 = vmatpush2.msra.mxu1 %v4985_v6 }
 0x431   :  { %5067 = vmatmul.mubr.f32.vlgmr.msra.gmra.mxu1 %v4994_v15 }
 0x4eb   :  { %v4469_v0 = vpop.f32.mrf.mxu0 }
 0x4ec   :  { %v4473_v36 = vadd.f32 %v4469_v0, %v3874_v49 }
 0x4ed   :  { %v4471_v61 = vpop.f32.mrf.mxu0 }
 0x4f1   :  { %v5068_v10 = vpop.f32.mrf.mxu1 }
 0x4f2   :  { %v5072_v59 = vadd.f32 %v5068_v10, %v4473_v36 }
 0x4f3   :  { %v5070_v18 = vpop.f32.mrf.mxu1 }
 0x4f4   :  { %v5075_v8 = vadd.f32 %v5074_v44, %v5072_v59 }
 0x4f6   :  { %v5076_v30 = vsub.f32 0.0, %v5075_v8 }
 0x4f8   :  { %v5077_v9 = vmul.f32 1.442695, %v5076_v30 }
 0x4fa   :  { %5398 = vpow2.f32 %v5077_v9 }
 0x507   :  { %v5399_v17 = vpop.eup %5398 }
 0x508   :  { %v5079_v1 = vadd.f32 1.0, %v5399_v17 }
 0x50a   :  { %5400 = vrcp.f32 %v5079_v1 }
 0x517   :  { %v5401_v39 = vpop.eup %5400 }
 0x518   :  { %5083 = vst.msk [vmem:[#allocation8] sm:$0x1] %vm5082_vm2, %v5401_v39 }
 0x519   :  { %6118 = shalt.err (!%p6115_p0)
}
 0x51a   :  { %5093 = dma.vmem_to_hbm [thread:$0]  %s5091_s27, 16, %s11625_s5, [#allocation4]  }
 0x51b   :  { %6131 = dma.done.wait [#allocation4], 16  }
 0x51c   :  { %6132 = vsyncadd [#allocation4], 4294967280 }
 0x51d   :  { %5097 = vsyncpa [#allocation4], 1 }
 0x51e   :  { %5098 = vsyncpa [#allocation5], 1 }
 0x51f   :  { %5099 = vsyncpa [#allocation7], 1 }

</bundles_post_ra>
